<compile_context>
chip_gen: v7x
topology: tpu7x:2x2x1
jax: 0.10.0
libtpu: 0.0.40
codegen_flags: <defaults>
</compile_context>

<pallas_src>
import jax
import jax.numpy as jnp
from jax import lax
from jax.experimental import pallas as pl
from jax.experimental.pallas import tpu as pltpu

EPS = 1e-5          # nn.BatchNorm2d default eps
LANE = 128          # TPU lane width; channels are padded to a multiple of this


def _vmem_limit_bytes():
    """~75% of physical VMEM; conservative 48 MiB fallback (safe on v7x's 64 MiB)."""
    try:
        cap = int(pltpu.get_tpu_info().vmem_capacity_bytes)
    except Exception:
        cap = 64 * 1024 * 1024
    return max(min(cap * 3 // 4, 110 * 1024 * 1024), 32 * 1024 * 1024)


VMEM_LIMIT = _vmem_limit_bytes()
# Bigger elementwise row tiles when VMEM allows (tile scaling ~= HBM roofline).
ROW_TILE_CAP = 8192 if VMEM_LIMIT >= 80 * 1024 * 1024 else 2048


def _round_up(x, m):
    return (x + m - 1) // m * m


def _pick_row_tile(m, cap):
    """Largest power-of-two row tile <= cap that divides m with >= 2 grid steps."""
    t = cap
    while t >= 8:
        if m % t == 0 and m // t >= 2:
            return t
        t //= 2
    return m


# -----------------------------------------------------------------------------
# Pass A: 3x3 conv (optionally with BN+ReLU fused on the input) + partial BN stats.
#         One image per grid step; grid axis is "parallel" (no resident accumulator).
# -----------------------------------------------------------------------------
def _make_conv_kernel(H, W, cp, fuse_bn):
    HW = H * W

    def conv_and_stats(act_hwc_bf16, w_ref, y_ref, sum_ref, ssq_ref, pad_ref):
        # Build the 1-px zero halo in VMEM (no host-side spatial pad / HBM round trip).
        # Zero the whole scratch each step: cheap, and stays correct when the grid axis
        # is megacore-sharded (each core owns its own scratch).
        pad_ref[...] = jnp.zeros_like(pad_ref)
        pad_ref[pl.ds(1, H), pl.ds(1, W), :] = act_hwc_bf16
        xp = pad_ref[...]                                      # (H+2, W+2, cp) bf16
        # Per-tile im2col: stack the 9 taps along the contraction dim and issue ONE
        # deep-K (9*cp) MXU matmul instead of 9 K=cp matmuls + 8 f32 accumulate adds.
        patch = jnp.concatenate(
            [xp[dy:dy + H, dx:dx + W, :].reshape(HW, cp)
             for dy in range(3) for dx in range(3)], axis=-1)  # (HW, 9*cp) bf16
        acc = jnp.dot(patch, w_ref[...], preferred_element_type=jnp.float32)
        # bf16 writeback halves HBM traffic of the largest tensor; BN statistics are
        # still taken from the f32 accumulator.
        y_ref[...] = acc.reshape(H, W, cp).astype(y_ref.dtype)
        sum_ref[...] = jnp.sum(acc, axis=0, keepdims=True)
        ssq_ref[...] = jnp.sum(acc * acc, axis=0, keepdims=True)

    if fuse_bn:
        def kernel(x_ref, scale_ref, shift_ref, w_ref, y_ref, sum_ref, ssq_ref, pad_ref):
            # BN(prev layer) + ReLU fused into the conv input path.  The zero halo is
            # added AFTER the affine+ReLU, so 'SAME' padding semantics are preserved.
            x2 = x_ref[...].astype(jnp.float32).reshape(HW, cp)
            act = jnp.maximum(x2 * scale_ref[...] + shift_ref[...], 0.0)
            conv_and_stats(act.astype(jnp.bfloat16).reshape(H, W, cp),
                           w_ref, y_ref, sum_ref, ssq_ref, pad_ref)
    else:
        def kernel(x_ref, w_ref, y_ref, sum_ref, ssq_ref, pad_ref):
            conv_and_stats(x_ref[...], w_ref, y_ref, sum_ref, ssq_ref, pad_ref)

    return kernel


def _conv3x3_block(x_bhwc, w_stacked, scale=None, shift=None):
    """3x3 conv over (B,H,W,cp) bf16 with optional fused BN+ReLU on the input.

    Returns (y bf16 (B,H,W,cp), sum (1,cp) f32, sumsq (1,cp) f32).
    """
    # TODO(synk): for very large H*W, tile the image spatially (halo'd row blocks) so a
    # single tile + its im2col patch stays well under v7x's 64 MiB VMEM.
    B, H, W, cp = x_bhwc.shape
    HW = H * W
    fuse_bn = scale is not None

    img_spec = pl.BlockSpec((None, H, W, cp), lambda b: (b, 0, 0, 0))
    chan_spec = pl.BlockSpec((1, cp), lambda b: (0, 0))
    w_spec = pl.BlockSpec((9 * cp, cp), lambda b: (0, 0))        # weights VMEM-resident
    stat_spec = pl.BlockSpec((None, 1, cp), lambda b: (b, 0, 0))

    if fuse_bn:
        ins = (x_bhwc, scale, shift, w_stacked)
        in_specs = [img_spec, chan_spec, chan_spec, w_spec]
    else:
        ins = (x_bhwc, w_stacked)
        in_specs = [img_spec, w_spec]

    flops = 2 * B * HW * (9 * cp) * cp
    bytes_accessed = int(x_bhwc.size * 2 + B * HW * cp * 2 + w_stacked.size * 2
                         + 2 * B * cp * 4 + (2 * cp * 4 if fuse_bn else 0))

    y, ps, pss = pl.pallas_call(
        _make_conv_kernel(H, W, cp, fuse_bn),
        out_shape=(jax.ShapeDtypeStruct((B, H, W, cp), jnp.bfloat16),
                   jax.ShapeDtypeStruct((B, 1, cp), jnp.float32),
                   jax.ShapeDtypeStruct((B, 1, cp), jnp.float32)),
        grid=(B,),
        in_specs=in_specs,
        out_specs=(img_spec, stat_spec, stat_spec),
        scratch_shapes=[pltpu.VMEM((H + 2, W + 2, cp), jnp.bfloat16)],
        compiler_params=pltpu.CompilerParams(
            dimension_semantics=("parallel",),     # partial stats -> shardable grid axis
            vmem_limit_bytes=VMEM_LIMIT),
        cost_estimate=pl.CostEstimate(flops=flops, transcendentals=0,
                                      bytes_accessed=bytes_accessed),
    )(*ins)
    # Tiny cross-image stat reduction in plain JAX (keeps the Pallas grid "parallel").
    return y, jnp.sum(ps, axis=0), jnp.sum(pss, axis=0)


# -----------------------------------------------------------------------------
# Pass B: row-tiled elementwise BN2-apply + residual add + ReLU.
# -----------------------------------------------------------------------------
def _bn_add_relu_kernel(y_ref, scale_ref, shift_ref, r_ref, o_ref):
    o_ref[...] = jnp.maximum(
        y_ref[...].astype(jnp.float32) * scale_ref[...] + shift_ref[...]
        + r_ref[...].astype(jnp.float32), 0.0).astype(o_ref.dtype)


def _bn_add_relu(y2d, scale, shift, residual, out_dtype):
    M, cp = y2d.shape
    tm = _pick_row_tile(M, ROW_TILE_CAP)
    row_spec = pl.BlockSpec((tm, cp), lambda i: (i, 0))
    chan_spec = pl.BlockSpec((1, cp), lambda i: (0, 0))
    bytes_accessed = int(2 * M * cp * 2 + M * cp * 4 + 2 * cp * 4)
    return pl.pallas_call(
        _bn_add_relu_kernel,
        out_shape=jax.ShapeDtypeStruct((M, cp), out_dtype),
        grid=(M // tm,),
        in_specs=[row_spec, chan_spec, chan_spec, row_spec],
        out_specs=row_spec,
        compiler_params=pltpu.CompilerParams(
            dimension_semantics=("parallel",),
            vmem_limit_bytes=VMEM_LIMIT),
        cost_estimate=pl.CostEstimate(flops=4 * M * cp, transcendentals=0,
                                      bytes_accessed=bytes_accessed),
    )(y2d, scale, shift, residual)


# -----------------------------------------------------------------------------
# Host-side glue: layout, padding, weight reshuffle, BN stat folding.
# -----------------------------------------------------------------------------
def _prep_weight(w_oihw, cin_p, cout_p):
    """(Cout, Cin, 3, 3) torch layout -> stacked-K (9*cin_p, cout_p) bf16, tap-major."""
    cout, cin, kh, kw = w_oihw.shape
    w = jnp.transpose(w_oihw.astype(jnp.float32), (2, 3, 1, 0)).reshape(kh * kw, cin, cout)
    w = jnp.pad(w, ((0, 0), (0, cin_p - cin), (0, cout_p - cout)))
    return w.reshape(kh * kw * cin_p, cout_p).astype(jnp.bfloat16)


def _bn_scale_shift(s, ss, count, gamma, beta, cp):
    """Fold training-mode batch stats + gamma/beta into a per-channel affine (f32)."""
    # TODO(synk): E[x^2]-E[x]^2 in f32 can lose precision for |mean| >> std; switch to a
    # Welford-style combine of the per-image partials if BN accuracy ever regresses.
    mean = s / count
    var = jnp.maximum(ss / count - mean * mean, 0.0)   # biased (population) variance
    inv = lax.rsqrt(var + EPS)
    g = jnp.pad(gamma.astype(jnp.float32), (0, cp - gamma.shape[0])).reshape(1, cp)
    b = jnp.pad(beta.astype(jnp.float32), (0, cp - beta.shape[0])).reshape(1, cp)
    scale = g * inv
    shift = b - mean * scale
    return scale, shift


def basic_block_forward(x_nchw, params):
    """Forward pass of BasicBlock (stride=1, downsample=None). NCHW in / NCHW out."""
    B, C, H, W = x_nchw.shape
    planes = params["w1"].shape[0]
    # TODO(synk): stride>1 / downsample branch of BasicBlock not implemented (module defaults).
    cp = _round_up(max(C, planes), LANE)
    M = B * H * W

    # Single host-side layout op: NCHW -> NHWC, channel-pad to lane width, cast bf16.
    # This tensor doubles as the residual in the final pass (no separate f32 copy, and
    # no host-side spatial padding: the 1-px halo is built in-kernel).
    x_c = jnp.pad(jnp.transpose(x_nchw, (0, 2, 3, 1)),
                  ((0, 0), (0, 0), (0, 0), (0, cp - C))).astype(jnp.bfloat16)

    w1s = _prep_weight(params["w1"], cp, cp)
    w2s = _prep_weight(params["w2"], cp, cp)

    # conv1 + batch stats
    y1, s1, ss1 = _conv3x3_block(x_c, w1s)
    scale1, shift1 = _bn_scale_shift(s1, ss1, M, params["gamma1"], params["beta1"], cp)

    # bn1 + relu fused into conv2's input path; conv2 + batch stats
    y2, s2, ss2 = _conv3x3_block(y1, w2s, scale=scale1, shift=shift1)
    scale2, shift2 = _bn_scale_shift(s2, ss2, M, params["gamma2"], params["beta2"], cp)

    # bn2 + residual + relu
    out = _bn_add_relu(y2.reshape(M, cp), scale2, shift2,
                       x_c.reshape(M, cp), jnp.float32)

    out = out.reshape(B, H, W, cp)[..., :planes]
    return jnp.transpose(out, (0, 3, 1, 2))


# -----------------------------------------------------------------------------
# Pure-JAX reference for validation
# -----------------------------------------------------------------------------
def _ref_conv3x3(x_nhwc, w_oihw):
    w_hwio = jnp.transpose(w_oihw, (2, 3, 1, 0))
    return lax.conv_general_dilated(
        x_nhwc, w_hwio, window_strides=(1, 1), padding="SAME",
        dimension_numbers=("NHWC", "HWIO", "NHWC"))


def _ref_bn(y, gamma, beta):
    mean = jnp.mean(y, axis=(0, 1, 2), keepdims=True)
    var = jnp.mean(jnp.square(y - mean), axis=(0, 1, 2), keepdims=True)
    return (y - mean) * lax.rsqrt(var + EPS) * gamma + beta


def basic_block_reference(x_nchw, params):
    x = jnp.transpose(x_nchw, (0, 2, 3, 1)).astype(jnp.float32)
    residual = x
    out = _ref_conv3x3(x, params["w1"])
    out = jnp.maximum(_ref_bn(out, params["gamma1"], params["beta1"]), 0.0)
    out = _ref_conv3x3(out, params["w2"])
    out = _ref_bn(out, params["gamma2"], params["beta2"])
    out = jnp.maximum(out + residual, 0.0)
    return jnp.transpose(out, (0, 3, 1, 2))


# -----------------------------------------------------------------------------
if __name__ == "__main__":
    B, C, H, W = 2, 4, 16, 16       # inplanes == planes == 4 (stride=1, downsample=None)
    planes = C

    key = jax.random.PRNGKey(0)
    kx, k1, k2, k3, k4 = jax.random.split(key, 5)

    x = jax.random.normal(kx, (B, C, H, W), dtype=jnp.float32)
    params = {
        "w1": 0.2 * jax.random.normal(k1, (planes, C, 3, 3), dtype=jnp.float32),
        "w2": 0.2 * jax.random.normal(k2, (planes, planes, 3, 3), dtype=jnp.float32),
        "gamma1": 1.0 + 0.1 * jax.random.normal(k3, (planes,), dtype=jnp.float32),
        "beta1": 0.1 * jax.random.normal(k4, (planes,), dtype=jnp.float32),
        "gamma2": 1.0 + 0.05 * jax.random.normal(k3, (planes,), dtype=jnp.float32),
        "beta2": 0.05 * jax.random.normal(k4, (planes,), dtype=jnp.float32),
    }

    fwd = jax.jit(basic_block_forward)
    out = jax.block_until_ready(fwd(x, params))
    ref = jax.block_until_ready(basic_block_reference(x, params))

    assert out.shape == (B, planes, H, W), out.shape
    max_err = float(jnp.max(jnp.abs(out - ref)))
    # bf16 MXU operands + bf16 activation/residual storage -> loosened tolerance.
    assert jnp.allclose(out, ref, rtol=5e-2, atol=5e-2), max_err

    print("KERNEL_OK")
</pallas_src>

<mosaic_0001>
module attributes {stable_mosaic.version = 11 : i64} {
  func.func @kernel(%arg0: i32, %arg1: memref<1x16x16x128xbf16, #tpu.memory_space<vmem>>, %arg2: memref<1152x128xbf16, #tpu.memory_space<vmem>>, %arg3: memref<1x16x16x128xbf16, #tpu.memory_space<vmem>>, %arg4: memref<1x1x128xf32, #tpu.memory_space<vmem>>, %arg5: memref<1x1x128xf32, #tpu.memory_space<vmem>>, %arg6: memref<18x18x128xbf16, #tpu.memory_space<vmem>>) attributes {dimension_semantics = [#tpu.dimension_semantics<parallel>], iteration_bounds = array<i64: 2>, scalar_prefetch = 0 : i64, scratch_operands = 1 : i64, tpu.core_type = #tpu.core_type<tc>, window_params = [{transform_indices = @transform_0, window_bounds = array<i64: 1, 16, 16, 128>}, {pipeline_mode = #tpu.pipeline_mode<synchronous>, transform_indices = @transform_1, window_bounds = array<i64: 1152, 128>}, {transform_indices = @transform_2, window_bounds = array<i64: 1, 16, 16, 128>}, {transform_indices = @transform_3, window_bounds = array<i64: 1, 1, 128>}, {transform_indices = @transform_4, window_bounds = array<i64: 1, 1, 128>}]} {
    %c0 = arith.constant 0 : index
    %c0_0 = arith.constant 0 : index
    %c0_1 = arith.constant 0 : index
    %c0_2 = arith.constant 0 : index
    %0 = vector.load %arg1[%c0, %c0_0, %c0_1, %c0_2] : memref<1x16x16x128xbf16, #tpu.memory_space<vmem>>, vector<1x16x16x128xbf16>
    %1 = vector.shape_cast %0 : vector<1x16x16x128xbf16> to vector<16x16x128xbf16>
    %cst = arith.constant 0.000000e+00 : bf16
    %2 = vector.broadcast %cst : bf16 to vector<18x18x128xbf16>
    %c0_3 = arith.constant 0 : index
    %c0_4 = arith.constant 0 : index
    %c0_5 = arith.constant 0 : index
    %3 = vector.load %arg6[%c0_3, %c0_4, %c0_5] : memref<18x18x128xbf16, #tpu.memory_space<vmem>>, vector<18x18x128xbf16>
    tpu.vector_store %arg6[%c0_3, %c0_4, %c0_5], %2 {strides = array<i32>} : memref<18x18x128xbf16, #tpu.memory_space<vmem>>, vector<18x18x128xbf16>,
    %c1 = arith.constant 1 : index
    %c1_6 = arith.constant 1 : index
    %c0_7 = arith.constant 0 : index
    %4 = vector.load %arg6[%c1, %c1_6, %c0_7] : memref<18x18x128xbf16, #tpu.memory_space<vmem>>, vector<16x16x128xbf16>
    tpu.vector_store %arg6[%c1, %c1_6, %c0_7], %1 {strides = array<i32>} : memref<18x18x128xbf16, #tpu.memory_space<vmem>>, vector<16x16x128xbf16>,
    %c0_8 = arith.constant 0 : index
    %c0_9 = arith.constant 0 : index
    %c0_10 = arith.constant 0 : index
    %5 = vector.load %arg6[%c0_8, %c0_9, %c0_10] : memref<18x18x128xbf16, #tpu.memory_space<vmem>>, vector<18x18x128xbf16>
    %6 = vector.extract_strided_slice %5 {offsets = [0, 0, 0], sizes = [16, 16, 128], strides = [1, 1, 1]} : vector<18x18x128xbf16> to vector<16x16x128xbf16>
    %7 = vector.shape_cast %6 : vector<16x16x128xbf16> to vector<256x128xbf16>
    %8 = vector.extract_strided_slice %5 {offsets = [0, 1, 0], sizes = [16, 16, 128], strides = [1, 1, 1]} : vector<18x18x128xbf16> to vector<16x16x128xbf16>
    %9 = vector.shape_cast %8 : vector<16x16x128xbf16> to vector<256x128xbf16>
    %10 = vector.extract_strided_slice %5 {offsets = [0, 2, 0], sizes = [16, 16, 128], strides = [1, 1, 1]} : vector<18x18x128xbf16> to vector<16x16x128xbf16>
    %11 = vector.shape_cast %10 : vector<16x16x128xbf16> to vector<256x128xbf16>
    %12 = vector.extract_strided_slice %5 {offsets = [1, 0, 0], sizes = [16, 16, 128], strides = [1, 1, 1]} : vector<18x18x128xbf16> to vector<16x16x128xbf16>
    %13 = vector.shape_cast %12 : vector<16x16x128xbf16> to vector<256x128xbf16>
    %14 = vector.extract_strided_slice %5 {offsets = [1, 1, 0], sizes = [16, 16, 128], strides = [1, 1, 1]} : vector<18x18x128xbf16> to vector<16x16x128xbf16>
    %15 = vector.shape_cast %14 : vector<16x16x128xbf16> to vector<256x128xbf16>
    %16 = vector.extract_strided_slice %5 {offsets = [1, 2, 0], sizes = [16, 16, 128], strides = [1, 1, 1]} : vector<18x18x128xbf16> to vector<16x16x128xbf16>
    %17 = vector.shape_cast %16 : vector<16x16x128xbf16> to vector<256x128xbf16>
    %18 = vector.extract_strided_slice %5 {offsets = [2, 0, 0], sizes = [16, 16, 128], strides = [1, 1, 1]} : vector<18x18x128xbf16> to vector<16x16x128xbf16>
    %19 = vector.shape_cast %18 : vector<16x16x128xbf16> to vector<256x128xbf16>
    %20 = vector.extract_strided_slice %5 {offsets = [2, 1, 0], sizes = [16, 16, 128], strides = [1, 1, 1]} : vector<18x18x128xbf16> to vector<16x16x128xbf16>
    %21 = vector.shape_cast %20 : vector<16x16x128xbf16> to vector<256x128xbf16>
    %22 = vector.extract_strided_slice %5 {offsets = [2, 2, 0], sizes = [16, 16, 128], strides = [1, 1, 1]} : vector<18x18x128xbf16> to vector<16x16x128xbf16>
    %23 = vector.shape_cast %22 : vector<16x16x128xbf16> to vector<256x128xbf16>
    %24 = tpu.concatenate %7, %9, %11, %13, %15, %17, %19, %21, %23 in 1 : vector<256x128xbf16>, vector<256x128xbf16>, vector<256x128xbf16>, vector<256x128xbf16>, vector<256x128xbf16>, vector<256x128xbf16>, vector<256x128xbf16>, vector<256x128xbf16>, vector<256x128xbf16> -> vector<256x1152xbf16>
    %c0_11 = arith.constant 0 : index
    %c0_12 = arith.constant 0 : index
    %25 = vector.load %arg2[%c0_11, %c0_12] : memref<1152x128xbf16, #tpu.memory_space<vmem>>, vector<1152x128xbf16>
    %cst_13 = arith.constant dense<0.000000e+00> : vector<256x128xf32>
    %26 = tpu.matmul %24, %25, %cst_13 {dimension_numbers = #tpu.dot_dimension_numbers<[1], [0], [0], [1], [0, 0, 1, 1], [], []>} : vector<256x1152xbf16>, vector<1152x128xbf16>, vector<256x128xf32> -> vector<256x128xf32>
    %27 = vector.shape_cast %26 : vector<256x128xf32> to vector<16x16x128xf32>
    %28 = arith.truncf %27 : vector<16x16x128xf32> to vector<16x16x128xbf16>
    %c0_14 = arith.constant 0 : index
    %c0_15 = arith.constant 0 : index
    %c0_16 = arith.constant 0 : index
    %c0_17 = arith.constant 0 : index
    %29 = vector.load %arg3[%c0_14, %c0_15, %c0_16, %c0_17] : memref<1x16x16x128xbf16, #tpu.memory_space<vmem>>, vector<1x16x16x128xbf16>
    %30 = vector.shape_cast %29 : vector<1x16x16x128xbf16> to vector<16x16x128xbf16>
    %31 = vector.shape_cast %28 : vector<16x16x128xbf16> to vector<1x16x16x128xbf16>
    tpu.vector_store %arg3[%c0_14, %c0_15, %c0_16, %c0_17], %31 {strides = array<i32>} : memref<1x16x16x128xbf16, #tpu.memory_space<vmem>>, vector<1x16x16x128xbf16>,
    %cst_18 = arith.constant dense<0.000000e+00> : vector<128xf32>
    %32 = vector.multi_reduction <add>, %26, %cst_18 [0] : vector<256x128xf32> to vector<128xf32>
    %33 = vector.shape_cast %32 : vector<128xf32> to vector<1x128xf32>
    %c0_19 = arith.constant 0 : index
    %c0_20 = arith.constant 0 : index
    %c0_21 = arith.constant 0 : index
    %34 = vector.load %arg4[%c0_19, %c0_20, %c0_21] : memref<1x1x128xf32, #tpu.memory_space<vmem>>, vector<1x1x128xf32>
    %35 = vector.shape_cast %34 : vector<1x1x128xf32> to vector<1x128xf32>
    %36 = vector.shape_cast %33 : vector<1x128xf32> to vector<1x1x128xf32>
    tpu.vector_store %arg4[%c0_19, %c0_20, %c0_21], %36 {strides = array<i32>} : memref<1x1x128xf32, #tpu.memory_space<vmem>>, vector<1x1x128xf32>,
    %37 = arith.mulf %26, %26 : vector<256x128xf32>
    %cst_22 = arith.constant dense<0.000000e+00> : vector<128xf32>
    %38 = vector.multi_reduction <add>, %37, %cst_22 [0] : vector<256x128xf32> to vector<128xf32>
    %39 = vector.shape_cast %38 : vector<128xf32> to vector<1x128xf32>
    %c0_23 = arith.constant 0 : index
    %c0_24 = arith.constant 0 : index
    %c0_25 = arith.constant 0 : index
    %40 = vector.load %arg5[%c0_23, %c0_24, %c0_25] : memref<1x1x128xf32, #tpu.memory_space<vmem>>, vector<1x1x128xf32>
    %41 = vector.shape_cast %40 : vector<1x1x128xf32> to vector<1x128xf32>
    %42 = vector.shape_cast %39 : vector<1x128xf32> to vector<1x1x128xf32>
    tpu.vector_store %arg5[%c0_23, %c0_24, %c0_25], %42 {strides = array<i32>} : memref<1x1x128xf32, #tpu.memory_space<vmem>>, vector<1x1x128xf32>,
    return
  }
  func.func @transform_0(%arg0: i32) -> (i32, i32, i32, i32) {
    %c0_i32 = arith.constant 0 : i32
    %c0_i32_0 = arith.constant 0 : i32
    %c0_i32_1 = arith.constant 0 : i32
    %c0_i32_2 = arith.constant 0 : i32
    return %arg0, %c0_i32, %c0_i32_0, %c0_i32_1 : i32, i32, i32, i32
  }
  func.func @transform_1(%arg0: i32) -> (i32, i32) {
    %c0_i32 = arith.constant 0 : i32
    %c0_i32_0 = arith.constant 0 : i32
    %c0_i32_1 = arith.constant 0 : i32
    return %c0_i32, %c0_i32_0 : i32, i32
  }
  func.func @transform_2(%arg0: i32) -> (i32, i32, i32, i32) {
    %c0_i32 = arith.constant 0 : i32
    %c0_i32_0 = arith.constant 0 : i32
    %c0_i32_1 = arith.constant 0 : i32
    %c0_i32_2 = arith.constant 0 : i32
    return %arg0, %c0_i32, %c0_i32_0, %c0_i32_1 : i32, i32, i32, i32
  }
  func.func @transform_3(%arg0: i32) -> (i32, i32, i32) {
    %c0_i32 = arith.constant 0 : i32
    %c0_i32_0 = arith.constant 0 : i32
    %c0_i32_1 = arith.constant 0 : i32
    return %arg0, %c0_i32, %c0_i32_0 : i32, i32, i32
  }
  func.func @transform_4(%arg0: i32) -> (i32, i32, i32) {
    %c0_i32 = arith.constant 0 : i32
    %c0_i32_0 = arith.constant 0 : i32
    %c0_i32_1 = arith.constant 0 : i32
    return %arg0, %c0_i32, %c0_i32_0 : i32, i32, i32
  }
}

module attributes {stable_mosaic.version = 11 : i64} {
  func.func @kernel(%arg0: i32, %arg1: memref<1x16x16x128xbf16, #tpu.memory_space<vmem>>, %arg2: memref<1x128xf32, #tpu.memory_space<vmem>>, %arg3: memref<1x128xf32, #tpu.memory_space<vmem>>, %arg4: memref<1152x128xbf16, #tpu.memory_space<vmem>>, %arg5: memref<1x16x16x128xbf16, #tpu.memory_space<vmem>>, %arg6: memref<1x1x128xf32, #tpu.memory_space<vmem>>, %arg7: memref<1x1x128xf32, #tpu.memory_space<vmem>>, %arg8: memref<18x18x128xbf16, #tpu.memory_space<vmem>>) attributes {dimension_semantics = [#tpu.dimension_semantics<parallel>], iteration_bounds = array<i64: 2>, scalar_prefetch = 0 : i64, scratch_operands = 1 : i64, tpu.core_type = #tpu.core_type<tc>, window_params = [{transform_indices = @transform_0, window_bounds = array<i64: 1, 16, 16, 128>}, {pipeline_mode = #tpu.pipeline_mode<synchronous>, transform_indices = @transform_1, window_bounds = array<i64: 1, 128>}, {pipeline_mode = #tpu.pipeline_mode<synchronous>, transform_indices = @transform_2, window_bounds = array<i64: 1, 128>}, {pipeline_mode = #tpu.pipeline_mode<synchronous>, transform_indices = @transform_3, window_bounds = array<i64: 1152, 128>}, {transform_indices = @transform_4, window_bounds = array<i64: 1, 16, 16, 128>}, {transform_indices = @transform_5, window_bounds = array<i64: 1, 1, 128>}, {transform_indices = @transform_6, window_bounds = array<i64: 1, 1, 128>}]} {
    %c0 = arith.constant 0 : index
    %c0_0 = arith.constant 0 : index
    %c0_1 = arith.constant 0 : index
    %c0_2 = arith.constant 0 : index
    %0 = vector.load %arg1[%c0, %c0_0, %c0_1, %c0_2] : memref<1x16x16x128xbf16, #tpu.memory_space<vmem>>, vector<1x16x16x128xbf16>
    %1 = vector.shape_cast %0 : vector<1x16x16x128xbf16> to vector<16x16x128xbf16>
    %2 = arith.extf %1 : vector<16x16x128xbf16> to vector<16x16x128xf32>
    %3 = vector.shape_cast %2 : vector<16x16x128xf32> to vector<256x128xf32>
    %c0_3 = arith.constant 0 : index
    %c0_4 = arith.constant 0 : index
    %4 = vector.load %arg2[%c0_3, %c0_4] : memref<1x128xf32, #tpu.memory_space<vmem>>, vector<1x128xf32>
    %5 = vector.broadcast %4 : vector<1x128xf32> to vector<256x128xf32>
    %6 = arith.mulf %3, %5 : vector<256x128xf32>
    %c0_5 = arith.constant 0 : index
    %c0_6 = arith.constant 0 : index
    %7 = vector.load %arg3[%c0_5, %c0_6] : memref<1x128xf32, #tpu.memory_space<vmem>>, vector<1x128xf32>
    %8 = vector.broadcast %7 : vector<1x128xf32> to vector<256x128xf32>
    %9 = arith.addf %6, %8 : vector<256x128xf32>
    %cst = arith.constant 0.000000e+00 : f32
    %10 = vector.broadcast %cst : f32 to vector<256x128xf32>
    %11 = arith.maximumf %9, %10 : vector<256x128xf32>
    %12 = arith.truncf %11 : vector<256x128xf32> to vector<256x128xbf16>
    %13 = vector.shape_cast %12 : vector<256x128xbf16> to vector<16x16x128xbf16>
    %cst_7 = arith.constant 0.000000e+00 : bf16
    %14 = vector.broadcast %cst_7 : bf16 to vector<18x18x128xbf16>
    %c0_8 = arith.constant 0 : index
    %c0_9 = arith.constant 0 : index
    %c0_10 = arith.constant 0 : index
    %15 = vector.load %arg8[%c0_8, %c0_9, %c0_10] : memref<18x18x128xbf16, #tpu.memory_space<vmem>>, vector<18x18x128xbf16>
    tpu.vector_store %arg8[%c0_8, %c0_9, %c0_10], %14 {strides = array<i32>} : memref<18x18x128xbf16, #tpu.memory_space<vmem>>, vector<18x18x128xbf16>,
    %c1 = arith.constant 1 : index
    %c1_11 = arith.constant 1 : index
    %c0_12 = arith.constant 0 : index
    %16 = vector.load %arg8[%c1, %c1_11, %c0_12] : memref<18x18x128xbf16, #tpu.memory_space<vmem>>, vector<16x16x128xbf16>
    tpu.vector_store %arg8[%c1, %c1_11, %c0_12], %13 {strides = array<i32>} : memref<18x18x128xbf16, #tpu.memory_space<vmem>>, vector<16x16x128xbf16>,
    %c0_13 = arith.constant 0 : index
    %c0_14 = arith.constant 0 : index
    %c0_15 = arith.constant 0 : index
    %17 = vector.load %arg8[%c0_13, %c0_14, %c0_15] : memref<18x18x128xbf16, #tpu.memory_space<vmem>>, vector<18x18x128xbf16>
    %18 = vector.extract_strided_slice %17 {offsets = [0, 0, 0], sizes = [16, 16, 128], strides = [1, 1, 1]} : vector<18x18x128xbf16> to vector<16x16x128xbf16>
    %19 = vector.shape_cast %18 : vector<16x16x128xbf16> to vector<256x128xbf16>
    %20 = vector.extract_strided_slice %17 {offsets = [0, 1, 0], sizes = [16, 16, 128], strides = [1, 1, 1]} : vector<18x18x128xbf16> to vector<16x16x128xbf16>
    %21 = vector.shape_cast %20 : vector<16x16x128xbf16> to vector<256x128xbf16>
    %22 = vector.extract_strided_slice %17 {offsets = [0, 2, 0], sizes = [16, 16, 128], strides = [1, 1, 1]} : vector<18x18x128xbf16> to vector<16x16x128xbf16>
    %23 = vector.shape_cast %22 : vector<16x16x128xbf16> to vector<256x128xbf16>
    %24 = vector.extract_strided_slice %17 {offsets = [1, 0, 0], sizes = [16, 16, 128], strides = [1, 1, 1]} : vector<18x18x128xbf16> to vector<16x16x128xbf16>
    %25 = vector.shape_cast %24 : vector<16x16x128xbf16> to vector<256x128xbf16>
    %26 = vector.extract_strided_slice %17 {offsets = [1, 1, 0], sizes = [16, 16, 128], strides = [1, 1, 1]} : vector<18x18x128xbf16> to vector<16x16x128xbf16>
    %27 = vector.shape_cast %26 : vector<16x16x128xbf16> to vector<256x128xbf16>
    %28 = vector.extract_strided_slice %17 {offsets = [1, 2, 0], sizes = [16, 16, 128], strides = [1, 1, 1]} : vector<18x18x128xbf16> to vector<16x16x128xbf16>
    %29 = vector.shape_cast %28 : vector<16x16x128xbf16> to vector<256x128xbf16>
    %30 = vector.extract_strided_slice %17 {offsets = [2, 0, 0], sizes = [16, 16, 128], strides = [1, 1, 1]} : vector<18x18x128xbf16> to vector<16x16x128xbf16>
    %31 = vector.shape_cast %30 : vector<16x16x128xbf16> to vector<256x128xbf16>
    %32 = vector.extract_strided_slice %17 {offsets = [2, 1, 0], sizes = [16, 16, 128], strides = [1, 1, 1]} : vector<18x18x128xbf16> to vector<16x16x128xbf16>
    %33 = vector.shape_cast %32 : vector<16x16x128xbf16> to vector<256x128xbf16>
    %34 = vector.extract_strided_slice %17 {offsets = [2, 2, 0], sizes = [16, 16, 128], strides = [1, 1, 1]} : vector<18x18x128xbf16> to vector<16x16x128xbf16>
    %35 = vector.shape_cast %34 : vector<16x16x128xbf16> to vector<256x128xbf16>
    %36 = tpu.concatenate %19, %21, %23, %25, %27, %29, %31, %33, %35 in 1 : vector<256x128xbf16>, vector<256x128xbf16>, vector<256x128xbf16>, vector<256x128xbf16>, vector<256x128xbf16>, vector<256x128xbf16>, vector<256x128xbf16>, vector<256x128xbf16>, vector<256x128xbf16> -> vector<256x1152xbf16>
    %c0_16 = arith.constant 0 : index
    %c0_17 = arith.constant 0 : index
    %37 = vector.load %arg4[%c0_16, %c0_17] : memref<1152x128xbf16, #tpu.memory_space<vmem>>, vector<1152x128xbf16>
    %cst_18 = arith.constant dense<0.000000e+00> : vector<256x128xf32>
    %38 = tpu.matmul %36, %37, %cst_18 {dimension_numbers = #tpu.dot_dimension_numbers<[1], [0], [0], [1], [0, 0, 1, 1], [], []>} : vector<256x1152xbf16>, vector<1152x128xbf16>, vector<256x128xf32> -> vector<256x128xf32>
    %39 = vector.shape_cast %38 : vector<256x128xf32> to vector<16x16x128xf32>
    %40 = arith.truncf %39 : vector<16x16x128xf32> to vector<16x16x128xbf16>
    %c0_19 = arith.constant 0 : index
    %c0_20 = arith.constant 0 : index
    %c0_21 = arith.constant 0 : index
    %c0_22 = arith.constant 0 : index
    %41 = vector.load %arg5[%c0_19, %c0_20, %c0_21, %c0_22] : memref<1x16x16x128xbf16, #tpu.memory_space<vmem>>, vector<1x16x16x128xbf16>
    %42 = vector.shape_cast %41 : vector<1x16x16x128xbf16> to vector<16x16x128xbf16>
    %43 = vector.shape_cast %40 : vector<16x16x128xbf16> to vector<1x16x16x128xbf16>
    tpu.vector_store %arg5[%c0_19, %c0_20, %c0_21, %c0_22], %43 {strides = array<i32>} : memref<1x16x16x128xbf16, #tpu.memory_space<vmem>>, vector<1x16x16x128xbf16>,
    %cst_23 = arith.constant dense<0.000000e+00> : vector<128xf32>
    %44 = vector.multi_reduction <add>, %38, %cst_23 [0] : vector<256x128xf32> to vector<128xf32>
    %45 = vector.shape_cast %44 : vector<128xf32> to vector<1x128xf32>
    %c0_24 = arith.constant 0 : index
    %c0_25 = arith.constant 0 : index
    %c0_26 = arith.constant 0 : index
    %46 = vector.load %arg6[%c0_24, %c0_25, %c0_26] : memref<1x1x128xf32, #tpu.memory_space<vmem>>, vector<1x1x128xf32>
    %47 = vector.shape_cast %46 : vector<1x1x128xf32> to vector<1x128xf32>
    %48 = vector.shape_cast %45 : vector<1x128xf32> to vector<1x1x128xf32>
    tpu.vector_store %arg6[%c0_24, %c0_25, %c0_26], %48 {strides = array<i32>} : memref<1x1x128xf32, #tpu.memory_space<vmem>>, vector<1x1x128xf32>,
    %49 = arith.mulf %38, %38 : vector<256x128xf32>
    %cst_27 = arith.constant dense<0.000000e+00> : vector<128xf32>
    %50 = vector.multi_reduction <add>, %49, %cst_27 [0] : vector<256x128xf32> to vector<128xf32>
    %51 = vector.shape_cast %50 : vector<128xf32> to vector<1x128xf32>
    %c0_28 = arith.constant 0 : index
    %c0_29 = arith.constant 0 : index
    %c0_30 = arith.constant 0 : index
    %52 = vector.load %arg7[%c0_28, %c0_29, %c0_30] : memref<1x1x128xf32, #tpu.memory_space<vmem>>, vector<1x1x128xf32>
    %53 = vector.shape_cast %52 : vector<1x1x128xf32> to vector<1x128xf32>
    %54 = vector.shape_cast %51 : vector<1x128xf32> to vector<1x1x128xf32>
    tpu.vector_store %arg7[%c0_28, %c0_29, %c0_30], %54 {strides = array<i32>} : memref<1x1x128xf32, #tpu.memory_space<vmem>>, vector<1x1x128xf32>,
    return
  }
  func.func @transform_0(%arg0: i32) -> (i32, i32, i32, i32) {
    %c0_i32 = arith.constant 0 : i32
    %c0_i32_0 = arith.constant 0 : i32
    %c0_i32_1 = arith.constant 0 : i32
    %c0_i32_2 = arith.constant 0 : i32
    return %arg0, %c0_i32, %c0_i32_0, %c0_i32_1 : i32, i32, i32, i32
  }
  func.func @transform_1(%arg0: i32) -> (i32, i32) {
    %c0_i32 = arith.constant 0 : i32
    %c0_i32_0 = arith.constant 0 : i32
    %c0_i32_1 = arith.constant 0 : i32
    return %c0_i32, %c0_i32_0 : i32, i32
  }
  func.func @transform_2(%arg0: i32) -> (i32, i32) {
    %c0_i32 = arith.constant 0 : i32
    %c0_i32_0 = arith.constant 0 : i32
    %c0_i32_1 = arith.constant 0 : i32
    return %c0_i32, %c0_i32_0 : i32, i32
  }
  func.func @transform_3(%arg0: i32) -> (i32, i32) {
    %c0_i32 = arith.constant 0 : i32
    %c0_i32_0 = arith.constant 0 : i32
    %c0_i32_1 = arith.constant 0 : i32
    return %c0_i32, %c0_i32_0 : i32, i32
  }
  func.func @transform_4(%arg0: i32) -> (i32, i32, i32, i32) {
    %c0_i32 = arith.constant 0 : i32
    %c0_i32_0 = arith.constant 0 : i32
    %c0_i32_1 = arith.constant 0 : i32
    %c0_i32_2 = arith.constant 0 : i32
    return %arg0, %c0_i32, %c0_i32_0, %c0_i32_1 : i32, i32, i32, i32
  }
  func.func @transform_5(%arg0: i32) -> (i32, i32, i32) {
    %c0_i32 = arith.constant 0 : i32
    %c0_i32_0 = arith.constant 0 : i32
    %c0_i32_1 = arith.constant 0 : i32
    return %arg0, %c0_i32, %c0_i32_0 : i32, i32, i32
  }
  func.func @transform_6(%arg0: i32) -> (i32, i32, i32) {
    %c0_i32 = arith.constant 0 : i32
    %c0_i32_0 = arith.constant 0 : i32
    %c0_i32_1 = arith.constant 0 : i32
    return %arg0, %c0_i32, %c0_i32_0 : i32, i32, i32
  }
}

module attributes {stable_mosaic.version = 11 : i64} {
  func.func @_bn_add_relu_kernel(%arg0: i32, %arg1: memref<256x128xbf16, #tpu.memory_space<vmem>>, %arg2: memref<1x128xf32, #tpu.memory_space<vmem>>, %arg3: memref<1x128xf32, #tpu.memory_space<vmem>>, %arg4: memref<256x128xbf16, #tpu.memory_space<vmem>>, %arg5: memref<256x128xf32, #tpu.memory_space<vmem>>) attributes {dimension_semantics = [#tpu.dimension_semantics<parallel>], iteration_bounds = array<i64: 2>, scalar_prefetch = 0 : i64, scratch_operands = 0 : i64, tpu.core_type = #tpu.core_type<tc>, window_params = [{transform_indices = @transform_0, window_bounds = array<i64: 256, 128>}, {pipeline_mode = #tpu.pipeline_mode<synchronous>, transform_indices = @transform_1, window_bounds = array<i64: 1, 128>}, {pipeline_mode = #tpu.pipeline_mode<synchronous>, transform_indices = @transform_2, window_bounds = array<i64: 1, 128>}, {transform_indices = @transform_3, window_bounds = array<i64: 256, 128>}, {transform_indices = @transform_4, window_bounds = array<i64: 256, 128>}]} {
    %c0 = arith.constant 0 : index
    %c0_0 = arith.constant 0 : index
    %0 = vector.load %arg1[%c0, %c0_0] : memref<256x128xbf16, #tpu.memory_space<vmem>>, vector<256x128xbf16>
    %1 = arith.extf %0 : vector<256x128xbf16> to vector<256x128xf32>
    %c0_1 = arith.constant 0 : index
    %c0_2 = arith.constant 0 : index
    %2 = vector.load %arg2[%c0_1, %c0_2] : memref<1x128xf32, #tpu.memory_space<vmem>>, vector<1x128xf32>
    %3 = vector.broadcast %2 : vector<1x128xf32> to vector<256x128xf32>
    %4 = arith.mulf %1, %3 : vector<256x128xf32>
    %c0_3 = arith.constant 0 : index
    %c0_4 = arith.constant 0 : index
    %5 = vector.load %arg3[%c0_3, %c0_4] : memref<1x128xf32, #tpu.memory_space<vmem>>, vector<1x128xf32>
    %6 = vector.broadcast %5 : vector<1x128xf32> to vector<256x128xf32>
    %7 = arith.addf %4, %6 : vector<256x128xf32>
    %c0_5 = arith.constant 0 : index
    %c0_6 = arith.constant 0 : index
    %8 = vector.load %arg4[%c0_5, %c0_6] : memref<256x128xbf16, #tpu.memory_space<vmem>>, vector<256x128xbf16>
    %9 = arith.extf %8 : vector<256x128xbf16> to vector<256x128xf32>
    %10 = arith.addf %7, %9 : vector<256x128xf32>
    %cst = arith.constant 0.000000e+00 : f32
    %11 = vector.broadcast %cst : f32 to vector<256x128xf32>
    %12 = arith.maximumf %10, %11 : vector<256x128xf32>
    %c0_7 = arith.constant 0 : index
    %c0_8 = arith.constant 0 : index
    %13 = vector.load %arg5[%c0_7, %c0_8] : memref<256x128xf32, #tpu.memory_space<vmem>>, vector<256x128xf32>
    tpu.vector_store %arg5[%c0_7, %c0_8], %12 {strides = array<i32>} : memref<256x128xf32, #tpu.memory_space<vmem>>, vector<256x128xf32>,
    return
  }
  func.func @transform_0(%arg0: i32) -> (i32, i32) {
    %c0_i32 = arith.constant 0 : i32
    %c0_i32_0 = arith.constant 0 : i32
    return %arg0, %c0_i32 : i32, i32
  }
  func.func @transform_1(%arg0: i32) -> (i32, i32) {
    %c0_i32 = arith.constant 0 : i32
    %c0_i32_0 = arith.constant 0 : i32
    %c0_i32_1 = arith.constant 0 : i32
    return %c0_i32, %c0_i32_0 : i32, i32
  }
  func.func @transform_2(%arg0: i32) -> (i32, i32) {
    %c0_i32 = arith.constant 0 : i32
    %c0_i32_0 = arith.constant 0 : i32
    %c0_i32_1 = arith.constant 0 : i32
    return %c0_i32, %c0_i32_0 : i32, i32
  }
  func.func @transform_3(%arg0: i32) -> (i32, i32) {
    %c0_i32 = arith.constant 0 : i32
    %c0_i32_0 = arith.constant 0 : i32
    return %arg0, %c0_i32 : i32, i32
  }
  func.func @transform_4(%arg0: i32) -> (i32, i32) {
    %c0_i32 = arith.constant 0 : i32
    %c0_i32_0 = arith.constant 0 : i32
    return %arg0, %c0_i32 : i32, i32
  }
}

</mosaic_0001>

<bundles_post_ra>
// kernel: basic_block_forward.5
= control target key start
LH: loop header
LB: loop body
LE: loop exit
PB: predicated region body
PF: predicated region fallthrough
CT: control target
= control target key end

     0   :  { %s807_s15 = smov 0   ;;  %s975_s0 = inlined_call_operand.vmem [shape: bf16[512,128], index: 0, kind: input, shape index: {}]   ;;  %s976_s1 = inlined_call_operand.vmem [shape: f32[1,128], index: 1, kind: input, shape index: {}]   ;;  %s977_s2 = inlined_call_operand.vmem [shape: f32[1,128], index: 2, kind: input, shape index: {}]   ;;  %s978_s3 = inlined_call_operand.vmem [shape: bf16[512,128], index: 3, kind: input, shape index: {}]   ;;  %s979_s4 = inlined_call_operand.vmem [shape: f32[512,128], index: 4, kind: output, shape index: {}]  }
   0x1 LB: > { %s593_s16 = sadd.s32 4294967295, %s780_s15   ;;  %p597_p0 = scmp.ge.s32.totalorder %s780_s15, 1  ;;  %s780_s15 = sphi %s807_s15, %s14_s15  }
   0x2   : > { %p174_p1 = scmp.lt.s32.totalorder %s780_s15, 3 }
   0x4   : > { %p175_p2 = pnand %p597_p0, %p174_p1 }
   0x5   : > { %s598_s17 = sshll.u32 (!%p175_p2), %s593_s16, 5  ;;  %v831_v0 = vld [vmem:[%s976_s1] ss:$0 sm:$0xff] (!%p175_p2) }
   0x6   : > { %178 = sbr.rel (%p175_p2) target bundleno = 71 (0x47), region = 36  ;;  %p206_p3 = scmp.lt.s32.totalorder (!%p175_p2), %s598_s17, 63  ;;  %v842_v11 = vld [vmem:[%s977_s2] ss:$0 sm:$0xff] (!%p175_p2) }
   0xd   : > { %s981_s17 = smov (!%p206_p3, %s598_s17), 63 }
   0xe   : > { %s599_s18 = sshll.u32 %s981_s17, 2  ;;  %s603_s29 = sshll.u32 %s981_s17, 3 }
   0xf   : > { %s821_s21 = scalar_lea.vmem %s975_s0, %s599_s18  ;;  %s826_s24 = scalar_lea.vmem %s978_s3, %s599_s18 }
  0x10   : > { %v609_v1 = vld [vmem:[%s821_s21] sm:$0xff]   ;;  %v736_v3 = vld [vmem:[%s821_s21 + $0x8] sm:$0xff]   ;;  %v737_v9 = vld [vmem:[%s821_s21 + $0x10] sm:$0xff]   ;;  %s862_s6 = scalar_lea.vmem %s979_s4, %s603_s29 }
  0x11   : > { %v673_v2 = vld [vmem:[%s826_s24] sm:$0xff]   ;;  %v610_v4 = vunpack.c.l.bf16 %v609_v1  ;;  %v611_v6 = vunpack.c.h.bf16 %v609_v1  ;;  %v751_v8 = vld [vmem:[%s826_s24 + $0x8] sm:$0xff]   ;;  %v752_v10 = vld [vmem:[%s826_s24 + $0x10] sm:$0xff]   ;;  %v614_v12 = vunpack.c.l.bf16 %v736_v3  ;;  %v615_v14 = vunpack.c.h.bf16 %v736_v3 }
  0x12   : > { %v674_v5 = vunpack.c.l.bf16 %v673_v2  ;;  %v675_v7 = vunpack.c.h.bf16 %v673_v2  ;;  %v678_v13 = vunpack.c.l.bf16 %v751_v8  ;;  %v679_v15 = vunpack.c.h.bf16 %v751_v8  ;;  %v738_v16 = vld [vmem:[%s821_s21 + $0x18] sm:$0xff]   ;;  %v739_v42 = vld [vmem:[%s821_s21 + $0x20] sm:$0xff]   ;;  %v740_v52 = vld [vmem:[%s821_s21 + $0x28] sm:$0xff]  }
  0x13   : > { %v294_v17 = vmul.f32 %v610_v4, %v831_v0  ;;  %v295_v18 = vmul.f32 %v611_v6, %v831_v0  ;;  %v618_v19 = vunpack.c.l.bf16 %v737_v9  ;;  %v682_v20 = vunpack.c.l.bf16 %v752_v10  ;;  %v753_v21 = vld [vmem:[%s826_s24 + $0x18] sm:$0xff]   ;;  %v754_v47 = vld [vmem:[%s826_s24 + $0x20] sm:$0xff]   ;;  %v755_v57 = vld [vmem:[%s826_s24 + $0x28] sm:$0xff]  }
  0x14   : > { %v296_v22 = vmul.f32 %v614_v12, %v831_v0  ;;  %v297_v23 = vmul.f32 %v615_v14, %v831_v0  ;;  %v619_v24 = vunpack.c.h.bf16 %v737_v9  ;;  %v683_v25 = vunpack.c.h.bf16 %v752_v10  ;;  %v741_v62 = vld [vmem:[%s821_s21 + $0x30] sm:$0xff]   ;;  %v742_v14 = vld [vmem:[%s821_s21 + $0x38] sm:$0xff]  }
  0x15   : > { %v333_v26 = vadd.f32 %v842_v11, %v294_v17  ;;  %v334_v27 = vadd.f32 %v842_v11, %v295_v18  ;;  %v298_v28 = vmul.f32 %v618_v19, %v831_v0  ;;  %v622_v29 = vunpack.c.l.bf16 %v738_v16  ;;  %v756_v4 = vld [vmem:[%s826_s24 + $0x30] sm:$0xff]  }
  0x16   : > { %v335_v30 = vadd.f32 %v842_v11, %v296_v22  ;;  %v336_v31 = vadd.f32 %v842_v11, %v297_v23  ;;  %v299_v32 = vmul.f32 %v619_v24, %v831_v0  ;;  %v686_v33 = vunpack.c.l.bf16 %v753_v21  ;;  %v757_v23 = vld [vmem:[%s826_s24 + $0x38] sm:$0xff]  }
  0x17   : > { %v429_v34 = vadd.f32 %v674_v5, %v333_v26  ;;  %v430_v35 = vadd.f32 %v675_v7, %v334_v27  ;;  %v337_v36 = vadd.f32 %v842_v11, %v298_v28  ;;  %v300_v37 = vmul.f32 %v622_v29, %v831_v0 }
  0x18   : > { %v431_v38 = vadd.f32 %v678_v13, %v335_v30  ;;  %v432_v39 = vadd.f32 %v679_v15, %v336_v31  ;;  %v338_v40 = vadd.f32 %v842_v11, %v299_v32  ;;  %v623_v41 = vunpack.c.h.bf16 %v738_v16  ;;  %v743_v32 = vld [vmem:[%s821_s21 + $0x40] sm:$0xff]  }
  0x19   : > { %v461_v43 = vmax.f32 %v429_v34, 0.0  ;;  %v462_v44 = vmax.f32 %v430_v35, 0.0  ;;  %v433_v45 = vadd.f32 %v682_v20, %v337_v36  ;;  %v339_v46 = vadd.f32 %v842_v11, %v300_v37  ;;  %v758_v37 = vld [vmem:[%s826_s24 + $0x40] sm:$0xff]  }
  0x1a   : > { %v463_v48 = vmax.f32 %v431_v38, 0.0  ;;  %v464_v49 = vmax.f32 %v432_v39, 0.0  ;;  %v434_v50 = vadd.f32 %v683_v25, %v338_v40  ;;  %v301_v51 = vmul.f32 %v623_v41, %v831_v0 }
  0x1b   : > { %493 = vst [vmem:[%s862_s6] sm:$0xff] %v461_v43  ;;  %494 = vst [vmem:[%s862_s6 + $0x8] sm:$0xff] %v462_v44  ;;  %v465_v53 = vmax.f32 %v433_v45, 0.0  ;;  %v435_v54 = vadd.f32 %v686_v33, %v339_v46  ;;  %v687_v55 = vunpack.c.h.bf16 %v753_v21  ;;  %v626_v56 = vunpack.c.l.bf16 %v739_v42  ;;  %v744_v46 = vld [vmem:[%s821_s21 + $0x48] sm:$0xff]  }
  0x1c   : > { %495 = vst [vmem:[%s862_s6 + $0x10] sm:$0xff] %v463_v48  ;;  %496 = vst [vmem:[%s862_s6 + $0x18] sm:$0xff] %v464_v49  ;;  %v466_v58 = vmax.f32 %v434_v50, 0.0  ;;  %v340_v59 = vadd.f32 %v842_v11, %v301_v51  ;;  %v690_v60 = vunpack.c.l.bf16 %v754_v47  ;;  %v627_v61 = vunpack.c.h.bf16 %v739_v42 }
  0x1d   : > { %497 = vst [vmem:[%s862_s6 + $0x20] sm:$0xff] %v465_v53  ;;  %v467_v63 = vmax.f32 %v435_v54, 0.0  ;;  %v302_v1 = vmul.f32 %v626_v56, %v831_v0  ;;  %v691_v2 = vunpack.c.h.bf16 %v754_v47  ;;  %v630_v3 = vunpack.c.l.bf16 %v740_v52  ;;  %v759_v47 = vld [vmem:[%s826_s24 + $0x48] sm:$0xff]   ;;  %v745_v56 = vld [vmem:[%s821_s21 + $0x50] sm:$0xff]  }
  0x1e   : > { %498 = vst [vmem:[%s862_s6 + $0x28] sm:$0xff] %v466_v58  ;;  %v436_v5 = vadd.f32 %v687_v55, %v340_v59  ;;  %v303_v6 = vmul.f32 %v627_v61, %v831_v0  ;;  %v694_v7 = vunpack.c.l.bf16 %v755_v57  ;;  %v631_v8 = vunpack.c.h.bf16 %v740_v52  ;;  %v760_v61 = vld [vmem:[%s826_s24 + $0x50] sm:$0xff]  }
  0x1f   : > { %499 = vst [vmem:[%s862_s6 + $0x30] sm:$0xff] %v467_v63  ;;  %v341_v9 = vadd.f32 %v842_v11, %v302_v1  ;;  %v304_v10 = vmul.f32 %v630_v3, %v831_v0  ;;  %v695_v12 = vunpack.c.h.bf16 %v755_v57  ;;  %v634_v13 = vunpack.c.l.bf16 %v741_v62 }
  0x20   : > { %v468_v15 = vmax.f32 %v436_v5, 0.0  ;;  %v342_v16 = vadd.f32 %v842_v11, %v303_v6  ;;  %v305_v17 = vmul.f32 %v631_v8, %v831_v0  ;;  %v698_v18 = vunpack.c.l.bf16 %v756_v4 }
  0x21   : > { %v437_v19 = vadd.f32 %v690_v60, %v341_v9  ;;  %v343_v20 = vadd.f32 %v842_v11, %v304_v10  ;;  %v306_v21 = vmul.f32 %v634_v13, %v831_v0  ;;  %v635_v22 = vunpack.c.h.bf16 %v741_v62 }
  0x22   : > { %500 = vst [vmem:[%s862_s6 + $0x38] sm:$0xff] %v468_v15  ;;  %v438_v24 = vadd.f32 %v691_v2, %v342_v16  ;;  %v344_v25 = vadd.f32 %v842_v11, %v305_v17  ;;  %v699_v26 = vunpack.c.h.bf16 %v756_v4  ;;  %v638_v27 = vunpack.c.l.bf16 %v742_v14  ;;  %v761_v17 = vld [vmem:[%s826_s24 + $0x58] sm:$0xff]  }
  0x23   : > { %v469_v28 = vmax.f32 %v437_v19, 0.0  ;;  %v439_v29 = vadd.f32 %v694_v7, %v343_v20  ;;  %v345_v30 = vadd.f32 %v842_v11, %v306_v21  ;;  %v307_v31 = vmul.f32 %v635_v22, %v831_v0 }
  0x24   : > { %v470_v33 = vmax.f32 %v438_v24, 0.0  ;;  %v440_v34 = vadd.f32 %v695_v12, %v344_v25  ;;  %v308_v35 = vmul.f32 %v638_v27, %v831_v0  ;;  %v702_v36 = vunpack.c.l.bf16 %v757_v23  ;;  %v746_v12 = vld [vmem:[%s821_s21 + $0x58] sm:$0xff]  }
  0x25   : > { %501 = vst [vmem:[%s862_s6 + $0x40] sm:$0xff] %v469_v28  ;;  %v471_v38 = vmax.f32 %v439_v29, 0.0  ;;  %v441_v39 = vadd.f32 %v698_v18, %v345_v30  ;;  %v346_v40 = vadd.f32 %v842_v11, %v307_v31  ;;  %v639_v41 = vunpack.c.h.bf16 %v742_v14  ;;  %v762_v31 = vld [vmem:[%s826_s24 + $0x60] sm:$0xff]  }
  0x26   : > { %502 = vst [vmem:[%s862_s6 + $0x48] sm:$0xff] %v470_v33  ;;  %v472_v42 = vmax.f32 %v440_v34, 0.0  ;;  %v347_v43 = vadd.f32 %v842_v11, %v308_v35  ;;  %v703_v44 = vunpack.c.h.bf16 %v757_v23  ;;  %v642_v45 = vunpack.c.l.bf16 %v743_v32 }
  0x27   : > { %503 = vst [vmem:[%s862_s6 + $0x50] sm:$0xff] %v471_v38  ;;  %v473_v48 = vmax.f32 %v441_v39, 0.0  ;;  %v442_v49 = vadd.f32 %v699_v26, %v346_v40  ;;  %v309_v50 = vmul.f32 %v639_v41, %v831_v0  ;;  %v706_v51 = vunpack.c.l.bf16 %v758_v37  ;;  %v747_v26 = vld [vmem:[%s821_s21 + $0x60] sm:$0xff]   ;;  %v748_v40 = vld [vmem:[%s821_s21 + $0x68] sm:$0xff]  }
  0x28   : > { %504 = vst [vmem:[%s862_s6 + $0x58] sm:$0xff] %v472_v42  ;;  %v443_v52 = vadd.f32 %v702_v36, %v347_v43  ;;  %v310_v53 = vmul.f32 %v642_v45, %v831_v0  ;;  %v643_v54 = vunpack.c.h.bf16 %v743_v32  ;;  %v707_v55 = vunpack.c.h.bf16 %v758_v37  ;;  %v763_v41 = vld [vmem:[%s826_s24 + $0x68] sm:$0xff]  }
  0x29   : > { %505 = vst [vmem:[%s862_s6 + $0x60] sm:$0xff] %v473_v48  ;;  %v474_v57 = vmax.f32 %v442_v49, 0.0  ;;  %v348_v58 = vadd.f32 %v842_v11, %v309_v50  ;;  %v646_v59 = vunpack.c.l.bf16 %v744_v46  ;;  %v710_v60 = vunpack.c.l.bf16 %v759_v47  ;;  %v749_v50 = vld [vmem:[%s821_s21 + $0x70] sm:$0xff]  }
  0x2a   : > { %v475_v62 = vmax.f32 %v443_v52, 0.0  ;;  %v349_v63 = vadd.f32 %v842_v11, %v310_v53  ;;  %v311_v1 = vmul.f32 %v643_v54, %v831_v0  ;;  %v647_v2 = vunpack.c.h.bf16 %v744_v46 }
  0x2b   : > { %506 = vst [vmem:[%s862_s6 + $0x68] sm:$0xff] %v474_v57  ;;  %v444_v3 = vadd.f32 %v703_v44, %v348_v58  ;;  %v312_v4 = vmul.f32 %v646_v59, %v831_v0  ;;  %v711_v5 = vunpack.c.h.bf16 %v759_v47  ;;  %v650_v6 = vunpack.c.l.bf16 %v745_v56  ;;  %v764_v59 = vld [vmem:[%s826_s24 + $0x70] sm:$0xff]  }
  0x2c   : > { %507 = vst [vmem:[%s862_s6 + $0x70] sm:$0xff] %v475_v62  ;;  %v445_v7 = vadd.f32 %v706_v51, %v349_v63  ;;  %v350_v8 = vadd.f32 %v842_v11, %v311_v1  ;;  %v313_v9 = vmul.f32 %v647_v2, %v831_v0  ;;  %v714_v10 = vunpack.c.l.bf16 %v760_v61 }
  0x2d   : > { %v476_v13 = vmax.f32 %v444_v3, 0.0  ;;  %v351_v14 = vadd.f32 %v842_v11, %v312_v4  ;;  %v314_v15 = vmul.f32 %v650_v6, %v831_v0  ;;  %v651_v16 = vunpack.c.h.bf16 %v745_v56 }
  0x2e   : > { %v477_v18 = vmax.f32 %v445_v7, 0.0  ;;  %v446_v19 = vadd.f32 %v707_v55, %v350_v8  ;;  %v352_v20 = vadd.f32 %v842_v11, %v313_v9  ;;  %v715_v21 = vunpack.c.h.bf16 %v760_v61 }
  0x2f   : > { %508 = vst [vmem:[%s862_s6 + $0x78] sm:$0xff] %v476_v13  ;;  %v447_v22 = vadd.f32 %v710_v60, %v351_v14  ;;  %v353_v23 = vadd.f32 %v842_v11, %v314_v15  ;;  %v315_v24 = vmul.f32 %v651_v16, %v831_v0  ;;  %v654_v25 = vunpack.c.l.bf16 %v746_v12 }
  0x30   : > { %509 = vst [vmem:[%s862_s6 + $0x80] sm:$0xff] %v477_v18  ;;  %v478_v27 = vmax.f32 %v446_v19, 0.0  ;;  %v448_v28 = vadd.f32 %v711_v5, %v352_v20  ;;  %v718_v29 = vunpack.c.l.bf16 %v761_v17  ;;  %v655_v30 = vunpack.c.h.bf16 %v746_v12  ;;  %v750_v5 = vld [vmem:[%s821_s21 + $0x78] sm:$0xff]  }
  0x31   : > { %v479_v32 = vmax.f32 %v447_v22, 0.0  ;;  %v449_v33 = vadd.f32 %v714_v10, %v353_v23  ;;  %v354_v34 = vadd.f32 %v842_v11, %v315_v24  ;;  %v316_v35 = vmul.f32 %v654_v25, %v831_v0  ;;  %v765_v10 = vld [vmem:[%s826_s24 + $0x78] sm:$0xff]  }
  0x32   : > { %510 = vst [vmem:[%s862_s6 + $0x88] sm:$0xff] %v478_v27  ;;  %v480_v36 = vmax.f32 %v448_v28, 0.0  ;;  %v317_v37 = vmul.f32 %v655_v30, %v831_v0  ;;  %v719_v38 = vunpack.c.h.bf16 %v761_v17  ;;  %v658_v39 = vunpack.c.l.bf16 %v747_v26 }
  0x33   : > { %511 = vst [vmem:[%s862_s6 + $0x90] sm:$0xff] %v479_v32  ;;  %v481_v42 = vmax.f32 %v449_v33, 0.0  ;;  %v450_v43 = vadd.f32 %v715_v21, %v354_v34  ;;  %v355_v44 = vadd.f32 %v842_v11, %v316_v35  ;;  %v722_v45 = vunpack.c.l.bf16 %v762_v31 }
  0x34   : > { %512 = vst [vmem:[%s862_s6 + $0x98] sm:$0xff] %v480_v36  ;;  %v356_v46 = vadd.f32 %v842_v11, %v317_v37  ;;  %v318_v47 = vmul.f32 %v658_v39, %v831_v0  ;;  %v659_v48 = vunpack.c.h.bf16 %v747_v26  ;;  %v723_v49 = vunpack.c.h.bf16 %v762_v31 }
  0x35   : > { %513 = vst [vmem:[%s862_s6 + $0xa0] sm:$0xff] %v481_v42  ;;  %v482_v51 = vmax.f32 %v450_v43, 0.0  ;;  %v451_v52 = vadd.f32 %v718_v29, %v355_v44  ;;  %v662_v53 = vunpack.c.l.bf16 %v748_v40  ;;  %v726_v54 = vunpack.c.l.bf16 %v763_v41 }
  0x36   : > { %v452_v55 = vadd.f32 %v719_v38, %v356_v46  ;;  %v357_v56 = vadd.f32 %v842_v11, %v318_v47  ;;  %v319_v57 = vmul.f32 %v659_v48, %v831_v0  ;;  %v663_v58 = vunpack.c.h.bf16 %v748_v40 }
  0x37   : > { %514 = vst [vmem:[%s862_s6 + $0xa8] sm:$0xff] %v482_v51  ;;  %v483_v60 = vmax.f32 %v451_v52, 0.0  ;;  %v320_v61 = vmul.f32 %v662_v53, %v831_v0  ;;  %v727_v62 = vunpack.c.h.bf16 %v763_v41  ;;  %v666_v63 = vunpack.c.l.bf16 %v749_v50 }
  0x38   : > { %v484_v1 = vmax.f32 %v452_v55, 0.0  ;;  %v453_v2 = vadd.f32 %v722_v45, %v357_v56  ;;  %v358_v3 = vadd.f32 %v842_v11, %v319_v57  ;;  %v321_v4 = vmul.f32 %v663_v58, %v831_v0 }
  0x39   : > { %515 = vst [vmem:[%s862_s6 + $0xb0] sm:$0xff] %v483_v60  ;;  %v359_v6 = vadd.f32 %v842_v11, %v320_v61  ;;  %v322_v7 = vmul.f32 %v666_v63, %v831_v0  ;;  %v730_v8 = vunpack.c.l.bf16 %v764_v59  ;;  %v667_v9 = vunpack.c.h.bf16 %v749_v50 }
  0x3a   : > { %516 = vst [vmem:[%s862_s6 + $0xb8] sm:$0xff] %v484_v1  ;;  %v485_v12 = vmax.f32 %v453_v2, 0.0  ;;  %v454_v13 = vadd.f32 %v723_v49, %v358_v3  ;;  %v360_v14 = vadd.f32 %v842_v11, %v321_v4  ;;  %v731_v15 = vunpack.c.h.bf16 %v764_v59 }
  0x3b   : > { %v455_v16 = vadd.f32 %v726_v54, %v359_v6  ;;  %v361_v17 = vadd.f32 %v842_v11, %v322_v7  ;;  %v323_v18 = vmul.f32 %v667_v9, %v831_v0  ;;  %v670_v19 = vunpack.c.l.bf16 %v750_v5 }
  0x3c   : > { %517 = vst [vmem:[%s862_s6 + $0xc0] sm:$0xff] %v485_v12  ;;  %v486_v20 = vmax.f32 %v454_v13, 0.0  ;;  %v456_v21 = vadd.f32 %v727_v62, %v360_v14  ;;  %v734_v22 = vunpack.c.l.bf16 %v765_v10  ;;  %v671_v23 = vunpack.c.h.bf16 %v750_v5 }
  0x3d   : > { %v487_v24 = vmax.f32 %v455_v16, 0.0  ;;  %v457_v25 = vadd.f32 %v730_v8, %v361_v17  ;;  %v362_v26 = vadd.f32 %v842_v11, %v323_v18  ;;  %v324_v27 = vmul.f32 %v670_v19, %v831_v0 }
  0x3e   : > { %518 = vst [vmem:[%s862_s6 + $0xc8] sm:$0xff] %v486_v20  ;;  %v488_v28 = vmax.f32 %v456_v21, 0.0  ;;  %v325_v29 = vmul.f32 %v671_v23, %v831_v0  ;;  %v735_v30 = vunpack.c.h.bf16 %v765_v10 }
  0x3f   : > { %519 = vst [vmem:[%s862_s6 + $0xd0] sm:$0xff] %v487_v24  ;;  %v489_v31 = vmax.f32 %v457_v25, 0.0  ;;  %v458_v32 = vadd.f32 %v731_v15, %v362_v26  ;;  %v363_v33 = vadd.f32 %v842_v11, %v324_v27 }
  0x40   : > { %520 = vst [vmem:[%s862_s6 + $0xd8] sm:$0xff] %v488_v28  ;;  %v364_v34 = vadd.f32 %v842_v11, %v325_v29 }
  0x41   : > { %521 = vst [vmem:[%s862_s6 + $0xe0] sm:$0xff] %v489_v31  ;;  %v490_v35 = vmax.f32 %v458_v32, 0.0  ;;  %v459_v36 = vadd.f32 %v734_v22, %v363_v33 }
  0x42   : > { %v460_v37 = vadd.f32 %v735_v30, %v364_v34 }
  0x43   : > { %522 = vst [vmem:[%s862_s6 + $0xe8] sm:$0xff] %v490_v35  ;;  %v491_v38 = vmax.f32 %v459_v36, 0.0 }
  0x44   : > { %v492_v39 = vmax.f32 %v460_v37, 0.0 }
  0x45   : > { %523 = vst [vmem:[%s862_s6 + $0xf0] sm:$0xff] %v491_v38 }
  0x46   : > { %524 = vst [vmem:[%s862_s6 + $0xf8] sm:$0xff] %v492_v39 }
  0x47 PF: > { %s14_s15 = sadd.s32 1, %s780_s15  }
  0x48   : > { %p11_p4 = scmp.ge.s32.totalorder %s14_s15, 4  }
  0x4a   :  { %13 = sbr.rel (!%p11_p4) target bundleno = 1 (0x1), region = 69 }

// kernel: basic_block_forward.3
= control target key start
LH: loop header
LB: loop body
LE: loop exit
PB: predicated region body
PF: predicated region fallthrough
CT: control target
= control target key end

     0   :  { %s4382_s15 = smov 0   ;;  %s5791_s0 = inlined_call_operand.vmem [shape: bf16[2,16,16,128], index: 0, kind: input, shape index: {}]   ;;  %s5792_s1 = inlined_call_operand.vmem [shape: bf16[1152,128], index: 1, kind: input, shape index: {}]   ;;  %s5793_s2 = inlined_call_operand.vmem [shape: bf16[2,16,16,128], index: 2, kind: output, shape index: {0}]   ;;  %s5794_s3 = inlined_call_operand.vmem [shape: f32[2,1,128], index: 3, kind: output, shape index: {1}]   ;;  %s5795_s4 = inlined_call_operand.vmem [shape: f32[2,1,128], index: 4, kind: output, shape index: {2}]  }
   0x1 LB: > { %s3385_s16 = sadd.s32 4294967295, %s4354_s15   ;;  %p3389_p0 = scmp.ge.s32.totalorder %s4354_s15, 1  ;;  %s4354_s15 = sphi %s4382_s15, %s15_s15  }
   0x2   : > { %p167_p1 = scmp.lt.s32.totalorder %s4354_s15, 3 }
   0x4   : > { %p168_p2 = pnand %p3389_p0, %p167_p1 }
   0x6   : > { %171 = sbr.rel (%p168_p2) target bundleno = 620 (0x26c), region = 28 }
   0xd   : > { %v4246_v0 = vld [vmem:[%s5792_s1 + $0x40] sm:$0xff]   ;;  %v4356_v2 = vmov 0   ;;  %v4248_v3 = vld [vmem:[%s5792_s1 + $0x48] sm:$0xff]   ;;  %v4250_v5 = vld [vmem:[%s5792_s1 + $0x50] sm:$0xff]   ;;  %p199_p3 = scmp.lt.s32.totalorder %s3385_s16, 1  ;;  %vm1232_vm0 = vcmask 1042432  }
   0xe   : > { %v4247_v1 = vld [vmem:[%s5792_s1] sm:$0xff]   ;;  %248 = vst [vmem:[#allocation2] sm:$0xf] %v4356_v2  ;;  %249 = vst [vmem:[#allocation2 + $0x4] sm:$0xf] %v4356_v2  ;;  %3701 = vmatprep.subr.bf16.mxu0 %v4246_v0  ;;  %4221 = vmatprep.subr.bf16.mxu1 %v4246_v0  ;;  %v4249_v4 = vld [vmem:[%s5792_s1 + $0x8] sm:$0xff]  }
   0xf   : > { %250 = vst [vmem:[#allocation2 + $0x8] sm:$0x1] %v4356_v2  ;;  %251 = vst [vmem:[#allocation2 + $0xc] sm:$0xf] %v4356_v2  ;;  %3702 = vmatpush3.bf16.msra.mxu0 %v4247_v1  ;;  %4229 = vmatpush3.bf16.msra.mxu1 %v4247_v1  ;;  %v4251_v6 = vld [vmem:[%s5792_s1 + $0x10] sm:$0xff]   ;;  %v4252_v7 = vld [vmem:[%s5792_s1 + $0x58] sm:$0xff]  }
  0x10   : > { %252 = vst [vmem:[#allocation2 + $0x10] sm:$0xf] %v4356_v2  ;;  %253 = vst [vmem:[#allocation2 + $0x14] sm:$0x1] %v4356_v2  ;;  %3703 = vmatprep.subr.bf16.mxu0 %v4248_v3  ;;  %4222 = vmatprep.subr.bf16.mxu1 %v4248_v3  ;;  %s5829_s16 = smov (!%p199_p3, %s3385_s16), 1  ;;  %v4253_v8 = vld [vmem:[%s5792_s1 + $0x18] sm:$0xff]  }
  0x11   : > { %254 = vst [vmem:[#allocation2 + $0x18] sm:$0xf] %v4356_v2  ;;  %255 = vst [vmem:[#allocation2 + $0x1c] sm:$0xf] %v4356_v2  ;;  %v4254_v9 = vld [vmem:[%s5792_s1 + $0x60] sm:$0xff]   ;;  %s3572_s9 = sshll.u32 %s5829_s16, 7  ;;  %s211_s8 = scalar_lea.vmem %s5794_s3, %s5829_s16 }
  0x12   : > { %256 = vst [vmem:[#allocation2 + $0x20] sm:$0x1] %v4356_v2  ;;  %257 = vst [vmem:[#allocation2 + $0x24] sm:$0xf] %v4356_v2  ;;  %vm1233_vm1 = vcmask 1046532   ;;  %v4255_v10 = vld [vmem:[%s5792_s1 + $0x20] sm:$0xff]   ;;  %s4435_s18 = scalar_lea.vmem %s5791_s0, %s3572_s9  ;;  %s5703_s6 = scalar_lea.vmem %s5793_s2, %s3572_s9 }
  0x13   : > { %258 = vst [vmem:[#allocation2 + $0x28] sm:$0xf] %v4356_v2  ;;  %259 = vst [vmem:[#allocation2 + $0x2c] sm:$0x1] %v4356_v2  ;;  %3704 = vmatpush3.bf16.msra.mxu0 %v4249_v4  ;;  %4230 = vmatpush3.bf16.msra.mxu1 %v4249_v4  ;;  %vm626_vm2 = vcmask 1043456   ;;  %v4256_v11 = vld [vmem:[%s5792_s1 + $0x68] sm:$0xff]   ;;  %s214_s12 = scalar_lea.vmem %s5795_s4, %s5829_s16 }
  0x14   : > { %260 = vst [vmem:[#allocation2 + $0x30] sm:$0xf] %v4356_v2  ;;  %261 = vst [vmem:[#allocation2 + $0x34] sm:$0xf] %v4356_v2  ;;  %3705 = vmatprep.subr.bf16.mxu0 %v4250_v5  ;;  %4223 = vmatprep.subr.bf16.mxu1 %v4250_v5  ;;  %vm633_vm3 = vcmask 1040384   ;;  %v4257_v15 = vld [vmem:[%s5792_s1 + $0x28] sm:$0xff]  }
  0x15   : > { %262 = vst [vmem:[#allocation2 + $0x38] sm:$0x1] %v4356_v2  ;;  %263 = vst [vmem:[#allocation2 + $0x3c] sm:$0xf] %v4356_v2  ;;  %v4437_v12 = vld [vmem:[#allocation2] sm:$0xf] }
  0x16   : > { %264 = vst [vmem:[#allocation2 + $0x40] sm:$0xf] %v4356_v2  ;;  %265 = vst [vmem:[#allocation2 + $0x44] sm:$0x1] %v4356_v2  ;;  %v4439_v13 = vld [vmem:[#allocation2 + $0x4] sm:$0xf] }
  0x17   : > { %266 = vst [vmem:[#allocation2 + $0x48] sm:$0xf] %v4356_v2  ;;  %267 = vst [vmem:[#allocation2 + $0x4c] sm:$0xf] %v4356_v2  ;;  %3706 = vmatpush3.bf16.msra.mxu0 %v4251_v6  ;;  %4231 = vmatpush3.bf16.msra.mxu1 %v4251_v6  ;;  %v745_v14 = vld [vmem:[#allocation2 + $0x8] sm:$0x1]  ;;  %v3412_v4 = vcombine.low %v4437_v12, %v4439_v13 }
  0x18   : > { %268 = vst [vmem:[#allocation2 + $0x50] sm:$0x1] %v4356_v2  ;;  %269 = vst [vmem:[#allocation2 + $0x54] sm:$0xf] %v4356_v2  ;;  %3707 = vmatprep.subr.bf16.mxu0 %v4252_v7  ;;  %4224 = vmatprep.subr.bf16.mxu1 %v4252_v7  ;;  %vm797_vm4 = vsmask.f32 3328 }
  0x19   : > { %270 = vst [vmem:[#allocation2 + $0x58] sm:$0xf] %v4356_v2  ;;  %271 = vst [vmem:[#allocation2 + $0x5c] sm:$0x1] %v4356_v2  ;;  %vm798_vm5 = vsmask.f32 7440 }
  0x1a   : > { %272 = vst [vmem:[#allocation2 + $0x60] sm:$0xf] %v4356_v2  ;;  %273 = vst [vmem:[#allocation2 + $0x64] sm:$0xf] %v4356_v2  ;;  %v801_v16 = vshrl.u32 %v4437_v12, 16  ;;  %v804_v17 = vshll.u32 %v4437_v12, 16 }
  0x1b   : > { %274 = vst [vmem:[#allocation2 + $0x68] sm:$0x1] %v4356_v2  ;;  %275 = vst [vmem:[#allocation2 + $0x6c] sm:$0xf] %v4356_v2  ;;  %3708 = vmatpush3.bf16.msra.mxu0 %v4253_v8  ;;  %4232 = vmatpush3.bf16.msra.mxu1 %v4253_v8  ;;  %v810_v18 = vshll.u32 %v4439_v13, 16  ;;  %v814_v19 = vshrl.u32 %v4439_v13, 16 }
  0x1c   : > { %276 = vst [vmem:[#allocation2 + $0x70] sm:$0xf] %v4356_v2  ;;  %277 = vst [vmem:[#allocation2 + $0x74] sm:$0x1] %v4356_v2  ;;  %3709 = vmatprep.subr.bf16.mxu0 %v4254_v9  ;;  %4225 = vmatprep.subr.bf16.mxu1 %v4254_v9  ;;  %v820_v20 = vshll.u32 %v745_v14, 16  ;;  %v3394_v21 = vrot.slane %v4437_v12, 9 }
  0x1d   : > { %278 = vst [vmem:[#allocation2 + $0x78] sm:$0xf] %v4356_v2  ;;  %279 = vst [vmem:[#allocation2 + $0x7c] sm:$0xf] %v4356_v2  ;;  %v238_v22 = vld [vmem:[%s4435_s18 + $0x58] sm:$0xf] }
  0x1e   : > { %280 = vst [vmem:[#allocation2 + $0x80] sm:$0x1] %v4356_v2  ;;  %281 = vst [vmem:[#allocation2 + $0x84] sm:$0xf] %v4356_v2  ;;  %v803_v23 = vrot.slane %v801_v16, 4  ;;  %v806_v24 = vrot.slane %v804_v17, 5 }
  0x1f   : > { %282 = vst [vmem:[#allocation2 + $0x88] sm:$0xf] %v4356_v2  ;;  %283 = vst [vmem:[#allocation2 + $0x8c] sm:$0x1] %v4356_v2  ;;  %3710 = vmatpush3.bf16.msra.mxu0 %v4255_v10  ;;  %4233 = vmatpush3.bf16.msra.mxu1 %v4255_v10  ;;  %v1237_v25 = vrot.slane %v4439_v13, 5  ;;  %v1240_v26 = vrot.slane %v745_v14, 5 }
  0x20   : > { %284 = vst [vmem:[#allocation2 + $0x90] sm:$0xf] %v4356_v2  ;;  %285 = vst [vmem:[#allocation2 + $0x94] sm:$0xf] %v4356_v2  ;;  %v239_v27 = vld [vmem:[%s4435_s18 + $0x5c] sm:$0xf]  ;;  %3711 = vmatprep.subr.bf16.mxu0 %v4256_v11  ;;  %4226 = vmatprep.subr.bf16.mxu1 %v4256_v11  ;;  %v807_v34 = vor.u32 %v806_v24, %v803_v23 }
  0x21   : > { %286 = vst [vmem:[#allocation2 + $0x98] sm:$0x1] %v4356_v2  ;;  %287 = vst [vmem:[#allocation2 + $0x9c] sm:$0xf] %v4356_v2  ;;  %v4258_v28 = vld [vmem:[%s5792_s1 + $0x70] sm:$0xff]   ;;  %v812_v29 = vrot.slane %v810_v18, 5 }
  0x22   : > { %288 = vst [vmem:[#allocation2 + $0xa0] sm:$0xf] %v4356_v2  ;;  %289 = vst [vmem:[#allocation2 + $0xa4] sm:$0x1] %v4356_v2  ;;  %v816_v30 = vrot.slane %v814_v19, 4  ;;  %v822_v31 = vrot.slane %v820_v20, 5 }
  0x23   : > { %290 = vst [vmem:[#allocation2 + $0xa8] sm:$0xf] %v4356_v2  ;;  %291 = vst [vmem:[#allocation2 + $0xac] sm:$0xf] %v4356_v2  ;;  %vm302_vm7 = vsmask.f32 256  ;;  %3712 = vmatpush3.bf16.msra.mxu0 %v4257_v15  ;;  %4234 = vmatpush3.bf16.msra.mxu1 %v4257_v15 }
  0x24   : > { %292 = vst [vmem:[#allocation2 + $0xb0] sm:$0x1] %v4356_v2  ;;  %293 = vst [vmem:[#allocation2 + $0xb4] sm:$0xf] %v4356_v2  ;;  %v4259_v33 = vld [vmem:[%s5792_s1 + $0x30] sm:$0xff]   ;;  %v1239_v35 = vrot.slane %v1237_v25, 4  ;;  %v817_v39 = vor.u32 %v816_v30, %v812_v29  ;;  %3713 = vmatprep.subr.bf16.mxu0 %v4258_v28  ;;  %4227 = vmatprep.subr.bf16.mxu1 %v4258_v28 }
  0x25   : > { %294 = vst [vmem:[#allocation2 + $0xb8] sm:$0xf] %v4356_v2  ;;  %295 = vst [vmem:[#allocation2 + $0xbc] sm:$0x1] %v4356_v2  ;;  %vm303_vm8 = vsmask.f32 4368 }
  0x26   : > { %296 = vst [vmem:[#allocation2 + $0xc0] sm:$0xf] %v4356_v2  ;;  %297 = vst [vmem:[#allocation2 + $0xc4] sm:$0xf] %v4356_v2  ;;  %v493_v36 = vshrl.u32 %v238_v22, 16  ;;  %v4260_v37 = vld [vmem:[%s5792_s1 + $0x78] sm:$0xff]  }
  0x27   : > { %298 = vst [vmem:[#allocation2 + $0xc8] sm:$0x1] %v4356_v2  ;;  %299 = vst [vmem:[#allocation2 + $0xcc] sm:$0xf] %v4356_v2  ;;  %v496_v40 = vshll.u32 %v238_v22, 16  ;;  %v501_v41 = vshrl.u32 %v239_v27, 16  ;;  %3714 = vmatpush3.bf16.msra.mxu0 %v4259_v33  ;;  %4235 = vmatpush3.bf16.msra.mxu1 %v4259_v33 }
  0x28   : > { %300 = vst [vmem:[#allocation2 + $0xd0] sm:$0xf] %v4356_v2  ;;  %301 = vst [vmem:[#allocation2 + $0xd4] sm:$0x1] %v4356_v2  ;;  %v504_v42 = vshll.u32 %v239_v27, 16  ;;  %v808_v44 = vrot.slane %v807_v34, 4  ;;  %3715 = vmatprep.subr.bf16.mxu0 %v4260_v37  ;;  %4228 = vmatprep.subr.bf16.mxu1 %v4260_v37 }
  0x29   : > { %vm4457_vm6 = vmor %vm1232_vm0, %vm1233_vm1  ;;  %v708_v43 = vld [vmem:[#allocation2 + $0x90] sm:$0xf]  ;;  %v495_v46 = vrot.slane %v493_v36, 7  ;;  %vm627_vm10 = vsmask.f32 7938  ;;  %v818_v49 = vrot.slane %v817_v39, 4 }
  0x2a   : > { %vm4469_vm9 = vmor %vm797_vm4, %vm798_vm5  ;;  %v4475_v45 = vsel %vm4457_vm6, %v1239_v35, %v1240_v26  ;;  %v712_v48 = vld [vmem:[#allocation2 + $0x98] sm:$0x1]  ;;  %v503_v50 = vrot.slane %v501_v41, 7  ;;  %v4490_v52 = vsel %vm4457_vm6, %v3394_v21, %v1237_v25  ;;  %v4264_v62 = vld [vmem:[%s5792_s1 + $0xc0] sm:$0xff]  }
  0x2b   : > { %vm4479_vm11 = vmand %vm633_vm3, %vm302_vm7  ;;  %v4261_v53 = vld [vmem:[%s5792_s1 + $0x38] sm:$0xff]   ;;  %v813_v54 = vsel %vm4469_vm9, %v808_v44, %v812_v29  ;;  %v498_v56 = vor.u32 %v496_v40, %v495_v46  ;;  %v499_v57 = vrot.slane %v495_v46, 4  ;;  %v3444_v58 = vcombine.low %v4490_v52, %v4475_v45  ;;  %v4265_v3 = vld [vmem:[%s5792_s1 + $0x140] sm:$0xff]  }
  0x2c   : > { %vm4484_vm12 = vmand %vm626_vm2, %vm627_vm10  ;;  %v823_v59 = vsel %vm4469_vm9, %v818_v49, %v822_v31  ;;  %v506_v60 = vor.u32 %v504_v42, %v503_v50  ;;  %v508_v61 = vrot.slane %v503_v50, 4  ;;  %v216_v5 = vld [vmem:[%s4435_s18] sm:$0xf]  ;;  %v217_v6 = vld [vmem:[%s4435_s18 + $0x4] sm:$0xf]  ;;  %3716 = vmatpush3.bf16.msra.mxu0 %v4261_v53  ;;  %4236 = vmatpush3.bf16.msra.mxu1 %v4261_v53 }
  0x2d   : > { %vm4499_vm13 = vmor %vm302_vm7, %vm303_vm8  ;;  %v3428_v63 = vcombine.low %v813_v54, %v823_v59  ;;  %v709_v0 = vsel %vm4484_vm12, %v498_v56, %v708_v43  ;;  %v306_v7 = vshrl.u32 %v216_v5, 16  ;;  %v309_v8 = vshll.u32 %v216_v5, 16  ;;  %v4267_v11 = vld [vmem:[%s5792_s1 + $0x100] sm:$0xff]   ;;  %3813 = vmatprep.subr.bf16.mxu1 %v4264_v62  ;;  %3925 = vmatprep.subr.bf16.mxu0 %v4265_v3  ;;  %v629_v18 = vld [vmem:[#allocation2 + $0xc] sm:$0xf] }
  0x2e   : > { %v507_v1 = vsel %vm4499_vm13, %v499_v57, %v506_v60  ;;  %710 = vst [vmem:[#allocation2 + $0x90] sm:$0xf] %v709_v0  ;;  %v713_v2 = vsel %vm4479_vm11, %v508_v61, %v712_v48  ;;  %v314_v9 = vshrl.u32 %v217_v6, 16  ;;  %v317_v10 = vshll.u32 %v217_v6, 16  ;;  %v240_v14 = vld [vmem:[%s4435_s18 + $0x60] sm:$0xf] }
  0x2f   : > { %2239 = vmatprep.mubr.bf16.mxu0 %v3428_v63  ;;  %711 = vst [vmem:[#allocation2 + $0x94] sm:$0xf] %v507_v1  ;;  %714 = vst [vmem:[#allocation2 + $0x98] sm:$0x1] %v713_v2  ;;  %v241_v15 = vld [vmem:[%s4435_s18 + $0x64] sm:$0xf] }
  0x30   : > { %v308_v16 = vrot.slane %v306_v7, 7  ;;  %v316_v17 = vrot.slane %v314_v9, 7  ;;  %v510_v12 = vshrl.u32 %v240_v14, 16  ;;  %v513_v13 = vshll.u32 %v240_v14, 16  ;;  %2240 = vmatmul.mubr.bf16.vlgmr.msra.gmra.mrb[0].mxu0 %v3412_v4  ;;  %v635_v25 = vld [vmem:[#allocation2 + $0x14] sm:$0x1] }
  0x31   : > { %v518_v19 = vshrl.u32 %v241_v15, 16  ;;  %v521_v20 = vshll.u32 %v241_v15, 16  ;;  %3926 = vmatpush3.bf16.msra.mxu0 %v4267_v11  ;;  %v715_v29 = vld [vmem:[#allocation2 + $0x9c] sm:$0xf]  ;;  %v719_v41 = vld [vmem:[#allocation2 + $0xa4] sm:$0x1] }
  0x32   : > { %v311_v21 = vor.u32 %v309_v8, %v308_v16  ;;  %v312_v22 = vrot.slane %v308_v16, 4  ;;  %v319_v23 = vor.u32 %v317_v10, %v316_v17  ;;  %v321_v24 = vrot.slane %v316_v17, 4  ;;  %v4275_v59 = vld [vmem:[%s5792_s1 + $0x148] sm:$0xff]   ;;  %v4266_v15 = vld [vmem:[%s5792_s1 + $0x80] sm:$0xff]  }
  0x33   : > { %v512_v27 = vrot.slane %v510_v12, 7  ;;  %v520_v28 = vrot.slane %v518_v19, 7  ;;  %3927 = vmatprep.subr.bf16.mxu0 %v4275_v59  ;;  %v4277_v1 = vld [vmem:[%s5792_s1 + $0x108] sm:$0xff]  }
  0x34   : > { %v320_v35 = vsel %vm4499_vm13, %v312_v22, %v319_v23  ;;  %v630_v36 = vsel %vm4484_vm12, %v311_v21, %v629_v18  ;;  %v636_v44 = vsel %vm4479_vm11, %v321_v24, %v635_v25  ;;  %v218_v2 = vld [vmem:[%s4435_s18 + $0x8] sm:$0xf]  ;;  %v219_v4 = vld [vmem:[%s4435_s18 + $0xc] sm:$0xf] }
  0x35   : > { %v779_v26 = vld [vmem:[#allocation2 + $0x90] sm:$0xf]  ;;  %631 = vst [vmem:[#allocation2 + $0xc] sm:$0xf] %v630_v36  ;;  %632 = vst [vmem:[#allocation2 + $0x10] sm:$0xf] %v320_v35  ;;  %v515_v46 = vor.u32 %v513_v13, %v512_v27  ;;  %v523_v54 = vor.u32 %v521_v20, %v520_v28  ;;  %3928 = vmatpush3.bf16.msra.mxu0 %v4277_v1 }
  0x36   : > { %v780_v30 = vld [vmem:[#allocation2 + $0x94] sm:$0xf]  ;;  %v781_v31 = vld [vmem:[#allocation2 + $0x98] sm:$0x1]  ;;  %v1089_v33 = vshrl.u32 %v779_v26, 16  ;;  %v1092_v34 = vshll.u32 %v779_v26, 16 }
  0x37   : > { %v1098_v37 = vshll.u32 %v780_v30, 16  ;;  %v1102_v39 = vshrl.u32 %v780_v30, 16  ;;  %v1108_v40 = vshll.u32 %v781_v31, 16  ;;  %637 = vst [vmem:[#allocation2 + $0x14] sm:$0x1] %v636_v44  ;;  %v516_v50 = vrot.slane %v512_v27, 4 }
  0x38   : > { %v1091_v42 = vrot.slane %v1089_v33, 4  ;;  %v1094_v43 = vrot.slane %v1092_v34, 5  ;;  %v525_v56 = vrot.slane %v520_v28, 4  ;;  %v716_v57 = vsel %vm4484_vm12, %v515_v46, %v715_v29  ;;  %v4268_v13 = vld [vmem:[%s5792_s1 + $0xc8] sm:$0xff]   ;;  %v638_v27 = vld [vmem:[#allocation2 + $0x18] sm:$0xf] }
  0x39   : > { %v1100_v48 = vrot.slane %v1098_v37, 5  ;;  %v1104_v49 = vrot.slane %v1102_v39, 4  ;;  %v1110_v61 = vrot.slane %v1108_v40, 5  ;;  %717 = vst [vmem:[#allocation2 + $0x9c] sm:$0xf] %v716_v57  ;;  %v524_v63 = vsel %vm4499_vm13, %v516_v50, %v523_v54  ;;  %v4269_v34 = vld [vmem:[%s5792_s1 + $0x88] sm:$0xff]  }
  0x3a   : > { %v1095_v53 = vor.u32 %v1094_v43, %v1091_v42  ;;  %v720_v0 = vsel %vm4479_vm11, %v525_v56, %v719_v41  ;;  %718 = vst [vmem:[#allocation2 + $0xa0] sm:$0xf] %v524_v63  ;;  %v323_v5 = vshrl.u32 %v218_v2, 16  ;;  %v4550_v7 = vcombine.low %v779_v26, %v780_v30  ;;  %v642_v40 = vld [vmem:[#allocation2 + $0x20] sm:$0x1]  ;;  %v4272_v44 = vld [vmem:[%s5792_s1 + $0xd0] sm:$0xff]  }
  0x3b   : > { %v1105_v60 = vor.u32 %v1104_v49, %v1100_v48  ;;  %721 = vst [vmem:[#allocation2 + $0xa4] sm:$0x1] %v720_v0  ;;  %v326_v10 = vshll.u32 %v218_v2, 16  ;;  %v331_v11 = vshrl.u32 %v219_v4, 16  ;;  %v334_v22 = vshll.u32 %v219_v4, 16  ;;  %v4273_v63 = vld [vmem:[%s5792_s1 + $0x90] sm:$0xff]  }
  0x3c   : > { %v1096_v62 = vrot.slane %v1095_v53, 4  ;;  %v4552_v8 = vld [vmem:[#allocation2 + $0xc] sm:$0xf]  ;;  %v4554_v9 = vld [vmem:[#allocation2 + $0x10] sm:$0xf]  ;;  %v325_v21 = vrot.slane %v323_v5, 7 }
  0x3d   : > { %v1106_v3 = vrot.slane %v1105_v60, 4  ;;  %v825_v16 = vshrl.u32 %v4552_v8, 16  ;;  %v828_v17 = vshll.u32 %v4552_v8, 16  ;;  %v834_v18 = vshll.u32 %v4554_v9, 16  ;;  %v242_v57 = vld [vmem:[%s4435_s18 + $0x68] sm:$0xf] }
  0x3e   : > { %v1101_v6 = vsel %vm4469_vm9, %v1096_v62, %v1100_v48  ;;  %v4569_v19 = vld [vmem:[#allocation2 + $0x14] sm:$0x1]  ;;  %v838_v20 = vshrl.u32 %v4554_v9, 16  ;;  %v328_v30 = vor.u32 %v326_v10, %v325_v21  ;;  %v329_v31 = vrot.slane %v325_v21, 4  ;;  %v243_v0 = vld [vmem:[%s4435_s18 + $0x6c] sm:$0xf] }
  0x3f   : > { %v1111_v14 = vsel %vm4469_vm9, %v1106_v3, %v1110_v61  ;;  %v827_v23 = vrot.slane %v825_v16, 4  ;;  %v830_v24 = vrot.slane %v828_v17, 5  ;;  %v836_v25 = vrot.slane %v834_v18, 5  ;;  %v4287_v1 = vld [vmem:[%s5792_s1 + $0x150] sm:$0xff]   ;;  %v4274_v5 = vld [vmem:[%s5792_s1 + $0xd8] sm:$0xff]  }
  0x40   : > { %v4564_v12 = vcombine.low %v1101_v6, %v1111_v14  ;;  %v844_v26 = vshll.u32 %v4569_v19, 16  ;;  %v840_v28 = vrot.slane %v838_v20, 4  ;;  %v4574_v29 = vld [vmem:[#allocation2 + $0x9c] sm:$0xf]  ;;  %v333_v33 = vrot.slane %v331_v11, 7  ;;  %3929 = vmatprep.subr.bf16.mxu0 %v4287_v1  ;;  %v4289_v20 = vld [vmem:[%s5792_s1 + $0x110] sm:$0xff]  }
  0x41   : > { %v831_v35 = vor.u32 %v830_v24, %v827_v23  ;;  %v1113_v37 = vshrl.u32 %v4574_v29, 16  ;;  %v1116_v39 = vshll.u32 %v4574_v29, 16  ;;  %v783_v42 = vld [vmem:[#allocation2 + $0xa0] sm:$0xf]  ;;  %v639_v49 = vsel %vm4484_vm12, %v328_v30, %v638_v27  ;;  %v4276_v24 = vld [vmem:[%s5792_s1 + $0x98] sm:$0xff]   ;;  %3930 = vmatpush3.bf16.msra.mxu0 %v4289_v20 }
  0x42   : > { %5816 = vst [vmem:[#allocation3_spill] sm:$0xff] %v4564_v12  ;;  %2335 = vmatprep.mubr.bf16.mxu1 %v4564_v12  ;;  %v846_v36 = vrot.slane %v844_v26, 5  ;;  %v841_v41 = vor.u32 %v840_v28, %v836_v25  ;;  %v784_v43 = vld [vmem:[#allocation2 + $0xa4] sm:$0x1]  ;;  %v336_v46 = vor.u32 %v334_v22, %v333_v33  ;;  %v338_v48 = vrot.slane %v333_v33, 4 }
  0x43   : > { %2336 = vmatmul.mubr.bf16.vlgmr.msra.gmra.mrb[0].mxu1 %v4550_v7  ;;  %v832_v50 = vrot.slane %v831_v35, 4  ;;  %v1115_v53 = vrot.slane %v1113_v37, 4  ;;  %v1118_v54 = vrot.slane %v1116_v39, 5  ;;  %v1122_v56 = vshll.u32 %v783_v42, 16  ;;  %640 = vst [vmem:[#allocation2 + $0x18] sm:$0xf] %v639_v49 }
  0x44   : > { %3814 = vmatpush3.bf16.msra.mxu1 %v4266_v15  ;;  %v842_v59 = vrot.slane %v841_v41, 4  ;;  %v1126_v60 = vshrl.u32 %v783_v42, 16  ;;  %v1132_v61 = vshll.u32 %v784_v43, 16  ;;  %v4590_v62 = vcombine.low %v4552_v8, %v4554_v9  ;;  %v220_v26 = vld [vmem:[%s4435_s18 + $0x10] sm:$0xf]  ;;  %v4280_v41 = vld [vmem:[%s5792_s1 + $0xe0] sm:$0xff]  }
  0x45   : > { %3815 = vmatprep.subr.bf16.mxu1 %v4268_v13  ;;  %v837_v2 = vsel %vm4469_vm9, %v832_v50, %v836_v25  ;;  %v1119_v3 = vor.u32 %v1118_v54, %v1115_v53  ;;  %v1124_v4 = vrot.slane %v1122_v56, 5  ;;  %v337_v6 = vsel %vm4499_vm13, %v329_v31, %v336_v46  ;;  %v4282_v56 = vld [vmem:[%s5792_s1 + $0xe8] sm:$0xff]   ;;  %v4657_v1 = vld [vmem:[%s4435_s18 + $0x70] sm:$0xf] }
  0x46   : > { %v847_v10 = vsel %vm4469_vm9, %v842_v59, %v846_v36  ;;  %v1128_v11 = vrot.slane %v1126_v60, 4  ;;  %v1134_v14 = vrot.slane %v1132_v61, 5  ;;  %641 = vst [vmem:[#allocation2 + $0x1c] sm:$0xf] %v337_v6  ;;  %v643_v15 = vsel %vm4479_vm11, %v338_v48, %v642_v40  ;;  %v726_v40 = vld [vmem:[#allocation2 + $0xb0] sm:$0x1] }
  0x47   : > { %v4610_v16 = vcombine.low %v837_v2, %v847_v10  ;;  %v1120_v17 = vrot.slane %v1119_v3, 4  ;;  %644 = vst [vmem:[#allocation2 + $0x20] sm:$0x1] %v643_v15  ;;  %v527_v18 = vshrl.u32 %v242_v57, 16  ;;  %v530_v13 = vshll.u32 %v242_v57, 16 }
  0x48   : > { %3816 = vmatpush3.bf16.msra.mxu1 %v4269_v34  ;;  %v1129_v21 = vor.u32 %v1128_v11, %v1124_v4  ;;  %v535_v22 = vshrl.u32 %v243_v0, 16  ;;  %v538_v23 = vshll.u32 %v243_v0, 16  ;;  %v4624_v30 = vcombine.low %v4574_v29, %v783_v42  ;;  %v722_v34 = vld [vmem:[#allocation2 + $0xa8] sm:$0xf]  ;;  %v221_v57 = vld [vmem:[%s4435_s18 + $0x14] sm:$0xf] }
  0x49   : > { %3817 = vmatprep.subr.bf16.mxu1 %v4272_v44  ;;  %2247 = vmatprep.mubr.bf16.mxu0 %v4610_v16  ;;  %v529_v25 = vrot.slane %v527_v18, 7  ;;  %v1125_v27 = vsel %vm4469_vm9, %v1120_v17, %v1124_v4  ;;  %v4281_v44 = vld [vmem:[%s5792_s1 + $0xa0] sm:$0xff]   ;;  %v340_v46 = vshrl.u32 %v220_v26, 16  ;;  %v4662_v6 = vld [vmem:[%s4435_s18 + $0x74] sm:$0xf]  ;;  %v343_v15 = vshll.u32 %v220_v26, 16 }
  0x4a   : > { %v1130_v28 = vrot.slane %v1129_v21, 4  ;;  %2248 = vmatmul.mubr.bf16.gmra.mrb[4].mxu0 %v4590_v62  ;;  %v4626_v31 = vld [vmem:[#allocation2 + $0x18] sm:$0xf]  ;;  %v537_v33 = vrot.slane %v535_v22, 7  ;;  %v348_v17 = vshrl.u32 %v221_v57, 16  ;;  %v351_v21 = vshll.u32 %v221_v57, 16 }
  0x4b   : > { %v849_v35 = vshrl.u32 %v4626_v31, 16  ;;  %v852_v36 = vshll.u32 %v4626_v31, 16  ;;  %v532_v37 = vor.u32 %v530_v13, %v529_v25  ;;  %v533_v39 = vrot.slane %v529_v25, 4 }
  0x4c   : > { %3818 = vmatpush3.bf16.msra.mxu1 %v4273_v63  ;;  %v1135_v29 = vsel %vm4469_vm9, %v1130_v28, %v1134_v14  ;;  %v540_v42 = vor.u32 %v538_v23, %v537_v33  ;;  %v542_v43 = vrot.slane %v537_v33, 4  ;;  %v342_v4 = vrot.slane %v340_v46, 7  ;;  %v4283_v14 = vld [vmem:[%s5792_s1 + $0xa8] sm:$0xff]  }
  0x4d   : > { %3819 = vmatprep.subr.bf16.mxu1 %v4274_v5  ;;  %v4638_v48 = vcombine.low %v1125_v27, %v1135_v29  ;;  %v4640_v49 = vld [vmem:[#allocation2 + $0x1c] sm:$0xf]  ;;  %v851_v50 = vrot.slane %v849_v35, 4  ;;  %v854_v53 = vrot.slane %v852_v36, 5  ;;  %v723_v54 = vsel %vm4484_vm12, %v532_v37, %v722_v34  ;;  %v645_v5 = vld [vmem:[#allocation2 + $0x24] sm:$0xf] }
  0x4e   : > { %v4648_v59 = vld [vmem:[#allocation2 + $0x20] sm:$0x1]  ;;  %v858_v60 = vshll.u32 %v4640_v49, 16  ;;  %v862_v61 = vshrl.u32 %v4640_v49, 16  ;;  %v541_v63 = vsel %vm4499_vm13, %v533_v39, %v540_v42  ;;  %724 = vst [vmem:[#allocation2 + $0xa8] sm:$0xf] %v723_v54  ;;  %v727_v0 = vsel %vm4479_vm11, %v542_v43, %v726_v40 }
  0x4f   : > { %5817 = vst [vmem:[#allocation4_spill] sm:$0xff] %v4638_v48  ;;  %2343 = vmatprep.mubr.bf16.mxu1 %v4638_v48  ;;  %v855_v2 = vor.u32 %v854_v53, %v851_v50  ;;  %v868_v3 = vshll.u32 %v4648_v59, 16  ;;  %725 = vst [vmem:[#allocation2 + $0xac] sm:$0xf] %v541_v63  ;;  %v346_v20 = vrot.slane %v342_v4, 4  ;;  %v345_v23 = vor.u32 %v343_v15, %v342_v4  ;;  %v4286_v35 = vld [vmem:[%s5792_s1 + $0xf0] sm:$0xff]  }
  0x50   : > { %3820 = vmatpush3.bf16.msra.mxu1 %v4276_v24  ;;  %728 = vst [vmem:[#allocation2 + $0xb0] sm:$0x1] %v727_v0  ;;  %v860_v10 = vrot.slane %v858_v60, 5  ;;  %v864_v11 = vrot.slane %v862_v61, 4  ;;  %v350_v24 = vrot.slane %v348_v17, 7  ;;  %v544_v25 = vshrl.u32 %v4657_v1, 16 }
  0x51   : > { %3821 = vmatprep.subr.bf16.mxu1 %v4280_v41  ;;  %2344 = vmatmul.mubr.bf16.gmra.mrb[4].mxu1 %v4624_v30  ;;  %v856_v18 = vrot.slane %v855_v2, 4  ;;  %v870_v13 = vrot.slane %v868_v3, 5  ;;  %v649_v28 = vld [vmem:[#allocation2 + $0x2c] sm:$0x1]  ;;  %v547_v33 = vshll.u32 %v4657_v1, 16  ;;  %v552_v26 = vshrl.u32 %v4662_v6, 16 }
  0x52   : > { %v865_v22 = vor.u32 %v864_v11, %v860_v10  ;;  %v555_v34 = vshll.u32 %v4662_v6, 16  ;;  %v353_v37 = vor.u32 %v351_v21, %v350_v24  ;;  %v355_v39 = vrot.slane %v350_v24, 4  ;;  %v4288_v41 = vld [vmem:[%s5792_s1 + $0xb0] sm:$0xff]   ;;  %v733_v2 = vld [vmem:[#allocation2 + $0xbc] sm:$0x1] }
  0x53   : > { %v861_v27 = vsel %vm4469_vm9, %v856_v18, %v860_v10  ;;  %v646_v40 = vsel %vm4484_vm12, %v345_v23, %v645_v5  ;;  %v4684_v42 = vcombine.low %v4626_v31, %v4640_v49  ;;  %v546_v43 = vrot.slane %v544_v25, 7  ;;  %v729_v60 = vld [vmem:[#allocation2 + $0xb4] sm:$0xf]  ;;  %v4290_v3 = vld [vmem:[%s5792_s1 + $0xf8] sm:$0xff]  }
  0x54   : > { %3822 = vmatpush3.bf16.msra.mxu1 %v4281_v44  ;;  %v866_v36 = vrot.slane %v865_v22, 4  ;;  %647 = vst [vmem:[#allocation2 + $0x24] sm:$0xf] %v646_v40  ;;  %v554_v44 = vrot.slane %v552_v26, 7  ;;  %v354_v57 = vsel %vm4499_vm13, %v346_v20, %v353_v37  ;;  %v650_v6 = vsel %vm4479_vm11, %v355_v39, %v649_v28  ;;  %v222_v17 = vld [vmem:[%s4435_s18 + $0x18] sm:$0xf] }
  0x55   : > { %3823 = vmatprep.subr.bf16.mxu1 %v4282_v56  ;;  %v785_v29 = vld [vmem:[#allocation2 + $0xa8] sm:$0xf]  ;;  %648 = vst [vmem:[#allocation2 + $0x28] sm:$0xf] %v354_v57  ;;  %651 = vst [vmem:[#allocation2 + $0x2c] sm:$0x1] %v650_v6  ;;  %v549_v15 = vor.u32 %v547_v33, %v546_v43 }
  0x56   : > { %v871_v46 = vsel %vm4469_vm9, %v866_v36, %v870_v13  ;;  %v786_v50 = vld [vmem:[#allocation2 + $0xac] sm:$0xf]  ;;  %v1137_v54 = vshrl.u32 %v785_v29, 16  ;;  %v1140_v56 = vshll.u32 %v785_v29, 16  ;;  %v4295_v18 = vld [vmem:[%s5792_s1 + $0x158] sm:$0xff]   ;;  %v550_v20 = vrot.slane %v546_v43, 4 }
  0x57   : > { %v787_v53 = vld [vmem:[#allocation2 + $0xb0] sm:$0x1]  ;;  %v4690_v61 = vcombine.low %v861_v27, %v871_v46  ;;  %v1146_v63 = vshll.u32 %v786_v50, 16  ;;  %v1150_v0 = vshrl.u32 %v786_v50, 16  ;;  %v557_v21 = vor.u32 %v555_v34, %v554_v44  ;;  %v4291_v23 = vld [vmem:[%s5792_s1 + $0xb8] sm:$0xff]   ;;  %v4293_v26 = vld [vmem:[%s5792_s1 + $0x1c0] sm:$0xff]   ;;  %3931 = vmatprep.subr.bf16.mxu0 %v4295_v18 }
  0x58   : > { %3824 = vmatpush3.bf16.msra.mxu1 %v4283_v14  ;;  %v1156_v1 = vshll.u32 %v787_v53, 16  ;;  %v1139_v4 = vrot.slane %v1137_v54, 4  ;;  %v1142_v5 = vrot.slane %v1140_v56, 5  ;;  %v559_v22 = vrot.slane %v554_v44, 4  ;;  %v223_v24 = vld [vmem:[%s4435_s18 + $0x1c] sm:$0xf] }
  0x59   : > { %3825 = vmatprep.subr.bf16.mxu1 %v4286_v35  ;;  %2255 = vmatprep.mubr.bf16.mxu0 %v4690_v61  ;;  %v1148_v10 = vrot.slane %v1146_v63, 5  ;;  %v1152_v11 = vrot.slane %v1150_v0, 4  ;;  %v730_v27 = vsel %vm4484_vm12, %v549_v15, %v729_v60  ;;  %v357_v28 = vshrl.u32 %v222_v17, 16  ;;  %v652_v46 = vld [vmem:[#allocation2 + $0x30] sm:$0xf]  ;;  %v4299_v6 = vld [vmem:[%s5792_s1 + $0x160] sm:$0xff]  }
  0x5a   : > { %v1158_v14 = vrot.slane %v1156_v1, 5  ;;  %v1143_v13 = vor.u32 %v1142_v5, %v1139_v4  ;;  %2256 = vmatmul.mubr.bf16.gmra.mrb[8].mxu0 %v4684_v42  ;;  %v360_v33 = vshll.u32 %v222_v17, 16  ;;  %v558_v36 = vsel %vm4499_vm13, %v550_v20, %v557_v21  ;;  %731 = vst [vmem:[#allocation2 + $0xb4] sm:$0xf] %v730_v27  ;;  %v656_v20 = vld [vmem:[#allocation2 + $0x38] sm:$0x1] }
  0x5b   : > { %v1153_v25 = vor.u32 %v1152_v11, %v1148_v10  ;;  %v4712_v35 = vld [vmem:[#allocation2 + $0x24] sm:$0xf]  ;;  %v734_v37 = vsel %vm4479_vm11, %v559_v22, %v733_v2  ;;  %v365_v39 = vshrl.u32 %v223_v24, 16  ;;  %732 = vst [vmem:[#allocation2 + $0xb8] sm:$0xf] %v558_v36  ;;  %v359_v44 = vrot.slane %v357_v28, 7 }
  0x5c   : > { %3826 = vmatpush3.bf16.msra.mxu1 %v4288_v41  ;;  %v1144_v34 = vrot.slane %v1143_v13, 4  ;;  %v873_v41 = vshrl.u32 %v4712_v35, 16  ;;  %v876_v43 = vshll.u32 %v4712_v35, 16  ;;  %735 = vst [vmem:[#allocation2 + $0xbc] sm:$0x1] %v734_v37  ;;  %v4722_v54 = vcombine.low %v785_v29, %v786_v50 }
  0x5d   : > { %3827 = vmatprep.subr.bf16.mxu1 %v4290_v3  ;;  %v1154_v40 = vrot.slane %v1153_v25, 4  ;;  %v4724_v56 = vld [vmem:[#allocation2 + $0x28] sm:$0xf]  ;;  %v367_v57 = vrot.slane %v365_v39, 7  ;;  %v368_v60 = vshll.u32 %v223_v24, 16  ;;  %v4296_v3 = vld [vmem:[%s5792_s1 + $0x118] sm:$0xff]   ;;  %v362_v5 = vor.u32 %v360_v33, %v359_v44 }
  0x5e   : > { %v1149_v53 = vsel %vm4469_vm9, %v1144_v34, %v1148_v10  ;;  %v875_v0 = vrot.slane %v873_v41, 4  ;;  %v878_v1 = vrot.slane %v876_v43, 5  ;;  %v882_v2 = vshll.u32 %v4724_v56, 16  ;;  %v4734_v29 = vld [vmem:[#allocation2 + $0x2c] sm:$0x1]  ;;  %3932 = vmatpush3.bf16.msra.mxu0 %v4296_v3  ;;  %v4301_v43 = vld [vmem:[%s5792_s1 + $0x120] sm:$0xff]  }
  0x5f   : > { %v1159_v63 = vsel %vm4469_vm9, %v1154_v40, %v1158_v14  ;;  %v886_v50 = vshrl.u32 %v4724_v56, 16  ;;  %v892_v14 = vshll.u32 %v4734_v29, 16  ;;  %v363_v15 = vrot.slane %v359_v44, 4  ;;  %3933 = vmatprep.subr.bf16.mxu0 %v4299_v6  ;;  %v224_v41 = vld [vmem:[%s4435_s18 + $0x20] sm:$0xf]  ;;  %v4304_v3 = vld [vmem:[%s5792_s1 + $0x168] sm:$0xff]  }
  0x60   : > { %3828 = vmatpush3.bf16.msra.mxu1 %v4291_v23  ;;  %v4732_v4 = vcombine.low %v1149_v53, %v1159_v63  ;;  %v879_v10 = vor.u32 %v878_v1, %v875_v0  ;;  %v884_v11 = vrot.slane %v882_v2, 5  ;;  %v370_v18 = vor.u32 %v368_v60, %v367_v57  ;;  %v225_v60 = vld [vmem:[%s4435_s18 + $0x24] sm:$0xf] }
  0x61   : > { %4037 = vmatprep.subr.bf16.mxu1 %v4293_v26  ;;  %v888_v17 = vrot.slane %v886_v50, 4  ;;  %v653_v13 = vsel %vm4484_vm12, %v362_v5, %v652_v46  ;;  %v894_v22 = vrot.slane %v892_v14, 5  ;;  %v788_v23 = vld [vmem:[#allocation2 + $0xb4] sm:$0xf]  ;;  %v372_v24 = vrot.slane %v367_v57, 4 }
  0x62   : > { %5818 = vst [vmem:[#allocation5_spill] sm:$0xff] %v4732_v4  ;;  %2351 = vmatprep.mubr.bf16.mxu1 %v4732_v4  ;;  %v880_v21 = vrot.slane %v879_v10, 4  ;;  %654 = vst [vmem:[#allocation2 + $0x30] sm:$0xf] %v653_v13  ;;  %v789_v27 = vld [vmem:[#allocation2 + $0xb8] sm:$0xf]  ;;  %v371_v34 = vsel %vm4499_vm13, %v363_v15, %v370_v18  ;;  %v4749_v40 = vcombine.low %v4712_v35, %v4724_v56  ;;  %3934 = vmatpush3.bf16.msra.mxu0 %v4301_v43 }
  0x63   : > { %2352 = vmatmul.mubr.bf16.gmra.mrb[8].mxu1 %v4722_v54  ;;  %v889_v25 = vor.u32 %v888_v17, %v884_v11  ;;  %v790_v28 = vld [vmem:[#allocation2 + $0xbc] sm:$0x1]  ;;  %v1161_v33 = vshrl.u32 %v788_v23, 16  ;;  %v1164_v26 = vshll.u32 %v788_v23, 16  ;;  %v1170_v36 = vshll.u32 %v789_v27, 16  ;;  %3935 = vmatprep.subr.bf16.mxu0 %v4304_v3  ;;  %v4305_v43 = vld [vmem:[%s5792_s1 + $0x128] sm:$0xff]  }
  0x64   : > { %v1174_v37 = vshrl.u32 %v789_v27, 16  ;;  %v1180_v39 = vshll.u32 %v790_v28, 16  ;;  %655 = vst [vmem:[#allocation2 + $0x34] sm:$0xf] %v371_v34  ;;  %v885_v44 = vsel %vm4469_vm9, %v880_v21, %v884_v11  ;;  %v657_v2 = vsel %vm4479_vm11, %v372_v24, %v656_v20  ;;  %v659_v21 = vld [vmem:[#allocation2 + $0x3c] sm:$0xf] }
  0x65   : > { %v890_v46 = vrot.slane %v889_v25, 4  ;;  %v1163_v53 = vrot.slane %v1161_v33, 4  ;;  %v1166_v57 = vrot.slane %v1164_v26, 5  ;;  %v1172_v63 = vrot.slane %v1170_v36, 5  ;;  %658 = vst [vmem:[#allocation2 + $0x38] sm:$0x1] %v657_v2 }
  0x66   : > { %v1176_v0 = vrot.slane %v1174_v37, 4  ;;  %v1182_v1 = vrot.slane %v1180_v39, 5  ;;  %v374_v6 = vshrl.u32 %v224_v41, 16  ;;  %v377_v10 = vshll.u32 %v224_v41, 16  ;;  %v663_v39 = vld [vmem:[#allocation2 + $0x44] sm:$0x1]  ;;  %3936 = vmatpush3.bf16.msra.mxu0 %v4305_v43 }
  0x67   : > { %v895_v50 = vsel %vm4469_vm9, %v890_v46, %v894_v22  ;;  %v1167_v5 = vor.u32 %v1166_v57, %v1163_v53  ;;  %v382_v15 = vshrl.u32 %v225_v60, 16  ;;  %v385_v17 = vshll.u32 %v225_v60, 16  ;;  %v226_v41 = vld [vmem:[%s4435_s18 + $0x28] sm:$0xf]  ;;  %v227_v60 = vld [vmem:[%s4435_s18 + $0x2c] sm:$0xf] }
  0x68   : > { %v4765_v11 = vcombine.low %v885_v44, %v895_v50  ;;  %v1177_v14 = vor.u32 %v1176_v0, %v1172_v63  ;;  %v376_v20 = vrot.slane %v374_v6, 7  ;;  %v3395_v24 = vrot.slane %v4552_v8, 9  ;;  %v670_v43 = vld [vmem:[#allocation2 + $0x50] sm:$0x1] }
  0x69   : > { %v1168_v18 = vrot.slane %v1167_v5, 4  ;;  %v4767_v13 = vld [vmem:[#allocation2 + $0x30] sm:$0xf]  ;;  %v1244_v22 = vrot.slane %v4554_v9, 5  ;;  %v384_v26 = vrot.slane %v382_v15, 7  ;;  %v4777_v36 = vcombine.low %v788_v23, %v789_v27 }
  0x6a   : > { %2263 = vmatprep.mubr.bf16.mxu0 %v4765_v11  ;;  %v1178_v25 = vrot.slane %v1177_v14, 4  ;;  %v897_v28 = vshrl.u32 %v4767_v13, 16  ;;  %v900_v33 = vshll.u32 %v4767_v13, 16  ;;  %v379_v8 = vor.u32 %v377_v10, %v376_v20 }
  0x6b   : > { %v1173_v34 = vsel %vm4469_vm9, %v1168_v18, %v1172_v63  ;;  %2264 = vmatmul.mubr.bf16.gmra.mrb[12].mxu0 %v4749_v40  ;;  %v4779_v37 = vld [vmem:[#allocation2 + $0x34] sm:$0xf]  ;;  %v380_v9 = vrot.slane %v376_v20, 4  ;;  %v387_v63 = vor.u32 %v385_v17, %v384_v26  ;;  %v1245_v0 = vsel %vm4457_vm6, %v3395_v24, %v1244_v22 }
  0x6c   : > { %v1183_v44 = vsel %vm4469_vm9, %v1178_v25, %v1182_v1  ;;  %v899_v46 = vrot.slane %v897_v28, 4  ;;  %v902_v53 = vrot.slane %v900_v33, 5  ;;  %v906_v57 = vshll.u32 %v4779_v37, 16  ;;  %v4794_v2 = vld [vmem:[#allocation2 + $0x38] sm:$0x1]  ;;  %v4310_v17 = vld [vmem:[%s5792_s1 + $0x170] sm:$0xff]  }
  0x6d   : > { %v4789_v23 = vcombine.low %v1173_v34, %v1183_v44  ;;  %v910_v27 = vshrl.u32 %v4779_v37, 16  ;;  %v389_v5 = vrot.slane %v384_v26, 4  ;;  %v660_v1 = vsel %vm4484_vm12, %v379_v8, %v659_v21  ;;  %v4311_v25 = vld [vmem:[%s5792_s1 + $0x130] sm:$0xff]   ;;  %v666_v34 = vld [vmem:[#allocation2 + $0x48] sm:$0xf]  ;;  %3937 = vmatprep.subr.bf16.mxu0 %v4310_v17 }
  0x6e   : > { %v903_v3 = vor.u32 %v902_v53, %v899_v46  ;;  %v908_v50 = vrot.slane %v906_v57, 5  ;;  %v916_v10 = vshll.u32 %v4794_v2, 16  ;;  %v388_v14 = vsel %vm4499_vm13, %v380_v9, %v387_v63  ;;  %661 = vst [vmem:[#allocation2 + $0x3c] sm:$0xf] %v660_v1  ;;  %v4820_v44 = vld [vmem:[%s4435_s18 + $0x30] sm:$0xf]  ;;  %3938 = vmatpush3.bf16.msra.mxu0 %v4311_v25 }
  0x6f   : > { %5819 = vst [vmem:[#allocation6_spill] sm:$0xff] %v4789_v23  ;;  %2359 = vmatprep.mubr.bf16.mxu1 %v4789_v23  ;;  %v912_v6 = vrot.slane %v910_v27, 4  ;;  %v1246_v15 = vrot.slane %v1244_v22, 4  ;;  %662 = vst [vmem:[#allocation2 + $0x40] sm:$0xf] %v388_v14  ;;  %v664_v20 = vsel %vm4479_vm11, %v389_v5, %v663_v39  ;;  %v1247_v21 = vrot.slane %v4569_v19, 5 }
  0x70   : > { %2360 = vmatmul.mubr.bf16.gmra.mrb[12].mxu1 %v4777_v36  ;;  %v904_v18 = vrot.slane %v903_v3, 4  ;;  %v391_v24 = vshrl.u32 %v226_v41, 16  ;;  %v918_v28 = vrot.slane %v916_v10, 5  ;;  %665 = vst [vmem:[#allocation2 + $0x44] sm:$0x1] %v664_v20  ;;  %v394_v33 = vshll.u32 %v226_v41, 16 }
  0x71   : > { %v913_v22 = vor.u32 %v912_v6, %v908_v50  ;;  %2400 = vmatprep.mubr.bf16.mxu1 %v4590_v62  ;;  %v399_v26 = vshrl.u32 %v227_v60, 16  ;;  %v4815_v8 = vcombine.low %v4767_v13, %v4779_v37  ;;  %v1248_v19 = vsel %vm4457_vm6, %v1246_v15, %v1247_v21  ;;  %v4300_v15 = vld [vmem:[%s5792_s1 + $0x1c8] sm:$0xff]  }
  0x72   : > { %v393_v9 = vrot.slane %v391_v24, 7  ;;  %v402_v39 = vshll.u32 %v227_v60, 16  ;;  %v909_v62 = vsel %vm4469_vm9, %v904_v18, %v908_v50  ;;  %v3396_v53 = vrot.slane %v4626_v31, 9  ;;  %v4315_v60 = vld [vmem:[%s5792_s1 + $0x178] sm:$0xff]   ;;  %v4294_v50 = vld [vmem:[%s5792_s1 + $0x180] sm:$0xff]   ;;  %v4302_v25 = vld [vmem:[%s5792_s1 + $0x188] sm:$0xff]  }
  0x73   : > { %v914_v41 = vrot.slane %v913_v22, 4  ;;  %v401_v46 = vrot.slane %v399_v26, 7  ;;  %v1251_v63 = vrot.slane %v4640_v49, 5  ;;  %v1254_v3 = vrot.slane %v4648_v59, 5  ;;  %3939 = vmatprep.subr.bf16.mxu0 %v4315_v60  ;;  %v4316_v22 = vld [vmem:[%s5792_s1 + $0x138] sm:$0xff]  }
  0x74   : > { %v396_v57 = vor.u32 %v394_v33, %v393_v9  ;;  %v397_v27 = vrot.slane %v393_v9, 4  ;;  %v4835_v1 = vcombine.low %v1245_v0, %v1248_v19  ;;  %v408_v17 = vshrl.u32 %v4820_v44, 16  ;;  %v229_v9 = vld [vmem:[%s4435_s18 + $0x34] sm:$0xf]  ;;  %3940 = vmatpush3.bf16.msra.mxu0 %v4316_v22 }
  0x75   : > { %v919_v5 = vsel %vm4469_vm9, %v914_v41, %v918_v28  ;;  %v404_v31 = vor.u32 %v402_v39, %v401_v46  ;;  %v406_v6 = vrot.slane %v401_v46, 4  ;;  %v4839_v49 = vld [vmem:[#allocation2 + $0x3c] sm:$0xf]  ;;  %v1253_v14 = vrot.slane %v1251_v63, 4  ;;  %v4307_v41 = vld [vmem:[%s5792_s1 + $0x1d0] sm:$0xff]  }
  0x76   : > { %v4837_v10 = vcombine.low %v909_v62, %v919_v5  ;;  %v667_v59 = vsel %vm4484_vm12, %v396_v57, %v666_v34  ;;  %v4847_v18 = vld [vmem:[#allocation2 + $0x40] sm:$0xf]  ;;  %v921_v0 = vshrl.u32 %v4839_v49, 16  ;;  %v924_v20 = vshll.u32 %v4839_v49, 16  ;;  %v4881_v62 = vld [vmem:[%s4435_s18 + $0x38] sm:$0xf] }
  0x77   : > { %v405_v21 = vsel %vm4499_vm13, %v397_v27, %v404_v31  ;;  %668 = vst [vmem:[#allocation2 + $0x48] sm:$0xf] %v667_v59  ;;  %v671_v24 = vsel %vm4479_vm11, %v406_v6, %v670_v43  ;;  %v4865_v28 = vld [vmem:[#allocation2 + $0x44] sm:$0x1]  ;;  %v930_v33 = vshll.u32 %v4847_v18, 16  ;;  %v934_v26 = vshrl.u32 %v4847_v18, 16 }
  0x78   : > { %2271 = vmatprep.mubr.bf16.mxu0 %v4837_v10  ;;  %2401 = vmatmul.mubr.bf16.vlgmr.msra.gmra.mrb[16].mxu1 %v3444_v58  ;;  %669 = vst [vmem:[#allocation2 + $0x4c] sm:$0xf] %v405_v21  ;;  %672 = vst [vmem:[#allocation2 + $0x50] sm:$0x1] %v671_v24  ;;  %v1252_v34 = vsel %vm4457_vm6, %v3396_v53, %v1251_v63  ;;  %v1255_v19 = vsel %vm4457_vm6, %v1253_v14, %v1254_v3  ;;  %v923_v45 = vrot.slane %v921_v0, 4 }
  0x79   : > { %2272 = vmatmul.mubr.bf16.gmra.mrb[16].mxu0 %v4815_v8  ;;  %4038 = vmatpush3.bf16.msra.mxu1 %v4294_v50  ;;  %v926_v52 = vrot.slane %v924_v20, 5  ;;  %v940_v58 = vshll.u32 %v4865_v28, 16  ;;  %v4878_v39 = vcombine.low %v4839_v49, %v4847_v18  ;;  %v673_v43 = vld [vmem:[#allocation2 + $0x54] sm:$0xf]  ;;  %v932_v46 = vrot.slane %v930_v33, 5  ;;  %v4893_v50 = vld [vmem:[%s5792_s1 + $0x200] sm:$0xff]  }
  0x7a   : > { %v936_v53 = vrot.slane %v934_v26, 4  ;;  %2408 = vmatprep.mubr.bf16.mxu1 %v4684_v42  ;;  %4039 = vmatprep.subr.bf16.mxu1 %v4300_v15  ;;  %v410_v57 = vrot.slane %v408_v17, 7  ;;  %v411_v27 = vshll.u32 %v4820_v44, 16  ;;  %v4888_v3 = vcombine.low %v1252_v34, %v1255_v19  ;;  %v4308_v20 = vld [vmem:[%s5792_s1 + $0x190] sm:$0xff]  }
  0x7b   : > { %5820 = vst [vmem:[#allocation7_spill] sm:$0xff] %v4878_v39  ;;  %v927_v63 = vor.u32 %v926_v52, %v923_v45  ;;  %v416_v60 = vshrl.u32 %v229_v9, 16  ;;  %v419_v5 = vshll.u32 %v229_v9, 16  ;;  %v942_v6 = vrot.slane %v940_v58, 5  ;;  %4173 = vmatprep.subr.bf16.mxu0 %v4893_v50 }
  0x7c   : > { %v937_v31 = vor.u32 %v936_v53, %v932_v46  ;;  %v413_v59 = vor.u32 %v411_v27, %v410_v57  ;;  %v414_v14 = vrot.slane %v410_v57, 4  ;;  %v3397_v44 = vrot.slane %v4712_v35, 9  ;;  %v4313_v35 = vld [vmem:[%s5792_s1 + $0x1d8] sm:$0xff]  }
  0x7d   : > { %v928_v0 = vrot.slane %v927_v63, 4  ;;  %4040 = vmatpush3.bf16.msra.mxu1 %v4302_v25  ;;  %v418_v15 = vrot.slane %v416_v60, 7  ;;  %v1258_v17 = vrot.slane %v4724_v56, 5  ;;  %v1261_v33 = vrot.slane %v4734_v29, 5  ;;  %v231_v27 = vld [vmem:[%s4435_s18 + $0x3c] sm:$0xf] }
  0x7e   : > { %v938_v21 = vrot.slane %v937_v31, 4  ;;  %v4901_v24 = vld [vmem:[#allocation2 + $0x48] sm:$0xf]  ;;  %v674_v22 = vsel %vm4484_vm12, %v413_v59, %v673_v43  ;;  %v425_v25 = vshrl.u32 %v4881_v62, 16  ;;  %4041 = vmatprep.subr.bf16.mxu1 %v4307_v41  ;;  %v677_v41 = vld [vmem:[#allocation2 + $0x5c] sm:$0x1] }
  0x7f   : > { %v933_v56 = vsel %vm4469_vm9, %v928_v0, %v932_v46  ;;  %v4912_v26 = vld [vmem:[#allocation2 + $0x4c] sm:$0xf]  ;;  %v4914_v34 = vld [vmem:[#allocation2 + $0x50] sm:$0x1]  ;;  %v945_v19 = vshrl.u32 %v4901_v24, 16  ;;  %v948_v9 = vshll.u32 %v4901_v24, 16  ;;  %v421_v29 = vor.u32 %v419_v5, %v418_v15 }
  0x80   : > { %675 = vst [vmem:[#allocation2 + $0x54] sm:$0xf] %v674_v22  ;;  %v943_v45 = vsel %vm4469_vm9, %v938_v21, %v942_v6  ;;  %2409 = vmatmul.mubr.bf16.gmra.mrb[20].mxu1 %v4835_v1  ;;  %v954_v52 = vshll.u32 %v4912_v26, 16  ;;  %v958_v58 = vshrl.u32 %v4912_v26, 16  ;;  %v964_v43 = vshll.u32 %v4914_v34, 16  ;;  %v4314_v60 = vld [vmem:[%s5792_s1 + $0x198] sm:$0xff]  }
  0x81   : > { %v4924_v46 = vcombine.low %v933_v56, %v943_v45  ;;  %v947_v53 = vrot.slane %v945_v19, 4  ;;  %v950_v57 = vrot.slane %v948_v9, 5  ;;  %2416 = vmatprep.mubr.bf16.mxu1 %v4749_v40  ;;  %v428_v63 = vshll.u32 %v4881_v62, 16  ;;  %4042 = vmatpush3.bf16.msra.mxu1 %v4308_v20  ;;  %v4318_v0 = vld [vmem:[%s5792_s1 + $0x1e0] sm:$0xff]  }
  0x82   : > { %v956_v5 = vrot.slane %v954_v52, 5  ;;  %v960_v31 = vrot.slane %v958_v58, 4  ;;  %v966_v6 = vrot.slane %v964_v43, 5  ;;  %v422_v59 = vsel %vm4499_vm13, %v414_v14, %v421_v29  ;;  %4043 = vmatprep.subr.bf16.mxu1 %v4313_v35  ;;  %v680_v58 = vld [vmem:[#allocation2 + $0x60] sm:$0xf] }
  0x83   : > { %2279 = vmatprep.mubr.bf16.mxu0 %v4924_v46  ;;  %v951_v21 = vor.u32 %v950_v57, %v947_v53  ;;  %v4940_v62 = vcombine.low %v4901_v24, %v4912_v26  ;;  %v423_v20 = vrot.slane %v418_v15, 4  ;;  %676 = vst [vmem:[#allocation2 + $0x58] sm:$0xf] %v422_v59  ;;  %v1260_v22 = vrot.slane %v1258_v17, 4  ;;  %v4320_v15 = vld [vmem:[%s5792_s1 + $0x1a0] sm:$0xff]  }
  0x84   : > { %2280 = vmatmul.mubr.bf16.gmra.mrb[20].mxu0 %v4878_v39  ;;  %v961_v56 = vor.u32 %v960_v31, %v956_v5  ;;  %v1259_v14 = vsel %vm4457_vm6, %v3397_v44, %v1258_v17  ;;  %v427_v35 = vrot.slane %v425_v25, 7  ;;  %v433_v19 = vshrl.u32 %v231_v27, 16  ;;  %v684_v31 = vld [vmem:[#allocation2 + $0x68] sm:$0x1]  ;;  %v232_v59 = vld [vmem:[%s4435_s18 + $0x40] sm:$0xf] }
  0x85   : > { %5821 = vst [vmem:[#allocation8_spill] sm:$0xff] %v4940_v62  ;;  %v952_v9 = vrot.slane %v951_v21, 4  ;;  %v678_v29 = vsel %vm4479_vm11, %v423_v20, %v677_v41  ;;  %v1262_v45 = vsel %vm4457_vm6, %v1260_v22, %v1261_v33  ;;  %v436_v52 = vshll.u32 %v231_v27, 16  ;;  %4044 = vmatpush3.bf16.msra.mxu1 %v4314_v60  ;;  %v4321_v33 = vld [vmem:[%s5792_s1 + $0x1e8] sm:$0xff]  }
  0x86   : > { %v962_v43 = vrot.slane %v961_v56, 4  ;;  %679 = vst [vmem:[#allocation2 + $0x5c] sm:$0x1] %v678_v29  ;;  %v430_v17 = vor.u32 %v428_v63, %v427_v35  ;;  %v431_v25 = vrot.slane %v427_v35, 4  ;;  %v3398_v53 = vrot.slane %v4767_v13, 9  ;;  %4045 = vmatprep.subr.bf16.mxu1 %v4318_v0  ;;  %v4323_v13 = vld [vmem:[%s5792_s1 + $0x1a8] sm:$0xff]  }
  0x87   : > { %v4952_v44 = vld [vmem:[#allocation2 + $0x54] sm:$0xf]  ;;  %v957_v41 = vsel %vm4469_vm9, %v952_v9, %v956_v5  ;;  %v435_v60 = vrot.slane %v433_v19, 7  ;;  %v1265_v0 = vrot.slane %v4779_v37, 5  ;;  %v1268_v21 = vrot.slane %v4794_v2, 5 }
  0x88   : > { %v969_v57 = vshrl.u32 %v4952_v44, 16  ;;  %v972_v27 = vshll.u32 %v4952_v44, 16  ;;  %v967_v63 = vsel %vm4469_vm9, %v962_v43, %v966_v6  ;;  %2417 = vmatmul.mubr.bf16.gmra.mrb[24].mxu1 %v4888_v3  ;;  %v681_v5 = vsel %vm4484_vm12, %v430_v17, %v680_v58  ;;  %v233_v19 = vld [vmem:[%s4435_s18 + $0x44] sm:$0xf]  ;;  %v4324_v37 = vld [vmem:[%s5792_s1 + $0x1f0] sm:$0xff]  }
  0x89   : > { %v4973_v20 = vcombine.low %v957_v41, %v967_v63  ;;  %2424 = vmatprep.mubr.bf16.mxu1 %v4815_v8  ;;  %v438_v35 = vor.u32 %v436_v52, %v435_v60  ;;  %682 = vst [vmem:[#allocation2 + $0x60] sm:$0xf] %v681_v5  ;;  %4046 = vmatpush3.bf16.msra.mxu1 %v4320_v15  ;;  %v440_v29 = vrot.slane %v435_v60, 4  ;;  %v1267_v58 = vrot.slane %v1265_v0, 4  ;;  %v4326_v5 = vld [vmem:[%s5792_s1 + $0x1b0] sm:$0xff]  }
  0x8a   : > { %v971_v22 = vrot.slane %v969_v57, 4  ;;  %v974_v56 = vrot.slane %v972_v27, 5  ;;  %v4977_v6 = vld [vmem:[#allocation2 + $0x58] sm:$0xf]  ;;  %v4979_v9 = vcombine.low %v1259_v14, %v1262_v45  ;;  %v442_v43 = vshrl.u32 %v232_v59, 16  ;;  %4047 = vmatprep.subr.bf16.mxu1 %v4321_v33 }
  0x8b   : > { %2287 = vmatprep.mubr.bf16.mxu0 %v4973_v20  ;;  %v978_v52 = vshll.u32 %v4977_v6, 16  ;;  %v982_v17 = vshrl.u32 %v4977_v6, 16  ;;  %v1266_v15 = vsel %vm4457_vm6, %v3398_v53, %v1265_v0  ;;  %v4992_v14 = vcombine.low %v4952_v44, %v4977_v6 }
  0x8c   : > { %v975_v2 = vor.u32 %v974_v56, %v971_v22  ;;  %2288 = vmatmul.mubr.bf16.gmra.mrb[24].mxu0 %v4940_v62  ;;  %v439_v45 = vsel %vm4499_vm13, %v431_v25, %v438_v35  ;;  %v685_v33 = vsel %vm4479_vm11, %v440_v29, %v684_v31  ;;  %v444_v41 = vrot.slane %v442_v43, 7  ;;  %v4327_v56 = vld [vmem:[%s5792_s1 + $0x1f8] sm:$0xff]  }
  0x8d   : > { %v4998_v57 = vld [vmem:[#allocation2 + $0x5c] sm:$0x1]  ;;  %v980_v60 = vrot.slane %v978_v52, 5  ;;  %v984_v63 = vrot.slane %v982_v17, 4  ;;  %683 = vst [vmem:[#allocation2 + $0x64] sm:$0xf] %v439_v45  ;;  %v1269_v53 = vsel %vm4457_vm6, %v1267_v58, %v1268_v21  ;;  %4048 = vmatpush3.bf16.msra.mxu1 %v4323_v13 }
  0x8e   : > { %v976_v27 = vrot.slane %v975_v2, 4  ;;  %686 = vst [vmem:[#allocation2 + $0x68] sm:$0x1] %v685_v33  ;;  %v988_v25 = vshll.u32 %v4998_v57, 16  ;;  %v445_v0 = vshll.u32 %v232_v59, 16  ;;  %v448_v31 = vrot.slane %v444_v41, 4  ;;  %4049 = vmatprep.subr.bf16.mxu1 %v4324_v37 }
  0x8f   : > { %v450_v22 = vshrl.u32 %v233_v19, 16  ;;  %v985_v29 = vor.u32 %v984_v63, %v980_v60  ;;  %v453_v13 = vshll.u32 %v233_v19, 16  ;;  %v687_v21 = vld [vmem:[#allocation2 + $0x6c] sm:$0xf]  ;;  %v691_v58 = vld [vmem:[#allocation2 + $0x74] sm:$0x1] }
  0x90   : > { %v981_v35 = vsel %vm4469_vm9, %v976_v27, %v980_v60  ;;  %v3399_v43 = vrot.slane %v4839_v49, 9  ;;  %v990_v2 = vrot.slane %v988_v25, 5  ;;  %2425 = vmatmul.mubr.bf16.gmra.mrb[28].mxu1 %v4979_v9  ;;  %v5013_v59 = vld [vmem:[#allocation2 + $0x60] sm:$0xf]  ;;  %v447_v37 = vor.u32 %v445_v0, %v444_v41  ;;  %v234_v49 = vld [vmem:[%s4435_s18 + $0x48] sm:$0xf] }
  0x91   : > { %v452_v52 = vrot.slane %v450_v22, 7  ;;  %v1272_v17 = vrot.slane %v4847_v18, 5  ;;  %v986_v45 = vrot.slane %v985_v29, 4  ;;  %v993_v33 = vshrl.u32 %v5013_v59, 16  ;;  %2432 = vmatprep.mubr.bf16.mxu1 %v4878_v39  ;;  %4050 = vmatpush3.bf16.msra.mxu1 %v4326_v5  ;;  %v4329_v18 = vld [vmem:[%s5792_s1 + $0x1b8] sm:$0xff]  }
  0x92   : > { %v996_v27 = vshll.u32 %v5013_v59, 16  ;;  %v1275_v19 = vrot.slane %v4865_v28, 5  ;;  %v5021_v60 = vcombine.low %v1266_v15, %v1269_v53  ;;  %v688_v41 = vsel %vm4484_vm12, %v447_v37, %v687_v21  ;;  %4051 = vmatprep.subr.bf16.mxu1 %v4327_v56  ;;  %v235_v5 = vld [vmem:[%s4435_s18 + $0x4c] sm:$0xf] }
  0x93   : > { %v455_v63 = vor.u32 %v453_v13, %v452_v52  ;;  %v457_v25 = vrot.slane %v452_v52, 4  ;;  %v991_v0 = vsel %vm4469_vm9, %v986_v45, %v990_v2  ;;  %v995_v22 = vrot.slane %v993_v33, 4  ;;  %689 = vst [vmem:[#allocation2 + $0x6c] sm:$0xf] %v688_v41  ;;  %v694_v33 = vld [vmem:[#allocation2 + $0x78] sm:$0xf] }
  0x94   : > { %v998_v29 = vrot.slane %v996_v27, 5  ;;  %v1274_v28 = vrot.slane %v1272_v17, 4  ;;  %v5031_v15 = vcombine.low %v981_v35, %v991_v0  ;;  %v5033_v53 = vld [vmem:[#allocation2 + $0x64] sm:$0xf]  ;;  %v459_v37 = vshrl.u32 %v234_v49, 16 }
  0x95   : > { %v5035_v13 = vld [vmem:[#allocation2 + $0x68] sm:$0x1]  ;;  %v456_v56 = vsel %vm4499_vm13, %v448_v31, %v455_v63  ;;  %v692_v21 = vsel %vm4479_vm11, %v457_v25, %v691_v58  ;;  %v1002_v52 = vshll.u32 %v5033_v53, 16  ;;  %v1006_v45 = vshrl.u32 %v5033_v53, 16  ;;  %4052 = vmatpush3.bf16.msra.mxu1 %v4329_v18  ;;  %v5052_v25 = vld [vmem:[%s4435_s18 + $0x50] sm:$0xf] }
  0x96   : > { %v999_v2 = vor.u32 %v998_v29, %v995_v22  ;;  %v1012_v35 = vshll.u32 %v5035_v13, 16  ;;  %690 = vst [vmem:[#allocation2 + $0x70] sm:$0xf] %v456_v56  ;;  %693 = vst [vmem:[#allocation2 + $0x74] sm:$0x1] %v692_v21  ;;  %2295 = vmatprep.mubr.bf16.mxu0 %v5031_v15  ;;  %v5047_v31 = vcombine.low %v5013_v59, %v5033_v53  ;;  %v461_v27 = vrot.slane %v459_v37, 7 }
  0x97   : > { %v1273_v58 = vsel %vm4457_vm6, %v3399_v43, %v1272_v17  ;;  %v462_v63 = vshll.u32 %v234_v49, 16  ;;  %2296 = vmatmul.mubr.bf16.gmra.mrb[28].mxu0 %v4992_v14  ;;  %v1004_v0 = vrot.slane %v1002_v52, 5  ;;  %v1008_v22 = vrot.slane %v1006_v45, 4 }
  0x98   : > { %v1000_v41 = vrot.slane %v999_v2, 4  ;;  %v1014_v29 = vrot.slane %v1012_v35, 5  ;;  %2433 = vmatmul.mubr.bf16.gmra.mrb[32].mxu1 %v5021_v60  ;;  %v1276_v18 = vsel %vm4457_vm6, %v1274_v28, %v1275_v19  ;;  %v465_v21 = vrot.slane %v461_v27, 4  ;;  %v698_v19 = vld [vmem:[#allocation2 + $0x80] sm:$0x1] }
  0x99   : > { %v464_v56 = vor.u32 %v462_v63, %v461_v27  ;;  %v467_v23 = vshrl.u32 %v235_v5, 16  ;;  %v1009_v17 = vor.u32 %v1008_v22, %v1004_v0  ;;  %2440 = vmatprep.mubr.bf16.mxu1 %v4940_v62  ;;  %v470_v49 = vshll.u32 %v235_v5, 16 }
  0x9a   : > { %v1005_v43 = vsel %vm4469_vm9, %v1000_v41, %v1004_v0  ;;  %v3400_v37 = vrot.slane %v4901_v24, 9  ;;  %v5062_v2 = vld [vmem:[#allocation2 + $0x6c] sm:$0xf]  ;;  %v1279_v28 = vrot.slane %v4912_v26, 5  ;;  %v1282_v35 = vrot.slane %v4914_v34, 5 }
  0x9b   : > { %v469_v52 = vrot.slane %v467_v23, 7  ;;  %v695_v45 = vsel %vm4484_vm12, %v464_v56, %v694_v33  ;;  %v1010_v27 = vrot.slane %v1009_v17, 4  ;;  %v1017_v63 = vshrl.u32 %v5062_v2, 16  ;;  %v237_v26 = vld [vmem:[%s4435_s18 + $0x54] sm:$0xf] }
  0x9c   : > { %v1020_v41 = vshll.u32 %v5062_v2, 16  ;;  %696 = vst [vmem:[#allocation2 + $0x78] sm:$0xf] %v695_v45  ;;  %v476_v24 = vshrl.u32 %v5052_v25, 16  ;;  %v5075_v0 = vcombine.low %v1273_v58, %v1276_v18  ;;  %v1281_v56 = vrot.slane %v1279_v28, 4 }
  0x9d   : > { %v5071_v5 = vld [vmem:[#allocation2 + $0x70] sm:$0xf]  ;;  %v5073_v23 = vld [vmem:[#allocation2 + $0x74] sm:$0x1]  ;;  %v472_v33 = vor.u32 %v470_v49, %v469_v52  ;;  %v474_v22 = vrot.slane %v469_v52, 4  ;;  %v1015_v34 = vsel %vm4469_vm9, %v1010_v27, %v1014_v29  ;;  %v1019_v17 = vrot.slane %v1017_v63, 4 }
  0x9e   : > { %v1022_v4 = vrot.slane %v1020_v41, 5  ;;  %v1026_v48 = vshll.u32 %v5071_v5, 16  ;;  %v5081_v45 = vcombine.low %v1005_v43, %v1015_v34  ;;  %v1030_v12 = vshrl.u32 %v5071_v5, 16  ;;  %v701_v52 = vld [vmem:[#allocation2 + $0x84] sm:$0xf] }
  0x9f   : > { %v1036_v62 = vshll.u32 %v5073_v23, 16  ;;  %v473_v18 = vsel %vm4499_vm13, %v465_v21, %v472_v33  ;;  %v699_v49 = vsel %vm4479_vm11, %v474_v22, %v698_v19  ;;  %v1280_v43 = vsel %vm4457_vm6, %v3400_v37, %v1279_v28 }
  0xa0   : > { %v1023_v39 = vor.u32 %v1022_v4, %v1019_v17  ;;  %v1028_v58 = vrot.slane %v1026_v48, 5  ;;  %2303 = vmatprep.mubr.bf16.mxu0 %v5081_v45  ;;  %v1032_v29 = vrot.slane %v1030_v12, 4  ;;  %2441 = vmatmul.mubr.bf16.gmra.mrb[36].mxu1 %v5075_v0  ;;  %697 = vst [vmem:[#allocation2 + $0x7c] sm:$0xf] %v473_v18  ;;  %700 = vst [vmem:[#allocation2 + $0x80] sm:$0x1] %v699_v49 }
  0xa1   : > { %v1283_v4 = vsel %vm4457_vm6, %v1281_v56, %v1282_v35  ;;  %v478_v48 = vrot.slane %v476_v24, 7  ;;  %2304 = vmatmul.mubr.bf16.gmra.mrb[32].mxu0 %v5047_v31  ;;  %v1038_v27 = vrot.slane %v1036_v62, 5  ;;  %2448 = vmatprep.mubr.bf16.mxu1 %v4992_v14  ;;  %v479_v12 = vshll.u32 %v5052_v25, 16 }
  0xa2   : > { %v1024_v21 = vrot.slane %v1023_v39, 4  ;;  %v484_v19 = vshrl.u32 %v237_v26, 16  ;;  %v1033_v63 = vor.u32 %v1032_v29, %v1028_v58  ;;  %v487_v22 = vshll.u32 %v237_v26, 16 }
  0xa3   : > { %v5098_v41 = vld [vmem:[#allocation2 + $0x78] sm:$0xf]  ;;  %v482_v33 = vrot.slane %v478_v48, 4  ;;  %v3401_v37 = vrot.slane %v4952_v44, 9  ;;  %v5103_v24 = vcombine.low %v1280_v43, %v1283_v4  ;;  %v481_v39 = vor.u32 %v479_v12, %v478_v48  ;;  %v705_v4 = vld [vmem:[#allocation2 + $0x8c] sm:$0x1] }
  0xa4   : > { %v1041_v28 = vshrl.u32 %v5098_v41, 16  ;;  %v1044_v35 = vshll.u32 %v5098_v41, 16  ;;  %v1029_v62 = vsel %vm4469_vm9, %v1024_v21, %v1028_v58  ;;  %v1034_v56 = vrot.slane %v1033_v63, 4 }
  0xa5   : > { %v486_v25 = vrot.slane %v484_v19, 7  ;;  %v1286_v34 = vrot.slane %v4977_v6, 5  ;;  %v702_v26 = vsel %vm4484_vm12, %v481_v39, %v701_v52  ;;  %v1289_v44 = vrot.slane %v4998_v57, 5 }
  0xa6   : > { %v1043_v17 = vrot.slane %v1041_v28, 4  ;;  %v1046_v18 = vrot.slane %v1044_v35, 5  ;;  %v1039_v49 = vsel %vm4469_vm9, %v1034_v56, %v1038_v27  ;;  %v5115_v29 = vcombine.low %v5062_v2, %v5071_v5  ;;  %703 = vst [vmem:[#allocation2 + $0x84] sm:$0xf] %v702_v26 }
  0xa7   : > { %v489_v43 = vor.u32 %v487_v22, %v486_v25  ;;  %v491_v58 = vrot.slane %v486_v25, 4  ;;  %v5117_v48 = vcombine.low %v1029_v62, %v1039_v49  ;;  %v5119_v6 = vld [vmem:[#allocation2 + $0x7c] sm:$0xf]  ;;  %v5121_v21 = vld [vmem:[#allocation2 + $0x80] sm:$0x1]  ;;  %v1288_v12 = vrot.slane %v1286_v34, 4 }
  0xa8   : > { %v1047_v52 = vor.u32 %v1046_v18, %v1043_v17  ;;  %v1050_v57 = vshll.u32 %v5119_v6, 16  ;;  %v1054_v27 = vshrl.u32 %v5119_v6, 16  ;;  %v1060_v19 = vshll.u32 %v5121_v21, 16  ;;  %2449 = vmatmul.mubr.bf16.gmra.mrb[40].mxu1 %v5103_v24 }
  0xa9   : > { %v1287_v63 = vsel %vm4457_vm6, %v3401_v37, %v1286_v34  ;;  %2311 = vmatprep.mubr.bf16.mxu0 %v5117_v48  ;;  %v490_v22 = vsel %vm4499_vm13, %v482_v33, %v489_v43  ;;  %v706_v28 = vsel %vm4479_vm11, %v491_v58, %v705_v4  ;;  %2456 = vmatprep.mubr.bf16.mxu1 %v5047_v31  ;;  %v1293_v39 = vrot.slane %v5033_v53, 5 }
  0xaa   : > { %v1290_v35 = vsel %vm4457_vm6, %v1288_v12, %v1289_v44  ;;  %2312 = vmatmul.mubr.bf16.gmra.mrb[36].mxu0 %v5115_v29  ;;  %v1048_v62 = vrot.slane %v1047_v52, 4  ;;  %v1052_v56 = vrot.slane %v1050_v57, 5  ;;  %v1056_v37 = vrot.slane %v1054_v27, 4  ;;  %704 = vst [vmem:[#allocation2 + $0x88] sm:$0xf] %v490_v22 }
  0xab   : > { %707 = vst [vmem:[#allocation2 + $0x8c] sm:$0x1] %v706_v28  ;;  %v1062_v34 = vrot.slane %v1060_v19, 5  ;;  %v5139_v33 = vcombine.low %v1287_v63, %v1290_v35  ;;  %v3402_v18 = vrot.slane %v5013_v59, 9  ;;  %v1295_v26 = vrot.slane %v1293_v39, 4 }
  0xac   : > { %v1057_v25 = vor.u32 %v1056_v37, %v1052_v56  ;;  %v1296_v44 = vrot.slane %v5035_v13, 5  ;;  %v1053_v53 = vsel %vm4469_vm9, %v1048_v62, %v1052_v56  ;;  %v5153_v52 = vcombine.low %v5098_v41, %v5119_v6 }
  0xad   : > { %v5141_v17 = vld [vmem:[#allocation2 + $0x84] sm:$0xf]  ;;  %v1294_v19 = vsel %vm4457_vm6, %v3402_v18, %v1293_v39  ;;  %v1300_v22 = vrot.slane %v5071_v5, 5  ;;  %v3403_v5 = vrot.slane %v5062_v2, 9 }
  0xae   : > { %v1058_v49 = vrot.slane %v1057_v25, 4  ;;  %v1065_v43 = vshrl.u32 %v5141_v17, 16  ;;  %v1068_v58 = vshll.u32 %v5141_v17, 16  ;;  %v1297_v63 = vsel %vm4457_vm6, %v1295_v26, %v1296_v44 }
  0xaf   : > { %v1302_v18 = vrot.slane %v1300_v22, 4  ;;  %v1303_v26 = vrot.slane %v5073_v23, 5  ;;  %v247_v23 = vld [vmem:[%s4435_s18 + $0x7c] sm:$0xf] }
  0xb0   : > { %v1063_v4 = vsel %vm4469_vm9, %v1058_v49, %v1062_v34  ;;  %v1067_v12 = vrot.slane %v1065_v43, 4  ;;  %v1070_v59 = vrot.slane %v1068_v58, 5  ;;  %2457 = vmatmul.mubr.bf16.gmra.mrb[44].mxu1 %v5139_v33  ;;  %v5173_v34 = vcombine.low %v1294_v19, %v1297_v63  ;;  %v246_v49 = vld [vmem:[%s4435_s18 + $0x78] sm:$0xf] }
  0xb1   : > { %v5156_v13 = vcombine.low %v1053_v53, %v1063_v4  ;;  %v5158_v57 = vld [vmem:[#allocation2 + $0x88] sm:$0xf]  ;;  %2464 = vmatprep.mubr.bf16.mxu1 %v5115_v29  ;;  %v1301_v4 = vsel %vm4457_vm6, %v3403_v5, %v1300_v22  ;;  %v1304_v2 = vsel %vm4457_vm6, %v1302_v18, %v1303_v26  ;;  %v561_v63 = vshrl.u32 %v246_v49, 16  ;;  %v736_v5 = vld [vmem:[#allocation2 + $0xc0] sm:$0xf] }
  0xb2   : > { %v5160_v27 = vld [vmem:[#allocation2 + $0x8c] sm:$0x1]  ;;  %v1071_v28 = vor.u32 %v1070_v59, %v1067_v12  ;;  %v1074_v35 = vshll.u32 %v5158_v57, 16  ;;  %v1078_v62 = vshrl.u32 %v5158_v57, 16  ;;  %v1307_v12 = vrot.slane %v5119_v6, 5 }
  0xb3   : > { %v1084_v56 = vshll.u32 %v5160_v27, 16  ;;  %2319 = vmatprep.mubr.bf16.mxu0 %v5156_v13  ;;  %v5192_v19 = vcombine.low %v5141_v17, %v5158_v57  ;;  %v564_v22 = vshll.u32 %v246_v49, 16  ;;  %v3404_v6 = vrot.slane %v5098_v41, 9 }
  0xb4   : > { %2320 = vmatmul.mubr.bf16.gmra.mrb[40].mxu0 %v5153_v52  ;;  %v1072_v37 = vrot.slane %v1071_v28, 4  ;;  %v1076_v25 = vrot.slane %v1074_v35, 5  ;;  %v1080_v39 = vrot.slane %v1078_v62, 4  ;;  %v5196_v35 = vcombine.low %v1301_v4, %v1304_v2  ;;  %v4322_v2 = vld [vmem:[%s5792_s1 + $0x208] sm:$0xff]  }
  0xb5   : > { %v1086_v53 = vrot.slane %v1084_v56, 5  ;;  %v563_v62 = vrot.slane %v561_v63, 7  ;;  %v569_v56 = vshrl.u32 %v247_v23, 16  ;;  %v1314_v49 = vrot.slane %v5158_v57, 5 }
  0xb6   : > { %v1081_v44 = vor.u32 %v1080_v39, %v1076_v25  ;;  %v1077_v43 = vsel %vm4469_vm9, %v1072_v37, %v1076_v25  ;;  %v1309_v37 = vrot.slane %v1307_v12, 4  ;;  %v1310_v25 = vrot.slane %v5121_v21, 5 }
  0xb7   : > { %v572_v39 = vshll.u32 %v247_v23, 16  ;;  %v566_v18 = vor.u32 %v564_v22, %v563_v62  ;;  %v567_v26 = vrot.slane %v563_v62, 4  ;;  %v1308_v21 = vsel %vm4457_vm6, %v3404_v6, %v1307_v12 }
  0xb8   : > { %v1082_v58 = vrot.slane %v1081_v44, 4  ;;  %2465 = vmatmul.mubr.bf16.gmra.mrb[48].mxu1 %v5173_v34  ;;  %v571_v44 = vrot.slane %v569_v56, 7  ;;  %v1311_v4 = vsel %vm4457_vm6, %v1309_v37, %v1310_v25  ;;  %v3405_v12 = vrot.slane %v5141_v17, 9  ;;  %v4325_v17 = vld [vmem:[%s5792_s1 + $0x210] sm:$0xff]   ;;  %v4338_v37 = vld [vmem:[#allocation2 + $0x98] sm:$0x1] }
  0xb9   : > { %2472 = vmatprep.mubr.bf16.mxu1 %v5153_v52  ;;  %v737_v41 = vsel %vm4484_vm12, %v566_v18, %v736_v5  ;;  %v5216_v51 = vcombine.low %v1308_v21, %v1311_v4  ;;  %v1316_v23 = vrot.slane %v1314_v49, 4  ;;  %v4337_v56 = vld [vmem:[#allocation2 + $0x90] sm:$0xf]  ;;  %v1324_v25 = vrot.slane %v4338_v37, 5 }
  0xba   : > { %v1087_v59 = vsel %vm4469_vm9, %v1082_v58, %v1086_v53  ;;  %v740_v53 = vld [vmem:[#allocation2 + $0xc8] sm:$0x1]  ;;  %v576_v58 = vrot.slane %v571_v44, 4  ;;  %738 = vst [vmem:[#allocation2 + $0xc0] sm:$0xf] %v737_v41  ;;  %v1315_v47 = vsel %vm4457_vm6, %v3405_v12, %v1314_v49  ;;  %v3406_v6 = vrot.slane %v4337_v56, 9 }
  0xbb   : > { %v5194_v28 = vcombine.low %v1077_v43, %v1087_v59  ;;  %v574_v43 = vor.u32 %v572_v39, %v571_v44  ;;  %v1317_v59 = vrot.slane %v5160_v27, 5  ;;  %v4328_v49 = vld [vmem:[%s5792_s1 + $0x218] sm:$0xff]   ;;  %v4339_v56 = vld [vmem:[#allocation2 + $0xa0] sm:$0xf] }
  0xbc   : > { %v741_v57 = vsel %vm4479_vm11, %v576_v58, %v740_v53  ;;  %v1328_v37 = vrot.slane %v4339_v56, 5  ;;  %v4345_v56 = vld [vmem:[#allocation2 + $0xb8] sm:$0xf] }
  0xbd   : > { %2327 = vmatprep.mubr.bf16.mxu0 %v5194_v28  ;;  %742 = vst [vmem:[#allocation2 + $0xc8] sm:$0x1] %v741_v57  ;;  %v1318_v55 = vsel %vm4457_vm6, %v1316_v23, %v1317_v59 }
  0xbe   : > { %2328 = vmatmul.mubr.bf16.gmra.mrb[44].mxu0 %v5192_v19  ;;  %v5242_v18 = vcombine.low %v1315_v47, %v1318_v55  ;;  %v4331_v47 = vld [vmem:[%s5792_s1 + $0x220] sm:$0xff]  }
  0xbf   : > { %2561 = vmatprep.mubr.bf16.mxu0 %v4835_v1  ;;  %v575_v1 = vsel %vm4499_vm13, %v567_v26, %v574_v43 }
  0xc0   : > { %2473 = vmatmul.mubr.bf16.gmra.mrb[52].mxu1 %v5196_v35  ;;  %739 = vst [vmem:[#allocation2 + $0xc4] sm:$0xf] %v575_v1 }
  0xc1   : > { %2480 = vmatprep.mubr.bf16.mxu1 %v5192_v19  ;;  %v5234_v27 = vld [vmem:[#allocation2 + $0xc0] sm:$0xf] }
  0xc2   : > { %v1348_v63 = vshrl.u32 %v5234_v27, 16  ;;  %v1351_v62 = vshll.u32 %v5234_v27, 16  ;;  %v3410_v22 = vrot.slane %v5234_v27, 9 }
  0xc4   : > { %v793_v5 = vld [vmem:[#allocation2 + $0xc8] sm:$0x1]  ;;  %v1350_v43 = vrot.slane %v1348_v63, 4  ;;  %v1353_v41 = vrot.slane %v1351_v62, 5 }
  0xc5   : > { %v1379_v53 = vrot.slane %v793_v5, 5  ;;  %v1367_v21 = vshll.u32 %v793_v5, 16 }
  0xc6   : > { %2562 = vmatmul.mubr.bf16.vlgmr.msra.gmra.mrb[48].mxu0 %v4610_v16  ;;  %v4336_v16 = vld [vmem:[#allocation2 + $0x94] sm:$0xf]  ;;  %v1354_v12 = vor.u32 %v1353_v41, %v1350_v43  ;;  %v4341_v41 = vld [vmem:[#allocation2 + $0xa4] sm:$0x1] }
  0xc7   : > { %4174 = vmatpush3.bf16.msra.mxu0 %v4893_v50  ;;  %2569 = vmatprep.mubr.bf16.mxu0 %v4888_v3  ;;  %v1321_v50 = vrot.slane %v4336_v16, 5  ;;  %v5240_v39 = vld [vmem:[#allocation2 + $0xc4] sm:$0xf]  ;;  %v1369_v62 = vrot.slane %v1367_v21, 5 }
  0xc8   : > { %2481 = vmatmul.mubr.bf16.gmra.mrb[56].mxu1 %v5216_v51  ;;  %4175 = vmatprep.subr.bf16.mxu0 %v4322_v2  ;;  %v1361_v26 = vshrl.u32 %v5240_v39, 16  ;;  %v1376_v44 = vrot.slane %v5240_v39, 5  ;;  %v1357_v58 = vshll.u32 %v5240_v39, 16  ;;  %v1355_v16 = vrot.slane %v1354_v12, 4 }
  0xc9   : > { %2488 = vmatprep.mubr.bf16.mxu1 %v4550_v7  ;;  %v1323_v4 = vrot.slane %v1321_v50, 4 }
  0xca   : > { %v1377_v1 = vsel %vm4457_vm6, %v3410_v22, %v1376_v44  ;;  %v1378_v57 = vrot.slane %v1376_v44, 4  ;;  %v1359_v23 = vrot.slane %v1357_v58, 5  ;;  %v1331_v58 = vrot.slane %v4341_v41, 5 }
  0xcb   : > { %4176 = vmatpush3.bf16.msra.mxu0 %v4322_v2  ;;  %v1363_v2 = vrot.slane %v1361_v26, 4  ;;  %v1325_v22 = vsel %vm4457_vm6, %v1323_v4, %v1324_v25  ;;  %v1330_v25 = vrot.slane %v1328_v37, 4 }
  0xcc   : > { %4177 = vmatprep.subr.bf16.mxu0 %v4325_v17  ;;  %v1380_v59 = vsel %vm4457_vm6, %v1378_v57, %v1379_v53  ;;  %v1360_v5 = vsel %vm4469_vm9, %v1355_v16, %v1359_v23  ;;  %v4332_v53 = vld [vmem:[%s5792_s1 + $0x228] sm:$0xff]  }
  0xcd   : > { %v5260_v55 = vcombine.low %v1377_v1, %v1380_v59  ;;  %v1364_v63 = vor.u32 %v1363_v2, %v1359_v23  ;;  %v1332_v1 = vsel %vm4457_vm6, %v1330_v25, %v1331_v58  ;;  %v4342_v57 = vld [vmem:[#allocation2 + $0xac] sm:$0xf]  ;;  %v4334_v23 = vld [vmem:[%s5792_s1 + $0x238] sm:$0xff]   ;;  %v4343_v59 = vld [vmem:[#allocation2 + $0xa8] sm:$0xf] }
  0xce   : > { %2570 = vmatmul.mubr.bf16.gmra.mrb[52].mxu0 %v4690_v61  ;;  %v1335_v2 = vrot.slane %v4342_v57, 5 }
  0xcf   : > { %2577 = vmatprep.mubr.bf16.mxu0 %v4979_v9  ;;  %4178 = vmatpush3.bf16.msra.mxu0 %v4325_v17  ;;  %v1322_v17 = vsel %vm4457_vm6, %v3406_v6, %v1321_v50  ;;  %v1365_v26 = vrot.slane %v1364_v63, 4  ;;  %v4340_v6 = vld [vmem:[#allocation2 + $0x9c] sm:$0xf]  ;;  %v4344_v63 = vld [vmem:[#allocation2 + $0xb0] sm:$0x1] }
  0xd0   : > { %2489 = vmatmul.mubr.bf16.gmra.mrb[60].mxu1 %v5242_v18  ;;  %4179 = vmatprep.subr.bf16.mxu0 %v4328_v49  ;;  %v5269_v44 = vcombine.low %v1322_v17, %v1325_v22  ;;  %v3407_v43 = vrot.slane %v4340_v6, 9  ;;  %v1337_v16 = vrot.slane %v1335_v2, 4 }
  0xd1   : > { %2496 = vmatprep.mubr.bf16.mxu1 %v4624_v30  ;;  %v1370_v50 = vsel %vm4469_vm9, %v1365_v26, %v1369_v62  ;;  %v1338_v62 = vrot.slane %v4344_v63, 5  ;;  %v5306_v26 = vcombine.low %v5234_v27, %v5240_v39 }
  0xd2   : > { %v5276_v21 = vcombine.low %v1360_v5, %v1370_v50  ;;  %v1329_v4 = vsel %vm4457_vm6, %v3407_v43, %v1328_v37  ;;  %v1342_v37 = vrot.slane %v4345_v56, 5  ;;  %v4347_v43 = vld [vmem:[#allocation2 + $0xbc] sm:$0x1] }
  0xd3   : > { %4180 = vmatpush3.bf16.msra.mxu0 %v4328_v49  ;;  %v4333_v49 = vld [vmem:[%s5792_s1 + $0x230] sm:$0xff]   ;;  %v5289_v12 = vcombine.low %v1329_v4, %v1332_v1  ;;  %v1339_v22 = vsel %vm4457_vm6, %v1337_v16, %v1338_v62  ;;  %v1345_v25 = vrot.slane %v4347_v43, 5  ;;  %v5824_v16 = vld [vmem:[#allocation3_spill] sm:$0xff] }
  0xd4   : > { %4181 = vmatprep.subr.bf16.mxu0 %v4331_v47  ;;  %v1344_v6 = vrot.slane %v1342_v37, 4 }
  0xd6   : > { %2578 = vmatmul.mubr.bf16.gmra.mrb[56].mxu0 %v4765_v11  ;;  %v1346_v27 = vsel %vm4457_vm6, %v1344_v6, %v1345_v25  ;;  %v5826_v25 = vld [vmem:[#allocation5_spill] sm:$0xff] }
  0xd7   : > { %2585 = vmatprep.mubr.bf16.mxu0 %v5021_v60  ;;  %4182 = vmatpush3.bf16.msra.mxu0 %v4331_v47  ;;  %v3408_v47 = vrot.slane %v4343_v59, 9 }
  0xd8   : > { %2497 = vmatmul.mubr.bf16.gmra.mrb[64].mxu1 %v5269_v44  ;;  %4183 = vmatprep.subr.bf16.mxu0 %v4332_v53 }
  0xd9   : > { %2504 = vmatprep.mubr.bf16.mxu1 %v4722_v54  ;;  %v1336_v17 = vsel %vm4457_vm6, %v3408_v47, %v1335_v2 }
  0xda   : > { %v5302_v5 = vcombine.low %v1336_v17, %v1339_v22 }
  0xdb   : > { %4184 = vmatpush3.bf16.msra.mxu0 %v4332_v53  ;;  %v4346_v53 = vld [vmem:[#allocation2 + $0xb4] sm:$0xf] }
  0xdc   : > { %4185 = vmatprep.subr.bf16.mxu0 %v4333_v49  ;;  %v3409_v50 = vrot.slane %v4346_v53, 9 }
  0xde   : > { %2586 = vmatmul.mubr.bf16.gmra.mrb[60].mxu0 %v4837_v10  ;;  %v1343_v41 = vsel %vm4457_vm6, %v3409_v50, %v1342_v37  ;;  %v5825_v50 = vld [vmem:[#allocation4_spill] sm:$0xff] }
  0xdf   : > { %2593 = vmatprep.mubr.bf16.mxu0 %v5075_v0  ;;  %4186 = vmatpush3.bf16.msra.mxu0 %v4333_v49  ;;  %v5316_v39 = vcombine.low %v1343_v41, %v1346_v27 }
  0xe0   : > { %2505 = vmatmul.mubr.bf16.gmra.mrb[68].mxu1 %v5289_v12  ;;  %4187 = vmatprep.subr.bf16.mxu0 %v4334_v23 }
  0xe1   : > { %2512 = vmatprep.mubr.bf16.mxu1 %v4777_v36 }
  0xe3   : > { %4188 = vmatpush3.bf16.msra.mxu0 %v4334_v23 }
  0xe6   : > { %2594 = vmatmul.mubr.bf16.gmra.mrb[64].mxu0 %v4924_v46 }
  0xe7   : > { %2601 = vmatprep.mubr.bf16.mxu0 %v5103_v24 }
  0xe8   : > { %2513 = vmatmul.mubr.bf16.gmra.mrb[72].mxu1 %v5302_v5 }
  0xe9   : > { %2520 = vmatprep.mubr.bf16.mxu1 %v5306_v26 }
  0xee   : > { %2602 = vmatmul.mubr.bf16.gmra.mrb[68].mxu0 %v4973_v20 }
  0xef   : > { %2609 = vmatprep.mubr.bf16.mxu0 %v5139_v33 }
  0xf0   : > { %2521 = vmatmul.mubr.bf16.gmra.mrb[76].mxu1 %v5316_v39 }
  0xf1   : > { %2722 = vmatprep.mubr.bf16.mxu1 %v4690_v61 }
  0xf6   : > { %2610 = vmatmul.mubr.bf16.gmra.mrb[72].mxu0 %v5031_v15 }
  0xf7   : > { %2617 = vmatprep.mubr.bf16.mxu0 %v5173_v34 }
  0xf8   : > { %2723 = vmatmul.mubr.bf16.vlgmr.msra.gmra.mrb[80].mxu1 %v4684_v42 }
  0xf9   : > { %2730 = vmatprep.mubr.bf16.mxu1 %v4765_v11 }
  0xfe   : > { %2618 = vmatmul.mubr.bf16.gmra.mrb[76].mxu0 %v5081_v45 }
  0xff   : > { %2625 = vmatprep.mubr.bf16.mxu0 %v5196_v35 }
 0x100   : > { %2731 = vmatmul.mubr.bf16.gmra.mrb[84].mxu1 %v4749_v40  ;;  %v5822_v40 = vld [vmem:[#allocation7_spill] sm:$0xff] }
 0x101   : > { %2738 = vmatprep.mubr.bf16.mxu1 %v4837_v10 }
 0x103   : > { %v3717_v58 = vpop.f32.mrb[0].mxu0 }
 0x104   : > { %v3718_v49 = vpop.f32.mrb[1].mxu0 }
 0x105   : > { %v5331_v61 = vadd.f32 %v3718_v49, %v3717_v58  ;;  %v3720_v4 = vpop.f32.mrb[2].mxu0 }
 0x106   : > { %2626 = vmatmul.mubr.bf16.gmra.mrb[80].mxu0 %v5117_v48  ;;  %v3721_v42 = vpop.f32.mrb[3].mxu0 }
 0x107   : > { %2633 = vmatprep.mubr.bf16.mxu0 %v5216_v51  ;;  %v5335_v11 = vadd.f32 %v3721_v42, %v3720_v4 }
 0x108   : > { %2739 = vmatmul.mubr.bf16.gmra.mrb[88].mxu1 %v4815_v8 }
 0x109   : > { %2746 = vmatprep.mubr.bf16.mxu1 %v4924_v46  ;;  %v5823_v46 = vld [vmem:[#allocation8_spill] sm:$0xff] }
 0x10e   : > { %2634 = vmatmul.mubr.bf16.gmra.mrb[84].mxu0 %v5156_v13 }
 0x10f   : > { %2641 = vmatprep.mubr.bf16.mxu0 %v5242_v18 }
 0x110   : > { %2747 = vmatmul.mubr.bf16.gmra.mrb[92].mxu1 %v5822_v40 }
 0x111   : > { %2754 = vmatprep.mubr.bf16.mxu1 %v4973_v20 }
 0x116   : > { %v3789_v10 = vpop.f32.mrb[0].mxu1  ;;  %2642 = vmatmul.mubr.bf16.gmra.mrb[88].mxu0 %v5194_v28 }
 0x117   : > { %v3790_v1 = vpop.f32.mrb[1].mxu1  ;;  %2649 = vmatprep.mubr.bf16.mxu0 %v5269_v44 }
 0x118   : > { %v5342_v57 = vadd.f32 %v3790_v1, %v3789_v10  ;;  %v3792_v2 = vpop.f32.mrb[2].mxu1  ;;  %2755 = vmatmul.mubr.bf16.gmra.mrb[96].mxu1 %v5823_v46 }
 0x119   : > { %v3793_v8 = vpop.f32.mrb[3].mxu1  ;;  %2762 = vmatprep.mubr.bf16.mxu1 %v5031_v15 }
 0x11a   : > { %v5346_v23 = vadd.f32 %v3793_v8, %v3792_v2 }
 0x11d   : > { %v3723_v59 = vpop.f32.mrb[4].mxu0 }
 0x11e   : > { %v3724_v47 = vpop.f32.mrb[5].mxu0  ;;  %2650 = vmatmul.mubr.bf16.gmra.mrb[92].mxu0 %v5824_v16 }
 0x11f   : > { %v5351_v20 = vadd.f32 %v3724_v47, %v3723_v59  ;;  %v3726_v63 = vpop.f32.mrb[6].mxu0  ;;  %2657 = vmatprep.mubr.bf16.mxu0 %v5289_v12 }
 0x120   : > { %v3727_v62 = vpop.f32.mrb[7].mxu0  ;;  %2763 = vmatmul.mubr.bf16.gmra.mrb[100].mxu1 %v4992_v14 }
 0x121   : > { %v5355_v17 = vadd.f32 %v3727_v62, %v3726_v63  ;;  %2770 = vmatprep.mubr.bf16.mxu1 %v5081_v45 }
 0x124   : > { %v3795_v22 = vpop.f32.mrb[4].mxu1 }
 0x125   : > { %v3796_v56 = vpop.f32.mrb[5].mxu1 }
 0x126   : > { %v5358_v37 = vadd.f32 %v3796_v56, %v3795_v22  ;;  %v3798_v15 = vpop.f32.mrb[6].mxu1  ;;  %2658 = vmatmul.mubr.bf16.gmra.mrb[96].mxu0 %v5825_v50 }
 0x127   : > { %v3799_v53 = vpop.f32.mrb[7].mxu1  ;;  %2665 = vmatprep.mubr.bf16.mxu0 %v5302_v5 }
 0x128   : > { %v5361_v6 = vadd.f32 %v3799_v53, %v3798_v15  ;;  %2771 = vmatmul.mubr.bf16.gmra.mrb[104].mxu1 %v5047_v31  ;;  %v5827_v31 = vld [vmem:[#allocation6_spill] sm:$0xff] }
 0x129   : > { %2778 = vmatprep.mubr.bf16.mxu1 %v5117_v48 }
 0x12d   : > { %v3729_v14 = vpop.f32.mrb[8].mxu0 }
 0x12e   : > { %v3730_v43 = vpop.f32.mrb[9].mxu0  ;;  %2666 = vmatmul.mubr.bf16.gmra.mrb[100].mxu0 %v5826_v25 }
 0x12f   : > { %v5367_v45 = vadd.f32 %v3730_v43, %v3729_v14  ;;  %v3732_v41 = vpop.f32.mrb[10].mxu0  ;;  %2673 = vmatprep.mubr.bf16.mxu0 %v5316_v39 }
 0x130   : > { %v3733_v27 = vpop.f32.mrb[11].mxu0  ;;  %2779 = vmatmul.mubr.bf16.gmra.mrb[108].mxu1 %v5115_v29 }
 0x131   : > { %v5371_v58 = vadd.f32 %v3733_v27, %v3732_v41  ;;  %2786 = vmatprep.mubr.bf16.mxu1 %v5156_v13  ;;  %v5407_v41 = vld [vmem:[#allocation2 + $0xd0] sm:$0xf] }
 0x136   : > { %v3801_v49 = vpop.f32.mrb[8].mxu1  ;;  %2674 = vmatmul.mubr.bf16.gmra.mrb[104].mxu0 %v5827_v31 }
 0x137   : > { %v3802_v48 = vpop.f32.mrb[9].mxu1  ;;  %2681 = vmatprep.mubr.bf16.mxu0 %v5260_v55 }
 0x138   : > { %v5376_v4 = vadd.f32 %v3802_v48, %v3801_v49  ;;  %v3804_v42 = vpop.f32.mrb[10].mxu1  ;;  %2787 = vmatmul.mubr.bf16.gmra.mrb[112].mxu1 %v5153_v52  ;;  %v1391_v49 = vshll.u32 %v5407_v41, 16  ;;  %v1395_v48 = vshrl.u32 %v5407_v41, 16 }
 0x139   : > { %v3805_v40 = vpop.f32.mrb[11].mxu1  ;;  %2794 = vmatprep.mubr.bf16.mxu1 %v5194_v28 }
 0x13a   : > { %v5379_v10 = vadd.f32 %v3805_v40, %v3804_v42 }
 0x13e   : > { %2682 = vmatmul.mubr.bf16.gmra.mrb[108].mxu0 %v5276_v21  ;;  %v3735_v29 = vpop.f32.mrb[12].mxu0 }
 0x13f   : > { %4189 = vmatprep.mubr.bf16.mxu0 %v4888_v3  ;;  %v3736_v13 = vpop.f32.mrb[13].mxu0 }
 0x140   : > { %2795 = vmatmul.mubr.bf16.gmra.mrb[116].mxu1 %v5192_v19  ;;  %v5385_v1 = vadd.f32 %v3736_v13, %v3735_v29  ;;  %v3738_v2 = vpop.f32.mrb[14].mxu0 }
 0x141   : > { %v3739_v8 = vpop.f32.mrb[15].mxu0  ;;  %2802 = vmatprep.mubr.bf16.mxu1 %v5824_v16 }
 0x142   : > { %v5388_v52 = vadd.f32 %v3739_v8, %v3738_v2  ;;  %v1393_v8 = vrot.slane %v1391_v49, 5 }
 0x143   : > { %v3807_v46 = vpop.f32.mrb[12].mxu1 }
 0x144   : > { %v3808_v59 = vpop.f32.mrb[13].mxu1 }
 0x145   : > { %v5390_v47 = vadd.f32 %v3808_v59, %v3807_v46  ;;  %v3810_v28 = vpop.f32.mrb[14].mxu1  ;;  %v1397_v46 = vrot.slane %v1395_v48, 4 }
 0x146   : > { %4190 = vmatmul.mubr.bf16.vlgmr.msra.gmra.mrb[112].mxu0 %v4979_v9  ;;  %v3811_v63 = vpop.f32.mrb[15].mxu1 }
 0x147   : > { %4193 = vmatprep.mubr.bf16.mxu0 %v5021_v60  ;;  %v5394_v3 = vadd.f32 %v3811_v63, %v3810_v28  ;;  %v5425_v63 = vld [vmem:[#allocation2 + $0xd4] sm:$0x1] }
 0x148   : > { %2803 = vmatmul.mubr.bf16.gmra.mrb[120].mxu1 %v4550_v7 }
 0x149   : > { %2810 = vmatprep.mubr.bf16.mxu1 %v5825_v50  ;;  %v5405_v50 = vld [vmem:[#allocation2 + $0xcc] sm:$0xf] }
 0x14b   : > { %v3829_v19 = vpop.f32.mrb[16].mxu1 }
 0x14c   : > { %v3741_v16 = vpop.f32.mrb[16].mxu0  ;;  %v3830_v62 = vpop.f32.mrb[17].mxu1 }
 0x14d   : > { %v3742_v22 = vpop.f32.mrb[17].mxu0  ;;  %v3831_v56 = vadd.f32 %v3830_v62, %v3829_v19  ;;  %v3832_v15 = vpop.f32.mrb[18].mxu1 }
 0x14e   : > { %4194 = vmatmul.mubr.bf16.gmra.mrb[116].mxu0 %v5075_v0  ;;  %v5399_v53 = vadd.f32 %v3742_v22, %v3741_v16  ;;  %v3744_v9 = vpop.f32.mrb[18].mxu0  ;;  %v3833_v14 = vpop.f32.mrb[19].mxu1 }
 0x14f   : > { %4197 = vmatprep.mubr.bf16.mxu0 %v5103_v24  ;;  %v5403_v60 = vadd.f32 %v3831_v56, %v5331_v61  ;;  %v3745_v7 = vpop.f32.mrb[19].mxu0  ;;  %v3834_v43 = vadd.f32 %v3833_v14, %v3832_v15  ;;  %v1382_v24 = vshrl.u32 %v5405_v50, 16  ;;  %v1385_v61 = vshll.u32 %v5405_v50, 16 }
 0x150   : > { %v5409_v27 = vadd.f32 %v3745_v7, %v3744_v9  ;;  %2811 = vmatmul.mubr.bf16.gmra.mrb[124].mxu1 %v4624_v30  ;;  %v1398_v56 = vor.u32 %v1397_v46, %v1393_v8 }
 0x151   : > { %v5413_v0 = vadd.f32 %v3834_v43, %v5335_v11  ;;  %2818 = vmatprep.mubr.bf16.mxu1 %v5826_v25  ;;  %v1384_v2 = vrot.slane %v1382_v24, 4  ;;  %v1387_v11 = vrot.slane %v1385_v61, 5 }
 0x152   : > { %v1399_v61 = vrot.slane %v1398_v56, 4 }
 0x153   : > { %v3835_v42 = vpop.f32.mrb[20].mxu1 }
 0x154   : > { %v3836_v40 = vpop.f32.mrb[21].mxu1 }
 0x155   : > { %v3837_v29 = vadd.f32 %v3836_v40, %v3835_v42  ;;  %v3838_v13 = vpop.f32.mrb[22].mxu1 }
 0x156   : > { %4198 = vmatmul.mubr.bf16.gmra.mrb[120].mxu0 %v5139_v33  ;;  %v3839_v30 = vpop.f32.mrb[23].mxu1 }
 0x157   : > { %4201 = vmatprep.mubr.bf16.mxu0 %v5173_v34  ;;  %v3747_v25 = vpop.f32.mrb[20].mxu0  ;;  %v5423_v59 = vadd.f32 %v3837_v29, %v5351_v20  ;;  %v3840_v28 = vadd.f32 %v3839_v30, %v3838_v13  ;;  %v1388_v34 = vor.u32 %v1387_v11, %v1384_v2  ;;  %v1401_v20 = vshll.u32 %v5425_v63, 16 }
 0x158   : > { %v3748_v19 = vpop.f32.mrb[21].mxu0  ;;  %2819 = vmatmul.mubr.bf16.gmra.mrb[128].mxu1 %v4722_v54 }
 0x159   : > { %v5428_v16 = vadd.f32 %v3748_v19, %v3747_v25  ;;  %v3750_v33 = vpop.f32.mrb[22].mxu0  ;;  %v5431_v62 = vadd.f32 %v3840_v28, %v5355_v17  ;;  %2826 = vmatprep.mubr.bf16.mxu1 %v5827_v31  ;;  %v1389_v24 = vrot.slane %v1388_v34, 4  ;;  %v1403_v17 = vrot.slane %v1401_v20, 5 }
 0x15a   : > { %v3751_v22 = vpop.f32.mrb[23].mxu0 }
 0x15b   : > { %v5435_v15 = vadd.f32 %v3751_v22, %v3750_v33  ;;  %v3841_v9 = vpop.f32.mrb[24].mxu1 }
 0x15c   : > { %v3842_v14 = vpop.f32.mrb[25].mxu1 }
 0x15d   : > { %v3843_v7 = vadd.f32 %v3842_v14, %v3841_v9  ;;  %v3844_v43 = vpop.f32.mrb[26].mxu1 }
 0x15e   : > { %4202 = vmatmul.mubr.bf16.gmra.mrb[124].mxu0 %v5196_v35  ;;  %v3845_v54 = vpop.f32.mrb[27].mxu1 }
 0x15f   : > { %4205 = vmatprep.mubr.bf16.mxu0 %v5216_v51  ;;  %v3753_v31 = vpop.f32.mrb[24].mxu0  ;;  %v5440_v49 = vadd.f32 %v3843_v7, %v5367_v45  ;;  %v3846_v48 = vadd.f32 %v3845_v54, %v3844_v43  ;;  %v1394_v51 = vsel %vm4469_vm9, %v1389_v24, %v1393_v8  ;;  %v1404_v45 = vsel %vm4469_vm9, %v1399_v61, %v1403_v17 }
 0x160   : > { %v3754_v42 = vpop.f32.mrb[25].mxu0  ;;  %2827 = vmatmul.mubr.bf16.gmra.mrb[132].mxu1 %v4777_v36  ;;  %v3464_v25 = vcombine.low %v1394_v51, %v1404_v45  ;;  %v1410_v7 = vrot.slane %v5407_v41, 5  ;;  %v3411_v54 = vrot.slane %v5405_v50, 9  ;;  %v1413_v61 = vrot.slane %v5425_v63, 5 }
 0x161   : > { %v5443_v40 = vadd.f32 %v3754_v42, %v3753_v31  ;;  %v3756_v29 = vpop.f32.mrb[26].mxu0  ;;  %v5446_v13 = vadd.f32 %v3846_v48, %v5371_v58  ;;  %2834 = vmatprep.mubr.bf16.mxu1 %v5276_v21 }
 0x162   : > { %v3757_v35 = vpop.f32.mrb[27].mxu0  ;;  %v1412_v24 = vrot.slane %v1410_v7, 4 }
 0x163   : > { %v5453_v30 = vadd.f32 %v3757_v35, %v3756_v29  ;;  %v3847_v2 = vpop.f32.mrb[28].mxu1 }
 0x164   : > { %v3848_v11 = vpop.f32.mrb[29].mxu1 }
 0x165   : > { %v3849_v36 = vadd.f32 %v3848_v11, %v3847_v2  ;;  %v3850_v46 = vpop.f32.mrb[30].mxu1 }
 0x166   : > { %4206 = vmatmul.mubr.bf16.gmra.mrb[128].mxu0 %v5242_v18  ;;  %v3851_v58 = vpop.f32.mrb[31].mxu1  ;;  %v3463_v18 = vcombine.low %v5405_v50, %v5407_v41  ;;  %v1411_v50 = vsel %vm4457_vm6, %v3411_v54, %v1410_v7 }
 0x167   : > { %4209 = vmatprep.mubr.bf16.mxu0 %v5269_v44  ;;  %v5458_v21 = vadd.f32 %v3849_v36, %v5385_v1  ;;  %v3852_v28 = vadd.f32 %v3851_v58, %v3850_v46 }
 0x168   : > { %2835 = vmatmul.mubr.bf16.gmra.mrb[136].mxu1 %v5306_v26 }
 0x169   : > { %v5462_v38 = vadd.f32 %v3852_v28, %v5388_v52  ;;  %2842 = vmatprep.mubr.bf16.mxu1 %v3464_v25 }
 0x16a   : > { %v3759_v8 = vpop.f32.mrb[28].mxu0 }
 0x16b   : > { %v3760_v19 = vpop.f32.mrb[29].mxu0  ;;  %v3853_v33 = vpop.f32.mrb[32].mxu1 }
 0x16c   : > { %v3761_v22 = vadd.f32 %v3760_v19, %v3759_v8  ;;  %v3762_v34 = vpop.f32.mrb[30].mxu0  ;;  %v3854_v56 = vpop.f32.mrb[33].mxu1 }
 0x16d   : > { %v3763_v44 = vpop.f32.mrb[31].mxu0  ;;  %v3855_v20 = vadd.f32 %v3854_v56, %v3853_v33  ;;  %v3856_v1 = vpop.f32.mrb[34].mxu1 }
 0x16e   : > { %4210 = vmatmul.mubr.bf16.gmra.mrb[132].mxu0 %v5289_v12  ;;  %v3764_v9 = vadd.f32 %v3763_v44, %v3762_v34  ;;  %v3857_v26 = vpop.f32.mrb[35].mxu1 }
 0x16f   : > { %4213 = vmatprep.mubr.bf16.mxu0 %v5302_v5  ;;  %v5469_v52 = vadd.f32 %v3855_v20, %v5399_v53  ;;  %v3858_v14 = vadd.f32 %v3857_v26, %v3856_v1 }
 0x170   : > { %2843 = vmatmul.mubr.bf16.gmra.mrb[140].mxu1 %v3463_v18 }
 0x171   : > { %v5473_v43 = vadd.f32 %v3858_v14, %v5409_v27  ;;  %v1414_v27 = vsel %vm4457_vm6, %v1412_v24, %v1413_v61 }
 0x173   : > { %v3859_v12 = vpop.f32.mrb[36].mxu1 }
 0x174   : > { %v3765_v17 = vpop.f32.mrb[32].mxu0  ;;  %v3860_v31 = vpop.f32.mrb[37].mxu1 }
 0x175   : > { %v3766_v48 = vpop.f32.mrb[33].mxu0  ;;  %v3861_v5 = vadd.f32 %v3860_v31, %v3859_v12  ;;  %v3862_v42 = vpop.f32.mrb[38].mxu1 }
 0x176   : > { %4214 = vmatmul.mubr.bf16.gmra.mrb[136].mxu0 %v5316_v39  ;;  %v3767_v53 = vadd.f32 %v3766_v48, %v3765_v17  ;;  %v3768_v29 = vpop.f32.mrb[34].mxu0  ;;  %v3863_v41 = vpop.f32.mrb[39].mxu1  ;;  %v3465_v39 = vcombine.low %v1411_v50, %v1414_v27 }
 0x177   : > { %v3769_v35 = vpop.f32.mrb[35].mxu0  ;;  %4217 = vmatprep.mubr.bf16.mxu0 %v5260_v55  ;;  %v5484_v63 = vadd.f32 %v3861_v5, %v5428_v16  ;;  %v3864_v51 = vadd.f32 %v3863_v41, %v3862_v42 }
 0x178   : > { %v3770_v45 = vadd.f32 %v3769_v35, %v3768_v29 }
 0x179   : > { %v5487_v2 = vadd.f32 %v3864_v51, %v5435_v15 }
 0x17b   : > { %v3865_v11 = vpop.f32.mrb[40].mxu1 }
 0x17c   : > { %v3866_v36 = vpop.f32.mrb[41].mxu1 }
 0x17d   : > { %v3771_v46 = vpop.f32.mrb[36].mxu0  ;;  %v3867_v25 = vadd.f32 %v3866_v36, %v3865_v11  ;;  %v3868_v55 = vpop.f32.mrb[42].mxu1 }
 0x17e   : > { %4218 = vmatmul.mubr.bf16.gmra.mrb[140].mxu0 %v3465_v39  ;;  %v3772_v58 = vpop.f32.mrb[37].mxu0  ;;  %v3869_v28 = vpop.f32.mrb[43].mxu1 }
 0x17f   : > { %v3773_v8 = vadd.f32 %v3772_v58, %v3771_v46  ;;  %v3774_v32 = vpop.f32.mrb[38].mxu0  ;;  %v5490_v19 = vadd.f32 %v3867_v25, %v5443_v40  ;;  %v3870_v16 = vadd.f32 %v3869_v28, %v3868_v55 }
 0x180   : > { %v3775_v33 = vpop.f32.mrb[39].mxu0 }
 0x181   : > { %v3776_v34 = vadd.f32 %v3775_v33, %v3774_v32  ;;  %v5493_v15 = vadd.f32 %v3870_v16, %v5453_v30 }
 0x183   : > { %v3871_v56 = vpop.f32.mrb[44].mxu1 }
 0x184   : > { %v3872_v18 = vpop.f32.mrb[45].mxu1 }
 0x185   : > { %v3873_v44 = vadd.f32 %v3872_v18, %v3871_v56  ;;  %v3874_v20 = vpop.f32.mrb[46].mxu1 }
 0x186   : > { %v3875_v1 = vpop.f32.mrb[47].mxu1 }
 0x187   : > { %v3777_v26 = vpop.f32.mrb[40].mxu0  ;;  %v5495_v14 = vadd.f32 %v3873_v44, %v3761_v22  ;;  %v3876_v7 = vadd.f32 %v3875_v1, %v3874_v20 }
 0x188   : > { %v3778_v54 = vpop.f32.mrb[41].mxu0 }
 0x189   : > { %v3779_v24 = vadd.f32 %v3778_v54, %v3777_v26  ;;  %v3780_v61 = vpop.f32.mrb[42].mxu0  ;;  %v5497_v40 = vadd.f32 %v3876_v7, %v3764_v9 }
 0x18a   : > { %v3781_v12 = vpop.f32.mrb[43].mxu0 }
 0x18b   : > { %v3782_v17 = vadd.f32 %v3781_v12, %v3780_v61  ;;  %v3877_v31 = vpop.f32.mrb[48].mxu1 }
 0x18c   : > { %v3878_v48 = vpop.f32.mrb[49].mxu1 }
 0x18d   : > { %v3879_v30 = vadd.f32 %v3878_v48, %v3877_v31  ;;  %v3880_v5 = vpop.f32.mrb[50].mxu1 }
 0x18e   : > { %v3881_v42 = vpop.f32.mrb[51].mxu1 }
 0x18f   : > { %v5499_v29 = vadd.f32 %v3879_v30, %v3767_v53  ;;  %v3882_v41 = vadd.f32 %v3881_v42, %v3880_v5 }
 0x191   : > { %v3783_v35 = vpop.f32.mrb[44].mxu0  ;;  %v5501_v50 = vadd.f32 %v3882_v41, %v3770_v45 }
 0x192   : > { %v3784_v22 = vpop.f32.mrb[45].mxu0 }
 0x193   : > { %v3785_v27 = vadd.f32 %v3784_v22, %v3783_v35  ;;  %v3786_v51 = vpop.f32.mrb[46].mxu0  ;;  %v3883_v39 = vpop.f32.mrb[52].mxu1 }
 0x194   : > { %v3787_v11 = vpop.f32.mrb[47].mxu0  ;;  %v3884_v9 = vpop.f32.mrb[53].mxu1 }
 0x195   : > { %v3788_v36 = vadd.f32 %v3787_v11, %v3786_v51  ;;  %v3885_v46 = vadd.f32 %v3884_v9, %v3883_v39  ;;  %v3886_v25 = vpop.f32.mrb[54].mxu1 }
 0x196   : > { %v3887_v55 = vpop.f32.mrb[55].mxu1 }
 0x197   : > { %v5503_v58 = vadd.f32 %v3885_v46, %v3773_v8  ;;  %v3888_v28 = vadd.f32 %v3887_v55, %v3886_v25 }
 0x199   : > { %v3941_v32 = vpop.f32.mrb[48].mxu0  ;;  %v5505_v53 = vadd.f32 %v3888_v28, %v3776_v34 }
 0x19a   : > { %v3942_v16 = vpop.f32.mrb[49].mxu0 }
 0x19b   : > { %v3943_v33 = vadd.f32 %v3942_v16, %v3941_v32  ;;  %v3944_v45 = vpop.f32.mrb[50].mxu0  ;;  %v3889_v56 = vpop.f32.mrb[56].mxu1 }
 0x19c   : > { %v3945_v18 = vpop.f32.mrb[51].mxu0  ;;  %v3890_v44 = vpop.f32.mrb[57].mxu1 }
 0x19d   : > { %v5508_v20 = vadd.f32 %v3943_v33, %v5403_v60  ;;  %v3946_v1 = vadd.f32 %v3945_v18, %v3944_v45  ;;  %v3891_v26 = vadd.f32 %v3890_v44, %v3889_v56  ;;  %v3892_v7 = vpop.f32.mrb[58].mxu1 }
 0x19e   : > { %v3893_v54 = vpop.f32.mrb[59].mxu1 }
 0x19f   : > { %v5511_v8 = vadd.f32 %v3946_v1, %v5413_v0  ;;  %v5513_v61 = vadd.f32 %v3891_v26, %v3779_v24  ;;  %v3894_v34 = vadd.f32 %v3893_v54, %v3892_v7 }
 0x1a1   : > { %v3947_v12 = vpop.f32.mrb[52].mxu0  ;;  %v5515_v31 = vadd.f32 %v3894_v34, %v3782_v17 }
 0x1a2   : > { %v3948_v48 = vpop.f32.mrb[53].mxu0 }
 0x1a3   : > { %v3949_v30 = vadd.f32 %v3948_v48, %v3947_v12  ;;  %v3950_v5 = vpop.f32.mrb[54].mxu0  ;;  %v3895_v42 = vpop.f32.mrb[60].mxu1 }
 0x1a4   : > { %v3951_v41 = vpop.f32.mrb[55].mxu0  ;;  %v3896_v60 = vpop.f32.mrb[61].mxu1 }
 0x1a5   : > { %v5518_v35 = vadd.f32 %v3949_v30, %v5423_v59  ;;  %v3952_v22 = vadd.f32 %v3951_v41, %v3950_v5  ;;  %v3897_v51 = vadd.f32 %v3896_v60, %v3895_v42  ;;  %v3898_v39 = vpop.f32.mrb[62].mxu1 }
 0x1a6   : > { %v3899_v0 = vpop.f32.mrb[63].mxu1 }
 0x1a7   : > { %v5521_v24 = vadd.f32 %v3952_v22, %v5431_v62  ;;  %v5523_v11 = vadd.f32 %v3897_v51, %v3785_v27  ;;  %v3900_v17 = vadd.f32 %v3899_v0, %v3898_v39 }
 0x1a9   : > { %v3953_v9 = vpop.f32.mrb[56].mxu0  ;;  %v5525_v46 = vadd.f32 %v3900_v17, %v3788_v36 }
 0x1aa   : > { %v3954_v25 = vpop.f32.mrb[57].mxu0 }
 0x1ab   : > { %v3955_v55 = vadd.f32 %v3954_v25, %v3953_v9  ;;  %v3956_v28 = vpop.f32.mrb[58].mxu0  ;;  %v3901_v32 = vpop.f32.mrb[64].mxu1 }
 0x1ac   : > { %v3957_v16 = vpop.f32.mrb[59].mxu0  ;;  %v3902_v59 = vpop.f32.mrb[65].mxu1 }
 0x1ad   : > { %v5528_v33 = vadd.f32 %v3955_v55, %v5440_v49  ;;  %v3958_v45 = vadd.f32 %v3957_v16, %v3956_v28  ;;  %v3903_v56 = vadd.f32 %v3902_v59, %v3901_v32  ;;  %v3904_v18 = vpop.f32.mrb[66].mxu1 }
 0x1ae   : > { %v3905_v62 = vpop.f32.mrb[67].mxu1 }
 0x1af   : > { %v5531_v27 = vadd.f32 %v3958_v45, %v5446_v13  ;;  %v5534_v44 = vadd.f32 %v3903_v56, %v5342_v57  ;;  %v3906_v36 = vadd.f32 %v3905_v62, %v3904_v18 }
 0x1b1   : > { %v3959_v1 = vpop.f32.mrb[60].mxu0  ;;  %v5537_v26 = vadd.f32 %v3906_v36, %v5346_v23 }
 0x1b2   : > { %v3960_v7 = vpop.f32.mrb[61].mxu0 }
 0x1b3   : > { %v3961_v54 = vadd.f32 %v3960_v7, %v3959_v1  ;;  %v3962_v34 = vpop.f32.mrb[62].mxu0  ;;  %v3907_v49 = vpop.f32.mrb[68].mxu1 }
 0x1b4   : > { %v3963_v12 = vpop.f32.mrb[63].mxu0  ;;  %v3908_v48 = vpop.f32.mrb[69].mxu1 }
 0x1b5   : > { %v5540_v30 = vadd.f32 %v3961_v54, %v5458_v21  ;;  %v3964_v5 = vadd.f32 %v3963_v12, %v3962_v34  ;;  %v3909_v13 = vadd.f32 %v3908_v48, %v3907_v49  ;;  %v3910_v42 = vpop.f32.mrb[70].mxu1 }
 0x1b6   : > { %v3911_v41 = vpop.f32.mrb[71].mxu1 }
 0x1b7   : > { %v5543_v57 = vadd.f32 %v3964_v5, %v5462_v38  ;;  %v5546_v60 = vadd.f32 %v3909_v13, %v5358_v37  ;;  %v3912_v23 = vadd.f32 %v3911_v41, %v3910_v42 }
 0x1b9   : > { %v3965_v22 = vpop.f32.mrb[64].mxu0  ;;  %v5549_v51 = vadd.f32 %v3912_v23, %v5361_v6 }
 0x1ba   : > { %v3966_v39 = vpop.f32.mrb[65].mxu0 }
 0x1bb   : > { %v3967_v0 = vadd.f32 %v3966_v39, %v3965_v22  ;;  %v3968_v17 = vpop.f32.mrb[66].mxu0  ;;  %v3913_v21 = vpop.f32.mrb[72].mxu1 }
 0x1bc   : > { %v3969_v9 = vpop.f32.mrb[67].mxu0  ;;  %v3914_v25 = vpop.f32.mrb[73].mxu1 }
 0x1bd   : > { %v5552_v55 = vadd.f32 %v3967_v0, %v5469_v52  ;;  %v3970_v28 = vadd.f32 %v3969_v9, %v3968_v17  ;;  %v3915_v38 = vadd.f32 %v3914_v25, %v3913_v21  ;;  %v3916_v32 = vpop.f32.mrb[74].mxu1 }
 0x1be   : > { %v3917_v16 = vpop.f32.mrb[75].mxu1 }
 0x1bf   : > { %v5555_v37 = vadd.f32 %v3970_v28, %v5473_v43  ;;  %v5558_v59 = vadd.f32 %v3915_v38, %v5376_v4  ;;  %v3918_v6 = vadd.f32 %v3917_v16, %v3916_v32 }
 0x1c1   : > { %v3971_v45 = vpop.f32.mrb[68].mxu0  ;;  %v5561_v56 = vadd.f32 %v3918_v6, %v5379_v10 }
 0x1c2   : > { %v3972_v18 = vpop.f32.mrb[69].mxu0 }
 0x1c3   : > { %v3973_v62 = vadd.f32 %v3972_v18, %v3971_v45  ;;  %v3974_v36 = vpop.f32.mrb[70].mxu0  ;;  %v3919_v52 = vpop.f32.mrb[76].mxu1 }
 0x1c4   : > { %v3975_v1 = vpop.f32.mrb[71].mxu0  ;;  %v3920_v7 = vpop.f32.mrb[77].mxu1 }
 0x1c5   : > { %v5564_v54 = vadd.f32 %v3973_v62, %v5484_v63  ;;  %v3976_v34 = vadd.f32 %v3975_v1, %v3974_v36  ;;  %v3921_v43 = vadd.f32 %v3920_v7, %v3919_v52  ;;  %v3922_v49 = vpop.f32.mrb[78].mxu1 }
 0x1c6   : > { %v3923_v12 = vpop.f32.mrb[79].mxu1 }
 0x1c7   : > { %v5567_v4 = vadd.f32 %v3976_v34, %v5487_v2  ;;  %v5570_v48 = vadd.f32 %v3921_v43, %v5390_v47  ;;  %v3924_v10 = vadd.f32 %v3923_v12, %v3922_v49 }
 0x1c9   : > { %v3977_v5 = vpop.f32.mrb[72].mxu0  ;;  %v5573_v13 = vadd.f32 %v3924_v10, %v5394_v3 }
 0x1ca   : > { %v3978_v42 = vpop.f32.mrb[73].mxu0 }
 0x1cb   : > { %v3979_v41 = vadd.f32 %v3978_v42, %v3977_v5  ;;  %v3980_v23 = vpop.f32.mrb[74].mxu0  ;;  %v4053_v63 = vpop.f32.mrb[80].mxu1 }
 0x1cc   : > { %v3981_v22 = vpop.f32.mrb[75].mxu0  ;;  %v4054_v39 = vpop.f32.mrb[81].mxu1 }
 0x1cd   : > { %v5576_v0 = vadd.f32 %v3979_v41, %v5490_v19  ;;  %v3982_v17 = vadd.f32 %v3981_v22, %v3980_v23  ;;  %v4055_v2 = vadd.f32 %v4054_v39, %v4053_v63  ;;  %v4056_v21 = vpop.f32.mrb[82].mxu1 }
 0x1ce   : > { %v4057_v9 = vpop.f32.mrb[83].mxu1 }
 0x1cf   : > { %v5579_v47 = vadd.f32 %v3982_v17, %v5493_v15  ;;  %v4058_v25 = vadd.f32 %v4057_v9, %v4056_v21  ;;  %v5582_v3 = vadd.f32 %v4055_v2, %v5508_v20 }
 0x1d1   : > { %v3983_v28 = vpop.f32.mrb[76].mxu0  ;;  %v5585_v38 = vadd.f32 %v4058_v25, %v5511_v8 }
 0x1d2   : > { %v3984_v32 = vpop.f32.mrb[77].mxu0 }
 0x1d3   : > { %v3985_v16 = vadd.f32 %v3984_v32, %v3983_v28  ;;  %v3986_v6 = vpop.f32.mrb[78].mxu0  ;;  %v4059_v19 = vpop.f32.mrb[84].mxu1 }
 0x1d4   : > { %v3987_v45 = vpop.f32.mrb[79].mxu0  ;;  %v4060_v18 = vpop.f32.mrb[85].mxu1 }
 0x1d5   : > { %v5588_v62 = vadd.f32 %v3985_v16, %v5495_v14  ;;  %v3988_v36 = vadd.f32 %v3987_v45, %v3986_v6  ;;  %v4061_v15 = vadd.f32 %v4060_v18, %v4059_v19  ;;  %v4062_v52 = vpop.f32.mrb[86].mxu1 }
 0x1d6   : > { %v4063_v1 = vpop.f32.mrb[87].mxu1 }
 0x1d7   : > { %v5591_v20 = vadd.f32 %v3988_v36, %v5497_v40  ;;  %v4064_v7 = vadd.f32 %v4063_v1, %v4062_v52  ;;  %v5594_v8 = vadd.f32 %v4061_v15, %v5518_v35 }
 0x1d9   : > { %v3989_v34 = vpop.f32.mrb[80].mxu0  ;;  %v5597_v43 = vadd.f32 %v4064_v7, %v5521_v24 }
 0x1da   : > { %v3990_v49 = vpop.f32.mrb[81].mxu0 }
 0x1db   : > { %v3991_v12 = vadd.f32 %v3990_v49, %v3989_v34  ;;  %v3992_v10 = vpop.f32.mrb[82].mxu0  ;;  %v4065_v14 = vpop.f32.mrb[88].mxu1 }
 0x1dc   : > { %v3993_v5 = vpop.f32.mrb[83].mxu0  ;;  %v4066_v42 = vpop.f32.mrb[89].mxu1 }
 0x1dd   : > { %v5600_v41 = vadd.f32 %v3991_v12, %v5499_v29  ;;  %v3994_v23 = vadd.f32 %v3993_v5, %v3992_v10  ;;  %v4067_v40 = vadd.f32 %v4066_v42, %v4065_v14  ;;  %v4068_v63 = vpop.f32.mrb[90].mxu1 }
 0x1de   : > { %v4069_v22 = vpop.f32.mrb[91].mxu1 }
 0x1df   : > { %v5603_v35 = vadd.f32 %v3994_v23, %v5501_v50  ;;  %v4070_v39 = vadd.f32 %v4069_v22, %v4068_v63  ;;  %v5606_v24 = vadd.f32 %v4067_v40, %v5528_v33 }
 0x1e1   : > { %v3995_v17 = vpop.f32.mrb[84].mxu0  ;;  %v5609_v2 = vadd.f32 %v4070_v39, %v5531_v27 }
 0x1e2   : > { %v3996_v21 = vpop.f32.mrb[85].mxu0 }
 0x1e3   : > { %v3997_v9 = vadd.f32 %v3996_v21, %v3995_v17  ;;  %v3998_v25 = vpop.f32.mrb[86].mxu0  ;;  %v4071_v29 = vpop.f32.mrb[92].mxu1 }
 0x1e4   : > { %v3999_v28 = vpop.f32.mrb[87].mxu0  ;;  %v4072_v32 = vpop.f32.mrb[93].mxu1 }
 0x1e5   : > { %v5612_v16 = vadd.f32 %v3997_v9, %v5503_v58  ;;  %v4000_v6 = vadd.f32 %v3999_v28, %v3998_v25  ;;  %v4073_v50 = vadd.f32 %v4072_v32, %v4071_v29  ;;  %v4074_v19 = vpop.f32.mrb[94].mxu1 }
 0x1e6   : > { %v4075_v45 = vpop.f32.mrb[95].mxu1 }
 0x1e7   : > { %v5615_v33 = vadd.f32 %v4000_v6, %v5505_v53  ;;  %v4076_v18 = vadd.f32 %v4075_v45, %v4074_v19  ;;  %v5618_v27 = vadd.f32 %v4073_v50, %v5540_v30 }
 0x1e9   : > { %v4001_v36 = vpop.f32.mrb[88].mxu0  ;;  %v5621_v15 = vadd.f32 %v4076_v18, %v5543_v57 }
 0x1ea   : > { %v4002_v52 = vpop.f32.mrb[89].mxu0 }
 0x1eb   : > { %v4003_v1 = vadd.f32 %v4002_v52, %v4001_v36  ;;  %v4004_v7 = vpop.f32.mrb[90].mxu0  ;;  %v4077_v58 = vpop.f32.mrb[96].mxu1 }
 0x1ec   : > { %v4005_v34 = vpop.f32.mrb[91].mxu0  ;;  %v4078_v49 = vpop.f32.mrb[97].mxu1 }
 0x1ed   : > { %v5624_v12 = vadd.f32 %v4003_v1, %v5513_v61  ;;  %v4006_v10 = vadd.f32 %v4005_v34, %v4004_v7  ;;  %v4079_v53 = vadd.f32 %v4078_v49, %v4077_v58  ;;  %v4080_v14 = vpop.f32.mrb[98].mxu1 }
 0x1ee   : > { %v4081_v5 = vpop.f32.mrb[99].mxu1 }
 0x1ef   : > { %v5627_v30 = vadd.f32 %v4006_v10, %v5515_v31  ;;  %v4082_v42 = vadd.f32 %v4081_v5, %v4080_v14  ;;  %v5630_v57 = vadd.f32 %v4079_v53, %v5552_v55 }
 0x1f1   : > { %v4007_v23 = vpop.f32.mrb[92].mxu0  ;;  %v5633_v40 = vadd.f32 %v4082_v42, %v5555_v37 }
 0x1f2   : > { %v4008_v63 = vpop.f32.mrb[93].mxu0 }
 0x1f3   : > { %v4009_v22 = vadd.f32 %v4008_v63, %v4007_v23  ;;  %v4010_v39 = vpop.f32.mrb[94].mxu0  ;;  %v4083_v61 = vpop.f32.mrb[100].mxu1 }
 0x1f4   : > { %v4011_v17 = vpop.f32.mrb[95].mxu0  ;;  %v4084_v21 = vpop.f32.mrb[101].mxu1 }
 0x1f5   : > { %v5636_v9 = vadd.f32 %v4009_v22, %v5523_v11  ;;  %v4012_v25 = vadd.f32 %v4011_v17, %v4010_v39  ;;  %v4085_v31 = vadd.f32 %v4084_v21, %v4083_v61  ;;  %v4086_v29 = vpop.f32.mrb[102].mxu1 }
 0x1f6   : > { %v4087_v28 = vpop.f32.mrb[103].mxu1 }
 0x1f7   : > { %v5639_v55 = vadd.f32 %v4012_v25, %v5525_v46  ;;  %v4088_v32 = vadd.f32 %v4087_v28, %v4086_v29  ;;  %v5642_v37 = vadd.f32 %v4085_v31, %v5564_v54 }
 0x1f9   : > { %v4013_v6 = vpop.f32.mrb[96].mxu0  ;;  %v5645_v50 = vadd.f32 %v4088_v32, %v5567_v4 }
 0x1fa   : > { %v4014_v19 = vpop.f32.mrb[97].mxu0 }
 0x1fb   : > { %v4015_v45 = vadd.f32 %v4014_v19, %v4013_v6  ;;  %v4016_v18 = vpop.f32.mrb[98].mxu0  ;;  %v4089_v11 = vpop.f32.mrb[104].mxu1 }
 0x1fc   : > { %v4017_v36 = vpop.f32.mrb[99].mxu0  ;;  %v4090_v52 = vpop.f32.mrb[105].mxu1 }
 0x1fd   : > { %v5648_v1 = vadd.f32 %v4015_v45, %v5534_v44  ;;  %v4018_v7 = vadd.f32 %v4017_v36, %v4016_v18  ;;  %v4091_v46 = vadd.f32 %v4090_v52, %v4089_v11  ;;  %v4092_v58 = vpop.f32.mrb[106].mxu1 }
 0x1fe   : > { %v4093_v34 = vpop.f32.mrb[107].mxu1 }
 0x1ff   : > { %v5651_v54 = vadd.f32 %v4018_v7, %v5537_v26  ;;  %v4094_v49 = vadd.f32 %v4093_v34, %v4092_v58  ;;  %v5654_v4 = vadd.f32 %v4091_v46, %v5576_v0 }
 0x201   : > { %v4019_v10 = vpop.f32.mrb[100].mxu0  ;;  %v5657_v53 = vadd.f32 %v4094_v49, %v5579_v47 }
 0x202   : > { %v4020_v14 = vpop.f32.mrb[101].mxu0 }
 0x203   : > { %v4021_v5 = vadd.f32 %v4020_v14, %v4019_v10  ;;  %v4022_v42 = vpop.f32.mrb[102].mxu0  ;;  %v4095_v44 = vpop.f32.mrb[108].mxu1 }
 0x204   : > { %v4023_v23 = vpop.f32.mrb[103].mxu0  ;;  %v4096_v63 = vpop.f32.mrb[109].mxu1 }
 0x205   : > { %v5660_v22 = vadd.f32 %v4021_v5, %v5546_v60  ;;  %v4024_v39 = vadd.f32 %v4023_v23, %v4022_v42  ;;  %v4097_v26 = vadd.f32 %v4096_v63, %v4095_v44  ;;  %v4098_v61 = vpop.f32.mrb[110].mxu1 }
 0x206   : > { %v4099_v17 = vpop.f32.mrb[111].mxu1 }
 0x207   : > { %v5663_v0 = vadd.f32 %v4024_v39, %v5549_v51  ;;  %v4100_v21 = vadd.f32 %v4099_v17, %v4098_v61  ;;  %v5666_v47 = vadd.f32 %v4097_v26, %v5588_v62 }
 0x209   : > { %v4025_v25 = vpop.f32.mrb[104].mxu0  ;;  %v5669_v31 = vadd.f32 %v4100_v21, %v5591_v20 }
 0x20a   : > { %v4026_v29 = vpop.f32.mrb[105].mxu0 }
 0x20b   : > { %v4027_v28 = vadd.f32 %v4026_v29, %v4025_v25  ;;  %v4028_v32 = vpop.f32.mrb[106].mxu0  ;;  %v4101_v60 = vpop.f32.mrb[112].mxu1 }
 0x20c   : > { %v4029_v6 = vpop.f32.mrb[107].mxu0  ;;  %v4102_v19 = vpop.f32.mrb[113].mxu1 }
 0x20d   : > { %v5672_v45 = vadd.f32 %v4027_v28, %v5558_v59  ;;  %v4030_v18 = vadd.f32 %v4029_v6, %v4028_v32  ;;  %v4103_v51 = vadd.f32 %v4102_v19, %v4101_v60  ;;  %v4104_v11 = vpop.f32.mrb[114].mxu1 }
 0x20e   : > { %v4105_v36 = vpop.f32.mrb[115].mxu1 }
 0x20f   : > { %v5675_v62 = vadd.f32 %v4030_v18, %v5561_v56  ;;  %v4106_v52 = vadd.f32 %v4105_v36, %v4104_v11  ;;  %v5678_v20 = vadd.f32 %v4103_v51, %v5600_v41 }
 0x211   : > { %v4031_v7 = vpop.f32.mrb[108].mxu0  ;;  %v5681_v46 = vadd.f32 %v4106_v52, %v5603_v35 }
 0x212   : > { %v4032_v58 = vpop.f32.mrb[109].mxu0 }
 0x213   : > { %v4033_v34 = vadd.f32 %v4032_v58, %v4031_v7  ;;  %v4034_v49 = vpop.f32.mrb[110].mxu0  ;;  %v4107_v59 = vpop.f32.mrb[116].mxu1 }
 0x214   : > { %v4035_v10 = vpop.f32.mrb[111].mxu0  ;;  %v4108_v14 = vpop.f32.mrb[117].mxu1 }
 0x215   : > { %v5684_v5 = vadd.f32 %v4033_v34, %v5570_v48  ;;  %v4036_v42 = vadd.f32 %v4035_v10, %v4034_v49  ;;  %v4109_v56 = vadd.f32 %v4108_v14, %v4107_v59  ;;  %v4110_v44 = vpop.f32.mrb[118].mxu1 }
 0x216   : > { %v4111_v23 = vpop.f32.mrb[119].mxu1 }
 0x217   : > { %v5687_v41 = vadd.f32 %v4036_v42, %v5573_v13  ;;  %v4112_v63 = vadd.f32 %v4111_v23, %v4110_v44  ;;  %v5690_v35 = vadd.f32 %v4109_v56, %v5612_v16 }
 0x219   : > { %v4191_v39 = vpop.f32.mrb[112].mxu0  ;;  %v5693_v26 = vadd.f32 %v4112_v63, %v5615_v33 }
 0x21a   : > { %v2894_v61 = vadd.f32 %v4191_v39, %v5594_v8  ;;  %v2885_v48 = vpop.f32.mrb[113].mxu0 }
 0x21b   : > { %v2886_v17 = vadd.f32 %v2885_v48, %v5582_v3  ;;  %v4192_v21 = vpop.f32.mrb[114].mxu0  ;;  %v4113_v25 = vpop.f32.mrb[120].mxu1 }
 0x21c   : > { %v2897_v29 = vadd.f32 %v4192_v21, %v5597_v43  ;;  %v2888_v28 = vpop.f32.mrb[115].mxu0  ;;  %v4114_v13 = vpop.f32.mrb[121].mxu1  ;;  %v3212_v11 = vmul.f32 %v2894_v61, %v2894_v61 }
 0x21d   : > { %v2889_v16 = vadd.f32 %v2888_v28, %v5585_v38  ;;  %v4115_v8 = vadd.f32 %v4114_v13, %v4113_v25  ;;  %v4116_v33 = vpop.f32.mrb[122].mxu1  ;;  %v3210_v32 = vmul.f32 %v2886_v17, %v2886_v17 }
 0x21e   : > { %v3614_v3 = vpack.c.bf16 %v2897_v29, %v2894_v61  ;;  %v4117_v60 = vpop.f32.mrb[123].mxu1  ;;  %v3213_v49 = vmul.f32 %v2897_v29, %v2897_v29 }
 0x21f   : > { %v3609_v6 = vpack.c.bf16 %v2889_v16, %v2886_v17  ;;  %v3172_v19 = vadd.f32 %v2889_v16, %v2886_v17  ;;  %v3211_v43 = vmul.f32 %v2889_v16, %v2889_v16  ;;  %v4118_v18 = vadd.f32 %v4117_v60, %v4116_v33 }
 0x220   : > { %3686 = vst [vmem:[%s5703_s6 + $0x8] sm:$0xff] %v3614_v3   ;;  %v5708_v51 = vadd.f32 %v4115_v8, %v5624_v12 }
 0x221   : > { %3610 = vst [vmem:[%s5703_s6] sm:$0xff] %v3609_v6   ;;  %v3173_v36 = vadd.f32 %v3172_v19, %v2894_v61  ;;  %v3242_v52 = vadd.f32 %v3211_v43, %v3210_v32  ;;  %v4195_v7 = vpop.f32.mrb[116].mxu0  ;;  %v5712_v38 = vadd.f32 %v4118_v18, %v5627_v30 }
 0x222   : > { %v2910_v58 = vadd.f32 %v4195_v7, %v5618_v27  ;;  %v2901_v34 = vpop.f32.mrb[117].mxu0 }
 0x223   : > { %v3243_v59 = vadd.f32 %v3242_v52, %v3212_v11  ;;  %v2902_v10 = vadd.f32 %v2901_v34, %v5606_v24  ;;  %v3174_v14 = vadd.f32 %v3173_v36, %v2897_v29  ;;  %v4196_v42 = vpop.f32.mrb[118].mxu0  ;;  %v4119_v56 = vpop.f32.mrb[124].mxu1 }
 0x224   : > { %v2913_v12 = vadd.f32 %v4196_v42, %v5621_v15  ;;  %v2904_v44 = vpop.f32.mrb[119].mxu0  ;;  %v4120_v23 = vpop.f32.mrb[125].mxu1  ;;  %v3216_v16 = vmul.f32 %v2910_v58, %v2910_v58 }
 0x225   : > { %v3175_v63 = vadd.f32 %v3174_v14, %v2902_v10  ;;  %v3214_v39 = vmul.f32 %v2902_v10, %v2902_v10  ;;  %v3244_v30 = vadd.f32 %v3243_v59, %v3213_v49  ;;  %v2905_v61 = vadd.f32 %v2904_v44, %v5609_v2  ;;  %v4122_v27 = vpop.f32.mrb[126].mxu1 }
 0x226   : > { %v3624_v48 = vpack.c.bf16 %v2913_v12, %v2910_v58  ;;  %v4121_v17 = vadd.f32 %v4120_v23, %v4119_v56  ;;  %v4123_v21 = vpop.f32.mrb[127].mxu1  ;;  %v3217_v6 = vmul.f32 %v2913_v12, %v2913_v12 }
 0x227   : > { %v3245_v25 = vadd.f32 %v3244_v30, %v3214_v39  ;;  %v3619_v24 = vpack.c.bf16 %v2905_v61, %v2902_v10  ;;  %v3176_v29 = vadd.f32 %v3175_v63, %v2905_v61  ;;  %v3215_v28 = vmul.f32 %v2905_v61, %v2905_v61 }
 0x228   : > { %3688 = vst [vmem:[%s5703_s6 + $0x18] sm:$0xff] %v3624_v48   ;;  %v4124_v13 = vadd.f32 %v4123_v21, %v4122_v27  ;;  %v5720_v15 = vadd.f32 %v4121_v17, %v5636_v9 }
 0x229   : > { %3687 = vst [vmem:[%s5703_s6 + $0x10] sm:$0xff] %v3619_v24   ;;  %v3177_v8 = vadd.f32 %v3176_v29, %v2910_v58  ;;  %v3246_v33 = vadd.f32 %v3245_v25, %v3215_v28  ;;  %v4199_v32 = vpop.f32.mrb[120].mxu0 }
 0x22a   : > { %v2926_v2 = vadd.f32 %v4199_v32, %v5642_v37  ;;  %v2917_v3 = vpop.f32.mrb[121].mxu0  ;;  %v5725_v60 = vadd.f32 %v4124_v13, %v5639_v55 }
 0x22b   : > { %v3247_v19 = vadd.f32 %v3246_v33, %v3216_v16  ;;  %v2918_v43 = vadd.f32 %v2917_v3, %v5630_v57  ;;  %v3178_v18 = vadd.f32 %v3177_v8, %v2913_v12  ;;  %v4200_v11 = vpop.f32.mrb[122].mxu0  ;;  %v4125_v36 = vpop.f32.mrb[128].mxu1 }
 0x22c   : > { %v2929_v9 = vadd.f32 %v4200_v11, %v5645_v50  ;;  %v2920_v52 = vpop.f32.mrb[123].mxu0  ;;  %v4126_v7 = vpop.f32.mrb[129].mxu1  ;;  %v3220_v23 = vmul.f32 %v2926_v2, %v2926_v2 }
 0x22d   : > { %v3179_v58 = vadd.f32 %v3178_v18, %v2918_v43  ;;  %v3218_v34 = vmul.f32 %v2918_v43, %v2918_v43  ;;  %v3248_v37 = vadd.f32 %v3247_v19, %v3217_v6  ;;  %v2921_v49 = vadd.f32 %v2920_v52, %v5633_v40  ;;  %v4128_v55 = vpop.f32.mrb[130].mxu1 }
 0x22e   : > { %v3634_v59 = vpack.c.bf16 %v2929_v9, %v2926_v2  ;;  %v4127_v10 = vadd.f32 %v4126_v7, %v4125_v36  ;;  %v4129_v14 = vpop.f32.mrb[131].mxu1  ;;  %v3221_v48 = vmul.f32 %v2929_v9, %v2929_v9 }
 0x22f   : > { %v3249_v42 = vadd.f32 %v3248_v37, %v3218_v34  ;;  %v3629_v57 = vpack.c.bf16 %v2921_v49, %v2918_v43  ;;  %v3180_v56 = vadd.f32 %v3179_v58, %v2921_v49  ;;  %v3219_v12 = vmul.f32 %v2921_v49, %v2921_v49 }
 0x230   : > { %3690 = vst [vmem:[%s5703_s6 + $0x28] sm:$0xff] %v3634_v59   ;;  %v4130_v44 = vadd.f32 %v4129_v14, %v4128_v55  ;;  %v5732_v50 = vadd.f32 %v4127_v10, %v5648_v1 }
 0x231   : > { %3689 = vst [vmem:[%s5703_s6 + $0x20] sm:$0xff] %v3629_v57   ;;  %v3181_v63 = vadd.f32 %v3180_v56, %v2926_v2  ;;  %v3250_v39 = vadd.f32 %v3249_v42, %v3219_v12  ;;  %v4203_v30 = vpop.f32.mrb[124].mxu0 }
 0x232   : > { %v2942_v40 = vadd.f32 %v4203_v30, %v5666_v47  ;;  %v2933_v61 = vpop.f32.mrb[125].mxu0  ;;  %v5737_v27 = vadd.f32 %v4130_v44, %v5651_v54 }
 0x233   : > { %v3251_v17 = vadd.f32 %v3250_v39, %v3220_v23  ;;  %v2934_v21 = vadd.f32 %v2933_v61, %v5654_v4  ;;  %v3182_v25 = vadd.f32 %v3181_v63, %v2929_v9  ;;  %v4204_v24 = vpop.f32.mrb[126].mxu0  ;;  %v4131_v29 = vpop.f32.mrb[132].mxu1 }
 0x234   : > { %v2945_v1 = vadd.f32 %v4204_v24, %v5669_v31  ;;  %v2936_v28 = vpop.f32.mrb[127].mxu0  ;;  %v4132_v13 = vpop.f32.mrb[133].mxu1  ;;  %v3224_v11 = vmul.f32 %v2942_v40, %v2942_v40 }
 0x235   : > { %v3183_v16 = vadd.f32 %v3182_v25, %v2934_v21  ;;  %v3222_v8 = vmul.f32 %v2934_v21, %v2934_v21  ;;  %v3252_v47 = vadd.f32 %v3251_v17, %v3221_v48  ;;  %v2937_v33 = vadd.f32 %v2936_v28, %v5657_v53  ;;  %v4134_v54 = vpop.f32.mrb[134].mxu1 }
 0x236   : > { %v3644_v32 = vpack.c.bf16 %v2945_v1, %v2942_v40  ;;  %v4133_v2 = vadd.f32 %v4132_v13, %v4131_v29  ;;  %v4135_v3 = vpop.f32.mrb[135].mxu1  ;;  %v3225_v34 = vmul.f32 %v2945_v1, %v2945_v1 }
 0x237   : > { %v3253_v6 = vadd.f32 %v3252_v47, %v3222_v8  ;;  %v3639_v4 = vpack.c.bf16 %v2937_v33, %v2934_v21  ;;  %v3184_v19 = vadd.f32 %v3183_v16, %v2937_v33  ;;  %v3223_v43 = vmul.f32 %v2937_v33, %v2937_v33 }
 0x238   : > { %3692 = vst [vmem:[%s5703_s6 + $0x38] sm:$0xff] %v3644_v32   ;;  %v4136_v18 = vadd.f32 %v4135_v3, %v4134_v54  ;;  %v5744_v31 = vadd.f32 %v4133_v2, %v5660_v22 }
 0x239   : > { %3691 = vst [vmem:[%s5703_s6 + $0x30] sm:$0xff] %v3639_v4   ;;  %v3185_v36 = vadd.f32 %v3184_v19, %v2942_v40  ;;  %v3254_v9 = vadd.f32 %v3253_v6, %v3223_v43  ;;  %v4207_v52 = vpop.f32.mrb[128].mxu0 }
 0x23a   : > { %v2958_v53 = vadd.f32 %v4207_v52, %v5690_v35  ;;  %v2949_v7 = vpop.f32.mrb[129].mxu0  ;;  %v5749_v58 = vadd.f32 %v4136_v18, %v5663_v0 }
 0x23b   : > { %v3255_v37 = vadd.f32 %v3254_v9, %v3224_v11  ;;  %v2950_v49 = vadd.f32 %v2949_v7, %v5678_v20  ;;  %v3186_v55 = vadd.f32 %v3185_v36, %v2945_v1  ;;  %v4208_v59 = vpop.f32.mrb[130].mxu0  ;;  %v4137_v10 = vpop.f32.mrb[136].mxu1 }
 0x23c   : > { %v2961_v22 = vadd.f32 %v4208_v59, %v5693_v26  ;;  %v2952_v14 = vpop.f32.mrb[131].mxu0  ;;  %v4138_v42 = vpop.f32.mrb[137].mxu1  ;;  %v3228_v48 = vmul.f32 %v2958_v53, %v2958_v53 }
 0x23d   : > { %v3187_v57 = vadd.f32 %v3186_v55, %v2950_v49  ;;  %v3226_v56 = vmul.f32 %v2950_v49, %v2950_v49  ;;  %v3256_v35 = vadd.f32 %v3255_v37, %v3225_v34  ;;  %v2953_v12 = vadd.f32 %v2952_v14, %v5681_v46  ;;  %v4140_v0 = vpop.f32.mrb[138].mxu1 }
 0x23e   : > { %v3654_v44 = vpack.c.bf16 %v2961_v22, %v2958_v53  ;;  %v4139_v23 = vadd.f32 %v4138_v42, %v4137_v10  ;;  %v4141_v63 = vpop.f32.mrb[139].mxu1  ;;  %v3229_v1 = vmul.f32 %v2961_v22, %v2961_v22 }
 0x23f   : > { %v3257_v39 = vadd.f32 %v3256_v35, %v3226_v56  ;;  %v3649_v20 = vpack.c.bf16 %v2953_v12, %v2950_v49  ;;  %v3188_v30 = vadd.f32 %v3187_v57, %v2953_v12  ;;  %v3227_v40 = vmul.f32 %v2953_v12, %v2953_v12 }
 0x240   : > { %3694 = vst [vmem:[%s5703_s6 + $0x48] sm:$0xff] %v3654_v44   ;;  %v4142_v61 = vadd.f32 %v4141_v63, %v4140_v0  ;;  %v5756_v26 = vadd.f32 %v4139_v23, %v5672_v45 }
 0x241   : > { %3693 = vst [vmem:[%s5703_s6 + $0x40] sm:$0xff] %v3649_v20   ;;  %v3189_v17 = vadd.f32 %v3188_v30, %v2958_v53  ;;  %v3258_v21 = vadd.f32 %v3257_v39, %v3227_v40  ;;  %v4211_v25 = vpop.f32.mrb[132].mxu0 }
 0x242   : > { %v2974_v46 = vadd.f32 %v4211_v25, %v5720_v15  ;;  %v2965_v24 = vpop.f32.mrb[133].mxu0  ;;  %v5761_v29 = vadd.f32 %v4142_v61, %v5675_v62 }
 0x243   : > { %v3259_v28 = vadd.f32 %v3258_v21, %v3228_v48  ;;  %v2966_v13 = vadd.f32 %v2965_v24, %v5708_v51  ;;  %v3190_v16 = vadd.f32 %v3189_v17, %v2961_v22  ;;  %v4212_v8 = vpop.f32.mrb[134].mxu0  ;;  %v4143_v47 = vpop.f32.mrb[140].mxu1 }
 0x244   : > { %v2977_v45 = vadd.f32 %v4212_v8, %v5725_v60  ;;  %v2968_v33 = vpop.f32.mrb[135].mxu0  ;;  %v4144_v54 = vpop.f32.mrb[141].mxu1  ;;  %v3232_v9 = vmul.f32 %v2974_v46, %v2974_v46 }
 0x245   : > { %v3191_v32 = vadd.f32 %v3190_v16, %v2966_v13  ;;  %v3230_v2 = vmul.f32 %v2966_v13, %v2966_v13  ;;  %v3260_v15 = vadd.f32 %v3259_v28, %v3229_v1  ;;  %v2969_v3 = vadd.f32 %v2968_v33, %v5712_v38  ;;  %v4146_v62 = vpop.f32.mrb[142].mxu1 }
 0x246   : > { %v3664_v6 = vpack.c.bf16 %v2977_v45, %v2974_v46  ;;  %v4145_v4 = vadd.f32 %v4144_v54, %v4143_v47  ;;  %v4147_v19 = vpop.f32.mrb[143].mxu1  ;;  %v3233_v49 = vmul.f32 %v2977_v45, %v2977_v45 }
 0x247   : > { %v3261_v43 = vadd.f32 %v3260_v15, %v3230_v2  ;;  %v3659_v51 = vpack.c.bf16 %v2969_v3, %v2966_v13  ;;  %v3192_v18 = vadd.f32 %v3191_v32, %v2969_v3  ;;  %v3231_v11 = vmul.f32 %v2969_v3, %v2969_v3 }
 0x248   : > { %3696 = vst [vmem:[%s5703_s6 + $0x58] sm:$0xff] %v3664_v6   ;;  %v2845_v36 = vadd.f32 %v4145_v4, %v5684_v5  ;;  %v4148_v60 = vadd.f32 %v4147_v19, %v4146_v62 }
 0x249   : > { %3695 = vst [vmem:[%s5703_s6 + $0x50] sm:$0xff] %v3659_v51   ;;  %v3193_v52 = vadd.f32 %v3192_v18, %v2974_v46  ;;  %v3262_v53 = vadd.f32 %v3261_v43, %v3231_v11  ;;  %v4215_v7 = vpop.f32.mrb[136].mxu0 }
 0x24a   : > { %v2990_v34 = vadd.f32 %v4215_v7, %v5744_v31  ;;  %v2981_v38 = vpop.f32.mrb[137].mxu0  ;;  %v2848_v37 = vadd.f32 %v4148_v60, %v5687_v41 }
 0x24b   : > { %v3263_v55 = vadd.f32 %v3262_v53, %v3232_v9  ;;  %v2982_v59 = vadd.f32 %v2981_v38, %v5732_v50  ;;  %v3194_v10 = vadd.f32 %v3193_v52, %v2977_v45  ;;  %v4216_v22 = vpop.f32.mrb[138].mxu0 }
 0x24c   : > { %v2993_v5 = vadd.f32 %v4216_v22, %v5749_v58  ;;  %v2984_v14 = vpop.f32.mrb[139].mxu0  ;;  %v3236_v23 = vmul.f32 %v2990_v34, %v2990_v34 }
 0x24d   : > { %v3195_v42 = vadd.f32 %v3194_v10, %v2982_v59  ;;  %v3234_v57 = vmul.f32 %v2982_v59, %v2982_v59  ;;  %v3264_v56 = vadd.f32 %v3263_v55, %v3233_v49  ;;  %v2985_v35 = vadd.f32 %v2984_v14, %v5737_v27 }
 0x24e   : > { %v3674_v31 = vpack.c.bf16 %v2993_v5, %v2990_v34  ;;  %v3237_v58 = vmul.f32 %v2993_v5, %v2993_v5 }
 0x24f   : > { %v3265_v12 = vadd.f32 %v3264_v56, %v3234_v57  ;;  %v3669_v0 = vpack.c.bf16 %v2985_v35, %v2982_v59  ;;  %v3196_v41 = vadd.f32 %v3195_v42, %v2985_v35  ;;  %v3235_v44 = vmul.f32 %v2985_v35, %v2985_v35 }
 0x250   : > { %3698 = vst [vmem:[%s5703_s6 + $0x68] sm:$0xff] %v3674_v31  }
 0x251   : > { %3697 = vst [vmem:[%s5703_s6 + $0x60] sm:$0xff] %v3669_v0   ;;  %v3197_v50 = vadd.f32 %v3196_v41, %v2990_v34  ;;  %v3266_v63 = vadd.f32 %v3265_v12, %v3235_v44  ;;  %v4219_v39 = vpop.f32.mrb[140].mxu0 }
 0x252   : > { %v3006_v20 = vadd.f32 %v4219_v39, %v2845_v36  ;;  %v2997_v30 = vpop.f32.mrb[141].mxu0 }
 0x253   : > { %v3267_v40 = vadd.f32 %v3266_v63, %v3236_v23  ;;  %v2998_v61 = vadd.f32 %v2997_v30, %v5756_v26  ;;  %v3198_v48 = vadd.f32 %v3197_v50, %v2993_v5  ;;  %v4220_v27 = vpop.f32.mrb[142].mxu0 }
 0x254   : > { %v3009_v17 = vadd.f32 %v4220_v27, %v2848_v37  ;;  %v3000_v21 = vpop.f32.mrb[143].mxu0  ;;  %v3240_v28 = vmul.f32 %v3006_v20, %v3006_v20 }
 0x255   : > { %v3199_v25 = vadd.f32 %v3198_v48, %v2998_v61  ;;  %v3238_v46 = vmul.f32 %v2998_v61, %v2998_v61  ;;  %v3268_v24 = vadd.f32 %v3267_v40, %v3237_v58  ;;  %v3001_v1 = vadd.f32 %v3000_v21, %v5761_v29 }
 0x256   : > { %v3684_v13 = vpack.c.bf16 %v3009_v17, %v3006_v20  ;;  %v3241_v33 = vmul.f32 %v3009_v17, %v3009_v17 }
 0x257   : > { %v3269_v16 = vadd.f32 %v3268_v24, %v3238_v46  ;;  %v3679_v8 = vpack.c.bf16 %v3001_v1, %v2998_v61  ;;  %v3200_v47 = vadd.f32 %v3199_v25, %v3001_v1  ;;  %v3239_v45 = vmul.f32 %v3001_v1, %v3001_v1 }
 0x258   : > { %3700 = vst [vmem:[%s5703_s6 + $0x78] sm:$0xff] %v3684_v13  }
 0x259   : > { %3699 = vst [vmem:[%s5703_s6 + $0x70] sm:$0xff] %v3679_v8   ;;  %v3201_v26 = vadd.f32 %v3200_v47, %v3006_v20  ;;  %v3270_v54 = vadd.f32 %v3269_v16, %v3239_v45 }
 0x25b   : > { %v3202_v32 = vadd.f32 %v3201_v26, %v3009_v17  ;;  %v3271_v2 = vadd.f32 %v3270_v54, %v3240_v28 }
 0x25d   : > { %v3203_v15 = vrot.slane %v3202_v32, 4  ;;  %v3272_v3 = vadd.f32 %v3271_v2, %v3241_v33 }
 0x25f   : > { %v3204_v62 = vadd.f32 %v3203_v15, %v3202_v32  ;;  %v3273_v6 = vrot.slane %v3272_v3, 4 }
 0x261   : > { %v3205_v29 = vrot.slane %v3204_v62, 2  ;;  %v3274_v4 = vadd.f32 %v3273_v6, %v3272_v3 }
 0x263   : > { %v3206_v19 = vadd.f32 %v3205_v29, %v3204_v62  ;;  %v3275_v43 = vrot.slane %v3274_v4, 2 }
 0x265   : > { %v3207_v51 = vrot.slane %v3206_v19, 1  ;;  %v3276_v18 = vadd.f32 %v3275_v43, %v3274_v4 }
 0x267   : > { %v3208_v11 = vadd.f32 %v3207_v51, %v3206_v19  ;;  %v3277_v36 = vrot.slane %v3276_v18, 1 }
 0x269   : > { %3209 = vst [vmem:[%s211_s8] sm:$0x1] %v3208_v11  ;;  %v3278_v60 = vadd.f32 %v3277_v36, %v3276_v18 }
 0x26b   : > { %3279 = vst [vmem:[%s214_s12] sm:$0x1] %v3278_v60 }
 0x26c PF: > { %s15_s15 = sadd.s32 1, %s4354_s15  }
 0x26d   : > { %p12_p4 = scmp.ge.s32.totalorder %s15_s15, 4  }
 0x26f   :  { %14 = sbr.rel (!%p12_p4) target bundleno = 1 (0x1), region = 83 }

// kernel: basic_block_forward.4
= control target key start
LH: loop header
LB: loop body
LE: loop exit
PB: predicated region body
PF: predicated region fallthrough
CT: control target
= control target key end

     0   :  { %s4834_s21 = smov 0   ;;  %s6329_s0 = inlined_call_operand.vmem [shape: bf16[2,16,16,128], index: 0, kind: input, shape index: {}]   ;;  %s6330_s1 = inlined_call_operand.vmem [shape: f32[1,128], index: 1, kind: input, shape index: {}]   ;;  %s6331_s2 = inlined_call_operand.vmem [shape: f32[1,128], index: 2, kind: input, shape index: {}]   ;;  %s6332_s3 = inlined_call_operand.vmem [shape: bf16[1152,128], index: 3, kind: input, shape index: {}]   ;;  %s6333_s4 = inlined_call_operand.vmem [shape: bf16[2,16,16,128], index: 4, kind: output, shape index: {0}]   ;;  %s6334_s5 = inlined_call_operand.vmem [shape: f32[2,1,128], index: 5, kind: output, shape index: {1}]   ;;  %s6335_s6 = inlined_call_operand.vmem [shape: f32[2,1,128], index: 6, kind: output, shape index: {2}]  }
   0x1 LB: > { %s3677_s22 = sadd.s32 4294967295, %s4796_s21   ;;  %p3681_p0 = scmp.ge.s32.totalorder %s4796_s21, 1  ;;  %s4796_s21 = sphi %s4834_s21, %s17_s21  }
   0x2   : > { %p217_p1 = scmp.lt.s32.totalorder %s4796_s21, 3 }
   0x4   : > { %p218_p2 = pnand %p3681_p0, %p217_p1 }
   0x6   : > { %221 = sbr.rel (%p218_p2) target bundleno = 654 (0x28e), region = 36 }
   0xd   : > { %v4683_v0 = vld [vmem:[%s6332_s3 + $0x40] sm:$0xff]   ;;  %v4798_v2 = vmov 0   ;;  %v4685_v3 = vld [vmem:[%s6332_s3 + $0x48] sm:$0xff]   ;;  %v4687_v5 = vld [vmem:[%s6332_s3 + $0x50] sm:$0xff]   ;;  %p253_p3 = scmp.lt.s32.totalorder %s3677_s22, 1  ;;  %vm1524_vm0 = vcmask 1042432  }
   0xe   : > { %v4684_v1 = vld [vmem:[%s6332_s3] sm:$0xff]   ;;  %460 = vst [vmem:[#allocation2] sm:$0xf] %v4798_v2  ;;  %461 = vst [vmem:[#allocation2 + $0x4] sm:$0xf] %v4798_v2  ;;  %4138 = vmatprep.subr.bf16.mxu0 %v4683_v0  ;;  %4658 = vmatprep.subr.bf16.mxu1 %v4683_v0  ;;  %v4686_v4 = vld [vmem:[%s6332_s3 + $0x8] sm:$0xff]  }
   0xf   : > { %462 = vst [vmem:[#allocation2 + $0x8] sm:$0x1] %v4798_v2  ;;  %463 = vst [vmem:[#allocation2 + $0xc] sm:$0xf] %v4798_v2  ;;  %4139 = vmatpush3.bf16.msra.mxu0 %v4684_v1  ;;  %4666 = vmatpush3.bf16.msra.mxu1 %v4684_v1  ;;  %v4688_v6 = vld [vmem:[%s6332_s3 + $0x10] sm:$0xff]   ;;  %v4689_v7 = vld [vmem:[%s6332_s3 + $0x58] sm:$0xff]  }
  0x10   : > { %464 = vst [vmem:[#allocation2 + $0x10] sm:$0xf] %v4798_v2  ;;  %465 = vst [vmem:[#allocation2 + $0x14] sm:$0x1] %v4798_v2  ;;  %4140 = vmatprep.subr.bf16.mxu0 %v4685_v3  ;;  %4659 = vmatprep.subr.bf16.mxu1 %v4685_v3  ;;  %s6385_s22 = smov (!%p253_p3, %s3677_s22), 1  ;;  %v4690_v8 = vld [vmem:[%s6332_s3 + $0x18] sm:$0xff]  }
  0x11   : > { %466 = vst [vmem:[#allocation2 + $0x18] sm:$0xf] %v4798_v2  ;;  %467 = vst [vmem:[#allocation2 + $0x1c] sm:$0xf] %v4798_v2  ;;  %v4691_v9 = vld [vmem:[%s6332_s3 + $0x60] sm:$0xff]   ;;  %s3898_s17 = sshll.u32 %s6385_s22, 7  ;;  %s265_s24 = scalar_lea.vmem %s6334_s5, %s6385_s22 }
  0x12   : > { %468 = vst [vmem:[#allocation2 + $0x20] sm:$0x1] %v4798_v2  ;;  %469 = vst [vmem:[#allocation2 + $0x24] sm:$0xf] %v4798_v2  ;;  %v4692_v10 = vld [vmem:[%s6332_s3 + $0x20] sm:$0xff]   ;;  %v4693_v11 = vld [vmem:[%s6332_s3 + $0x68] sm:$0xff]   ;;  %s4887_s26 = scalar_lea.vmem %s6329_s0, %s3898_s17  ;;  %s6247_s20 = scalar_lea.vmem %s6333_s4, %s3898_s17 }
  0x13   : > { %470 = vst [vmem:[#allocation2 + $0x28] sm:$0xf] %v4798_v2  ;;  %471 = vst [vmem:[#allocation2 + $0x2c] sm:$0x1] %v4798_v2  ;;  %4141 = vmatpush3.bf16.msra.mxu0 %v4686_v4  ;;  %4667 = vmatpush3.bf16.msra.mxu1 %v4686_v4  ;;  %vm1089_vm1 = vsmask.f32 3328  ;;  %s268_s28 = scalar_lea.vmem %s6335_s6, %s6385_s22 }
  0x14   : > { %472 = vst [vmem:[#allocation2 + $0x30] sm:$0xf] %v4798_v2  ;;  %473 = vst [vmem:[#allocation2 + $0x34] sm:$0xf] %v4798_v2  ;;  %4142 = vmatprep.subr.bf16.mxu0 %v4687_v5  ;;  %4660 = vmatprep.subr.bf16.mxu1 %v4687_v5  ;;  %vm1525_vm2 = vcmask 1046532   ;;  %v3965_v20 = vld [vmem:[%s4887_s26] sm:$0xff]  }
  0x15   : > { %474 = vst [vmem:[#allocation2 + $0x38] sm:$0x1] %v4798_v2  ;;  %475 = vst [vmem:[#allocation2 + $0x3c] sm:$0xf] %v4798_v2  ;;  %v4889_v12 = vld [vmem:[#allocation2] sm:$0xf]  ;;  %v3966_v34 = vunpack.c.l.bf16 %v3965_v20  ;;  %v3967_v35 = vunpack.c.h.bf16 %v3965_v20 }
  0x16   : > { %476 = vst [vmem:[#allocation2 + $0x40] sm:$0xf] %v4798_v2  ;;  %477 = vst [vmem:[#allocation2 + $0x44] sm:$0x1] %v4798_v2  ;;  %v4891_v13 = vld [vmem:[#allocation2 + $0x4] sm:$0xf] }
  0x17   : > { %478 = vst [vmem:[#allocation2 + $0x48] sm:$0xf] %v4798_v2  ;;  %479 = vst [vmem:[#allocation2 + $0x4c] sm:$0xf] %v4798_v2  ;;  %4143 = vmatpush3.bf16.msra.mxu0 %v4688_v6  ;;  %4668 = vmatpush3.bf16.msra.mxu1 %v4688_v6  ;;  %v1037_v14 = vld [vmem:[#allocation2 + $0x8] sm:$0x1]  ;;  %v3738_v4 = vcombine.low %v4889_v12, %v4891_v13 }
  0x18   : > { %480 = vst [vmem:[#allocation2 + $0x50] sm:$0x1] %v4798_v2  ;;  %481 = vst [vmem:[#allocation2 + $0x54] sm:$0xf] %v4798_v2  ;;  %4144 = vmatprep.subr.bf16.mxu0 %v4689_v7  ;;  %4661 = vmatprep.subr.bf16.mxu1 %v4689_v7  ;;  %v1093_v15 = vshrl.u32 %v4889_v12, 16  ;;  %v1096_v16 = vshll.u32 %v4889_v12, 16 }
  0x19   : > { %482 = vst [vmem:[#allocation2 + $0x58] sm:$0xf] %v4798_v2  ;;  %483 = vst [vmem:[#allocation2 + $0x5c] sm:$0x1] %v4798_v2  ;;  %vm1090_vm3 = vsmask.f32 7440 }
  0x1a   : > { %484 = vst [vmem:[#allocation2 + $0x60] sm:$0xf] %v4798_v2  ;;  %485 = vst [vmem:[#allocation2 + $0x64] sm:$0xf] %v4798_v2  ;;  %v1102_v17 = vshll.u32 %v4891_v13, 16  ;;  %v1106_v18 = vshrl.u32 %v4891_v13, 16 }
  0x1b   : > { %486 = vst [vmem:[#allocation2 + $0x68] sm:$0x1] %v4798_v2  ;;  %487 = vst [vmem:[#allocation2 + $0x6c] sm:$0xf] %v4798_v2  ;;  %4145 = vmatpush3.bf16.msra.mxu0 %v4690_v8  ;;  %4669 = vmatpush3.bf16.msra.mxu1 %v4690_v8  ;;  %v1112_v19 = vshll.u32 %v1037_v14, 16  ;;  %v4694_v21 = vld [vmem:[%s6332_s3 + $0x28] sm:$0xff]  }
  0x1c   : > { %488 = vst [vmem:[#allocation2 + $0x70] sm:$0xf] %v4798_v2  ;;  %489 = vst [vmem:[#allocation2 + $0x74] sm:$0x1] %v4798_v2  ;;  %4146 = vmatprep.subr.bf16.mxu0 %v4691_v9  ;;  %4662 = vmatprep.subr.bf16.mxu1 %v4691_v9  ;;  %v1095_v22 = vrot.slane %v1093_v15, 4  ;;  %v1098_v23 = vrot.slane %v1096_v16, 5 }
  0x1d   : > { %490 = vst [vmem:[#allocation2 + $0x78] sm:$0xf] %v4798_v2  ;;  %491 = vst [vmem:[#allocation2 + $0x7c] sm:$0xf] %v4798_v2  ;;  %v1529_v24 = vrot.slane %v4891_v13, 5  ;;  %v1532_v25 = vrot.slane %v1037_v14, 5 }
  0x1e   : > { %492 = vst [vmem:[#allocation2 + $0x80] sm:$0x1] %v4798_v2  ;;  %493 = vst [vmem:[#allocation2 + $0x84] sm:$0xf] %v4798_v2  ;;  %v4695_v26 = vld [vmem:[%s6332_s3 + $0x70] sm:$0xff]   ;;  %v1104_v27 = vrot.slane %v1102_v17, 5  ;;  %v1099_v32 = vor.u32 %v1098_v23, %v1095_v22 }
  0x1f   : > { %494 = vst [vmem:[#allocation2 + $0x88] sm:$0xf] %v4798_v2  ;;  %495 = vst [vmem:[#allocation2 + $0x8c] sm:$0x1] %v4798_v2  ;;  %4147 = vmatpush3.bf16.msra.mxu0 %v4692_v10  ;;  %4670 = vmatpush3.bf16.msra.mxu1 %v4692_v10  ;;  %v1108_v28 = vrot.slane %v1106_v18, 4  ;;  %v3720_v30 = vrot.slane %v4889_v12, 9 }
  0x20   : > { %496 = vst [vmem:[#allocation2 + $0x90] sm:$0xf] %v4798_v2  ;;  %497 = vst [vmem:[#allocation2 + $0x94] sm:$0xf] %v4798_v2  ;;  %4148 = vmatprep.subr.bf16.mxu0 %v4693_v11  ;;  %4663 = vmatprep.subr.bf16.mxu1 %v4693_v11  ;;  %v4915_v31 = vld [vmem:[%s6330_s1] ss:$0 sm:$0xff] }
  0x21   : > { %498 = vst [vmem:[#allocation2 + $0x98] sm:$0x1] %v4798_v2  ;;  %499 = vst [vmem:[#allocation2 + $0x9c] sm:$0xf] %v4798_v2  ;;  %v1531_v33 = vrot.slane %v1529_v24, 4  ;;  %v4118_v36 = vld [vmem:[%s4887_s26 + $0x58] sm:$0xff]   ;;  %v1109_v38 = vor.u32 %v1108_v28, %v1104_v27  ;;  %v341_v44 = vmul.f32 %v3966_v34, %v4915_v31  ;;  %v342_v45 = vmul.f32 %v3967_v35, %v4915_v31 }
  0x22   : > { %500 = vst [vmem:[#allocation2 + $0xa0] sm:$0xf] %v4798_v2  ;;  %501 = vst [vmem:[#allocation2 + $0xa4] sm:$0x1] %v4798_v2  ;;  %v1114_v39 = vrot.slane %v1112_v19, 5  ;;  %vm918_vm6 = vcmask 1043456   ;;  %v4010_v48 = vunpack.c.l.bf16 %v4118_v36  ;;  %v4011_v49 = vunpack.c.h.bf16 %v4118_v36 }
  0x23   : > { %502 = vst [vmem:[#allocation2 + $0xa8] sm:$0xf] %v4798_v2  ;;  %503 = vst [vmem:[#allocation2 + $0xac] sm:$0xf] %v4798_v2  ;;  %v4927_v40 = vld [vmem:[%s6331_s2] ss:$0 sm:$0xff]  ;;  %4149 = vmatpush3.bf16.msra.mxu0 %v4694_v21  ;;  %4671 = vmatpush3.bf16.msra.mxu1 %v4694_v21 }
  0x24   : > { %504 = vst [vmem:[#allocation2 + $0xb0] sm:$0x1] %v4798_v2  ;;  %505 = vst [vmem:[#allocation2 + $0xb4] sm:$0xf] %v4798_v2  ;;  %v4696_v41 = vld [vmem:[%s6332_s3 + $0x30] sm:$0xff]   ;;  %v1100_v42 = vrot.slane %v1099_v32, 4  ;;  %4150 = vmatprep.subr.bf16.mxu0 %v4695_v26  ;;  %4664 = vmatprep.subr.bf16.mxu1 %v4695_v26  ;;  %v380_v53 = vadd.f32 %v4927_v40, %v341_v44  ;;  %v381_v54 = vadd.f32 %v4927_v40, %v342_v45 }
  0x25   : > { %506 = vst [vmem:[#allocation2 + $0xb8] sm:$0xf] %v4798_v2  ;;  %507 = vst [vmem:[#allocation2 + $0xbc] sm:$0x1] %v4798_v2  ;;  %v4697_v46 = vld [vmem:[%s6332_s3 + $0x78] sm:$0xff]   ;;  %v1110_v47 = vrot.slane %v1109_v38, 4  ;;  %v363_v57 = vmul.f32 %v4010_v48, %v4915_v31  ;;  %v364_v58 = vmul.f32 %v4011_v49, %v4915_v31 }
  0x26   : > { %508 = vst [vmem:[#allocation2 + $0xc0] sm:$0xf] %v4798_v2  ;;  %509 = vst [vmem:[#allocation2 + $0xc4] sm:$0xf] %v4798_v2  ;;  %v4698_v51 = vld [vmem:[%s6332_s3 + $0x38] sm:$0xff]   ;;  %vm925_vm7 = vcmask 1040384  }
  0x27   : > { %510 = vst [vmem:[#allocation2 + $0xc8] sm:$0x1] %v4798_v2  ;;  %511 = vst [vmem:[#allocation2 + $0xcc] sm:$0xf] %v4798_v2  ;;  %v4700_v59 = vld [vmem:[%s6332_s3 + $0xc0] sm:$0xff]   ;;  %4151 = vmatpush3.bf16.msra.mxu0 %v4696_v41  ;;  %4672 = vmatpush3.bf16.msra.mxu1 %v4696_v41  ;;  %v412_v62 = vmax.f32 %v380_v53, 0.0  ;;  %v402_v0 = vadd.f32 %v4927_v40, %v363_v57  ;;  %v403_v1 = vadd.f32 %v4927_v40, %v364_v58 }
  0x28   : > { %512 = vst [vmem:[#allocation2 + $0xd0] sm:$0xf] %v4798_v2  ;;  %513 = vst [vmem:[#allocation2 + $0xd4] sm:$0x1] %v4798_v2  ;;  %v4701_v60 = vld [vmem:[%s6332_s3 + $0x140] sm:$0xff]   ;;  %v413_v63 = vmax.f32 %v381_v54, 0.0  ;;  %4152 = vmatprep.subr.bf16.mxu0 %v4697_v46  ;;  %4665 = vmatprep.subr.bf16.mxu1 %v4697_v46 }
  0x29   : > { %vm4907_vm4 = vmor %vm1524_vm0, %vm1525_vm2  ;;  %vm594_vm8 = vsmask.f32 256  ;;  %v3900_v2 = vpack.c.bf16 %v412_v62, %v412_v62  ;;  %vm595_vm9 = vsmask.f32 4368  ;;  %vm919_vm10 = vsmask.f32 7938 }
  0x2a   : > { %vm4920_vm5 = vmor %vm1089_vm1, %vm1090_vm3  ;;  %v4934_v43 = vsel %vm4907_vm4, %v1531_v33, %v1532_v25  ;;  %v4943_v50 = vsel %vm4907_vm4, %v3720_v30, %v1529_v24  ;;  %v3901_v3 = vpack.c.bf16 %v413_v63, %v413_v63  ;;  %v434_v5 = vmax.f32 %v402_v0, 0.0  ;;  %v4108_v7 = vld [vmem:[%s4887_s26 + $0x8] sm:$0xff]   ;;  %v4705_v14 = vld [vmem:[%s6332_s3 + $0x100] sm:$0xff]  }
  0x2b   : > { %v1105_v52 = vsel %vm4920_vm5, %v1100_v42, %v1104_v27  ;;  %v1115_v56 = vsel %vm4920_vm5, %v1110_v47, %v1114_v39  ;;  %v435_v6 = vmax.f32 %v403_v1, 0.0  ;;  %4153 = vmatpush3.bf16.msra.mxu0 %v4698_v51  ;;  %4673 = vmatpush3.bf16.msra.mxu1 %v4698_v51  ;;  %v598_v8 = vshrl.u32 %v3900_v2, 16  ;;  %vm4973_vm11 = vmor %vm594_vm8, %vm595_vm9  ;;  %v921_v12 = vld [vmem:[#allocation2 + $0xc] sm:$0xf]  ;;  %v4119_v19 = vld [vmem:[%s4887_s26 + $0x60] sm:$0xff]  }
  0x2c   : > { %v3754_v61 = vcombine.low %v1105_v52, %v1115_v56  ;;  %v601_v9 = vshll.u32 %v3900_v2, 16  ;;  %v606_v10 = vshrl.u32 %v3901_v3, 16  ;;  %v609_v11 = vshll.u32 %v3901_v3, 16  ;;  %4250 = vmatprep.subr.bf16.mxu1 %v4700_v59  ;;  %4362 = vmatprep.subr.bf16.mxu0 %v4701_v60  ;;  %vm4980_vm12 = vmand %vm918_vm6, %vm919_vm10  ;;  %v927_v26 = vld [vmem:[#allocation2 + $0x14] sm:$0x1]  ;;  %v4713_v56 = vld [vmem:[%s6332_s3 + $0x148] sm:$0xff]  }
  0x2d   : > { %v3922_v13 = vpack.c.bf16 %v434_v5, %v434_v5  ;;  %v3923_v16 = vpack.c.bf16 %v435_v6, %v435_v6  ;;  %v3970_v17 = vunpack.c.l.bf16 %v4108_v7  ;;  %v3971_v18 = vunpack.c.h.bf16 %v4108_v7  ;;  %vm4986_vm13 = vmand %vm925_vm7, %vm594_vm8  ;;  %v1000_v38 = vld [vmem:[#allocation2 + $0x90] sm:$0xf]  ;;  %v1004_v48 = vld [vmem:[#allocation2 + $0x98] sm:$0x1] }
  0x2e   : > { %2531 = vmatprep.mubr.bf16.mxu0 %v3754_v61  ;;  %v600_v20 = vrot.slane %v598_v8, 7  ;;  %v608_v21 = vrot.slane %v606_v10, 7  ;;  %v4014_v23 = vunpack.c.l.bf16 %v4119_v19  ;;  %v4015_v24 = vunpack.c.h.bf16 %v4119_v19  ;;  %v4715_v0 = vld [vmem:[%s6332_s3 + $0x108] sm:$0xff]   ;;  %v4109_v1 = vld [vmem:[%s4887_s26 + $0x10] sm:$0xff]   ;;  %v955_v55 = vld [vmem:[#allocation2 + $0x44] sm:$0x1] }
  0x2f   : > { %2532 = vmatmul.mubr.bf16.vlgmr.msra.gmra.mrb[0].mxu0 %v3738_v4  ;;  %v785_v27 = vshrl.u32 %v3922_v13, 16  ;;  %v788_v28 = vshll.u32 %v3922_v13, 16  ;;  %v793_v30 = vshrl.u32 %v3923_v16, 16  ;;  %v796_v32 = vshll.u32 %v3923_v16, 16  ;;  %v4120_v6 = vld [vmem:[%s4887_s26 + $0x68] sm:$0xff]   ;;  %v4762_v15 = vld [vmem:[%s6332_s3 + $0x210] sm:$0xff]  }
  0x30   : > { %v603_v33 = vor.u32 %v601_v9, %v600_v20  ;;  %v604_v34 = vrot.slane %v600_v20, 4  ;;  %v611_v35 = vor.u32 %v609_v11, %v608_v21  ;;  %v613_v36 = vrot.slane %v608_v21, 4  ;;  %4363 = vmatpush3.bf16.msra.mxu0 %v4705_v14 }
  0x31   : > { %v787_v39 = vrot.slane %v785_v27, 7  ;;  %v795_v41 = vrot.slane %v793_v30, 7  ;;  %v343_v42 = vmul.f32 %v3970_v17, %v4915_v31  ;;  %v344_v44 = vmul.f32 %v3971_v18, %v4915_v31  ;;  %4364 = vmatprep.subr.bf16.mxu0 %v4713_v56 }
  0x32   : > { %v612_v45 = vsel %vm4973_vm11, %v604_v34, %v611_v35  ;;  %v922_v46 = vsel %vm4980_vm12, %v603_v33, %v921_v12  ;;  %v928_v47 = vsel %vm4986_vm13, %v613_v36, %v927_v26  ;;  %v365_v49 = vmul.f32 %v4014_v23, %v4915_v31 }
  0x33   : > { %923 = vst [vmem:[#allocation2 + $0xc] sm:$0xf] %v922_v46  ;;  %924 = vst [vmem:[#allocation2 + $0x10] sm:$0xf] %v612_v45  ;;  %v790_v51 = vor.u32 %v788_v28, %v787_v39  ;;  %v791_v52 = vrot.slane %v787_v39, 4  ;;  %v798_v53 = vor.u32 %v796_v32, %v795_v41  ;;  %v800_v54 = vrot.slane %v795_v41, 4 }
  0x34   : > { %929 = vst [vmem:[#allocation2 + $0x14] sm:$0x1] %v928_v47  ;;  %v382_v57 = vadd.f32 %v4927_v40, %v343_v42  ;;  %v383_v58 = vadd.f32 %v4927_v40, %v344_v44  ;;  %v366_v59 = vmul.f32 %v4015_v24, %v4915_v31  ;;  %v404_v60 = vadd.f32 %v4927_v40, %v365_v49 }
  0x35   : > { %v799_v61 = vsel %vm4973_vm11, %v791_v52, %v798_v53  ;;  %v1001_v62 = vsel %vm4980_vm12, %v790_v51, %v1000_v38  ;;  %v1005_v63 = vsel %vm4986_vm13, %v800_v54, %v1004_v48  ;;  %4365 = vmatpush3.bf16.msra.mxu0 %v4715_v0  ;;  %v3974_v7 = vunpack.c.l.bf16 %v4109_v1 }
  0x36   : > { %1002 = vst [vmem:[#allocation2 + $0x90] sm:$0xf] %v1001_v62  ;;  %1003 = vst [vmem:[#allocation2 + $0x94] sm:$0xf] %v799_v61  ;;  %v414_v2 = vmax.f32 %v382_v57, 0.0  ;;  %v415_v3 = vmax.f32 %v383_v58, 0.0  ;;  %v405_v4 = vadd.f32 %v4927_v40, %v366_v59  ;;  %v3975_v8 = vunpack.c.h.bf16 %v4109_v1 }
  0x37   : > { %1006 = vst [vmem:[#allocation2 + $0x98] sm:$0x1] %v1005_v63  ;;  %v436_v5 = vmax.f32 %v404_v60, 0.0  ;;  %v4018_v9 = vunpack.c.l.bf16 %v4120_v6  ;;  %v4019_v10 = vunpack.c.h.bf16 %v4120_v6  ;;  %v345_v16 = vmul.f32 %v3974_v7, %v4915_v31 }
  0x38   : > { %v3902_v11 = vpack.c.bf16 %v414_v2, %v414_v2  ;;  %v437_v14 = vmax.f32 %v405_v4, 0.0  ;;  %v5018_v12 = vpack.c.bf16 %v415_v3, %v415_v3  ;;  %v346_v21 = vmul.f32 %v3975_v8, %v4915_v31  ;;  %v930_v8 = vld [vmem:[#allocation2 + $0x18] sm:$0xf] }
  0x39   : > { %v5020_v13 = vpack.c.bf16 %v436_v5, %v436_v5  ;;  %v5033_v23 = vmul.f32 %v4018_v9, %v4915_v31  ;;  %v5036_v24 = vmul.f32 %v4019_v10, %v4915_v31  ;;  %v5048_v48 = vadd.f32 %v4927_v40, %v345_v16  ;;  %v934_v16 = vld [vmem:[#allocation2 + $0x20] sm:$0x1] }
  0x3a   : > { %v5023_v17 = vld [vmem:[#allocation2 + $0xc] sm:$0xf]  ;;  %v5025_v18 = vld [vmem:[#allocation2 + $0x10] sm:$0xf]  ;;  %v5029_v20 = vpack.c.bf16 %v437_v14, %v437_v14  ;;  %v615_v34 = vshrl.u32 %v3902_v11, 16  ;;  %v618_v35 = vshll.u32 %v3902_v11, 16  ;;  %v5051_v49 = vadd.f32 %v4927_v40, %v346_v21 }
  0x3b   : > { %v5027_v19 = vld [vmem:[#allocation2 + $0x14] sm:$0x1]  ;;  %v1117_v26 = vshrl.u32 %v5023_v17, 16  ;;  %v1120_v27 = vshll.u32 %v5023_v17, 16  ;;  %v1126_v28 = vshll.u32 %v5025_v18, 16  ;;  %v1130_v30 = vshrl.u32 %v5025_v18, 16 }
  0x3c   : > { %v1136_v32 = vshll.u32 %v5027_v19, 16  ;;  %v5045_v33 = vcombine.low %v5023_v17, %v5025_v18  ;;  %v617_v2 = vrot.slane %v615_v34, 7  ;;  %v623_v3 = vshrl.u32 %v5018_v12, 16  ;;  %v4723_v21 = vld [vmem:[%s6332_s3 + $0x150] sm:$0xff]  }
  0x3d   : > { %v1119_v36 = vrot.slane %v1117_v26, 4  ;;  %v1122_v38 = vrot.slane %v1120_v27, 5  ;;  %v1128_v39 = vrot.slane %v1126_v28, 5  ;;  %v1132_v41 = vrot.slane %v1130_v30, 4  ;;  %v1071_v42 = vld [vmem:[#allocation2 + $0x90] sm:$0xf]  ;;  %4366 = vmatprep.subr.bf16.mxu0 %v4723_v21 }
  0x3e   : > { %v1138_v44 = vrot.slane %v1136_v32, 5  ;;  %v1072_v45 = vld [vmem:[#allocation2 + $0x94] sm:$0xf]  ;;  %v1073_v46 = vld [vmem:[#allocation2 + $0x98] sm:$0x1]  ;;  %v1381_v47 = vshrl.u32 %v1071_v42, 16  ;;  %v620_v11 = vor.u32 %v618_v35, %v617_v2 }
  0x3f   : > { %v1123_v51 = vor.u32 %v1122_v38, %v1119_v36  ;;  %v1133_v52 = vor.u32 %v1132_v41, %v1128_v39  ;;  %v1384_v53 = vshll.u32 %v1071_v42, 16  ;;  %v1390_v54 = vshll.u32 %v1072_v45, 16  ;;  %v1007_v36 = vld [vmem:[#allocation2 + $0x9c] sm:$0xf]  ;;  %v937_v21 = vld [vmem:[#allocation2 + $0x24] sm:$0xf] }
  0x40   : > { %v1383_v56 = vrot.slane %v1381_v47, 4  ;;  %v1394_v57 = vshrl.u32 %v1072_v45, 16  ;;  %v1400_v58 = vshll.u32 %v1073_v46, 16  ;;  %v5053_v59 = vcombine.low %v1071_v42, %v1072_v45 }
  0x41   : > { %v1124_v60 = vrot.slane %v1123_v51, 4  ;;  %v1134_v61 = vrot.slane %v1133_v52, 4  ;;  %v1386_v62 = vrot.slane %v1384_v53, 5  ;;  %v1392_v63 = vrot.slane %v1390_v54, 5  ;;  %v4727_v51 = vld [vmem:[%s6332_s3 + $0x110] sm:$0xff]  }
  0x42   : > { %v1396_v0 = vrot.slane %v1394_v57, 4  ;;  %v1402_v1 = vrot.slane %v1400_v58, 5  ;;  %v626_v7 = vshll.u32 %v5018_v12, 16  ;;  %v621_v14 = vrot.slane %v617_v2, 4  ;;  %v1011_v57 = vld [vmem:[#allocation2 + $0xa4] sm:$0x1]  ;;  %4367 = vmatpush3.bf16.msra.mxu0 %v4727_v51 }
  0x43   : > { %v1129_v4 = vsel %vm4920_vm5, %v1124_v60, %v1128_v39  ;;  %v1139_v5 = vsel %vm4920_vm5, %v1134_v61, %v1138_v44  ;;  %v1387_v6 = vor.u32 %v1386_v62, %v1383_v56  ;;  %v625_v27 = vrot.slane %v623_v3, 7  ;;  %v5104_v2 = vld [vmem:[%s4887_s26 + $0x70] sm:$0xff]   ;;  %v4707_v3 = vld [vmem:[%s6332_s3 + $0x88] sm:$0xff]  }
  0x44   : > { %v5061_v9 = vcombine.low %v1129_v4, %v1139_v5  ;;  %v1397_v10 = vor.u32 %v1396_v0, %v1392_v63  ;;  %v802_v28 = vshrl.u32 %v5020_v13, 16  ;;  %v805_v30 = vshll.u32 %v5020_v13, 16  ;;  %v4704_v13 = vld [vmem:[%s6332_s3 + $0x80] sm:$0xff]  }
  0x45   : > { %v1388_v26 = vrot.slane %v1387_v6, 4  ;;  %v931_v32 = vsel %vm4980_vm12, %v620_v11, %v930_v8  ;;  %v810_v34 = vshrl.u32 %v5029_v20, 16  ;;  %v813_v35 = vshll.u32 %v5029_v20, 16  ;;  %v4706_v20 = vld [vmem:[%s6332_s3 + $0xc8] sm:$0xff]  }
  0x46   : > { %2539 = vmatprep.mubr.bf16.mxu0 %v5061_v9  ;;  %v1398_v12 = vrot.slane %v1397_v10, 4  ;;  %v628_v39 = vor.u32 %v626_v7, %v625_v27  ;;  %v630_v41 = vrot.slane %v625_v27, 4  ;;  %932 = vst [vmem:[#allocation2 + $0x18] sm:$0xf] %v931_v32  ;;  %v804_v42 = vrot.slane %v802_v28, 7  ;;  %v4711_v32 = vld [vmem:[%s6332_s3 + $0x90] sm:$0xff]  }
  0x47   : > { %v1393_v38 = vsel %vm4920_vm5, %v1388_v26, %v1392_v63  ;;  %2540 = vmatmul.mubr.bf16.gmra.mrb[4].mxu0 %v5045_v33  ;;  %v812_v45 = vrot.slane %v810_v34, 7  ;;  %v416_v46 = vmax.f32 %v5048_v48, 0.0  ;;  %v417_v47 = vmax.f32 %v5051_v49, 0.0 }
  0x48   : > { %v1403_v44 = vsel %vm4920_vm5, %v1398_v12, %v1402_v1  ;;  %v629_v53 = vsel %vm4973_vm11, %v621_v14, %v628_v39  ;;  %v935_v54 = vsel %vm4986_vm13, %v630_v41, %v934_v16  ;;  %v807_v56 = vor.u32 %v805_v30, %v804_v42  ;;  %v4110_v1 = vld [vmem:[%s4887_s26 + $0x18] sm:$0xff]   ;;  %v4708_v14 = vld [vmem:[%s6332_s3 + $0xd0] sm:$0xff]  }
  0x49   : > { %v5089_v52 = vcombine.low %v1393_v38, %v1403_v44  ;;  %933 = vst [vmem:[#allocation2 + $0x1c] sm:$0xf] %v629_v53  ;;  %936 = vst [vmem:[#allocation2 + $0x20] sm:$0x1] %v935_v54  ;;  %v808_v48 = vrot.slane %v804_v42, 4  ;;  %v815_v49 = vor.u32 %v813_v35, %v812_v45  ;;  %v817_v58 = vrot.slane %v812_v45, 4 }
  0x4a   : > { %v3904_v60 = vpack.c.bf16 %v416_v46, %v416_v46  ;;  %v1008_v61 = vsel %vm4980_vm12, %v807_v56, %v1007_v36  ;;  %v3905_v62 = vpack.c.bf16 %v417_v47, %v417_v47  ;;  %v406_v63 = vadd.f32 %v4927_v40, %v5033_v23  ;;  %v4712_v36 = vld [vmem:[%s6332_s3 + $0xd8] sm:$0xff]  }
  0x4b   : > { %6361 = vst [vmem:[#allocation3_spill] sm:$0xff] %v5089_v52  ;;  %2627 = vmatprep.mubr.bf16.mxu1 %v5089_v52  ;;  %v407_v0 = vadd.f32 %v4927_v40, %v5036_v24  ;;  %v816_v4 = vsel %vm4973_vm11, %v808_v48, %v815_v49  ;;  %1009 = vst [vmem:[#allocation2 + $0x9c] sm:$0xf] %v1008_v61  ;;  %v1012_v5 = vsel %vm4986_vm13, %v817_v58, %v1011_v57  ;;  %v4733_v42 = vld [vmem:[%s6332_s3 + $0x158] sm:$0xff]  }
  0x4c   : > { %2628 = vmatmul.mubr.bf16.vlgmr.msra.gmra.mrb[0].mxu1 %v5053_v59  ;;  %v632_v23 = vshrl.u32 %v3904_v60, 16  ;;  %v635_v6 = vshll.u32 %v3904_v60, 16  ;;  %1010 = vst [vmem:[#allocation2 + $0xa0] sm:$0xf] %v816_v4  ;;  %1013 = vst [vmem:[#allocation2 + $0xa4] sm:$0x1] %v1012_v5  ;;  %v3978_v26 = vunpack.c.l.bf16 %v4110_v1  ;;  %v3979_v27 = vunpack.c.h.bf16 %v4110_v1  ;;  %4368 = vmatprep.subr.bf16.mxu0 %v4733_v42 }
  0x4d   : > { %4251 = vmatpush3.bf16.msra.mxu1 %v4704_v13  ;;  %v640_v24 = vshrl.u32 %v3905_v62, 16  ;;  %v643_v7 = vshll.u32 %v3905_v62, 16  ;;  %v438_v8 = vmax.f32 %v406_v63, 0.0  ;;  %v439_v10 = vmax.f32 %v407_v0, 0.0  ;;  %v5114_v11 = vld [vmem:[#allocation2 + $0x18] sm:$0xf] }
  0x4e   : > { %4252 = vmatprep.subr.bf16.mxu1 %v4706_v20  ;;  %v634_v16 = vrot.slane %v632_v23, 7  ;;  %v4022_v28 = vunpack.c.l.bf16 %v5104_v2  ;;  %v1141_v30 = vshrl.u32 %v5114_v11, 16  ;;  %v1144_v12 = vshll.u32 %v5114_v11, 16  ;;  %v4734_v48 = vld [vmem:[%s6332_s3 + $0x118] sm:$0xff]   ;;  %v941_v0 = vld [vmem:[#allocation2 + $0x2c] sm:$0x1] }
  0x4f   : > { %v642_v34 = vrot.slane %v640_v24, 7  ;;  %v5125_v35 = vpack.c.bf16 %v438_v8, %v438_v8  ;;  %v5130_v39 = vpack.c.bf16 %v439_v10, %v439_v10  ;;  %v5133_v41 = vmul.f32 %v3978_v26, %v4915_v31  ;;  %v4714_v60 = vld [vmem:[%s6332_s3 + $0x98] sm:$0xff]   ;;  %4369 = vmatpush3.bf16.msra.mxu0 %v4734_v48 }
  0x50   : > { %v637_v38 = vor.u32 %v635_v6, %v634_v16  ;;  %v638_v13 = vrot.slane %v634_v16, 4  ;;  %v5138_v44 = vld [vmem:[#allocation2 + $0x1c] sm:$0xf]  ;;  %v5140_v20 = vld [vmem:[#allocation2 + $0x20] sm:$0x1]  ;;  %v1143_v45 = vrot.slane %v1141_v30, 4  ;;  %v5143_v51 = vmul.f32 %v3979_v27, %v4915_v31 }
  0x51   : > { %4253 = vmatpush3.bf16.msra.mxu1 %v4707_v3  ;;  %v1146_v46 = vrot.slane %v1144_v12, 5  ;;  %v645_v47 = vor.u32 %v643_v7, %v642_v34  ;;  %v1150_v53 = vshll.u32 %v5138_v44, 16  ;;  %v1154_v54 = vshrl.u32 %v5138_v44, 16 }
  0x52   : > { %v1160_v56 = vshll.u32 %v5140_v20, 16  ;;  %4254 = vmatprep.subr.bf16.mxu1 %v4708_v14  ;;  %v5150_v57 = vcombine.low %v5114_v11, %v5138_v44  ;;  %v1074_v58 = vld [vmem:[#allocation2 + $0x9c] sm:$0xf]  ;;  %v647_v62 = vrot.slane %v642_v34, 4  ;;  %v938_v63 = vsel %vm4980_vm12, %v637_v38, %v937_v21  ;;  %v4716_v21 = vld [vmem:[%s6332_s3 + $0xe0] sm:$0xff]  }
  0x53   : > { %v1147_v49 = vor.u32 %v1146_v46, %v1143_v45  ;;  %v646_v61 = vsel %vm4973_vm11, %v638_v13, %v645_v47  ;;  %v1152_v1 = vrot.slane %v1150_v53, 5  ;;  %v1156_v3 = vrot.slane %v1154_v54, 4  ;;  %v1075_v5 = vld [vmem:[#allocation2 + $0xa0] sm:$0xf]  ;;  %939 = vst [vmem:[#allocation2 + $0x24] sm:$0xf] %v938_v63 }
  0x54   : > { %6362 = vst [vmem:[#allocation4_spill] sm:$0xff] %v5150_v57  ;;  %v1162_v4 = vrot.slane %v1160_v56, 5  ;;  %v1405_v23 = vshrl.u32 %v1074_v58, 16  ;;  %940 = vst [vmem:[#allocation2 + $0x28] sm:$0xf] %v646_v61  ;;  %v1408_v7 = vshll.u32 %v1074_v58, 16  ;;  %v5162_v27 = vcombine.low %v1074_v58, %v1075_v5 }
  0x55   : > { %v1148_v6 = vrot.slane %v1147_v49, 4  ;;  %v1076_v24 = vld [vmem:[#allocation2 + $0xa4] sm:$0x1]  ;;  %v1414_v8 = vshll.u32 %v1075_v5, 16  ;;  %v1418_v10 = vshrl.u32 %v1075_v5, 16  ;;  %4255 = vmatpush3.bf16.msra.mxu1 %v4711_v32  ;;  %v1157_v14 = vor.u32 %v1156_v3, %v1152_v1  ;;  %v4720_v46 = vld [vmem:[%s6332_s3 + $0xe8] sm:$0xff]  }
  0x56   : > { %v1407_v16 = vrot.slane %v1405_v23, 4  ;;  %v1424_v26 = vshll.u32 %v1076_v24, 16  ;;  %4256 = vmatprep.subr.bf16.mxu1 %v4712_v36  ;;  %v1410_v12 = vrot.slane %v1408_v7, 5  ;;  %v942_v32 = vsel %vm4986_vm13, %v647_v62, %v941_v0  ;;  %v4719_v36 = vld [vmem:[%s6332_s3 + $0xa0] sm:$0xff]   ;;  %v1014_v62 = vld [vmem:[#allocation2 + $0xa8] sm:$0xf] }
  0x57   : > { %v1153_v30 = vsel %vm4920_vm5, %v1148_v6, %v1152_v1  ;;  %v1416_v34 = vrot.slane %v1414_v8, 5  ;;  %v1420_v38 = vrot.slane %v1418_v10, 4  ;;  %v1158_v13 = vrot.slane %v1157_v14, 4  ;;  %v4736_v47 = vld [vmem:[%s6332_s3 + $0x160] sm:$0xff]   ;;  %943 = vst [vmem:[#allocation2 + $0x2c] sm:$0x1] %v942_v32 }
  0x58   : > { %v1426_v42 = vrot.slane %v1424_v26, 5  ;;  %v819_v45 = vshrl.u32 %v5125_v35, 16  ;;  %v1411_v53 = vor.u32 %v1410_v12, %v1407_v16  ;;  %v822_v56 = vshll.u32 %v5125_v35, 16  ;;  %4370 = vmatprep.subr.bf16.mxu0 %v4736_v47  ;;  %v4739_v6 = vld [vmem:[%s6332_s3 + $0x120] sm:$0xff]  }
  0x59   : > { %v1421_v54 = vor.u32 %v1420_v38, %v1416_v34  ;;  %4257 = vmatpush3.bf16.msra.mxu1 %v4714_v60  ;;  %v827_v48 = vshrl.u32 %v5130_v39, 16  ;;  %v1163_v49 = vsel %vm4920_vm5, %v1158_v13, %v1162_v4  ;;  %v830_v61 = vshll.u32 %v5130_v39, 16  ;;  %4371 = vmatpush3.bf16.msra.mxu0 %v4739_v6 }
  0x5a   : > { %v821_v58 = vrot.slane %v819_v45, 7  ;;  %4258 = vmatprep.subr.bf16.mxu1 %v4716_v21  ;;  %v386_v63 = vadd.f32 %v4927_v40, %v5133_v41  ;;  %v5188_v0 = vcombine.low %v1153_v30, %v1163_v49  ;;  %v1412_v60 = vrot.slane %v1411_v53, 4  ;;  %v5190_v3 = vld [vmem:[#allocation2 + $0x24] sm:$0xf]  ;;  %v1018_v21 = vld [vmem:[#allocation2 + $0xb0] sm:$0x1] }
  0x5b   : > { %v1422_v1 = vrot.slane %v1421_v54, 4  ;;  %v5192_v35 = vld [vmem:[#allocation2 + $0x28] sm:$0xf]  ;;  %v387_v4 = vadd.f32 %v4927_v40, %v5143_v51  ;;  %v1165_v5 = vshrl.u32 %v5190_v3, 16  ;;  %v1168_v39 = vshll.u32 %v5190_v3, 16  ;;  %v4726_v53 = vld [vmem:[%s6332_s3 + $0xb0] sm:$0xff]  }
  0x5c   : > { %v1174_v23 = vshll.u32 %v5192_v35, 16  ;;  %v1178_v41 = vshrl.u32 %v5192_v35, 16  ;;  %2547 = vmatprep.mubr.bf16.mxu0 %v5188_v0  ;;  %v1417_v24 = vsel %vm4920_vm5, %v1412_v60, %v1416_v34  ;;  %v824_v7 = vor.u32 %v822_v56, %v821_v58  ;;  %v4721_v30 = vld [vmem:[%s6332_s3 + $0xa8] sm:$0xff]  }
  0x5d   : > { %v1427_v51 = vsel %vm4920_vm5, %v1422_v1, %v1426_v42  ;;  %v825_v8 = vrot.slane %v821_v58, 4  ;;  %4259 = vmatpush3.bf16.msra.mxu1 %v4719_v36  ;;  %2548 = vmatmul.mubr.bf16.gmra.mrb[8].mxu0 %v5150_v57  ;;  %v1167_v14 = vrot.slane %v1165_v5, 4  ;;  %v1170_v16 = vrot.slane %v1168_v39, 5  ;;  %v4722_v42 = vld [vmem:[%s6332_s3 + $0xf0] sm:$0xff]   ;;  %v4742_v1 = vld [vmem:[%s6332_s3 + $0x168] sm:$0xff]  }
  0x5e   : > { %v5208_v10 = vcombine.low %v1417_v24, %v1427_v51  ;;  %v1176_v26 = vrot.slane %v1174_v23, 5  ;;  %4260 = vmatprep.subr.bf16.mxu1 %v4720_v46  ;;  %v1180_v12 = vrot.slane %v1178_v41, 4  ;;  %v829_v34 = vrot.slane %v827_v48, 7  ;;  %v5224_v32 = vld [vmem:[#allocation2 + $0x2c] sm:$0x1]  ;;  %v4728_v23 = vld [vmem:[%s6332_s3 + $0xf8] sm:$0xff]   ;;  %4372 = vmatprep.subr.bf16.mxu0 %v4742_v1 }
  0x5f   : > { %v1015_v38 = vsel %vm4980_vm12, %v824_v7, %v1014_v62  ;;  %v5218_v13 = vcombine.low %v5190_v3, %v5192_v35  ;;  %v1171_v45 = vor.u32 %v1170_v16, %v1167_v14  ;;  %v418_v36 = vmax.f32 %v386_v63, 0.0  ;;  %v5254_v7 = vld [vmem:[%s4887_s26 + $0x28] sm:$0xff]  }
  0x60   : > { %6363 = vst [vmem:[#allocation5_spill] sm:$0xff] %v5208_v10  ;;  %2635 = vmatprep.mubr.bf16.mxu1 %v5208_v10  ;;  %1016 = vst [vmem:[#allocation2 + $0xa8] sm:$0xf] %v1015_v38  ;;  %v419_v46 = vmax.f32 %v387_v4, 0.0  ;;  %v4023_v47 = vunpack.c.h.bf16 %v5104_v2  ;;  %v1181_v54 = vor.u32 %v1180_v12, %v1176_v26  ;;  %v1184_v56 = vshll.u32 %v5224_v32, 16  ;;  %v5246_v2 = vld [vmem:[%s4887_s26 + $0x20] sm:$0xff]  }
  0x61   : > { %6364 = vst [vmem:[#allocation6_spill] sm:$0xff] %v5218_v13  ;;  %2636 = vmatmul.mubr.bf16.gmra.mrb[4].mxu1 %v5162_v27  ;;  %v832_v48 = vor.u32 %v830_v61, %v829_v34  ;;  %v834_v49 = vrot.slane %v829_v34, 4  ;;  %v1172_v58 = vrot.slane %v1171_v45, 4  ;;  %v3906_v62 = vpack.c.bf16 %v418_v36, %v418_v36  ;;  %v944_v45 = vld [vmem:[#allocation2 + $0x30] sm:$0xf] }
  0x62   : > { %4261 = vmatpush3.bf16.msra.mxu1 %v4721_v30  ;;  %v3907_v60 = vpack.c.bf16 %v419_v46, %v419_v46  ;;  %v369_v63 = vmul.f32 %v4022_v28, %v4915_v31  ;;  %v1182_v4 = vrot.slane %v1181_v54, 4  ;;  %v1186_v5 = vrot.slane %v1184_v56, 5  ;;  %v4743_v28 = vld [vmem:[%s6332_s3 + $0x128] sm:$0xff]   ;;  %v4730_v54 = vld [vmem:[%s6332_s3 + $0x1c0] sm:$0xff]  }
  0x63   : > { %v833_v39 = vsel %vm4973_vm11, %v825_v8, %v832_v48  ;;  %v1019_v61 = vsel %vm4986_vm13, %v834_v49, %v1018_v21  ;;  %4262 = vmatprep.subr.bf16.mxu1 %v4722_v42  ;;  %v1177_v41 = vsel %vm4920_vm5, %v1172_v58, %v1176_v26  ;;  %v649_v6 = vshrl.u32 %v3906_v62, 16  ;;  %v4729_v26 = vld [vmem:[%s6332_s3 + $0xb8] sm:$0xff]   ;;  %4373 = vmatpush3.bf16.msra.mxu0 %v4743_v28 }
  0x64   : > { %1017 = vst [vmem:[#allocation2 + $0xac] sm:$0xf] %v833_v39  ;;  %1020 = vst [vmem:[#allocation2 + $0xb0] sm:$0x1] %v1019_v61  ;;  %v652_v24 = vshll.u32 %v3906_v62, 16  ;;  %v657_v51 = vshrl.u32 %v3907_v60, 16  ;;  %v1187_v8 = vsel %vm4920_vm5, %v1182_v4, %v1186_v5  ;;  %v370_v16 = vmul.f32 %v4023_v47, %v4915_v31 }
  0x65   : > { %v660_v14 = vshll.u32 %v3907_v60, 16  ;;  %v408_v21 = vadd.f32 %v4927_v40, %v369_v63  ;;  %v5263_v30 = vcombine.low %v1177_v41, %v1187_v8  ;;  %v651_v12 = vrot.slane %v649_v6, 7  ;;  %v948_v62 = vld [vmem:[#allocation2 + $0x38] sm:$0x1]  ;;  %v4749_v8 = vld [vmem:[%s6332_s3 + $0x130] sm:$0xff]  }
  0x66   : > { %v659_v34 = vrot.slane %v657_v51, 7  ;;  %4263 = vmatpush3.bf16.msra.mxu1 %v4726_v53  ;;  %v3982_v38 = vunpack.c.l.bf16 %v5246_v2  ;;  %v409_v36 = vadd.f32 %v4927_v40, %v370_v16  ;;  %v3983_v47 = vunpack.c.h.bf16 %v5246_v2  ;;  %v4747_v40 = vld [vmem:[%s6332_s3 + $0x170] sm:$0xff]  }
  0x67   : > { %v1077_v42 = vld [vmem:[#allocation2 + $0xa8] sm:$0xf]  ;;  %v440_v46 = vmax.f32 %v408_v21, 0.0  ;;  %4264 = vmatprep.subr.bf16.mxu1 %v4728_v23  ;;  %v3986_v56 = vunpack.c.l.bf16 %v5254_v7  ;;  %2555 = vmatprep.mubr.bf16.mxu0 %v5263_v30  ;;  %v654_v49 = vor.u32 %v652_v24, %v651_v12  ;;  %v655_v58 = vrot.slane %v651_v12, 4 }
  0x68   : > { %v1429_v48 = vshrl.u32 %v1077_v42, 16  ;;  %v1432_v53 = vshll.u32 %v1077_v42, 16  ;;  %2556 = vmatmul.mubr.bf16.gmra.mrb[12].mxu0 %v5218_v13  ;;  %v662_v60 = vor.u32 %v660_v14, %v659_v34  ;;  %v664_v63 = vrot.slane %v659_v34, 4  ;;  %4374 = vmatprep.subr.bf16.mxu0 %v4747_v40 }
  0x69   : > { %v441_v1 = vmax.f32 %v409_v36, 0.0  ;;  %v3928_v4 = vpack.c.bf16 %v440_v46, %v440_v46  ;;  %v945_v61 = vsel %vm4980_vm12, %v654_v49, %v944_v45  ;;  %v349_v23 = vmul.f32 %v3982_v38, %v4915_v31  ;;  %v1021_v45 = vld [vmem:[#allocation2 + $0xb4] sm:$0xf]  ;;  %4375 = vmatpush3.bf16.msra.mxu0 %v4749_v8 }
  0x6a   : > { %v1431_v5 = vrot.slane %v1429_v48, 4  ;;  %v1434_v39 = vrot.slane %v1432_v53, 5  ;;  %4265 = vmatpush3.bf16.msra.mxu1 %v4729_v26  ;;  %v663_v41 = vsel %vm4973_vm11, %v655_v58, %v662_v60  ;;  %946 = vst [vmem:[#allocation2 + $0x30] sm:$0xf] %v945_v61  ;;  %v949_v6 = vsel %vm4986_vm13, %v664_v63, %v948_v62  ;;  %v1025_v53 = vld [vmem:[#allocation2 + $0xbc] sm:$0x1] }
  0x6b   : > { %v1078_v2 = vld [vmem:[#allocation2 + $0xac] sm:$0xf]  ;;  %v1079_v28 = vld [vmem:[#allocation2 + $0xb0] sm:$0x1]  ;;  %v3929_v24 = vpack.c.bf16 %v441_v1, %v441_v1  ;;  %v836_v51 = vshrl.u32 %v3928_v4, 16  ;;  %4474 = vmatprep.subr.bf16.mxu1 %v4730_v54  ;;  %v839_v34 = vshll.u32 %v3928_v4, 16 }
  0x6c   : > { %v1435_v14 = vor.u32 %v1434_v39, %v1431_v5  ;;  %v1438_v16 = vshll.u32 %v1078_v2, 16  ;;  %v1442_v31 = vshrl.u32 %v1078_v2, 16  ;;  %v1448_v21 = vshll.u32 %v1079_v28, 16  ;;  %947 = vst [vmem:[#allocation2 + $0x34] sm:$0xf] %v663_v41  ;;  %v4753_v41 = vld [vmem:[%s6332_s3 + $0x178] sm:$0xff]  }
  0x6d   : > { %950 = vst [vmem:[#allocation2 + $0x38] sm:$0x1] %v949_v6  ;;  %v5287_v26 = vcombine.low %v1077_v42, %v1078_v2  ;;  %v838_v12 = vrot.slane %v836_v51, 7  ;;  %v844_v38 = vshrl.u32 %v3929_v24, 16  ;;  %v847_v40 = vshll.u32 %v3929_v24, 16  ;;  %4376 = vmatprep.subr.bf16.mxu0 %v4753_v41 }
  0x6e   : > { %v1436_v36 = vrot.slane %v1435_v14, 4  ;;  %v1440_v46 = vrot.slane %v1438_v16, 5  ;;  %v1444_v54 = vrot.slane %v1442_v31, 4  ;;  %v1450_v48 = vrot.slane %v1448_v21, 5  ;;  %v5294_v42 = vld [vmem:[%s6330_s1] ss:$0 sm:$0xff] }
  0x6f   : > { %v841_v49 = vor.u32 %v839_v34, %v838_v12  ;;  %v842_v58 = vrot.slane %v838_v12, 4  ;;  %v846_v62 = vrot.slane %v844_v38, 7  ;;  %v350_v1 = vmul.f32 %v5294_v42, %v3983_v47  ;;  %v5300_v4 = vld [vmem:[%s6331_s2] ss:$0 sm:$0xff] }
  0x70   : > { %v1441_v60 = vsel %vm4920_vm5, %v1436_v36, %v1440_v46  ;;  %v1445_v63 = vor.u32 %v1444_v54, %v1440_v46  ;;  %v388_v5 = vadd.f32 %v5300_v4, %v349_v23  ;;  %v3987_v28 = vunpack.c.h.bf16 %v5254_v7 }
  0x71   : > { %v849_v39 = vor.u32 %v847_v40, %v846_v62  ;;  %v851_v61 = vrot.slane %v846_v62, 4  ;;  %v1022_v2 = vsel %vm4980_vm12, %v841_v49, %v1021_v45  ;;  %v5309_v47 = vld [vmem:[#allocation2 + $0x30] sm:$0xf]  ;;  %v389_v24 = vadd.f32 %v5300_v4, %v350_v1  ;;  %v4754_v45 = vld [vmem:[%s6332_s3 + $0x138] sm:$0xff]  }
  0x72   : > { %v1446_v6 = vrot.slane %v1445_v63, 4  ;;  %1023 = vst [vmem:[#allocation2 + $0xb4] sm:$0xf] %v1022_v2  ;;  %v420_v51 = vmax.f32 %v388_v5, 0.0  ;;  %v351_v23 = vmul.f32 %v5294_v42, %v3986_v56  ;;  %v1189_v16 = vshrl.u32 %v5309_v47, 16  ;;  %4377 = vmatpush3.bf16.msra.mxu0 %v4754_v45 }
  0x73   : > { %v5315_v8 = vld [vmem:[#allocation2 + $0x34] sm:$0xf]  ;;  %v1192_v31 = vshll.u32 %v5309_v47, 16  ;;  %v850_v21 = vsel %vm4973_vm11, %v842_v58, %v849_v39  ;;  %v1026_v12 = vsel %vm4986_vm13, %v851_v61, %v1025_v53  ;;  %v421_v40 = vmax.f32 %v389_v24, 0.0 }
  0x74   : > { %v5317_v14 = vld [vmem:[#allocation2 + $0x38] sm:$0x1]  ;;  %v1451_v7 = vsel %vm4920_vm5, %v1446_v6, %v1450_v48  ;;  %v1198_v56 = vshll.u32 %v5315_v8, 16  ;;  %v1202_v34 = vshrl.u32 %v5315_v8, 16  ;;  %1024 = vst [vmem:[#allocation2 + $0xb8] sm:$0xf] %v850_v21  ;;  %v5337_v53 = vcombine.low %v5309_v47, %v5315_v8 }
  0x75   : > { %v1208_v38 = vshll.u32 %v5317_v14, 16  ;;  %1027 = vst [vmem:[#allocation2 + $0xbc] sm:$0x1] %v1026_v12  ;;  %v5333_v36 = vcombine.low %v1441_v60, %v1451_v7  ;;  %v1191_v46 = vrot.slane %v1189_v16, 4  ;;  %v1194_v54 = vrot.slane %v1192_v31, 5  ;;  %v4756_v48 = vld [vmem:[%s6332_s3 + $0x200] sm:$0xff]  }
  0x76   : > { %6366 = vst [vmem:[#allocation8_spill] sm:$0xff] %v5337_v53  ;;  %v1200_v49 = vrot.slane %v1198_v56, 5  ;;  %v1204_v58 = vrot.slane %v1202_v34, 4  ;;  %v3908_v60 = vpack.c.bf16 %v420_v51, %v420_v51  ;;  %v352_v1 = vmul.f32 %v5294_v42, %v3987_v28  ;;  %4610 = vmatprep.subr.bf16.mxu0 %v4756_v48 }
  0x77   : > { %6365 = vst [vmem:[#allocation7_spill] sm:$0xff] %v5333_v36  ;;  %v1210_v62 = vrot.slane %v1208_v38, 5  ;;  %2643 = vmatprep.mubr.bf16.mxu1 %v5333_v36  ;;  %v1195_v63 = vor.u32 %v1194_v54, %v1191_v46  ;;  %v390_v5 = vadd.f32 %v5300_v4, %v351_v23  ;;  %v3909_v61 = vpack.c.bf16 %v421_v40, %v421_v40 }
  0x78   : > { %2644 = vmatmul.mubr.bf16.gmra.mrb[8].mxu1 %v5287_v26  ;;  %v1205_v39 = vor.u32 %v1204_v58, %v1200_v49  ;;  %v3721_v2 = vrot.slane %v5023_v17, 9  ;;  %v1536_v41 = vrot.slane %v5025_v18, 5  ;;  %v666_v16 = vshrl.u32 %v3908_v60, 16  ;;  %v951_v18 = vld [vmem:[#allocation2 + $0x3c] sm:$0xf] }
  0x79   : > { %v1196_v6 = vrot.slane %v1195_v63, 4  ;;  %v1080_v24 = vld [vmem:[#allocation2 + $0xb4] sm:$0xf]  ;;  %v669_v31 = vshll.u32 %v3908_v60, 16  ;;  %v391_v21 = vadd.f32 %v5300_v4, %v352_v1  ;;  %v674_v7 = vshrl.u32 %v3909_v61, 16 }
  0x7a   : > { %v1206_v51 = vrot.slane %v1205_v39, 4  ;;  %v1453_v12 = vshrl.u32 %v1080_v24, 16  ;;  %v1456_v28 = vshll.u32 %v1080_v24, 16  ;;  %v668_v17 = vrot.slane %v666_v16, 7 }
  0x7b   : > { %v1201_v23 = vsel %vm4920_vm5, %v1196_v6, %v1200_v49  ;;  %v1081_v56 = vld [vmem:[#allocation2 + $0xb8] sm:$0xf]  ;;  %v677_v38 = vshll.u32 %v3909_v61, 16  ;;  %v1537_v45 = vsel %vm4907_vm4, %v3721_v2, %v1536_v41  ;;  %v4113_v49 = vld [vmem:[%s4887_s26 + $0x30] sm:$0xff]  }
  0x7c   : > { %v1082_v34 = vld [vmem:[#allocation2 + $0xbc] sm:$0x1]  ;;  %v1211_v46 = vsel %vm4920_vm5, %v1206_v51, %v1210_v62  ;;  %v1455_v54 = vrot.slane %v1453_v12, 4  ;;  %v1458_v48 = vrot.slane %v1456_v28, 5  ;;  %v1462_v58 = vshll.u32 %v1081_v56, 16 }
  0x7d   : > { %v5355_v40 = vcombine.low %v1201_v23, %v1211_v46  ;;  %v1466_v63 = vshrl.u32 %v1081_v56, 16  ;;  %v1472_v60 = vshll.u32 %v1082_v34, 16  ;;  %v5357_v1 = vcombine.low %v1080_v24, %v1081_v56 }
  0x7e   : > { %v1459_v39 = vor.u32 %v1458_v48, %v1455_v54  ;;  %v1464_v6 = vrot.slane %v1462_v58, 5  ;;  %v671_v61 = vor.u32 %v669_v31, %v668_v17  ;;  %v672_v16 = vrot.slane %v668_v17, 4 }
  0x7f   : > { %2563 = vmatprep.mubr.bf16.mxu0 %v5355_v40  ;;  %v1468_v2 = vrot.slane %v1466_v63, 4  ;;  %v1474_v36 = vrot.slane %v1472_v60, 5  ;;  %v676_v62 = vrot.slane %v674_v7, 7  ;;  %v422_v51 = vmax.f32 %v390_v5, 0.0  ;;  %v958_v60 = vld [vmem:[#allocation2 + $0x48] sm:$0xf] }
  0x80   : > { %v1460_v12 = vrot.slane %v1459_v39, 4  ;;  %2564 = vmatmul.mubr.bf16.gmra.mrb[16].mxu0 %v5337_v53  ;;  %v952_v28 = vsel %vm4980_vm12, %v671_v61, %v951_v18  ;;  %v423_v24 = vmax.f32 %v391_v21, 0.0  ;;  %v1538_v23 = vrot.slane %v1536_v41, 4  ;;  %v962_v61 = vld [vmem:[#allocation2 + $0x50] sm:$0x1] }
  0x81   : > { %v1469_v56 = vor.u32 %v1468_v2, %v1464_v6  ;;  %v679_v34 = vor.u32 %v677_v38, %v676_v62  ;;  %v681_v46 = vrot.slane %v676_v62, 4  ;;  %953 = vst [vmem:[#allocation2 + $0x3c] sm:$0xf] %v952_v28  ;;  %v3910_v31 = vpack.c.bf16 %v422_v51, %v422_v51  ;;  %v4114_v28 = vld [vmem:[%s4887_s26 + $0x38] sm:$0xff]  }
  0x82   : > { %v1465_v17 = vsel %vm4920_vm5, %v1460_v12, %v1464_v6  ;;  %v3911_v54 = vpack.c.bf16 %v423_v24, %v423_v24  ;;  %v1539_v7 = vrot.slane %v5027_v19, 5  ;;  %v3990_v5 = vunpack.c.l.bf16 %v4113_v49 }
  0x83   : > { %v1470_v48 = vrot.slane %v1469_v56, 4  ;;  %v680_v58 = vsel %vm4973_vm11, %v672_v16, %v679_v34  ;;  %v956_v21 = vsel %vm4986_vm13, %v681_v46, %v955_v55  ;;  %v683_v41 = vshrl.u32 %v3910_v31, 16 }
  0x84   : > { %954 = vst [vmem:[#allocation2 + $0x40] sm:$0xf] %v680_v58  ;;  %957 = vst [vmem:[#allocation2 + $0x44] sm:$0x1] %v956_v21  ;;  %v686_v38 = vshll.u32 %v3910_v31, 16  ;;  %v691_v18 = vshrl.u32 %v3911_v54, 16  ;;  %v1540_v39 = vsel %vm4907_vm4, %v1538_v23, %v1539_v7  ;;  %v3991_v2 = vunpack.c.h.bf16 %v4113_v49 }
  0x85   : > { %v694_v63 = vshll.u32 %v3911_v54, 16  ;;  %v1475_v19 = vsel %vm4920_vm5, %v1470_v48, %v1474_v36  ;;  %v685_v6 = vrot.slane %v683_v41, 7  ;;  %v5375_v16 = vcombine.low %v1537_v45, %v1540_v39 }
  0x86   : > { %v5377_v55 = vcombine.low %v1465_v17, %v1475_v19  ;;  %v693_v62 = vrot.slane %v691_v18, 7  ;;  %v353_v51 = vmul.f32 %v5294_v42, %v3990_v5  ;;  %v3722_v12 = vrot.slane %v5114_v11, 9 }
  0x87   : > { %v688_v24 = vor.u32 %v686_v38, %v685_v6  ;;  %v689_v56 = vrot.slane %v685_v6, 4  ;;  %v354_v23 = vmul.f32 %v5294_v42, %v3991_v2  ;;  %v1543_v34 = vrot.slane %v5138_v44, 5 }
  0x88   : > { %6367 = vst [vmem:[#allocation9_spill] sm:$0xff] %v5377_v55  ;;  %2651 = vmatprep.mubr.bf16.mxu1 %v5377_v55  ;;  %v5385_v36 = vld [vmem:[#allocation2 + $0x3c] sm:$0xf]  ;;  %v696_v45 = vor.u32 %v694_v63, %v693_v62  ;;  %v698_v49 = vrot.slane %v693_v62, 4  ;;  %v392_v46 = vadd.f32 %v5300_v4, %v353_v51  ;;  %v1546_v31 = vrot.slane %v5140_v20, 5 }
  0x89   : > { %2652 = vmatmul.mubr.bf16.gmra.mrb[12].mxu1 %v5357_v1  ;;  %v1213_v11 = vshrl.u32 %v5385_v36, 16  ;;  %v1216_v17 = vshll.u32 %v5385_v36, 16  ;;  %v959_v54 = vsel %vm4980_vm12, %v688_v24, %v958_v60  ;;  %v393_v44 = vadd.f32 %v5300_v4, %v354_v23 }
  0x8a   : > { %2692 = vmatprep.mubr.bf16.mxu1 %v5045_v33  ;;  %v697_v7 = vsel %vm4973_vm11, %v689_v56, %v696_v45  ;;  %960 = vst [vmem:[#allocation2 + $0x48] sm:$0xf] %v959_v54  ;;  %v963_v20 = vsel %vm4986_vm13, %v698_v49, %v962_v61  ;;  %v424_v5 = vmax.f32 %v392_v46, 0.0  ;;  %v1544_v48 = vsel %vm4907_vm4, %v3722_v12, %v1543_v34 }
  0x8b   : > { %v5402_v58 = vld [vmem:[#allocation2 + $0x40] sm:$0xf]  ;;  %v5404_v21 = vld [vmem:[#allocation2 + $0x44] sm:$0x1]  ;;  %v1215_v41 = vrot.slane %v1213_v11, 4  ;;  %v1218_v38 = vrot.slane %v1216_v17, 5  ;;  %v3994_v33 = vunpack.c.l.bf16 %v4114_v28  ;;  %v3995_v18 = vunpack.c.h.bf16 %v4114_v28 }
  0x8c   : > { %961 = vst [vmem:[#allocation2 + $0x4c] sm:$0xf] %v697_v7  ;;  %964 = vst [vmem:[#allocation2 + $0x50] sm:$0x1] %v963_v20  ;;  %v1222_v63 = vshll.u32 %v5402_v58, 16  ;;  %v1226_v60 = vshrl.u32 %v5402_v58, 16  ;;  %v5411_v19 = vcombine.low %v5385_v36, %v5402_v58  ;;  %v3912_v2 = vpack.c.bf16 %v424_v5, %v424_v5 }
  0x8d   : > { %v1232_v39 = vshll.u32 %v5404_v21, 16  ;;  %v1219_v6 = vor.u32 %v1218_v38, %v1215_v41  ;;  %v425_v61 = vmax.f32 %v393_v44, 0.0  ;;  %v1545_v62 = vrot.slane %v1543_v34, 4  ;;  %v4732_v28 = vld [vmem:[%s6332_s3 + $0x180] sm:$0xff]   ;;  %v4737_v11 = vld [vmem:[%s6332_s3 + $0x1c8] sm:$0xff]  }
  0x8e   : > { %6368 = vst [vmem:[#allocation10_spill] sm:$0xff] %v5411_v19  ;;  %v1224_v51 = vrot.slane %v1222_v63, 5  ;;  %v1228_v12 = vrot.slane %v1226_v60, 4  ;;  %v355_v56 = vmul.f32 %v5294_v42, %v3994_v33  ;;  %v700_v49 = vshrl.u32 %v3912_v2, 16  ;;  %v965_v63 = vld [vmem:[#allocation2 + $0x54] sm:$0xf] }
  0x8f   : > { %v1234_v24 = vrot.slane %v1232_v39, 5  ;;  %v1220_v23 = vrot.slane %v1219_v6, 4  ;;  %v3913_v45 = vpack.c.bf16 %v425_v61, %v425_v61  ;;  %v703_v46 = vshll.u32 %v3912_v2, 16 }
  0x90   : > { %v1229_v17 = vor.u32 %v1228_v12, %v1224_v51  ;;  %v1547_v34 = vsel %vm4907_vm4, %v1545_v62, %v1546_v31  ;;  %v356_v54 = vmul.f32 %v5294_v42, %v3995_v18  ;;  %v394_v44 = vadd.f32 %v5300_v4, %v355_v56  ;;  %v4740_v31 = vld [vmem:[%s6332_s3 + $0x188] sm:$0xff]   ;;  %v4744_v12 = vld [vmem:[%s6332_s3 + $0x1d0] sm:$0xff]  }
  0x91   : > { %v1225_v7 = vsel %vm4920_vm5, %v1220_v23, %v1224_v51  ;;  %v6369_v20 = vcombine.low %v4943_v50, %v4934_v43  ;;  %v5429_v5 = vld [vmem:[#allocation2 + $0x48] sm:$0xf]  ;;  %v702_v41 = vrot.slane %v700_v49, 7  ;;  %v708_v38 = vshrl.u32 %v3913_v45, 16 }
  0x92   : > { %v711_v33 = vshll.u32 %v3913_v45, 16  ;;  %v1230_v18 = vrot.slane %v1229_v17, 4  ;;  %v1237_v6 = vshrl.u32 %v5429_v5, 16  ;;  %v5440_v43 = vcombine.low %v1544_v48, %v1547_v34 }
  0x93   : > { %2693 = vmatmul.mubr.bf16.vlgmr.msra.gmra.mrb[16].mxu1 %v6369_v20  ;;  %v5434_v60 = vld [vmem:[#allocation2 + $0x4c] sm:$0xf]  ;;  %v5436_v39 = vld [vmem:[#allocation2 + $0x50] sm:$0x1]  ;;  %v395_v50 = vadd.f32 %v5300_v4, %v356_v54  ;;  %v1240_v61 = vshll.u32 %v5429_v5, 16  ;;  %v705_v23 = vor.u32 %v703_v46, %v702_v41  ;;  %v710_v20 = vrot.slane %v708_v38, 7 }
  0x94   : > { %4475 = vmatpush3.bf16.msra.mxu1 %v4732_v28  ;;  %2700 = vmatprep.mubr.bf16.mxu1 %v5150_v57  ;;  %v1246_v2 = vshll.u32 %v5434_v60, 16  ;;  %v1250_v62 = vshrl.u32 %v5434_v60, 16  ;;  %v1256_v51 = vshll.u32 %v5436_v39, 16  ;;  %v1235_v28 = vsel %vm4920_vm5, %v1230_v18, %v1234_v24  ;;  %v4746_v24 = vld [vmem:[%s6332_s3 + $0x190] sm:$0xff]  }
  0x95   : > { %4476 = vmatprep.subr.bf16.mxu1 %v4737_v11  ;;  %v1239_v48 = vrot.slane %v1237_v6, 4  ;;  %v5454_v56 = vcombine.low %v5429_v5, %v5434_v60  ;;  %v5456_v45 = vcombine.low %v1225_v7, %v1235_v28  ;;  %v1242_v49 = vrot.slane %v1240_v61, 5  ;;  %v969_v7 = vld [vmem:[#allocation2 + $0x5c] sm:$0x1]  ;;  %v4115_v28 = vld [vmem:[%s4887_s26 + $0x40] sm:$0xff]  }
  0x96   : > { %v1248_v17 = vrot.slane %v1246_v2, 5  ;;  %v1252_v34 = vrot.slane %v1250_v62, 4  ;;  %v1258_v54 = vrot.slane %v1256_v51, 5  ;;  %v706_v11 = vrot.slane %v702_v41, 4  ;;  %v4750_v41 = vld [vmem:[%s6332_s3 + $0x1d8] sm:$0xff]  }
  0x97   : > { %6370 = vst [vmem:[#allocation11_spill] sm:$0xff] %v5454_v56  ;;  %v966_v55 = vsel %vm4980_vm12, %v705_v23, %v965_v63  ;;  %2571 = vmatprep.mubr.bf16.mxu0 %v5456_v45  ;;  %v1243_v18 = vor.u32 %v1242_v49, %v1239_v48  ;;  %v426_v6 = vmax.f32 %v394_v44, 0.0  ;;  %v427_v61 = vmax.f32 %v395_v50, 0.0 }
  0x98   : > { %4477 = vmatpush3.bf16.msra.mxu1 %v4740_v31  ;;  %v1253_v46 = vor.u32 %v1252_v34, %v1248_v17  ;;  %967 = vst [vmem:[#allocation2 + $0x54] sm:$0xf] %v966_v55  ;;  %2572 = vmatmul.mubr.bf16.gmra.mrb[20].mxu0 %v5411_v19  ;;  %v713_v38 = vor.u32 %v711_v33, %v710_v20  ;;  %v715_v63 = vrot.slane %v710_v20, 4  ;;  %v3723_v31 = vrot.slane %v5190_v3, 9 }
  0x99   : > { %4478 = vmatprep.subr.bf16.mxu1 %v4744_v12  ;;  %v1550_v2 = vrot.slane %v5192_v35, 5  ;;  %v1244_v62 = vrot.slane %v1243_v18, 4  ;;  %v3914_v55 = vpack.c.bf16 %v426_v6, %v426_v6  ;;  %v3915_v44 = vpack.c.bf16 %v427_v61, %v427_v61  ;;  %v4752_v35 = vld [vmem:[%s6332_s3 + $0x198] sm:$0xff]  }
  0x9a   : > { %v1254_v51 = vrot.slane %v1253_v46, 4  ;;  %v714_v50 = vsel %vm4973_vm11, %v706_v11, %v713_v38  ;;  %v970_v12 = vsel %vm4986_vm13, %v715_v63, %v969_v7  ;;  %v4755_v11 = vld [vmem:[%s6332_s3 + $0x1e0] sm:$0xff]   ;;  %v1553_v46 = vrot.slane %v5224_v32, 5 }
  0x9b   : > { %2701 = vmatmul.mubr.bf16.gmra.mrb[20].mxu1 %v5375_v16  ;;  %v1551_v33 = vsel %vm4907_vm4, %v3723_v31, %v1550_v2  ;;  %v1552_v3 = vrot.slane %v1550_v2, 4  ;;  %v1249_v48 = vsel %vm4920_vm5, %v1244_v62, %v1248_v17  ;;  %968 = vst [vmem:[#allocation2 + $0x58] sm:$0xf] %v714_v50  ;;  %971 = vst [vmem:[#allocation2 + $0x5c] sm:$0x1] %v970_v12  ;;  %v717_v49 = vshrl.u32 %v3914_v55, 16 }
  0x9c   : > { %2708 = vmatprep.mubr.bf16.mxu1 %v5218_v13  ;;  %4479 = vmatpush3.bf16.msra.mxu1 %v4746_v24  ;;  %v1259_v23 = vsel %vm4920_vm5, %v1254_v51, %v1258_v54  ;;  %v720_v34 = vshll.u32 %v3914_v55, 16  ;;  %v725_v24 = vshrl.u32 %v3915_v44, 16  ;;  %v728_v18 = vshll.u32 %v3915_v44, 16  ;;  %v972_v17 = vld [vmem:[#allocation2 + $0x60] sm:$0xf] }
  0x9d   : > { %4480 = vmatprep.subr.bf16.mxu1 %v4750_v41  ;;  %v5489_v20 = vcombine.low %v1249_v48, %v1259_v23  ;;  %v719_v7 = vrot.slane %v717_v49, 7  ;;  %v3998_v6 = vunpack.c.l.bf16 %v4115_v28  ;;  %v3999_v61 = vunpack.c.h.bf16 %v4115_v28  ;;  %v4757_v44 = vld [vmem:[%s6332_s3 + $0x1a0] sm:$0xff]   ;;  %v979_v13 = vld [vmem:[#allocation2 + $0x6c] sm:$0xf] }
  0x9e   : > { %v3724_v54 = vrot.slane %v5309_v47, 9  ;;  %v727_v41 = vrot.slane %v725_v24, 7  ;;  %v1554_v63 = vsel %vm4907_vm4, %v1552_v3, %v1553_v46  ;;  %v1557_v31 = vrot.slane %v5315_v8, 5  ;;  %v976_v47 = vld [vmem:[#allocation2 + $0x68] sm:$0x1] }
  0x9f   : > { %2579 = vmatprep.mubr.bf16.mxu0 %v5489_v20  ;;  %v5494_v38 = vld [vmem:[#allocation2 + $0x54] sm:$0xf]  ;;  %v1560_v2 = vrot.slane %v5317_v14, 5  ;;  %v722_v51 = vor.u32 %v720_v34, %v719_v7  ;;  %v723_v55 = vrot.slane %v719_v7, 4  ;;  %v5506_v8 = vcombine.low %v1551_v33, %v1554_v63  ;;  %v4758_v3 = vld [vmem:[%s6332_s3 + $0x1e8] sm:$0xff]  }
  0xa0   : > { %4481 = vmatpush3.bf16.msra.mxu1 %v4752_v35  ;;  %v1261_v32 = vshrl.u32 %v5494_v38, 16  ;;  %v1264_v62 = vshll.u32 %v5494_v38, 16  ;;  %2580 = vmatmul.mubr.bf16.gmra.mrb[24].mxu0 %v5454_v56  ;;  %v730_v50 = vor.u32 %v728_v18, %v727_v41  ;;  %v732_v12 = vrot.slane %v727_v41, 4  ;;  %v4760_v41 = vld [vmem:[%s6332_s3 + $0x1a8] sm:$0xff]  }
  0xa1   : > { %4482 = vmatprep.subr.bf16.mxu1 %v4755_v11  ;;  %v357_v14 = vmul.f32 %v5294_v42, %v3998_v6  ;;  %v973_v48 = vsel %vm4980_vm12, %v722_v51, %v972_v17  ;;  %v358_v23 = vmul.f32 %v5294_v42, %v3999_v61  ;;  %v1558_v18 = vsel %vm4907_vm4, %v3724_v54, %v1557_v31  ;;  %v4116_v61 = vld [vmem:[%s4887_s26 + $0x48] sm:$0xff]   ;;  %v4761_v51 = vld [vmem:[%s6332_s3 + $0x1f0] sm:$0xff]  }
  0xa2   : > { %v1263_v28 = vrot.slane %v1261_v32, 4  ;;  %v1266_v35 = vrot.slane %v1264_v62, 5  ;;  %v5516_v49 = vld [vmem:[#allocation2 + $0x58] sm:$0xf]  ;;  %v5518_v33 = vld [vmem:[#allocation2 + $0x5c] sm:$0x1]  ;;  %v731_v34 = vsel %vm4973_vm11, %v723_v55, %v730_v50  ;;  %v977_v11 = vsel %vm4986_vm13, %v732_v12, %v976_v47 }
  0xa3   : > { %2709 = vmatmul.mubr.bf16.gmra.mrb[24].mxu1 %v5440_v43  ;;  %974 = vst [vmem:[#allocation2 + $0x60] sm:$0xf] %v973_v48  ;;  %v396_v24 = vadd.f32 %v5300_v4, %v357_v14  ;;  %v1270_v7 = vshll.u32 %v5516_v49, 16  ;;  %v1274_v17 = vshrl.u32 %v5516_v49, 16  ;;  %v1280_v6 = vshll.u32 %v5518_v33, 16 }
  0xa4   : > { %2716 = vmatprep.mubr.bf16.mxu1 %v5337_v53  ;;  %v1267_v46 = vor.u32 %v1266_v35, %v1263_v28  ;;  %975 = vst [vmem:[#allocation2 + $0x64] sm:$0xf] %v731_v34  ;;  %978 = vst [vmem:[#allocation2 + $0x68] sm:$0x1] %v977_v11  ;;  %4483 = vmatpush3.bf16.msra.mxu1 %v4757_v44  ;;  %v5537_v63 = vcombine.low %v5494_v38, %v5516_v49  ;;  %v1559_v62 = vrot.slane %v1557_v31, 4  ;;  %v5550_v34 = vld [vmem:[%s4887_s26 + $0x50] sm:$0xff]  }
  0xa5   : > { %v397_v54 = vadd.f32 %v5300_v4, %v358_v23  ;;  %v428_v32 = vmax.f32 %v396_v24, 0.0  ;;  %4484 = vmatprep.subr.bf16.mxu1 %v4758_v3  ;;  %v1272_v47 = vrot.slane %v1270_v7, 5  ;;  %v1276_v44 = vrot.slane %v1274_v17, 4  ;;  %v4763_v11 = vld [vmem:[%s6332_s3 + $0x1b0] sm:$0xff]   ;;  %v4764_v17 = vld [vmem:[%s6332_s3 + $0x1f8] sm:$0xff]  }
  0xa6   : > { %6371 = vst [vmem:[#allocation12_spill] sm:$0xff] %v5537_v63  ;;  %v1268_v55 = vrot.slane %v1267_v46, 4  ;;  %v1282_v50 = vrot.slane %v1280_v6, 5  ;;  %v1561_v28 = vsel %vm4907_vm4, %v1559_v62, %v1560_v2  ;;  %v4002_v35 = vunpack.c.l.bf16 %v4116_v61 }
  0xa7   : > { %v429_v12 = vmax.f32 %v397_v54, 0.0  ;;  %v3916_v14 = vpack.c.bf16 %v428_v32, %v428_v32  ;;  %v1277_v23 = vor.u32 %v1276_v44, %v1272_v47  ;;  %v5547_v31 = vcombine.low %v1558_v18, %v1561_v28  ;;  %v4766_v28 = vld [vmem:[%s6332_s3 + $0x1b8] sm:$0xff]  }
  0xa8   : > { %v1273_v48 = vsel %vm4920_vm5, %v1268_v55, %v1272_v47  ;;  %v4003_v3 = vunpack.c.h.bf16 %v4116_v61  ;;  %4485 = vmatpush3.bf16.msra.mxu1 %v4760_v41  ;;  %v359_v2 = vmul.f32 %v5294_v42, %v4002_v35  ;;  %v3725_v41 = vrot.slane %v5385_v36, 9 }
  0xa9   : > { %v3917_v24 = vpack.c.bf16 %v429_v12, %v429_v12  ;;  %v734_v46 = vshrl.u32 %v3916_v14, 16  ;;  %v737_v7 = vshll.u32 %v3916_v14, 16  ;;  %4486 = vmatprep.subr.bf16.mxu1 %v4761_v51  ;;  %v1278_v18 = vrot.slane %v1277_v23, 4 }
  0xaa   : > { %v5559_v6 = vld [vmem:[#allocation2 + $0x60] sm:$0xf]  ;;  %v360_v61 = vmul.f32 %v5294_v42, %v4003_v3  ;;  %v1564_v54 = vrot.slane %v5402_v58, 5  ;;  %v398_v47 = vadd.f32 %v5300_v4, %v359_v2  ;;  %v4006_v44 = vunpack.c.l.bf16 %v5550_v34 }
  0xab   : > { %2717 = vmatmul.mubr.bf16.gmra.mrb[28].mxu1 %v5506_v8  ;;  %v5565_v32 = vld [vmem:[#allocation2 + $0x64] sm:$0xf]  ;;  %v5567_v62 = vld [vmem:[#allocation2 + $0x68] sm:$0x1]  ;;  %v1285_v51 = vshrl.u32 %v5559_v6, 16  ;;  %v1288_v55 = vshll.u32 %v5559_v6, 16  ;;  %v1283_v12 = vsel %vm4920_vm5, %v1278_v18, %v1282_v50 }
  0xac   : > { %2724 = vmatprep.mubr.bf16.mxu1 %v5411_v19  ;;  %v1294_v36 = vshll.u32 %v5565_v32, 16  ;;  %v1298_v58 = vshrl.u32 %v5565_v32, 16  ;;  %v1304_v14 = vshll.u32 %v5567_v62, 16  ;;  %4487 = vmatpush3.bf16.msra.mxu1 %v4763_v11  ;;  %v5582_v35 = vcombine.low %v1273_v48, %v1283_v12 }
  0xad   : > { %v1287_v23 = vrot.slane %v1285_v51, 4  ;;  %v1290_v3 = vrot.slane %v1288_v55, 5  ;;  %v5586_v2 = vcombine.low %v5559_v6, %v5565_v32  ;;  %4488 = vmatprep.subr.bf16.mxu1 %v4764_v17  ;;  %v736_v52 = vrot.slane %v734_v46, 7 }
  0xae   : > { %v1296_v50 = vrot.slane %v1294_v36, 5  ;;  %v1300_v18 = vrot.slane %v1298_v58, 4  ;;  %v1306_v10 = vrot.slane %v1304_v14, 5  ;;  %2587 = vmatprep.mubr.bf16.mxu0 %v5582_v35  ;;  %v742_v19 = vshrl.u32 %v3917_v24, 16 }
  0xaf   : > { %6372 = vst [vmem:[#allocation13_spill] sm:$0xff] %v5586_v2  ;;  %v1291_v11 = vor.u32 %v1290_v3, %v1287_v23  ;;  %v745_v53 = vshll.u32 %v3917_v24, 16  ;;  %v399_v48 = vadd.f32 %v5300_v4, %v360_v61  ;;  %2588 = vmatmul.mubr.bf16.gmra.mrb[28].mxu0 %v5537_v63  ;;  %v739_v55 = vor.u32 %v737_v7, %v736_v52  ;;  %v983_v23 = vld [vmem:[#allocation2 + $0x74] sm:$0x1] }
  0xb0   : > { %v1301_v51 = vor.u32 %v1300_v18, %v1296_v50  ;;  %v740_v12 = vrot.slane %v736_v52, 4  ;;  %v430_v57 = vmax.f32 %v398_v47, 0.0  ;;  %4489 = vmatpush3.bf16.msra.mxu1 %v4766_v28  ;;  %v744_v36 = vrot.slane %v742_v19, 7 }
  0xb1   : > { %v1292_v17 = vrot.slane %v1291_v11, 4  ;;  %v431_v58 = vmax.f32 %v399_v48, 0.0  ;;  %v1565_v46 = vsel %vm4907_vm4, %v3725_v41, %v1564_v54  ;;  %v980_v24 = vsel %vm4980_vm12, %v739_v55, %v979_v13  ;;  %v986_v55 = vld [vmem:[#allocation2 + $0x78] sm:$0xf] }
  0xb2   : > { %v1302_v14 = vrot.slane %v1301_v51, 4  ;;  %v3918_v61 = vpack.c.bf16 %v430_v57, %v430_v57  ;;  %v1566_v3 = vrot.slane %v1564_v54, 4  ;;  %v747_v7 = vor.u32 %v745_v53, %v744_v36  ;;  %981 = vst [vmem:[#allocation2 + $0x6c] sm:$0xf] %v980_v24  ;;  %v990_v24 = vld [vmem:[#allocation2 + $0x80] sm:$0x1] }
  0xb3   : > { %2725 = vmatmul.mubr.bf16.gmra.mrb[32].mxu1 %v5547_v31  ;;  %v1297_v52 = vsel %vm4920_vm5, %v1292_v17, %v1296_v50  ;;  %v749_v47 = vrot.slane %v744_v36, 4  ;;  %v3919_v19 = vpack.c.bf16 %v431_v58, %v431_v58  ;;  %v1567_v13 = vrot.slane %v5404_v21, 5 }
  0xb4   : > { %2732 = vmatprep.mubr.bf16.mxu1 %v5454_v56  ;;  %v1307_v41 = vsel %vm4920_vm5, %v1302_v14, %v1306_v10  ;;  %v751_v28 = vshrl.u32 %v3918_v61, 16  ;;  %v754_v18 = vshll.u32 %v3918_v61, 16  ;;  %v748_v57 = vsel %vm4973_vm11, %v740_v12, %v747_v7 }
  0xb5   : > { %v5602_v11 = vcombine.low %v1297_v52, %v1307_v41  ;;  %v984_v53 = vsel %vm4986_vm13, %v749_v47, %v983_v23  ;;  %v759_v54 = vshrl.u32 %v3919_v19, 16  ;;  %982 = vst [vmem:[#allocation2 + $0x70] sm:$0xf] %v748_v57  ;;  %v762_v48 = vshll.u32 %v3919_v19, 16 }
  0xb6   : > { %985 = vst [vmem:[#allocation2 + $0x74] sm:$0x1] %v984_v53  ;;  %v753_v50 = vrot.slane %v751_v28, 7  ;;  %v1568_v10 = vsel %vm4907_vm4, %v1566_v3, %v1567_v13  ;;  %v4007_v51 = vunpack.c.h.bf16 %v5550_v34  ;;  %v361_v12 = vmul.f32 %v5294_v42, %v4006_v44 }
  0xb7   : > { %2595 = vmatprep.mubr.bf16.mxu0 %v5602_v11  ;;  %v761_v21 = vrot.slane %v759_v54, 7  ;;  %v5612_v17 = vcombine.low %v1565_v46, %v1568_v10  ;;  %v3726_v36 = vrot.slane %v5429_v5, 9  ;;  %v1571_v61 = vrot.slane %v5434_v60, 5 }
  0xb8   : > { %2596 = vmatmul.mubr.bf16.gmra.mrb[32].mxu0 %v5586_v2  ;;  %v756_v58 = vor.u32 %v754_v18, %v753_v50  ;;  %v757_v14 = vrot.slane %v753_v50, 4  ;;  %v362_v23 = vmul.f32 %v5294_v42, %v4007_v51  ;;  %v400_v52 = vadd.f32 %v5300_v4, %v361_v12 }
  0xb9   : > { %v764_v34 = vor.u32 %v762_v48, %v761_v21  ;;  %v766_v3 = vrot.slane %v761_v21, 4  ;;  %v1574_v46 = vrot.slane %v5436_v39, 5  ;;  %v5621_v7 = vld [vmem:[#allocation2 + $0x6c] sm:$0xf]  ;;  %v1572_v42 = vsel %vm4907_vm4, %v3726_v36, %v1571_v61 }
  0xba   : > { %v987_v5 = vsel %vm4980_vm12, %v756_v58, %v986_v55  ;;  %v401_v44 = vadd.f32 %v5300_v4, %v362_v23  ;;  %v1573_v47 = vrot.slane %v1571_v61, 4  ;;  %v1309_v60 = vshrl.u32 %v5621_v7, 16 }
  0xbb   : > { %2733 = vmatmul.mubr.bf16.gmra.mrb[36].mxu1 %v5612_v17  ;;  %v1312_v19 = vshll.u32 %v5621_v7, 16  ;;  %v765_v39 = vsel %vm4973_vm11, %v757_v14, %v764_v34  ;;  %988 = vst [vmem:[#allocation2 + $0x78] sm:$0xf] %v987_v5  ;;  %v991_v41 = vsel %vm4986_vm13, %v766_v3, %v990_v24  ;;  %v432_v4 = vmax.f32 %v400_v52, 0.0 }
  0xbc   : > { %2740 = vmatprep.mubr.bf16.mxu1 %v5537_v63  ;;  %989 = vst [vmem:[#allocation2 + $0x7c] sm:$0xf] %v765_v39  ;;  %992 = vst [vmem:[#allocation2 + $0x80] sm:$0x1] %v991_v41  ;;  %v433_v28 = vmax.f32 %v401_v44, 0.0  ;;  %v1575_v18 = vsel %vm4907_vm4, %v1573_v47, %v1574_v46  ;;  %v1311_v53 = vrot.slane %v1309_v60, 4 }
  0xbd   : > { %v5638_v13 = vld [vmem:[#allocation2 + $0x70] sm:$0xf]  ;;  %v5640_v57 = vld [vmem:[#allocation2 + $0x74] sm:$0x1]  ;;  %v1314_v54 = vrot.slane %v1312_v19, 5  ;;  %v5645_v51 = vcombine.low %v1572_v42, %v1575_v18  ;;  %v3920_v55 = vpack.c.bf16 %v432_v4, %v432_v4  ;;  %v1578_v36 = vrot.slane %v5516_v49, 5 }
  0xbe   : > { %v1318_v50 = vshll.u32 %v5638_v13, 16  ;;  %v1322_v48 = vshrl.u32 %v5638_v13, 16  ;;  %v1328_v10 = vshll.u32 %v5640_v57, 16  ;;  %v3921_v12 = vpack.c.bf16 %v433_v28, %v433_v28 }
  0xbf   : > { %v1315_v21 = vor.u32 %v1314_v54, %v1311_v53  ;;  %v3727_v23 = vrot.slane %v5494_v38, 9  ;;  %v768_v34 = vshrl.u32 %v3920_v55, 16  ;;  %v771_v3 = vshll.u32 %v3920_v55, 16 }
  0xc0   : > { %v1320_v58 = vrot.slane %v1318_v50, 5  ;;  %v1324_v14 = vrot.slane %v1322_v48, 4  ;;  %v1330_v24 = vrot.slane %v1328_v10, 5  ;;  %v1581_v52 = vrot.slane %v5518_v33, 5 }
  0xc1   : > { %v1316_v61 = vrot.slane %v1315_v21, 4  ;;  %v776_v44 = vshrl.u32 %v3921_v12, 16  ;;  %v779_v42 = vshll.u32 %v3921_v12, 16  ;;  %v1580_v47 = vrot.slane %v1578_v36, 4 }
  0xc2   : > { %v1325_v46 = vor.u32 %v1324_v14, %v1320_v58  ;;  %v5650_v5 = vld [vmem:[#allocation2 + $0x78] sm:$0xf]  ;;  %v5657_v60 = vcombine.low %v5621_v7, %v5638_v13  ;;  %v770_v50 = vrot.slane %v768_v34, 7  ;;  %v1579_v48 = vsel %vm4907_vm4, %v3727_v23, %v1578_v36  ;;  %v997_v23 = vld [vmem:[#allocation2 + $0x8c] sm:$0x1] }
  0xc3   : > { %2741 = vmatmul.mubr.bf16.gmra.mrb[40].mxu1 %v5645_v51  ;;  %v1321_v49 = vsel %vm4920_vm5, %v1316_v61, %v1320_v58  ;;  %v5659_v38 = vld [vmem:[#allocation2 + $0x7c] sm:$0xf]  ;;  %v5661_v19 = vld [vmem:[#allocation2 + $0x80] sm:$0x1]  ;;  %v1333_v33 = vshrl.u32 %v5650_v5, 16  ;;  %v1336_v39 = vshll.u32 %v5650_v5, 16  ;;  %v1582_v34 = vsel %vm4907_vm4, %v1580_v47, %v1581_v52 }
  0xc4   : > { %2748 = vmatprep.mubr.bf16.mxu1 %v5586_v2  ;;  %v1326_v41 = vrot.slane %v1325_v46, 4  ;;  %v1342_v4 = vshll.u32 %v5659_v38, 16  ;;  %v1346_v28 = vshrl.u32 %v5659_v38, 16  ;;  %v1352_v18 = vshll.u32 %v5661_v19, 16  ;;  %v993_v58 = vld [vmem:[#allocation2 + $0x84] sm:$0xf] }
  0xc5   : > { %v1335_v53 = vrot.slane %v1333_v33, 4  ;;  %v1338_v54 = vrot.slane %v1336_v39, 5  ;;  %v773_v46 = vor.u32 %v771_v3, %v770_v50  ;;  %v774_v2 = vrot.slane %v770_v50, 4 }
  0xc6   : > { %v1331_v10 = vsel %vm4920_vm5, %v1326_v41, %v1330_v24  ;;  %v1344_v21 = vrot.slane %v1342_v4, 5  ;;  %v1348_v55 = vrot.slane %v1346_v28, 4  ;;  %v1354_v12 = vrot.slane %v1352_v18, 5 }
  0xc7   : > { %v5673_v14 = vcombine.low %v1321_v49, %v1331_v10  ;;  %v1339_v61 = vor.u32 %v1338_v54, %v1335_v53  ;;  %v778_v56 = vrot.slane %v776_v44, 7  ;;  %v3728_v33 = vrot.slane %v5559_v6, 9  ;;  %v4122_v53 = vld [vmem:[%s4887_s26 + $0x78] sm:$0xff]  }
  0xc8   : > { %v1349_v63 = vor.u32 %v1348_v55, %v1344_v21  ;;  %v994_v24 = vsel %vm4980_vm12, %v773_v46, %v993_v58  ;;  %v5681_v39 = vcombine.low %v1579_v48, %v1582_v34  ;;  %v1585_v49 = vrot.slane %v5565_v32, 5 }
  0xc9   : > { %2603 = vmatprep.mubr.bf16.mxu0 %v5673_v14  ;;  %v1340_v36 = vrot.slane %v1339_v61, 4  ;;  %v781_v44 = vor.u32 %v779_v42, %v778_v56  ;;  %v783_v41 = vrot.slane %v778_v56, 4  ;;  %995 = vst [vmem:[#allocation2 + $0x84] sm:$0xf] %v994_v24  ;;  %v1588_v52 = vrot.slane %v5567_v62, 5 }
  0xca   : > { %2604 = vmatmul.mubr.bf16.gmra.mrb[36].mxu0 %v5657_v60  ;;  %v1350_v3 = vrot.slane %v1349_v63, 4  ;;  %v1586_v47 = vsel %vm4907_vm4, %v3728_v33, %v1585_v49  ;;  %v1587_v4 = vrot.slane %v1585_v49, 4  ;;  %v1592_v62 = vrot.slane %v5638_v13, 5 }
  0xcb   : > { %v1345_v6 = vsel %vm4920_vm5, %v1340_v36, %v1344_v21  ;;  %2749 = vmatmul.mubr.bf16.gmra.mrb[44].mxu1 %v5681_v39  ;;  %v782_v63 = vsel %vm4973_vm11, %v774_v2, %v781_v44  ;;  %v998_v56 = vsel %vm4986_vm13, %v783_v41, %v997_v23  ;;  %v5705_v18 = vcombine.low %v5650_v5, %v5659_v38 }
  0xcc   : > { %v1355_v32 = vsel %vm4920_vm5, %v1350_v3, %v1354_v12  ;;  %2756 = vmatprep.mubr.bf16.mxu1 %v5657_v60  ;;  %996 = vst [vmem:[#allocation2 + $0x88] sm:$0xf] %v782_v63  ;;  %999 = vst [vmem:[#allocation2 + $0x8c] sm:$0x1] %v998_v56  ;;  %v1589_v28 = vsel %vm4907_vm4, %v1587_v4, %v1588_v52  ;;  %v3729_v54 = vrot.slane %v5621_v7, 9  ;;  %v1594_v50 = vrot.slane %v1592_v62, 4 }
  0xcd   : > { %v5699_v42 = vcombine.low %v1345_v6, %v1355_v32  ;;  %v5708_v2 = vcombine.low %v1586_v47, %v1589_v28  ;;  %v1595_v13 = vrot.slane %v5640_v57, 5  ;;  %v4026_v55 = vunpack.c.l.bf16 %v4122_v53 }
  0xce   : > { %v1599_v12 = vrot.slane %v5659_v38, 5  ;;  %v1593_v57 = vsel %vm4907_vm4, %v3729_v54, %v1592_v62  ;;  %v4027_v49 = vunpack.c.h.bf16 %v4122_v53  ;;  %v4775_v38 = vld [vmem:[%s6330_s1] ss:$0 sm:$0xff]  ;;  %v3730_v6 = vrot.slane %v5650_v5, 9 }
  0xcf   : > { %2611 = vmatprep.mubr.bf16.mxu0 %v5699_v42  ;;  %v1596_v34 = vsel %vm4907_vm4, %v1594_v50, %v1595_v13  ;;  %v371_v3 = vmul.f32 %v4775_v38, %v4026_v55  ;;  %v1602_v32 = vrot.slane %v5661_v19, 5  ;;  %v4776_v53 = vld [vmem:[%s6331_s2] ss:$0 sm:$0xff] }
  0xd0   : > { %v5713_v48 = vld [vmem:[#allocation2 + $0x84] sm:$0xf]  ;;  %v5728_v52 = vcombine.low %v1593_v57, %v1596_v34  ;;  %v1601_v4 = vrot.slane %v1599_v12, 4  ;;  %v372_v28 = vmul.f32 %v4775_v38, %v4027_v49  ;;  %v1600_v5 = vsel %vm4907_vm4, %v3730_v6, %v1599_v12  ;;  %v1028_v6 = vld [vmem:[#allocation2 + $0xc0] sm:$0xf] }
  0xd1   : > { %v1357_v10 = vshrl.u32 %v5713_v48, 16  ;;  %v1360_v21 = vshll.u32 %v5713_v48, 16  ;;  %v410_v54 = vadd.f32 %v4776_v53, %v371_v3 }
  0xd2   : > { %2612 = vmatmul.mubr.bf16.gmra.mrb[40].mxu0 %v5705_v18  ;;  %v1603_v19 = vsel %vm4907_vm4, %v1601_v4, %v1602_v32 }
  0xd3   : > { %2757 = vmatmul.mubr.bf16.gmra.mrb[48].mxu1 %v5708_v2  ;;  %v1069_v58 = vld [vmem:[#allocation2 + $0x88] sm:$0xf]  ;;  %v1070_v61 = vld [vmem:[#allocation2 + $0x8c] sm:$0x1]  ;;  %v1359_v46 = vrot.slane %v1357_v10, 4  ;;  %v1362_v7 = vrot.slane %v1360_v21, 5  ;;  %v411_v21 = vadd.f32 %v4776_v53, %v372_v28 }
  0xd4   : > { %2764 = vmatprep.mubr.bf16.mxu1 %v5705_v18  ;;  %v1366_v33 = vshll.u32 %v1069_v58, 16  ;;  %v1370_v36 = vshrl.u32 %v1069_v58, 16  ;;  %v1376_v24 = vshll.u32 %v1070_v61, 16  ;;  %v5733_v62 = vcombine.low %v5713_v48, %v1069_v58 }
  0xd5   : > { %v1363_v23 = vor.u32 %v1362_v7, %v1359_v46  ;;  %v1606_v10 = vrot.slane %v1069_v58, 5  ;;  %v442_v55 = vmax.f32 %v410_v54, 0.0  ;;  %v443_v57 = vmax.f32 %v411_v21, 0.0  ;;  %v4759_v54 = vld [vmem:[%s6332_s3 + $0x208] sm:$0xff]  }
  0xd6   : > { %v1368_v44 = vrot.slane %v1366_v33, 5  ;;  %v1372_v41 = vrot.slane %v1370_v36, 4  ;;  %v1378_v56 = vrot.slane %v1376_v24, 5  ;;  %v5750_v33 = vcombine.low %v1600_v5, %v1603_v19 }
  0xd7   : > { %v1364_v47 = vrot.slane %v1363_v23, 4  ;;  %v3930_v34 = vpack.c.bf16 %v442_v55, %v442_v55  ;;  %v3731_v36 = vrot.slane %v5713_v48, 9  ;;  %v1609_v12 = vrot.slane %v1070_v61, 5  ;;  %v4777_v48 = vld [vmem:[#allocation2 + $0x94] sm:$0xf] }
  0xd8   : > { %v1373_v63 = vor.u32 %v1372_v41, %v1368_v44  ;;  %v1608_v24 = vrot.slane %v1606_v10, 4  ;;  %v3931_v23 = vpack.c.bf16 %v443_v57, %v443_v57  ;;  %v1613_v61 = vrot.slane %v4777_v48, 5  ;;  %v4781_v57 = vld [vmem:[#allocation2 + $0xa0] sm:$0xf] }
  0xd9   : > { %v1369_v50 = vsel %vm4920_vm5, %v1364_v47, %v1368_v44  ;;  %v853_v49 = vshrl.u32 %v3930_v34, 16  ;;  %v856_v58 = vshll.u32 %v3930_v34, 16  ;;  %v1607_v41 = vsel %vm4907_vm4, %v3731_v36, %v1606_v10  ;;  %v4779_v10 = vld [vmem:[#allocation2 + $0x98] sm:$0x1]  ;;  %v4782_v36 = vld [vmem:[#allocation2 + $0x9c] sm:$0xf] }
  0xda   : > { %v1374_v13 = vrot.slane %v1373_v63, 4  ;;  %v861_v3 = vshrl.u32 %v3931_v23, 16  ;;  %v864_v44 = vshll.u32 %v3931_v23, 16  ;;  %v1610_v47 = vsel %vm4907_vm4, %v1608_v24, %v1609_v12 }
  0xdb   : > { %2765 = vmatmul.mubr.bf16.gmra.mrb[52].mxu1 %v5728_v52  ;;  %v855_v38 = vrot.slane %v853_v49, 7  ;;  %v1615_v19 = vrot.slane %v1613_v61, 4  ;;  %v1616_v21 = vrot.slane %v4779_v10, 5  ;;  %v1620_v34 = vrot.slane %v4781_v57, 5  ;;  %v4765_v49 = vld [vmem:[%s6332_s3 + $0x218] sm:$0xff]  }
  0xdc   : > { %2772 = vmatprep.mubr.bf16.mxu1 %v5733_v62  ;;  %v1379_v46 = vsel %vm4920_vm5, %v1374_v13, %v1378_v56  ;;  %v863_v63 = vrot.slane %v861_v3, 7  ;;  %v4778_v13 = vld [vmem:[#allocation2 + $0x90] sm:$0xf]  ;;  %v3733_v12 = vrot.slane %v4782_v36, 9 }
  0xdd   : > { %v5748_v7 = vcombine.low %v1369_v50, %v1379_v46  ;;  %v858_v4 = vor.u32 %v856_v58, %v855_v38  ;;  %v859_v32 = vrot.slane %v855_v38, 4  ;;  %v5767_v50 = vcombine.low %v1607_v41, %v1610_v47  ;;  %v4780_v46 = vld [vmem:[%s6332_s3 + $0x200] sm:$0xff]  }
  0xde   : > { %v866_v56 = vor.u32 %v864_v44, %v863_v63  ;;  %v868_v53 = vrot.slane %v863_v63, 4  ;;  %v3732_v5 = vrot.slane %v4778_v13, 9  ;;  %v1622_v44 = vrot.slane %v1620_v34, 4  ;;  %v4783_v41 = vld [vmem:[#allocation2 + $0xa4] sm:$0x1] }
  0xdf   : > { %2619 = vmatprep.mubr.bf16.mxu0 %v5748_v7  ;;  %v1029_v28 = vsel %vm4980_vm12, %v858_v4, %v1028_v6  ;;  %v1623_v48 = vrot.slane %v4783_v41, 5 }
  0xe0   : > { %2620 = vmatmul.mubr.bf16.gmra.mrb[44].mxu0 %v5733_v62  ;;  %1030 = vst [vmem:[#allocation2 + $0xc0] sm:$0xf] %v1029_v28  ;;  %v867_v55 = vsel %vm4973_vm11, %v859_v32, %v866_v56  ;;  %v1614_v25 = vsel %vm4907_vm4, %v3732_v5, %v1613_v61 }
  0xe1   : > { %2853 = vmatprep.mubr.bf16.mxu0 %v5375_v16  ;;  %v1032_v16 = vld [vmem:[#allocation2 + $0xc8] sm:$0x1]  ;;  %1031 = vst [vmem:[#allocation2 + $0xc4] sm:$0xf] %v867_v55  ;;  %v1624_v10 = vsel %vm4907_vm4, %v1622_v44, %v1623_v48  ;;  %v4786_v44 = vld [vmem:[#allocation2 + $0xb0] sm:$0x1] }
  0xe2   : > { %v1033_v22 = vsel %vm4986_vm13, %v868_v53, %v1032_v16  ;;  %v1621_v53 = vsel %vm4907_vm4, %v3733_v12, %v1620_v34  ;;  %v4785_v12 = vld [vmem:[#allocation2 + $0xa8] sm:$0xf]  ;;  %v1630_v41 = vrot.slane %v4786_v44, 5 }
  0xe3   : > { %2773 = vmatmul.mubr.bf16.gmra.mrb[56].mxu1 %v5750_v33  ;;  %1034 = vst [vmem:[#allocation2 + $0xc8] sm:$0x1] %v1033_v22  ;;  %v5814_v36 = vcombine.low %v1621_v53, %v1624_v10  ;;  %v4771_v53 = vld [vmem:[%s6332_s3 + $0x238] sm:$0xff]  }
  0xe4   : > { %2780 = vmatprep.mubr.bf16.mxu1 %v5053_v59  ;;  %v4789_v10 = vld [vmem:[#allocation2 + $0xbc] sm:$0x1] }
  0xe7   : > { %v5787_v24 = vld [vmem:[#allocation2 + $0xc0] sm:$0xf] }
  0xe8   : > { %2854 = vmatmul.mubr.bf16.vlgmr.msra.gmra.mrb[48].mxu0 %v5061_v9  ;;  %v1617_v9 = vsel %vm4907_vm4, %v1615_v19, %v1616_v21  ;;  %v1640_v58 = vshrl.u32 %v5787_v24, 16  ;;  %v1643_v38 = vshll.u32 %v5787_v24, 16  ;;  %v3736_v3 = vrot.slane %v5787_v24, 9  ;;  %v1084_v61 = vld [vmem:[#allocation2 + $0xc4] sm:$0xf] }
  0xe9   : > { %2861 = vmatprep.mubr.bf16.mxu0 %v5440_v43  ;;  %4611 = vmatpush3.bf16.msra.mxu0 %v4780_v46  ;;  %v5789_v23 = vcombine.low %v1614_v25, %v1617_v9  ;;  %v1653_v47 = vshrl.u32 %v1084_v61, 16  ;;  %v1668_v4 = vrot.slane %v1084_v61, 5  ;;  %v1649_v56 = vshll.u32 %v1084_v61, 16  ;;  %v4784_v21 = vld [vmem:[#allocation2 + $0xac] sm:$0xf] }
  0xea   : > { %4612 = vmatprep.subr.bf16.mxu0 %v4759_v54  ;;  %v1085_v6 = vld [vmem:[#allocation2 + $0xc8] sm:$0x1]  ;;  %v1642_v63 = vrot.slane %v1640_v58, 4  ;;  %v1645_v16 = vrot.slane %v1643_v38, 5  ;;  %v1627_v55 = vrot.slane %v4784_v21, 5  ;;  %v3734_v58 = vrot.slane %v4785_v12, 9 }
  0xeb   : > { %2781 = vmatmul.mubr.bf16.gmra.mrb[60].mxu1 %v5767_v50  ;;  %v1671_v32 = vrot.slane %v1085_v6, 5  ;;  %v1659_v28 = vshll.u32 %v1085_v6, 16  ;;  %v1669_v13 = vsel %vm4907_vm4, %v3736_v3, %v1668_v4  ;;  %v1670_v5 = vrot.slane %v1668_v4, 4  ;;  %v4769_v38 = vld [vmem:[%s6332_s3 + $0x228] sm:$0xff]   ;;  %v6373_v12 = vld [vmem:[#allocation4_spill] sm:$0xff] }
  0xec   : > { %2788 = vmatprep.mubr.bf16.mxu1 %v5162_v27  ;;  %v1655_v19 = vrot.slane %v1653_v47, 4  ;;  %v1646_v22 = vor.u32 %v1645_v16, %v1642_v63  ;;  %v1651_v46 = vrot.slane %v1649_v56, 5  ;;  %v1629_v3 = vrot.slane %v1627_v55, 4  ;;  %v4770_v47 = vld [vmem:[%s6332_s3 + $0x230] sm:$0xff]   ;;  %v4787_v16 = vld [vmem:[#allocation2 + $0xb8] sm:$0xf] }
  0xed   : > { %4613 = vmatpush3.bf16.msra.mxu0 %v4759_v54  ;;  %v4768_v54 = vld [vmem:[%s6332_s3 + $0x220] sm:$0xff]   ;;  %v1661_v34 = vrot.slane %v1659_v28, 5  ;;  %v1634_v56 = vrot.slane %v4787_v16, 5  ;;  %v1637_v21 = vrot.slane %v4789_v10, 5  ;;  %v6376_v16 = vld [vmem:[#allocation10_spill] sm:$0xff] }
  0xee   : > { %4614 = vmatprep.subr.bf16.mxu0 %v4762_v15  ;;  %v1647_v9 = vrot.slane %v1646_v22, 4  ;;  %v1656_v57 = vor.u32 %v1655_v19, %v1651_v46  ;;  %v1631_v63 = vsel %vm4907_vm4, %v1629_v3, %v1630_v41 }
  0xef   : > { %v1636_v19 = vrot.slane %v1634_v56, 4 }
  0xf0   : > { %2862 = vmatmul.mubr.bf16.gmra.mrb[52].mxu0 %v5188_v0  ;;  %v1657_v48 = vrot.slane %v1656_v57, 4 }
  0xf1   : > { %2869 = vmatprep.mubr.bf16.mxu0 %v5506_v8  ;;  %4615 = vmatpush3.bf16.msra.mxu0 %v4762_v15  ;;  %v1672_v15 = vsel %vm4907_vm4, %v1670_v5, %v1671_v32  ;;  %v1628_v32 = vsel %vm4907_vm4, %v3734_v58, %v1627_v55  ;;  %v6374_v58 = vld [vmem:[#allocation6_spill] sm:$0xff] }
  0xf2   : > { %4616 = vmatprep.subr.bf16.mxu0 %v4765_v49  ;;  %v5812_v25 = vcombine.low %v1669_v13, %v1672_v15  ;;  %v1662_v6 = vsel %vm4920_vm5, %v1657_v48, %v1661_v34  ;;  %v5836_v28 = vcombine.low %v1628_v32, %v1631_v63  ;;  %v4788_v13 = vld [vmem:[#allocation2 + $0xb4] sm:$0xf]  ;;  %v6375_v32 = vld [vmem:[#allocation8_spill] sm:$0xff] }
  0xf3   : > { %2789 = vmatmul.mubr.bf16.gmra.mrb[64].mxu1 %v5789_v23  ;;  %v3735_v5 = vrot.slane %v4788_v13, 9 }
  0xf4   : > { %2796 = vmatprep.mubr.bf16.mxu1 %v5287_v26 }
  0xf5   : > { %4617 = vmatpush3.bf16.msra.mxu0 %v4765_v49  ;;  %v1652_v49 = vsel %vm4920_vm5, %v1647_v9, %v1651_v46 }
  0xf6   : > { %4618 = vmatprep.subr.bf16.mxu0 %v4768_v54  ;;  %v5829_v4 = vcombine.low %v1652_v49, %v1662_v6 }
  0xf8   : > { %2870 = vmatmul.mubr.bf16.gmra.mrb[56].mxu0 %v5263_v30 }
  0xf9   : > { %2877 = vmatprep.mubr.bf16.mxu0 %v5547_v31  ;;  %4619 = vmatpush3.bf16.msra.mxu0 %v4768_v54  ;;  %v5842_v54 = vcombine.low %v5787_v24, %v1084_v61  ;;  %v1635_v24 = vsel %vm4907_vm4, %v3735_v5, %v1634_v56  ;;  %v1638_v61 = vsel %vm4907_vm4, %v1636_v19, %v1637_v21 }
  0xfa   : > { %4620 = vmatprep.subr.bf16.mxu0 %v4769_v38  ;;  %v5854_v57 = vcombine.low %v1635_v24, %v1638_v61 }
  0xfb   : > { %2797 = vmatmul.mubr.bf16.gmra.mrb[68].mxu1 %v5814_v36 }
  0xfc   : > { %2804 = vmatprep.mubr.bf16.mxu1 %v5357_v1 }
  0xfd   : > { %4621 = vmatpush3.bf16.msra.mxu0 %v4769_v38 }
  0xfe   : > { %4622 = vmatprep.subr.bf16.mxu0 %v4770_v47 }
 0x100   : > { %2878 = vmatmul.mubr.bf16.gmra.mrb[60].mxu0 %v5355_v40 }
 0x101   : > { %2885 = vmatprep.mubr.bf16.mxu0 %v5612_v17  ;;  %4623 = vmatpush3.bf16.msra.mxu0 %v4770_v47 }
 0x102   : > { %4624 = vmatprep.subr.bf16.mxu0 %v4771_v53  ;;  %v4154_v55 = vpop.f32.mrb[0].mxu0 }
 0x103   : > { %2805 = vmatmul.mubr.bf16.gmra.mrb[72].mxu1 %v5836_v28  ;;  %v4155_v22 = vpop.f32.mrb[1].mxu0 }
 0x104   : > { %2812 = vmatprep.mubr.bf16.mxu1 %v5842_v54  ;;  %v5852_v46 = vadd.f32 %v4155_v22, %v4154_v55  ;;  %v4157_v15 = vpop.f32.mrb[2].mxu0 }
 0x105   : > { %4625 = vmatpush3.bf16.msra.mxu0 %v4771_v53  ;;  %v4158_v9 = vpop.f32.mrb[3].mxu0  ;;  %v6377_v53 = vld [vmem:[#allocation11_spill] sm:$0xff] }
 0x106   : > { %v5856_v34 = vadd.f32 %v4158_v9, %v4157_v15  ;;  %v6378_v15 = vld [vmem:[#allocation12_spill] sm:$0xff] }
 0x108   : > { %2886 = vmatmul.mubr.bf16.gmra.mrb[64].mxu0 %v5456_v45 }
 0x109   : > { %2893 = vmatprep.mubr.bf16.mxu0 %v5645_v51 }
 0x10b   : > { %2813 = vmatmul.mubr.bf16.gmra.mrb[76].mxu1 %v5854_v57 }
 0x10c   : > { %3014 = vmatprep.mubr.bf16.mxu1 %v5188_v0 }
 0x110   : > { %2894 = vmatmul.mubr.bf16.gmra.mrb[68].mxu0 %v5489_v20 }
 0x111   : > { %2901 = vmatprep.mubr.bf16.mxu0 %v5681_v39 }
 0x113   : > { %3015 = vmatmul.mubr.bf16.vlgmr.msra.gmra.mrb[80].mxu1 %v6373_v12 }
 0x114   : > { %3022 = vmatprep.mubr.bf16.mxu1 %v5263_v30 }
 0x118   : > { %2902 = vmatmul.mubr.bf16.gmra.mrb[72].mxu0 %v5582_v35 }
 0x119   : > { %2909 = vmatprep.mubr.bf16.mxu0 %v5708_v2 }
 0x11a   : > { %v4160_v38 = vpop.f32.mrb[4].mxu0 }
 0x11b   : > { %3023 = vmatmul.mubr.bf16.gmra.mrb[84].mxu1 %v6374_v58  ;;  %v4161_v3 = vpop.f32.mrb[5].mxu0 }
 0x11c   : > { %3030 = vmatprep.mubr.bf16.mxu1 %v5355_v40  ;;  %v5870_v44 = vadd.f32 %v4161_v3, %v4160_v38  ;;  %v4163_v0 = vpop.f32.mrb[6].mxu0  ;;  %v6379_v3 = vld [vmem:[#allocation3_spill] sm:$0xff] }
 0x11d   : > { %v4164_v41 = vpop.f32.mrb[7].mxu0 }
 0x11e   : > { %v5872_v49 = vadd.f32 %v4164_v41, %v4163_v0  ;;  %v6380_v41 = vld [vmem:[#allocation13_spill] sm:$0xff] }
 0x11f   : > { %v4226_v48 = vpop.f32.mrb[0].mxu1 }
 0x120   : > { %2910 = vmatmul.mubr.bf16.gmra.mrb[76].mxu0 %v5602_v11  ;;  %v4227_v30 = vpop.f32.mrb[1].mxu1 }
 0x121   : > { %2917 = vmatprep.mubr.bf16.mxu0 %v5728_v52  ;;  %v5876_v6 = vadd.f32 %v4227_v30, %v4226_v48  ;;  %v4229_v47 = vpop.f32.mrb[2].mxu1  ;;  %v6381_v48 = vld [vmem:[#allocation5_spill] sm:$0xff] }
 0x122   : > { %v4230_v63 = vpop.f32.mrb[3].mxu1 }
 0x123   : > { %3031 = vmatmul.mubr.bf16.gmra.mrb[88].mxu1 %v6375_v32  ;;  %v5880_v40 = vadd.f32 %v4230_v63, %v4229_v47 }
 0x124   : > { %3038 = vmatprep.mubr.bf16.mxu1 %v5456_v45 }
 0x128   : > { %2918 = vmatmul.mubr.bf16.gmra.mrb[80].mxu0 %v5673_v14 }
 0x129   : > { %2925 = vmatprep.mubr.bf16.mxu0 %v5750_v33 }
 0x12b   : > { %3039 = vmatmul.mubr.bf16.gmra.mrb[92].mxu1 %v6376_v16 }
 0x12c   : > { %3046 = vmatprep.mubr.bf16.mxu1 %v5489_v20 }
 0x130   : > { %2926 = vmatmul.mubr.bf16.gmra.mrb[84].mxu0 %v5699_v42  ;;  %v4166_v56 = vpop.f32.mrb[8].mxu0 }
 0x131   : > { %2933 = vmatprep.mubr.bf16.mxu0 %v5767_v50  ;;  %v4167_v13 = vpop.f32.mrb[9].mxu0 }
 0x132   : > { %v5890_v45 = vadd.f32 %v4167_v13, %v4166_v56  ;;  %v4169_v5 = vpop.f32.mrb[10].mxu0  ;;  %v6382_v56 = vld [vmem:[#allocation7_spill] sm:$0xff] }
 0x133   : > { %3047 = vmatmul.mubr.bf16.gmra.mrb[96].mxu1 %v6377_v53  ;;  %v4170_v10 = vpop.f32.mrb[11].mxu0 }
 0x134   : > { %3054 = vmatprep.mubr.bf16.mxu1 %v5582_v35  ;;  %v4232_v19 = vpop.f32.mrb[4].mxu1  ;;  %v5892_v55 = vadd.f32 %v4170_v10, %v4169_v5 }
 0x135   : > { %v4233_v21 = vpop.f32.mrb[5].mxu1 }
 0x136   : > { %v5894_v24 = vadd.f32 %v4233_v21, %v4232_v19  ;;  %v4235_v20 = vpop.f32.mrb[6].mxu1  ;;  %v6383_v19 = vld [vmem:[#allocation9_spill] sm:$0xff] }
 0x137   : > { %v4236_v61 = vpop.f32.mrb[7].mxu1 }
 0x138   : > { %2934 = vmatmul.mubr.bf16.gmra.mrb[88].mxu0 %v5748_v7  ;;  %v5897_v22 = vadd.f32 %v4236_v61, %v4235_v20 }
 0x139   : > { %2941 = vmatprep.mubr.bf16.mxu0 %v5789_v23 }
 0x13b   : > { %3055 = vmatmul.mubr.bf16.gmra.mrb[100].mxu1 %v6378_v15  ;;  %v4172_v35 = vpop.f32.mrb[12].mxu0 }
 0x13c   : > { %3062 = vmatprep.mubr.bf16.mxu1 %v5602_v11  ;;  %v4173_v9 = vpop.f32.mrb[13].mxu0 }
 0x13d   : > { %v5902_v12 = vadd.f32 %v4173_v9, %v4172_v35  ;;  %v4175_v58 = vpop.f32.mrb[14].mxu0 }
 0x13e   : > { %v4176_v38 = vpop.f32.mrb[15].mxu0 }
 0x13f   : > { %v5905_v0 = vadd.f32 %v4176_v38, %v4175_v58 }
 0x140   : > { %2942 = vmatmul.mubr.bf16.gmra.mrb[92].mxu0 %v6379_v3 }
 0x141   : > { %2949 = vmatprep.mubr.bf16.mxu0 %v5814_v36 }
 0x143   : > { %3063 = vmatmul.mubr.bf16.gmra.mrb[104].mxu1 %v6380_v41  ;;  %v5942_v41 = vld [vmem:[#allocation2 + $0xcc] sm:$0xf] }
 0x144   : > { %3070 = vmatprep.mubr.bf16.mxu1 %v5673_v14 }
 0x148   : > { %2950 = vmatmul.mubr.bf16.gmra.mrb[96].mxu0 %v6381_v48 }
 0x149   : > { %2957 = vmatprep.mubr.bf16.mxu0 %v5836_v28 }
 0x14b   : > { %3071 = vmatmul.mubr.bf16.gmra.mrb[108].mxu1 %v5657_v60  ;;  %v4238_v11 = vpop.f32.mrb[8].mxu1 }
 0x14c   : > { %3078 = vmatprep.mubr.bf16.mxu1 %v5699_v42  ;;  %v4239_v30 = vpop.f32.mrb[9].mxu1 }
 0x14d   : > { %v5914_v47 = vadd.f32 %v4239_v30, %v4238_v11  ;;  %v4241_v32 = vpop.f32.mrb[10].mxu1 }
 0x14e   : > { %v4242_v63 = vpop.f32.mrb[11].mxu1 }
 0x14f   : > { %v5916_v16 = vadd.f32 %v4242_v63, %v4241_v32 }
 0x150   : > { %2958 = vmatmul.mubr.bf16.gmra.mrb[100].mxu0 %v6382_v56 }
 0x151   : > { %2965 = vmatprep.mubr.bf16.mxu0 %v5854_v57 }
 0x153   : > { %3079 = vmatmul.mubr.bf16.gmra.mrb[112].mxu1 %v5705_v18  ;;  %v4178_v14 = vpop.f32.mrb[16].mxu0 }
 0x154   : > { %3086 = vmatprep.mubr.bf16.mxu1 %v5748_v7  ;;  %v4179_v60 = vpop.f32.mrb[17].mxu0 }
 0x155   : > { %v5922_v53 = vadd.f32 %v4179_v60, %v4178_v14  ;;  %v4181_v42 = vpop.f32.mrb[18].mxu0 }
 0x156   : > { %v4182_v13 = vpop.f32.mrb[19].mxu0 }
 0x157   : > { %v5924_v5 = vadd.f32 %v4182_v13, %v4181_v42 }
 0x158   : > { %2966 = vmatmul.mubr.bf16.gmra.mrb[104].mxu0 %v6383_v19 }
 0x159   : > { %2973 = vmatprep.mubr.bf16.mxu0 %v5812_v25 }
 0x15b   : > { %3087 = vmatmul.mubr.bf16.gmra.mrb[116].mxu1 %v5733_v62 }
 0x15c   : > { %3094 = vmatprep.mubr.bf16.mxu1 %v6379_v3  ;;  %v4244_v10 = vpop.f32.mrb[12].mxu1 }
 0x15d   : > { %v4245_v18 = vpop.f32.mrb[13].mxu1 }
 0x15e   : > { %v5930_v21 = vadd.f32 %v4245_v18, %v4244_v10  ;;  %v4247_v7 = vpop.f32.mrb[14].mxu1 }
 0x15f   : > { %v4248_v20 = vpop.f32.mrb[15].mxu1 }
 0x160   : > { %2974 = vmatmul.mubr.bf16.gmra.mrb[108].mxu0 %v5829_v4  ;;  %v5933_v61 = vadd.f32 %v4248_v20, %v4247_v7 }
 0x161   : > { %4626 = vmatprep.mubr.bf16.mxu0 %v5440_v43  ;;  %v5945_v43 = vld [vmem:[#allocation2 + $0xd0] sm:$0xf] }
 0x162   : > { %v1683_v32 = vshll.u32 %v5945_v43, 16 }
 0x163   : > { %3095 = vmatmul.mubr.bf16.gmra.mrb[120].mxu1 %v5053_v59 }
 0x164   : > { %3102 = vmatprep.mubr.bf16.mxu1 %v6381_v48 }
 0x166   : > { %v4266_v15 = vpop.f32.mrb[16].mxu1 }
 0x167   : > { %v4267_v62 = vpop.f32.mrb[17].mxu1 }
 0x168   : > { %v4268_v35 = vadd.f32 %v4267_v62, %v4266_v15  ;;  %v4269_v9 = vpop.f32.mrb[18].mxu1  ;;  %4627 = vmatmul.mubr.bf16.vlgmr.msra.gmra.mrb[112].mxu0 %v5506_v8  ;;  %v1674_v8 = vshrl.u32 %v5942_v41, 16  ;;  %v5964_v15 = vld [vmem:[#allocation2 + $0xd4] sm:$0x1]  ;;  %v1685_v62 = vrot.slane %v1683_v32, 5 }
 0x169   : > { %v4270_v58 = vpop.f32.mrb[19].mxu1  ;;  %4630 = vmatprep.mubr.bf16.mxu0 %v5547_v31  ;;  %v1687_v31 = vshrl.u32 %v5945_v43, 16 }
 0x16a   : > { %v5940_v38 = vadd.f32 %v4268_v35, %v5852_v46  ;;  %v4271_v3 = vadd.f32 %v4270_v58, %v4269_v9  ;;  %v1677_v46 = vshll.u32 %v5942_v41, 16  ;;  %v1676_v10 = vrot.slane %v1674_v8, 4 }
 0x16b   : > { %3103 = vmatmul.mubr.bf16.gmra.mrb[124].mxu1 %v5162_v27  ;;  %v4184_v48 = vpop.f32.mrb[20].mxu0  ;;  %v1689_v35 = vrot.slane %v1687_v31, 4 }
 0x16c   : > { %v5948_v59 = vadd.f32 %v4271_v3, %v5856_v34  ;;  %3110 = vmatprep.mubr.bf16.mxu1 %v6382_v56  ;;  %v4185_v11 = vpop.f32.mrb[21].mxu0  ;;  %v1679_v18 = vrot.slane %v1677_v46, 5 }
 0x16d   : > { %v5956_v63 = vadd.f32 %v4185_v11, %v4184_v48  ;;  %v4187_v14 = vpop.f32.mrb[22].mxu0  ;;  %v1690_v8 = vor.u32 %v1689_v35, %v1685_v62 }
 0x16e   : > { %v4272_v30 = vpop.f32.mrb[20].mxu1  ;;  %v4188_v60 = vpop.f32.mrb[23].mxu0  ;;  %v1680_v48 = vor.u32 %v1679_v18, %v1676_v10 }
 0x16f   : > { %v4273_v34 = vpop.f32.mrb[21].mxu1  ;;  %v5958_v13 = vadd.f32 %v4188_v60, %v4187_v14 }
 0x170   : > { %v4274_v42 = vadd.f32 %v4273_v34, %v4272_v30  ;;  %v4275_v27 = vpop.f32.mrb[22].mxu1  ;;  %4631 = vmatmul.mubr.bf16.gmra.mrb[116].mxu0 %v5612_v17  ;;  %v1693_v17 = vshll.u32 %v5964_v15, 16  ;;  %v1681_v60 = vrot.slane %v1680_v48, 4 }
 0x171   : > { %v4276_v56 = vpop.f32.mrb[23].mxu1  ;;  %4634 = vmatprep.mubr.bf16.mxu0 %v5645_v51 }
 0x172   : > { %v5962_v7 = vadd.f32 %v4274_v42, %v5870_v44  ;;  %v4277_v20 = vadd.f32 %v4276_v56, %v4275_v27  ;;  %v1691_v42 = vrot.slane %v1690_v8, 4  ;;  %v1686_v10 = vsel %vm4920_vm5, %v1681_v60, %v1685_v62 }
 0x173   : > { %3111 = vmatmul.mubr.bf16.gmra.mrb[128].mxu1 %v5287_v26  ;;  %v4190_v58 = vpop.f32.mrb[24].mxu0  ;;  %v1695_v26 = vrot.slane %v1693_v17, 5 }
 0x174   : > { %v5968_v9 = vadd.f32 %v4277_v20, %v5872_v49  ;;  %3118 = vmatprep.mubr.bf16.mxu1 %v6383_v19  ;;  %v4191_v3 = vpop.f32.mrb[25].mxu0 }
 0x175   : > { %v5973_v46 = vadd.f32 %v4191_v3, %v4190_v58  ;;  %v4193_v11 = vpop.f32.mrb[26].mxu0 }
 0x176   : > { %v4278_v44 = vpop.f32.mrb[24].mxu1  ;;  %v4194_v32 = vpop.f32.mrb[27].mxu0 }
 0x177   : > { %v4279_v30 = vpop.f32.mrb[25].mxu1  ;;  %v5975_v49 = vadd.f32 %v4194_v32, %v4193_v11  ;;  %v3789_v11 = vcombine.low %v5942_v41, %v5945_v43 }
 0x178   : > { %v4280_v51 = vadd.f32 %v4279_v30, %v4278_v44  ;;  %v4281_v31 = vpop.f32.mrb[26].mxu1  ;;  %4635 = vmatmul.mubr.bf16.gmra.mrb[120].mxu0 %v5681_v39  ;;  %v1696_v39 = vsel %vm4920_vm5, %v1691_v42, %v1695_v26 }
 0x179   : > { %v4282_v14 = vpop.f32.mrb[27].mxu1  ;;  %4638 = vmatprep.mubr.bf16.mxu0 %v5708_v2  ;;  %v3790_v58 = vcombine.low %v1686_v10, %v1696_v39 }
 0x17a   : > { %v5979_v19 = vadd.f32 %v4280_v51, %v5890_v45  ;;  %v4283_v34 = vadd.f32 %v4282_v14, %v4281_v31 }
 0x17b   : > { %3119 = vmatmul.mubr.bf16.gmra.mrb[132].mxu1 %v5357_v1 }
 0x17c   : > { %v5983_v27 = vadd.f32 %v4283_v34, %v5892_v55  ;;  %3126 = vmatprep.mubr.bf16.mxu1 %v5829_v4 }
 0x17e   : > { %v4284_v56 = vpop.f32.mrb[28].mxu1 }
 0x17f   : > { %v4285_v45 = vpop.f32.mrb[29].mxu1 }
 0x180   : > { %v4286_v18 = vadd.f32 %v4285_v45, %v4284_v56  ;;  %v4287_v20 = vpop.f32.mrb[30].mxu1  ;;  %4639 = vmatmul.mubr.bf16.gmra.mrb[124].mxu0 %v5728_v52 }
 0x181   : > { %v4288_v35 = vpop.f32.mrb[31].mxu1  ;;  %4642 = vmatprep.mubr.bf16.mxu0 %v5750_v33 }
 0x182   : > { %v5993_v2 = vadd.f32 %v4286_v18, %v5902_v12  ;;  %v4289_v1 = vadd.f32 %v4288_v35, %v4287_v20  ;;  %v4196_v4 = vpop.f32.mrb[28].mxu0  ;;  %v3737_v18 = vrot.slane %v5942_v41, 9  ;;  %v1705_v35 = vrot.slane %v5964_v15, 5 }
 0x183   : > { %3127 = vmatmul.mubr.bf16.gmra.mrb[136].mxu1 %v5842_v54  ;;  %v4197_v37 = vpop.f32.mrb[29].mxu0 }
 0x184   : > { %v5997_v55 = vadd.f32 %v4289_v1, %v5905_v0  ;;  %3134 = vmatprep.mubr.bf16.mxu1 %v3790_v58  ;;  %v4198_v62 = vadd.f32 %v4197_v37, %v4196_v4  ;;  %v4199_v17 = vpop.f32.mrb[30].mxu0 }
 0x185   : > { %v4200_v44 = vpop.f32.mrb[31].mxu0 }
 0x186   : > { %v4290_v3 = vpop.f32.mrb[32].mxu1  ;;  %v4201_v52 = vadd.f32 %v4200_v44, %v4199_v17 }
 0x187   : > { %v4291_v48 = vpop.f32.mrb[33].mxu1 }
 0x188   : > { %v4292_v8 = vadd.f32 %v4291_v48, %v4290_v3  ;;  %v4293_v12 = vpop.f32.mrb[34].mxu1  ;;  %4643 = vmatmul.mubr.bf16.gmra.mrb[128].mxu0 %v5767_v50 }
 0x189   : > { %v4294_v33 = vpop.f32.mrb[35].mxu1  ;;  %4646 = vmatprep.mubr.bf16.mxu0 %v5789_v23 }
 0x18a   : > { %v6004_v0 = vadd.f32 %v4292_v8, %v5922_v53  ;;  %v4295_v54 = vadd.f32 %v4294_v33, %v4293_v12 }
 0x18b   : > { %v4202_v30 = vpop.f32.mrb[32].mxu0  ;;  %3135 = vmatmul.mubr.bf16.gmra.mrb[140].mxu1 %v3789_v11 }
 0x18c   : > { %v6008_v32 = vadd.f32 %v4295_v54, %v5924_v5  ;;  %v4203_v51 = vpop.f32.mrb[33].mxu0  ;;  %v1702_v5 = vrot.slane %v5945_v43, 5 }
 0x18d   : > { %v4204_v31 = vadd.f32 %v4203_v51, %v4202_v30  ;;  %v4205_v14 = vpop.f32.mrb[34].mxu0 }
 0x18e   : > { %v4296_v26 = vpop.f32.mrb[36].mxu1  ;;  %v4206_v34 = vpop.f32.mrb[35].mxu0  ;;  %v1704_v20 = vrot.slane %v1702_v5, 4  ;;  %v1703_v43 = vsel %vm4907_vm4, %v3737_v18, %v1702_v5 }
 0x18f   : > { %v4297_v60 = vpop.f32.mrb[37].mxu1  ;;  %v4207_v42 = vadd.f32 %v4206_v34, %v4205_v14 }
 0x190   : > { %v4298_v56 = vadd.f32 %v4297_v60, %v4296_v26  ;;  %v4299_v50 = vpop.f32.mrb[38].mxu1  ;;  %4647 = vmatmul.mubr.bf16.gmra.mrb[132].mxu0 %v5814_v36  ;;  %v1706_v41 = vsel %vm4907_vm4, %v1704_v20, %v1705_v35 }
 0x191   : > { %v4300_v10 = vpop.f32.mrb[39].mxu1  ;;  %4650 = vmatprep.mubr.bf16.mxu0 %v5836_v28  ;;  %v3791_v15 = vcombine.low %v1703_v43, %v1706_v41 }
 0x192   : > { %v6012_v53 = vadd.f32 %v4298_v56, %v5956_v63  ;;  %v4301_v23 = vadd.f32 %v4300_v10, %v4299_v50 }
 0x194   : > { %v6017_v39 = vadd.f32 %v4301_v23, %v5958_v13 }
 0x196   : > { %v4302_v45 = vpop.f32.mrb[40].mxu1 }
 0x197   : > { %v4303_v58 = vpop.f32.mrb[41].mxu1 }
 0x198   : > { %v4304_v1 = vadd.f32 %v4303_v58, %v4302_v45  ;;  %v4305_v36 = vpop.f32.mrb[42].mxu1  ;;  %4651 = vmatmul.mubr.bf16.gmra.mrb[136].mxu0 %v5854_v57 }
 0x199   : > { %v4306_v4 = vpop.f32.mrb[43].mxu1  ;;  %4654 = vmatprep.mubr.bf16.mxu0 %v5812_v25 }
 0x19a   : > { %v6023_v63 = vadd.f32 %v4304_v1, %v5973_v46  ;;  %v4307_v28 = vadd.f32 %v4306_v4, %v4305_v36 }
 0x19c   : > { %v6031_v13 = vadd.f32 %v4307_v28, %v5975_v49 }
 0x19d   : > { %v4208_v37 = vpop.f32.mrb[36].mxu0 }
 0x19e   : > { %v4209_v17 = vpop.f32.mrb[37].mxu0  ;;  %v4308_v3 = vpop.f32.mrb[44].mxu1 }
 0x19f   : > { %v4210_v57 = vadd.f32 %v4209_v17, %v4208_v37  ;;  %v4211_v44 = vpop.f32.mrb[38].mxu0  ;;  %v4309_v46 = vpop.f32.mrb[45].mxu1 }
 0x1a0   : > { %v4212_v48 = vpop.f32.mrb[39].mxu0  ;;  %v4310_v8 = vadd.f32 %v4309_v46, %v4308_v3  ;;  %v4311_v12 = vpop.f32.mrb[46].mxu1  ;;  %4655 = vmatmul.mubr.bf16.gmra.mrb[140].mxu0 %v3791_v15 }
 0x1a1   : > { %v4213_v25 = vadd.f32 %v4212_v48, %v4211_v44  ;;  %v4312_v11 = vpop.f32.mrb[47].mxu1 }
 0x1a2   : > { %v6033_v33 = vadd.f32 %v4310_v8, %v4198_v62  ;;  %v4313_v29 = vadd.f32 %v4312_v11, %v4311_v12 }
 0x1a4   : > { %v6035_v54 = vadd.f32 %v4313_v29, %v4201_v52 }
 0x1a5   : > { %v4214_v49 = vpop.f32.mrb[40].mxu0 }
 0x1a6   : > { %v4215_v30 = vpop.f32.mrb[41].mxu0  ;;  %v4314_v51 = vpop.f32.mrb[48].mxu1 }
 0x1a7   : > { %v4216_v14 = vadd.f32 %v4215_v30, %v4214_v49  ;;  %v4217_v26 = vpop.f32.mrb[42].mxu0  ;;  %v4315_v34 = vpop.f32.mrb[49].mxu1 }
 0x1a8   : > { %v4218_v60 = vpop.f32.mrb[43].mxu0  ;;  %v4316_v56 = vadd.f32 %v4315_v34, %v4314_v51  ;;  %v4317_v50 = vpop.f32.mrb[50].mxu1 }
 0x1a9   : > { %v4219_v10 = vadd.f32 %v4218_v60, %v4217_v26  ;;  %v4318_v23 = vpop.f32.mrb[51].mxu1 }
 0x1aa   : > { %v6037_v5 = vadd.f32 %v4316_v56, %v4204_v31  ;;  %v4319_v45 = vadd.f32 %v4318_v23, %v4317_v50 }
 0x1ac   : > { %v6039_v18 = vadd.f32 %v4319_v45, %v4207_v42 }
 0x1ae   : > { %v4320_v62 = vpop.f32.mrb[52].mxu1 }
 0x1af   : > { %v4321_v20 = vpop.f32.mrb[53].mxu1 }
 0x1b0   : > { %v4322_v52 = vadd.f32 %v4321_v20, %v4320_v62  ;;  %v4323_v35 = vpop.f32.mrb[54].mxu1 }
 0x1b1   : > { %v4324_v58 = vpop.f32.mrb[55].mxu1 }
 0x1b2   : > { %v6041_v1 = vadd.f32 %v4322_v52, %v4210_v57  ;;  %v4325_v36 = vadd.f32 %v4324_v58, %v4323_v35 }
 0x1b3   : > { %v4220_v4 = vpop.f32.mrb[44].mxu0 }
 0x1b4   : > { %v6043_v28 = vadd.f32 %v4325_v36, %v4213_v25  ;;  %v4221_v43 = vpop.f32.mrb[45].mxu0 }
 0x1b5   : > { %v4222_v41 = vadd.f32 %v4221_v43, %v4220_v4  ;;  %v4223_v15 = vpop.f32.mrb[46].mxu0 }
 0x1b6   : > { %v4326_v37 = vpop.f32.mrb[56].mxu1  ;;  %v4224_v31 = vpop.f32.mrb[47].mxu0 }
 0x1b7   : > { %v4327_v17 = vpop.f32.mrb[57].mxu1  ;;  %v4225_v3 = vadd.f32 %v4224_v31, %v4223_v15 }
 0x1b8   : > { %v4328_v42 = vadd.f32 %v4327_v17, %v4326_v37  ;;  %v4329_v44 = vpop.f32.mrb[58].mxu1 }
 0x1b9   : > { %v4330_v46 = vpop.f32.mrb[59].mxu1 }
 0x1ba   : > { %v6045_v48 = vadd.f32 %v4328_v42, %v4216_v14  ;;  %v4331_v8 = vadd.f32 %v4330_v46, %v4329_v44 }
 0x1bb   : > { %v4378_v12 = vpop.f32.mrb[48].mxu0 }
 0x1bc   : > { %v6047_v57 = vadd.f32 %v4331_v8, %v4219_v10  ;;  %v4379_v11 = vpop.f32.mrb[49].mxu0 }
 0x1bd   : > { %v4380_v29 = vadd.f32 %v4379_v11, %v4378_v12  ;;  %v4381_v25 = vpop.f32.mrb[50].mxu0 }
 0x1be   : > { %v4332_v49 = vpop.f32.mrb[60].mxu1  ;;  %v4382_v30 = vpop.f32.mrb[51].mxu0 }
 0x1bf   : > { %v4333_v51 = vpop.f32.mrb[61].mxu1  ;;  %v6050_v26 = vadd.f32 %v4380_v29, %v5940_v38  ;;  %v4383_v34 = vadd.f32 %v4382_v30, %v4381_v25 }
 0x1c0   : > { %v4334_v60 = vadd.f32 %v4333_v51, %v4332_v49  ;;  %v4335_v56 = vpop.f32.mrb[62].mxu1 }
 0x1c1   : > { %v4336_v50 = vpop.f32.mrb[63].mxu1  ;;  %v6053_v14 = vadd.f32 %v4383_v34, %v5948_v59 }
 0x1c2   : > { %v6055_v23 = vadd.f32 %v4334_v60, %v4222_v41  ;;  %v4337_v10 = vadd.f32 %v4336_v50, %v4335_v56 }
 0x1c3   : > { %v4384_v45 = vpop.f32.mrb[52].mxu0 }
 0x1c4   : > { %v6057_v62 = vadd.f32 %v4337_v10, %v4225_v3  ;;  %v4385_v20 = vpop.f32.mrb[53].mxu0 }
 0x1c5   : > { %v4386_v52 = vadd.f32 %v4385_v20, %v4384_v45  ;;  %v4387_v35 = vpop.f32.mrb[54].mxu0 }
 0x1c6   : > { %v4338_v58 = vpop.f32.mrb[64].mxu1  ;;  %v4388_v36 = vpop.f32.mrb[55].mxu0 }
 0x1c7   : > { %v4339_v38 = vpop.f32.mrb[65].mxu1  ;;  %v6060_v4 = vadd.f32 %v4386_v52, %v5962_v7  ;;  %v4389_v43 = vadd.f32 %v4388_v36, %v4387_v35 }
 0x1c8   : > { %v4340_v15 = vadd.f32 %v4339_v38, %v4338_v58  ;;  %v4341_v37 = vpop.f32.mrb[66].mxu1 }
 0x1c9   : > { %v4342_v59 = vpop.f32.mrb[67].mxu1  ;;  %v6063_v41 = vadd.f32 %v4389_v43, %v5968_v9 }
 0x1ca   : > { %v6066_v31 = vadd.f32 %v4340_v15, %v5876_v6  ;;  %v4343_v17 = vadd.f32 %v4342_v59, %v4341_v37 }
 0x1cb   : > { %v4390_v3 = vpop.f32.mrb[56].mxu0 }
 0x1cc   : > { %v6069_v42 = vadd.f32 %v4343_v17, %v5880_v40  ;;  %v4391_v44 = vpop.f32.mrb[57].mxu0 }
 0x1cd   : > { %v4392_v46 = vadd.f32 %v4391_v44, %v4390_v3  ;;  %v4393_v8 = vpop.f32.mrb[58].mxu0 }
 0x1ce   : > { %v4344_v7 = vpop.f32.mrb[68].mxu1  ;;  %v4394_v12 = vpop.f32.mrb[59].mxu0 }
 0x1cf   : > { %v4345_v11 = vpop.f32.mrb[69].mxu1  ;;  %v6072_v29 = vadd.f32 %v4392_v46, %v5979_v19  ;;  %v4395_v25 = vadd.f32 %v4394_v12, %v4393_v8 }
 0x1d0   : > { %v4346_v9 = vadd.f32 %v4345_v11, %v4344_v7  ;;  %v4347_v49 = vpop.f32.mrb[70].mxu1 }
 0x1d1   : > { %v4348_v30 = vpop.f32.mrb[71].mxu1  ;;  %v6075_v6 = vadd.f32 %v4395_v25, %v5983_v27 }
 0x1d2   : > { %v6078_v51 = vadd.f32 %v4346_v9, %v5894_v24  ;;  %v4349_v40 = vadd.f32 %v4348_v30, %v4347_v49 }
 0x1d3   : > { %v4396_v34 = vpop.f32.mrb[60].mxu0 }
 0x1d4   : > { %v6081_v60 = vadd.f32 %v4349_v40, %v5897_v22  ;;  %v4397_v56 = vpop.f32.mrb[61].mxu0 }
 0x1d5   : > { %v4398_v50 = vadd.f32 %v4397_v56, %v4396_v34  ;;  %v4399_v10 = vpop.f32.mrb[62].mxu0 }
 0x1d6   : > { %v4350_v19 = vpop.f32.mrb[72].mxu1  ;;  %v4400_v45 = vpop.f32.mrb[63].mxu0 }
 0x1d7   : > { %v4351_v20 = vpop.f32.mrb[73].mxu1  ;;  %v6084_v52 = vadd.f32 %v4398_v50, %v5993_v2  ;;  %v4401_v35 = vadd.f32 %v4400_v45, %v4399_v10 }
 0x1d8   : > { %v4352_v27 = vadd.f32 %v4351_v20, %v4350_v19  ;;  %v4353_v58 = vpop.f32.mrb[74].mxu1 }
 0x1d9   : > { %v4354_v36 = vpop.f32.mrb[75].mxu1  ;;  %v6087_v24 = vadd.f32 %v4401_v35, %v5997_v55 }
 0x1da   : > { %v6090_v38 = vadd.f32 %v4352_v27, %v5914_v47  ;;  %v4355_v22 = vadd.f32 %v4354_v36, %v4353_v58 }
 0x1db   : > { %v4402_v43 = vpop.f32.mrb[64].mxu0 }
 0x1dc   : > { %v6093_v15 = vadd.f32 %v4355_v22, %v5916_v16  ;;  %v4403_v37 = vpop.f32.mrb[65].mxu0 }
 0x1dd   : > { %v4404_v59 = vadd.f32 %v4403_v37, %v4402_v43  ;;  %v4405_v17 = vpop.f32.mrb[66].mxu0 }
 0x1de   : > { %v4356_v2 = vpop.f32.mrb[76].mxu1  ;;  %v4406_v3 = vpop.f32.mrb[67].mxu0 }
 0x1df   : > { %v4357_v44 = vpop.f32.mrb[77].mxu1  ;;  %v6096_v46 = vadd.f32 %v4404_v59, %v6004_v0  ;;  %v4407_v8 = vadd.f32 %v4406_v3, %v4405_v17 }
 0x1e0   : > { %v4358_v55 = vadd.f32 %v4357_v44, %v4356_v2  ;;  %v4359_v7 = vpop.f32.mrb[78].mxu1 }
 0x1e1   : > { %v4360_v12 = vpop.f32.mrb[79].mxu1  ;;  %v6099_v47 = vadd.f32 %v4407_v8, %v6008_v32 }
 0x1e2   : > { %v6102_v11 = vadd.f32 %v4358_v55, %v5930_v21  ;;  %v4361_v16 = vadd.f32 %v4360_v12, %v4359_v7 }
 0x1e3   : > { %v4408_v25 = vpop.f32.mrb[68].mxu0 }
 0x1e4   : > { %v6105_v9 = vadd.f32 %v4361_v16, %v5933_v61  ;;  %v4409_v49 = vpop.f32.mrb[69].mxu0 }
 0x1e5   : > { %v4410_v30 = vadd.f32 %v4409_v49, %v4408_v25  ;;  %v4411_v40 = vpop.f32.mrb[70].mxu0 }
 0x1e6   : > { %v4490_v0 = vpop.f32.mrb[80].mxu1  ;;  %v4412_v34 = vpop.f32.mrb[71].mxu0 }
 0x1e7   : > { %v4491_v56 = vpop.f32.mrb[81].mxu1  ;;  %v6108_v50 = vadd.f32 %v4410_v30, %v6012_v53  ;;  %v4413_v10 = vadd.f32 %v4412_v34, %v4411_v40 }
 0x1e8   : > { %v4492_v32 = vadd.f32 %v4491_v56, %v4490_v0  ;;  %v4493_v19 = vpop.f32.mrb[82].mxu1 }
 0x1e9   : > { %v4494_v45 = vpop.f32.mrb[83].mxu1  ;;  %v6111_v21 = vadd.f32 %v4413_v10, %v6017_v39 }
 0x1ea   : > { %v4495_v20 = vadd.f32 %v4494_v45, %v4493_v19  ;;  %v6114_v61 = vadd.f32 %v4492_v32, %v6050_v26 }
 0x1eb   : > { %v4414_v35 = vpop.f32.mrb[72].mxu0 }
 0x1ec   : > { %v6117_v27 = vadd.f32 %v4495_v20, %v6053_v14  ;;  %v4415_v58 = vpop.f32.mrb[73].mxu0 }
 0x1ed   : > { %v4416_v36 = vadd.f32 %v4415_v58, %v4414_v35  ;;  %v4417_v22 = vpop.f32.mrb[74].mxu0 }
 0x1ee   : > { %v4496_v53 = vpop.f32.mrb[84].mxu1  ;;  %v4418_v43 = vpop.f32.mrb[75].mxu0 }
 0x1ef   : > { %v4497_v37 = vpop.f32.mrb[85].mxu1  ;;  %v6120_v59 = vadd.f32 %v4416_v36, %v6023_v63  ;;  %v4419_v17 = vadd.f32 %v4418_v43, %v4417_v22 }
 0x1f0   : > { %v4498_v39 = vadd.f32 %v4497_v37, %v4496_v53  ;;  %v4499_v2 = vpop.f32.mrb[86].mxu1 }
 0x1f1   : > { %v4500_v3 = vpop.f32.mrb[87].mxu1  ;;  %v6123_v26 = vadd.f32 %v4419_v17, %v6031_v13 }
 0x1f2   : > { %v4501_v44 = vadd.f32 %v4500_v3, %v4499_v2  ;;  %v6126_v14 = vadd.f32 %v4498_v39, %v6060_v4 }
 0x1f3   : > { %v4420_v8 = vpop.f32.mrb[76].mxu0 }
 0x1f4   : > { %v6129_v55 = vadd.f32 %v4501_v44, %v6063_v41  ;;  %v4421_v7 = vpop.f32.mrb[77].mxu0 }
 0x1f5   : > { %v4422_v12 = vadd.f32 %v4421_v7, %v4420_v8  ;;  %v4423_v16 = vpop.f32.mrb[78].mxu0 }
 0x1f6   : > { %v4502_v63 = vpop.f32.mrb[88].mxu1  ;;  %v4424_v25 = vpop.f32.mrb[79].mxu0 }
 0x1f7   : > { %v4503_v49 = vpop.f32.mrb[89].mxu1  ;;  %v6132_v30 = vadd.f32 %v4422_v12, %v6033_v33  ;;  %v4425_v40 = vadd.f32 %v4424_v25, %v4423_v16 }
 0x1f8   : > { %v4504_v13 = vadd.f32 %v4503_v49, %v4502_v63  ;;  %v4505_v0 = vpop.f32.mrb[90].mxu1 }
 0x1f9   : > { %v4506_v34 = vpop.f32.mrb[91].mxu1  ;;  %v6135_v4 = vadd.f32 %v4425_v40, %v6035_v54 }
 0x1fa   : > { %v4507_v56 = vadd.f32 %v4506_v34, %v4505_v0  ;;  %v6138_v41 = vadd.f32 %v4504_v13, %v6072_v29 }
 0x1fb   : > { %v4426_v10 = vpop.f32.mrb[80].mxu0 }
 0x1fc   : > { %v6141_v32 = vadd.f32 %v4507_v56, %v6075_v6  ;;  %v4427_v19 = vpop.f32.mrb[81].mxu0 }
 0x1fd   : > { %v4428_v45 = vadd.f32 %v4427_v19, %v4426_v10  ;;  %v4429_v20 = vpop.f32.mrb[82].mxu0 }
 0x1fe   : > { %v4508_v33 = vpop.f32.mrb[92].mxu1  ;;  %v4430_v35 = vpop.f32.mrb[83].mxu0 }
 0x1ff   : > { %v4509_v58 = vpop.f32.mrb[93].mxu1  ;;  %v6144_v36 = vadd.f32 %v4428_v45, %v6037_v5  ;;  %v4431_v22 = vadd.f32 %v4430_v35, %v4429_v20 }
 0x200   : > { %v4510_v54 = vadd.f32 %v4509_v58, %v4508_v33  ;;  %v4511_v53 = vpop.f32.mrb[94].mxu1 }
 0x201   : > { %v4512_v43 = vpop.f32.mrb[95].mxu1  ;;  %v6147_v29 = vadd.f32 %v4431_v22, %v6039_v18 }
 0x202   : > { %v4513_v37 = vadd.f32 %v4512_v43, %v4511_v53  ;;  %v6150_v6 = vadd.f32 %v4510_v54, %v6084_v52 }
 0x203   : > { %v4432_v17 = vpop.f32.mrb[84].mxu0 }
 0x204   : > { %v6153_v39 = vadd.f32 %v4513_v37, %v6087_v24  ;;  %v4433_v2 = vpop.f32.mrb[85].mxu0 }
 0x205   : > { %v4434_v3 = vadd.f32 %v4433_v2, %v4432_v17  ;;  %v4435_v44 = vpop.f32.mrb[86].mxu0 }
 0x206   : > { %v4514_v5 = vpop.f32.mrb[96].mxu1  ;;  %v4436_v8 = vpop.f32.mrb[87].mxu0 }
 0x207   : > { %v4515_v7 = vpop.f32.mrb[97].mxu1  ;;  %v6156_v12 = vadd.f32 %v4434_v3, %v6041_v1  ;;  %v4437_v16 = vadd.f32 %v4436_v8, %v4435_v44 }
 0x208   : > { %v4516_v18 = vadd.f32 %v4515_v7, %v4514_v5  ;;  %v4517_v63 = vpop.f32.mrb[98].mxu1 }
 0x209   : > { %v4518_v25 = vpop.f32.mrb[99].mxu1  ;;  %v6159_v52 = vadd.f32 %v4437_v16, %v6043_v28 }
 0x20a   : > { %v4519_v49 = vadd.f32 %v4518_v25, %v4517_v63  ;;  %v6162_v24 = vadd.f32 %v4516_v18, %v6096_v46 }
 0x20b   : > { %v4438_v40 = vpop.f32.mrb[88].mxu0 }
 0x20c   : > { %v6165_v13 = vadd.f32 %v4519_v49, %v6099_v47  ;;  %v4439_v0 = vpop.f32.mrb[89].mxu0 }
 0x20d   : > { %v4440_v34 = vadd.f32 %v4439_v0, %v4438_v40  ;;  %v4441_v56 = vpop.f32.mrb[90].mxu0 }
 0x20e   : > { %v4520_v1 = vpop.f32.mrb[100].mxu1  ;;  %v4442_v10 = vpop.f32.mrb[91].mxu0 }
 0x20f   : > { %v4521_v19 = vpop.f32.mrb[101].mxu1  ;;  %v6168_v45 = vadd.f32 %v4440_v34, %v6045_v48  ;;  %v4443_v20 = vadd.f32 %v4442_v10, %v4441_v56 }
 0x210   : > { %v4522_v28 = vadd.f32 %v4521_v19, %v4520_v1  ;;  %v4523_v33 = vpop.f32.mrb[102].mxu1 }
 0x211   : > { %v4524_v35 = vpop.f32.mrb[103].mxu1  ;;  %v6171_v46 = vadd.f32 %v4443_v20, %v6047_v57 }
 0x212   : > { %v4525_v58 = vadd.f32 %v4524_v35, %v4523_v33  ;;  %v6174_v47 = vadd.f32 %v4522_v28, %v6108_v50 }
 0x213   : > { %v4444_v22 = vpop.f32.mrb[92].mxu0 }
 0x214   : > { %v6177_v54 = vadd.f32 %v4525_v58, %v6111_v21  ;;  %v4445_v53 = vpop.f32.mrb[93].mxu0 }
 0x215   : > { %v4446_v43 = vadd.f32 %v4445_v53, %v4444_v22  ;;  %v4447_v37 = vpop.f32.mrb[94].mxu0 }
 0x216   : > { %v4526_v48 = vpop.f32.mrb[104].mxu1  ;;  %v4448_v17 = vpop.f32.mrb[95].mxu0 }
 0x217   : > { %v4527_v2 = vpop.f32.mrb[105].mxu1  ;;  %v6180_v3 = vadd.f32 %v4446_v43, %v6055_v23  ;;  %v4449_v44 = vadd.f32 %v4448_v17, %v4447_v37 }
 0x218   : > { %v4528_v57 = vadd.f32 %v4527_v2, %v4526_v48  ;;  %v4529_v5 = vpop.f32.mrb[106].mxu1 }
 0x219   : > { %v4530_v8 = vpop.f32.mrb[107].mxu1  ;;  %v6183_v50 = vadd.f32 %v4449_v44, %v6057_v62 }
 0x21a   : > { %v4531_v7 = vadd.f32 %v4530_v8, %v4529_v5  ;;  %v6186_v21 = vadd.f32 %v4528_v57, %v6120_v59 }
 0x21b   : > { %v4450_v16 = vpop.f32.mrb[96].mxu0 }
 0x21c   : > { %v6189_v18 = vadd.f32 %v4531_v7, %v6123_v26  ;;  %v4451_v63 = vpop.f32.mrb[97].mxu0 }
 0x21d   : > { %v4452_v25 = vadd.f32 %v4451_v63, %v4450_v16  ;;  %v4453_v49 = vpop.f32.mrb[98].mxu0 }
 0x21e   : > { %v4532_v23 = vpop.f32.mrb[108].mxu1  ;;  %v4454_v40 = vpop.f32.mrb[99].mxu0 }
 0x21f   : > { %v4533_v0 = vpop.f32.mrb[109].mxu1  ;;  %v6192_v34 = vadd.f32 %v4452_v25, %v6066_v31  ;;  %v4455_v56 = vadd.f32 %v4454_v40, %v4453_v49 }
 0x220   : > { %v4534_v62 = vadd.f32 %v4533_v0, %v4532_v23  ;;  %v4535_v1 = vpop.f32.mrb[110].mxu1 }
 0x221   : > { %v4536_v10 = vpop.f32.mrb[111].mxu1  ;;  %v6195_v59 = vadd.f32 %v4455_v56, %v6069_v42 }
 0x222   : > { %v4537_v19 = vadd.f32 %v4536_v10, %v4535_v1  ;;  %v6198_v26 = vadd.f32 %v4534_v62, %v6132_v30 }
 0x223   : > { %v4456_v20 = vpop.f32.mrb[100].mxu0 }
 0x224   : > { %v6201_v28 = vadd.f32 %v4537_v19, %v6135_v4  ;;  %v4457_v33 = vpop.f32.mrb[101].mxu0 }
 0x225   : > { %v4458_v35 = vadd.f32 %v4457_v33, %v4456_v20  ;;  %v4459_v58 = vpop.f32.mrb[102].mxu0 }
 0x226   : > { %v4538_v31 = vpop.f32.mrb[112].mxu1  ;;  %v4460_v22 = vpop.f32.mrb[103].mxu0 }
 0x227   : > { %v4539_v53 = vpop.f32.mrb[113].mxu1  ;;  %v6204_v43 = vadd.f32 %v4458_v35, %v6078_v51  ;;  %v4461_v37 = vadd.f32 %v4460_v22, %v4459_v58 }
 0x228   : > { %v4540_v42 = vadd.f32 %v4539_v53, %v4538_v31  ;;  %v4541_v48 = vpop.f32.mrb[114].mxu1 }
 0x229   : > { %v4542_v17 = vpop.f32.mrb[115].mxu1  ;;  %v6207_v30 = vadd.f32 %v4461_v37, %v6081_v60 }
 0x22a   : > { %v4543_v2 = vadd.f32 %v4542_v17, %v4541_v48  ;;  %v6210_v4 = vadd.f32 %v4540_v42, %v6144_v36 }
 0x22b   : > { %v4462_v44 = vpop.f32.mrb[104].mxu0 }
 0x22c   : > { %v6213_v57 = vadd.f32 %v4543_v2, %v6147_v29  ;;  %v4463_v5 = vpop.f32.mrb[105].mxu0 }
 0x22d   : > { %v4464_v8 = vadd.f32 %v4463_v5, %v4462_v44  ;;  %v4465_v7 = vpop.f32.mrb[106].mxu0 }
 0x22e   : > { %v4544_v51 = vpop.f32.mrb[116].mxu1  ;;  %v4466_v16 = vpop.f32.mrb[107].mxu0 }
 0x22f   : > { %v4545_v63 = vpop.f32.mrb[117].mxu1  ;;  %v6216_v25 = vadd.f32 %v4464_v8, %v6090_v38  ;;  %v4467_v49 = vadd.f32 %v4466_v16, %v4465_v7 }
 0x230   : > { %v4546_v60 = vadd.f32 %v4545_v63, %v4544_v51  ;;  %v4547_v23 = vpop.f32.mrb[118].mxu1 }
 0x231   : > { %v4548_v40 = vpop.f32.mrb[119].mxu1  ;;  %v6219_v36 = vadd.f32 %v4467_v49, %v6093_v15 }
 0x232   : > { %v4549_v0 = vadd.f32 %v4548_v40, %v4547_v23  ;;  %v6222_v29 = vadd.f32 %v4546_v60, %v6156_v12 }
 0x233   : > { %v4468_v56 = vpop.f32.mrb[108].mxu0 }
 0x234   : > { %v6225_v62 = vadd.f32 %v4549_v0, %v6159_v52  ;;  %v4469_v1 = vpop.f32.mrb[109].mxu0 }
 0x235   : > { %v4470_v10 = vadd.f32 %v4469_v1, %v4468_v56  ;;  %v4471_v19 = vpop.f32.mrb[110].mxu0 }
 0x236   : > { %v4550_v38 = vpop.f32.mrb[120].mxu1  ;;  %v4472_v20 = vpop.f32.mrb[111].mxu0 }
 0x237   : > { %v4551_v33 = vpop.f32.mrb[121].mxu1  ;;  %v6228_v35 = vadd.f32 %v4470_v10, %v6102_v11  ;;  %v4473_v58 = vadd.f32 %v4472_v20, %v4471_v19 }
 0x238   : > { %v4552_v15 = vadd.f32 %v4551_v33, %v4550_v38  ;;  %v4553_v31 = vpop.f32.mrb[122].mxu1 }
 0x239   : > { %v4554_v22 = vpop.f32.mrb[123].mxu1  ;;  %v6231_v12 = vadd.f32 %v4473_v58, %v6105_v9 }
 0x23a   : > { %v4555_v53 = vadd.f32 %v4554_v22, %v4553_v31  ;;  %v6234_v52 = vadd.f32 %v4552_v15, %v6168_v45 }
 0x23b   : > { %v4628_v37 = vpop.f32.mrb[112].mxu0 }
 0x23c   : > { %v6237_v42 = vadd.f32 %v4555_v53, %v6171_v46  ;;  %v3186_v48 = vadd.f32 %v4628_v37, %v6126_v14  ;;  %v3177_v11 = vpop.f32.mrb[113].mxu0 }
 0x23d   : > { %v3178_v17 = vadd.f32 %v3177_v11, %v6114_v61  ;;  %v4629_v2 = vpop.f32.mrb[114].mxu0 }
 0x23e   : > { %v4556_v44 = vpop.f32.mrb[124].mxu1  ;;  %v3189_v5 = vadd.f32 %v4629_v2, %v6129_v55  ;;  %v3180_v8 = vpop.f32.mrb[115].mxu0  ;;  %v3504_v23 = vmul.f32 %v3186_v48, %v3186_v48 }
 0x23f   : > { %v4557_v9 = vpop.f32.mrb[125].mxu1  ;;  %v3181_v45 = vadd.f32 %v3180_v8, %v6117_v27  ;;  %v3502_v7 = vmul.f32 %v3178_v17, %v3178_v17 }
 0x240   : > { %v4558_v14 = vadd.f32 %v4557_v9, %v4556_v44  ;;  %v4559_v46 = vpop.f32.mrb[126].mxu1  ;;  %v4036_v61 = vpack.c.bf16 %v3189_v5, %v3186_v48  ;;  %v3505_v19 = vmul.f32 %v3189_v5, %v3189_v5 }
 0x241   : > { %v4560_v51 = vpop.f32.mrb[127].mxu1  ;;  %v4031_v16 = vpack.c.bf16 %v3181_v45, %v3178_v17  ;;  %v3464_v63 = vadd.f32 %v3181_v45, %v3178_v17  ;;  %v3503_v55 = vmul.f32 %v3181_v45, %v3181_v45 }
 0x242   : > { %v4561_v49 = vadd.f32 %v4560_v51, %v4559_v46  ;;  %4123 = vst [vmem:[%s6247_s20 + $0x8] sm:$0xff] %v4036_v61   ;;  %v6252_v60 = vadd.f32 %v4558_v14, %v6180_v3 }
 0x243   : > { %4032 = vst [vmem:[%s6247_s20] sm:$0xff] %v4031_v16   ;;  %v3465_v40 = vadd.f32 %v3464_v63, %v3186_v48  ;;  %v3534_v0 = vadd.f32 %v3503_v55, %v3502_v7  ;;  %v4632_v56 = vpop.f32.mrb[116].mxu0 }
 0x244   : > { %v6256_v27 = vadd.f32 %v4561_v49, %v6183_v50  ;;  %v3202_v1 = vadd.f32 %v4632_v56, %v6150_v6  ;;  %v3193_v10 = vpop.f32.mrb[117].mxu0 }
 0x245   : > { %v3535_v38 = vadd.f32 %v3534_v0, %v3504_v23  ;;  %v3194_v20 = vadd.f32 %v3193_v10, %v6138_v41  ;;  %v3466_v33 = vadd.f32 %v3465_v40, %v3189_v5  ;;  %v4633_v58 = vpop.f32.mrb[118].mxu0 }
 0x246   : > { %v4562_v15 = vpop.f32.mrb[128].mxu1  ;;  %v3205_v3 = vadd.f32 %v4633_v58, %v6153_v39  ;;  %v3196_v31 = vpop.f32.mrb[119].mxu0  ;;  %v3508_v45 = vmul.f32 %v3202_v1, %v3202_v1 }
 0x247   : > { %v4563_v22 = vpop.f32.mrb[129].mxu1  ;;  %v3467_v53 = vadd.f32 %v3466_v33, %v3194_v20  ;;  %v3506_v37 = vmul.f32 %v3194_v20, %v3194_v20  ;;  %v3536_v50 = vadd.f32 %v3535_v38, %v3505_v19  ;;  %v3197_v48 = vadd.f32 %v3196_v31, %v6141_v32 }
 0x248   : > { %v4565_v6 = vpop.f32.mrb[130].mxu1  ;;  %v4046_v11 = vpack.c.bf16 %v3205_v3, %v3202_v1  ;;  %v4564_v17 = vadd.f32 %v4563_v22, %v4562_v15  ;;  %v3509_v16 = vmul.f32 %v3205_v3, %v3205_v3 }
 0x249   : > { %v4566_v2 = vpop.f32.mrb[131].mxu1  ;;  %v3537_v44 = vadd.f32 %v3536_v50, %v3506_v37  ;;  %v4041_v41 = vpack.c.bf16 %v3197_v48, %v3194_v20  ;;  %v3468_v5 = vadd.f32 %v3467_v53, %v3197_v48  ;;  %v3507_v8 = vmul.f32 %v3197_v48, %v3197_v48 }
 0x24a   : > { %4125 = vst [vmem:[%s6247_s20 + $0x18] sm:$0xff] %v4046_v11   ;;  %v4567_v9 = vadd.f32 %v4566_v2, %v4565_v6  ;;  %v6264_v39 = vadd.f32 %v4564_v17, %v6192_v34 }
 0x24b   : > { %4124 = vst [vmem:[%s6247_s20 + $0x10] sm:$0xff] %v4041_v41   ;;  %v3469_v14 = vadd.f32 %v3468_v5, %v3202_v1  ;;  %v3538_v46 = vadd.f32 %v3537_v44, %v3507_v8  ;;  %v4636_v7 = vpop.f32.mrb[120].mxu0 }
 0x24c   : > { %v3218_v32 = vadd.f32 %v4636_v7, %v6174_v47  ;;  %v3209_v61 = vpop.f32.mrb[121].mxu0  ;;  %v6269_v51 = vadd.f32 %v4567_v9, %v6195_v59 }
 0x24d   : > { %v3539_v63 = vadd.f32 %v3538_v46, %v3508_v45  ;;  %v3210_v55 = vadd.f32 %v3209_v61, %v6162_v24  ;;  %v3470_v49 = vadd.f32 %v3469_v14, %v3205_v3  ;;  %v4637_v23 = vpop.f32.mrb[122].mxu0 }
 0x24e   : > { %v4568_v40 = vpop.f32.mrb[132].mxu1  ;;  %v3221_v34 = vadd.f32 %v4637_v23, %v6177_v54  ;;  %v3212_v0 = vpop.f32.mrb[123].mxu0  ;;  %v3512_v22 = vmul.f32 %v3218_v32, %v3218_v32 }
 0x24f   : > { %v4569_v56 = vpop.f32.mrb[133].mxu1  ;;  %v3471_v1 = vadd.f32 %v3470_v49, %v3210_v55  ;;  %v3510_v10 = vmul.f32 %v3210_v55, %v3210_v55  ;;  %v3540_v47 = vadd.f32 %v3539_v63, %v3509_v16  ;;  %v3213_v19 = vadd.f32 %v3212_v0, %v6165_v13 }
 0x250   : > { %v4571_v59 = vpop.f32.mrb[134].mxu1  ;;  %v4056_v38 = vpack.c.bf16 %v3221_v34, %v3218_v32  ;;  %v4570_v20 = vadd.f32 %v4569_v56, %v4568_v40  ;;  %v3513_v11 = vmul.f32 %v3221_v34, %v3221_v34 }
 0x251   : > { %v4572_v33 = vpop.f32.mrb[135].mxu1  ;;  %v3541_v58 = vadd.f32 %v3540_v47, %v3510_v10  ;;  %v4051_v24 = vpack.c.bf16 %v3213_v19, %v3210_v55  ;;  %v3472_v15 = vadd.f32 %v3471_v1, %v3213_v19  ;;  %v3511_v3 = vmul.f32 %v3213_v19, %v3213_v19 }
 0x252   : > { %4127 = vst [vmem:[%s6247_s20 + $0x28] sm:$0xff] %v4056_v38   ;;  %v6276_v31 = vadd.f32 %v4570_v20, %v6204_v43  ;;  %v4573_v54 = vadd.f32 %v4572_v33, %v4571_v59 }
 0x253   : > { %4126 = vst [vmem:[%s6247_s20 + $0x20] sm:$0xff] %v4051_v24   ;;  %v3473_v53 = vadd.f32 %v3472_v15, %v3218_v32  ;;  %v3542_v37 = vadd.f32 %v3541_v58, %v3511_v3  ;;  %v4640_v50 = vpop.f32.mrb[124].mxu0 }
 0x254   : > { %v3234_v13 = vadd.f32 %v4640_v50, %v6198_v26  ;;  %v3225_v48 = vpop.f32.mrb[125].mxu0  ;;  %v6281_v6 = vadd.f32 %v4573_v54, %v6207_v30 }
 0x255   : > { %v3543_v17 = vadd.f32 %v3542_v37, %v3512_v22  ;;  %v3226_v2 = vadd.f32 %v3225_v48, %v6186_v21  ;;  %v3474_v44 = vadd.f32 %v3473_v53, %v3221_v34  ;;  %v4641_v41 = vpop.f32.mrb[126].mxu0 }
 0x256   : > { %v4574_v43 = vpop.f32.mrb[136].mxu1  ;;  %v3237_v5 = vadd.f32 %v4641_v41, %v6201_v28  ;;  %v3228_v8 = vpop.f32.mrb[127].mxu0  ;;  %v3516_v23 = vmul.f32 %v3234_v13, %v3234_v13 }
 0x257   : > { %v4575_v9 = vpop.f32.mrb[137].mxu1  ;;  %v3475_v45 = vadd.f32 %v3474_v44, %v3226_v2  ;;  %v3514_v14 = vmul.f32 %v3226_v2, %v3226_v2  ;;  %v3544_v26 = vadd.f32 %v3543_v17, %v3513_v11  ;;  %v3229_v46 = vadd.f32 %v3228_v8, %v6189_v18 }
 0x258   : > { %v4577_v30 = vpop.f32.mrb[138].mxu1  ;;  %v4066_v7 = vpack.c.bf16 %v3237_v5, %v3234_v13  ;;  %v4576_v32 = vadd.f32 %v4575_v9, %v4574_v43  ;;  %v3517_v10 = vmul.f32 %v3237_v5, %v3237_v5 }
 0x259   : > { %v4578_v61 = vpop.f32.mrb[139].mxu1  ;;  %v3545_v16 = vadd.f32 %v3544_v26, %v3514_v14  ;;  %v4061_v21 = vpack.c.bf16 %v3229_v46, %v3226_v2  ;;  %v3476_v63 = vadd.f32 %v3475_v45, %v3229_v46  ;;  %v3515_v55 = vmul.f32 %v3229_v46, %v3229_v46 }
 0x25a   : > { %4129 = vst [vmem:[%s6247_s20 + $0x38] sm:$0xff] %v4066_v7   ;;  %v4579_v49 = vadd.f32 %v4578_v61, %v4577_v30  ;;  %v6288_v28 = vadd.f32 %v4576_v32, %v6216_v25 }
 0x25b   : > { %4128 = vst [vmem:[%s6247_s20 + $0x30] sm:$0xff] %v4061_v21   ;;  %v3477_v40 = vadd.f32 %v3476_v63, %v3234_v13  ;;  %v3546_v34 = vadd.f32 %v3545_v16, %v3515_v55  ;;  %v4644_v0 = vpop.f32.mrb[128].mxu0 }
 0x25c   : > { %v3250_v18 = vadd.f32 %v4644_v0, %v6222_v29  ;;  %v3241_v56 = vpop.f32.mrb[129].mxu0  ;;  %v6293_v1 = vadd.f32 %v4579_v49, %v6219_v36 }
 0x25d   : > { %v3547_v47 = vadd.f32 %v3546_v34, %v3516_v23  ;;  %v3242_v19 = vadd.f32 %v3241_v56, %v6210_v4  ;;  %v3478_v59 = vadd.f32 %v3477_v40, %v3237_v5  ;;  %v4645_v38 = vpop.f32.mrb[130].mxu0 }
 0x25e   : > { %v4580_v20 = vpop.f32.mrb[140].mxu1  ;;  %v3253_v25 = vadd.f32 %v4645_v38, %v6225_v62  ;;  %v3244_v33 = vpop.f32.mrb[131].mxu0  ;;  %v3520_v11 = vmul.f32 %v3250_v18, %v3250_v18 }
 0x25f   : > { %v4581_v58 = vpop.f32.mrb[141].mxu1  ;;  %v3479_v24 = vadd.f32 %v3478_v59, %v3242_v19  ;;  %v3518_v15 = vmul.f32 %v3242_v19, %v3242_v19  ;;  %v3548_v29 = vadd.f32 %v3547_v47, %v3517_v10  ;;  %v3245_v3 = vadd.f32 %v3244_v33, %v6213_v57 }
 0x260   : > { %v4583_v36 = vpop.f32.mrb[142].mxu1  ;;  %v4076_v54 = vpack.c.bf16 %v3253_v25, %v3250_v18  ;;  %v4582_v22 = vadd.f32 %v4581_v58, %v4580_v20  ;;  %v3521_v5 = vmul.f32 %v3253_v25, %v3253_v25 }
 0x261   : > { %v4584_v53 = vpop.f32.mrb[143].mxu1  ;;  %v3549_v37 = vadd.f32 %v3548_v29, %v3518_v15  ;;  %v4071_v4 = vpack.c.bf16 %v3245_v3, %v3242_v19  ;;  %v3480_v50 = vadd.f32 %v3479_v24, %v3245_v3  ;;  %v3519_v13 = vmul.f32 %v3245_v3, %v3245_v3 }
 0x262   : > { %4131 = vst [vmem:[%s6247_s20 + $0x48] sm:$0xff] %v4076_v54   ;;  %v3137_v48 = vadd.f32 %v4582_v22, %v6228_v35  ;;  %v4585_v62 = vadd.f32 %v4584_v53, %v4583_v36 }
 0x263   : > { %4130 = vst [vmem:[%s6247_s20 + $0x40] sm:$0xff] %v4071_v4   ;;  %v3481_v17 = vadd.f32 %v3480_v50, %v3250_v18  ;;  %v3550_v2 = vadd.f32 %v3549_v37, %v3519_v13  ;;  %v4648_v44 = vpop.f32.mrb[132].mxu0 }
 0x264   : > { %v3266_v41 = vadd.f32 %v4648_v44, %v6252_v60  ;;  %v3257_v57 = vpop.f32.mrb[133].mxu0  ;;  %v3140_v43 = vadd.f32 %v4585_v62, %v6231_v12 }
 0x265   : > { %v3551_v8 = vadd.f32 %v3550_v2, %v3520_v11  ;;  %v3258_v9 = vadd.f32 %v3257_v57, %v6234_v52  ;;  %v3482_v45 = vadd.f32 %v3481_v17, %v3253_v25  ;;  %v4649_v14 = vpop.f32.mrb[134].mxu0 }
 0x266   : > { %v3269_v35 = vadd.f32 %v4649_v14, %v6256_v27  ;;  %v3260_v26 = vpop.f32.mrb[135].mxu0  ;;  %v3524_v63 = vmul.f32 %v3266_v41, %v3266_v41 }
 0x267   : > { %v3483_v46 = vadd.f32 %v3482_v45, %v3258_v9  ;;  %v3522_v30 = vmul.f32 %v3258_v9, %v3258_v9  ;;  %v3552_v7 = vadd.f32 %v3551_v8, %v3521_v5  ;;  %v3261_v32 = vadd.f32 %v3260_v26, %v6237_v42 }
 0x268   : > { %v4086_v60 = vpack.c.bf16 %v3269_v35, %v3266_v41  ;;  %v3525_v40 = vmul.f32 %v3269_v35, %v3269_v35 }
 0x269   : > { %v3553_v61 = vadd.f32 %v3552_v7, %v3522_v30  ;;  %v4081_v16 = vpack.c.bf16 %v3261_v32, %v3258_v9  ;;  %v3484_v12 = vadd.f32 %v3483_v46, %v3261_v32  ;;  %v3523_v21 = vmul.f32 %v3261_v32, %v3261_v32 }
 0x26a   : > { %4133 = vst [vmem:[%s6247_s20 + $0x58] sm:$0xff] %v4086_v60  }
 0x26b   : > { %4132 = vst [vmem:[%s6247_s20 + $0x50] sm:$0xff] %v4081_v16   ;;  %v3485_v52 = vadd.f32 %v3484_v12, %v3266_v41  ;;  %v3554_v55 = vadd.f32 %v3553_v61, %v3523_v21  ;;  %v4652_v49 = vpop.f32.mrb[136].mxu0 }
 0x26c   : > { %v3282_v23 = vadd.f32 %v4652_v49, %v6276_v31  ;;  %v3273_v27 = vpop.f32.mrb[137].mxu0 }
 0x26d   : > { %v3555_v34 = vadd.f32 %v3554_v55, %v3524_v63  ;;  %v3274_v0 = vadd.f32 %v3273_v27, %v6264_v39  ;;  %v3486_v42 = vadd.f32 %v3485_v52, %v3269_v35  ;;  %v4653_v18 = vpop.f32.mrb[138].mxu0 }
 0x26e   : > { %v3285_v56 = vadd.f32 %v4653_v18, %v6281_v6  ;;  %v3276_v10 = vpop.f32.mrb[139].mxu0  ;;  %v3528_v20 = vmul.f32 %v3282_v23, %v3282_v23 }
 0x26f   : > { %v3487_v47 = vadd.f32 %v3486_v42, %v3274_v0  ;;  %v3526_v19 = vmul.f32 %v3274_v0, %v3274_v0  ;;  %v3556_v59 = vadd.f32 %v3555_v34, %v3525_v40  ;;  %v3277_v38 = vadd.f32 %v3276_v10, %v6269_v51 }
 0x270   : > { %v4096_v25 = vpack.c.bf16 %v3285_v56, %v3282_v23  ;;  %v3529_v15 = vmul.f32 %v3285_v56, %v3285_v56 }
 0x271   : > { %v3557_v31 = vadd.f32 %v3556_v59, %v3526_v19  ;;  %v4091_v33 = vpack.c.bf16 %v3277_v38, %v3274_v0  ;;  %v3488_v58 = vadd.f32 %v3487_v47, %v3277_v38  ;;  %v3527_v24 = vmul.f32 %v3277_v38, %v3277_v38 }
 0x272   : > { %4135 = vst [vmem:[%s6247_s20 + $0x68] sm:$0xff] %v4096_v25  }
 0x273   : > { %4134 = vst [vmem:[%s6247_s20 + $0x60] sm:$0xff] %v4091_v33   ;;  %v3489_v39 = vadd.f32 %v3488_v58, %v3282_v23  ;;  %v3558_v29 = vadd.f32 %v3557_v31, %v3527_v24  ;;  %v4656_v3 = vpop.f32.mrb[140].mxu0 }
 0x274   : > { %v3289_v36 = vpop.f32.mrb[141].mxu0  ;;  %v3298_v6 = vadd.f32 %v4656_v3, %v3137_v48 }
 0x275   : > { %v3559_v54 = vadd.f32 %v3558_v29, %v3528_v20  ;;  %v3290_v22 = vadd.f32 %v3289_v36, %v6288_v28  ;;  %v3490_v51 = vadd.f32 %v3489_v39, %v3285_v56  ;;  %v4657_v53 = vpop.f32.mrb[142].mxu0 }
 0x276   : > { %v3292_v37 = vpop.f32.mrb[143].mxu0  ;;  %v3301_v4 = vadd.f32 %v4657_v53, %v3140_v43  ;;  %v3532_v17 = vmul.f32 %v3298_v6, %v3298_v6 }
 0x277   : > { %v3491_v50 = vadd.f32 %v3490_v51, %v3290_v22  ;;  %v3530_v13 = vmul.f32 %v3290_v22, %v3290_v22  ;;  %v3560_v62 = vadd.f32 %v3559_v54, %v3529_v15  ;;  %v3293_v11 = vadd.f32 %v3292_v37, %v6293_v1 }
 0x278   : > { %v4106_v2 = vpack.c.bf16 %v3301_v4, %v3298_v6  ;;  %v3533_v8 = vmul.f32 %v3301_v4, %v3301_v4 }
 0x279   : > { %v3561_v44 = vadd.f32 %v3560_v62, %v3530_v13  ;;  %v4101_v41 = vpack.c.bf16 %v3293_v11, %v3290_v22  ;;  %v3492_v57 = vadd.f32 %v3491_v50, %v3293_v11  ;;  %v3531_v48 = vmul.f32 %v3293_v11, %v3293_v11 }
 0x27a   : > { %4137 = vst [vmem:[%s6247_s20 + $0x78] sm:$0xff] %v4106_v2  }
 0x27b   : > { %4136 = vst [vmem:[%s6247_s20 + $0x70] sm:$0xff] %v4101_v41   ;;  %v3562_v28 = vadd.f32 %v3561_v44, %v3531_v48  ;;  %v3493_v5 = vadd.f32 %v3492_v57, %v3298_v6 }
 0x27d   : > { %v3563_v9 = vadd.f32 %v3562_v28, %v3532_v17  ;;  %v3494_v43 = vadd.f32 %v3493_v5, %v3301_v4 }
 0x27f   : > { %v3495_v45 = vrot.slane %v3494_v43, 4  ;;  %v3564_v14 = vadd.f32 %v3563_v9, %v3533_v8 }
 0x281   : > { %v3496_v35 = vadd.f32 %v3495_v45, %v3494_v43  ;;  %v3565_v26 = vrot.slane %v3564_v14, 4 }
 0x283   : > { %v3497_v1 = vrot.slane %v3496_v35, 2  ;;  %v3566_v46 = vadd.f32 %v3565_v26, %v3564_v14 }
 0x285   : > { %v3498_v30 = vadd.f32 %v3497_v1, %v3496_v35  ;;  %v3567_v7 = vrot.slane %v3566_v46, 2 }
 0x287   : > { %v3499_v32 = vrot.slane %v3498_v30, 1  ;;  %v3568_v60 = vadd.f32 %v3567_v7, %v3566_v46 }
 0x289   : > { %v3500_v61 = vadd.f32 %v3499_v32, %v3498_v30  ;;  %v3569_v16 = vrot.slane %v3568_v60, 1 }
 0x28b   : > { %3501 = vst [vmem:[%s265_s24] sm:$0x1] %v3500_v61  ;;  %v3570_v12 = vadd.f32 %v3569_v16, %v3568_v60 }
 0x28d   : > { %3571 = vst [vmem:[%s268_s28] sm:$0x1] %v3570_v12 }
 0x28e PF: > { %s17_s21 = sadd.s32 1, %s4796_s21  }
 0x28f   : > { %p14_p4 = scmp.ge.s32.totalorder %s17_s21, 4  }
 0x291   :  { %16 = sbr.rel (!%p14_p4) target bundleno = 1 (0x1), region = 91 }

</bundles_post_ra>
